<compile_context>
chip_gen: v6e
topology: v6e:2x2x1
jax: 0.10.0
libtpu: 0.0.40
codegen_flags: <defaults>
</compile_context>

<pallas_src>
import functools

import jax
import jax.numpy as jnp
import numpy as np
from jax import lax
from jax.experimental import pallas as pl
from jax.experimental.pallas import tpu as pltpu

KH = KW = 4
STRIDE = 2
PAD = 1
EPS = 1e-5


def _round_up(x, m):
    return (x + m - 1) // m * m


def _vmem_limit_bytes():
    """Generation-aware scoped-VMEM limit (v5e/v6e: 128 MiB, v7x: 64 MiB)."""
    try:
        cap = int(pltpu.get_tpu_info().vmem_capacity_bytes)
    except Exception:
        cap = 64 * 1024 * 1024          # conservative fallback (v7x per-core VMEM)
    return max(min(cap - 16 * 1024 * 1024, 112 * 1024 * 1024), 32 * 1024 * 1024)


def _pick_batch_tile(N, Sp, Mp, cin_pad, C4, budget_bytes):
    """Largest divisor of N whose per-step VMEM footprint (double-buffered bf16
    input/output blocks + bf16 im2col scratch + weights) fits the budget."""
    w_bytes = 2 * (9 * cin_pad * C4 * 2)                  # weight block, x2 bufs
    for bt in range(N, 0, -1):
        if N % bt:
            continue
        est = (2 * (bt * Sp * cin_pad * 2)                # x block (bf16), x2 bufs
               + 2 * (bt * Mp * C4 * 2)                   # y block (bf16), x2 bufs
               + bt * Mp * 9 * cin_pad * 2                # im2col scratch (bf16)
               + 2 * (2 * C4 * 4)                         # stats block (f32), x2 bufs
               + w_bytes)
        if est <= budget_bytes:
            return bt
    return 1
    # TODO(synk): for very large H the bt=1 tile may still exceed VMEM; a row-tile
    # grid axis with halo'd input blocks would be needed there.


# ---------------------------------------------------------------------------
# kernels
# ---------------------------------------------------------------------------
def _convt_core(x_ref, w_ref, patch_ref, *, H, W, bt):
    """im2col (9 contiguous sublane-window copies per image, lane-aligned
    because Cin is padded to a multiple of 128) + ONE deep-K bf16 MXU matmul
    producing all 4 output-pixel parities at once (f32 accumulation)."""
    Wp = W + 2
    Mp = H * Wp
    Cp = x_ref.shape[-1]                                  # Cin padded to 128k
    for b in range(bt):
        for dy in range(3):
            for dx in range(3):
                t = dy * 3 + dx
                off = dy * Wp + dx                        # static sublane offset
                patch_ref[b * Mp:(b + 1) * Mp, t * Cp:(t + 1) * Cp] = (
                    x_ref[b, off:off + Mp, :])
    return jnp.dot(patch_ref[...], w_ref[...], preferred_element_type=jnp.float32)


def _convt_relu_kernel(x_ref, w_ref, y_ref, patch_ref, *, H, W, bt):
    # batch_norm=False path: ReLU fused straight into the conv kernel.
    acc = _convt_core(x_ref, w_ref, patch_ref, H=H, W=W, bt=bt)
    y_ref[...] = jnp.maximum(acc, 0.0).reshape(y_ref.shape).astype(y_ref.dtype)


def _convt_bnstats_kernel(x_ref, w_ref, y_ref, stats_ref, patch_ref, *, H, W, bt):
    acc = _convt_core(x_ref, w_ref, patch_ref, H=H, W=W, bt=bt)   # (bt*Mp, C4) f32
    y_ref[...] = acc.reshape(y_ref.shape).astype(y_ref.dtype)     # bf16 pre-BN acts
    # Per-tile partial BN statistics (sum, sum-of-squares) from the f32
    # accumulator.  The iota mask drops the 2 junk columns per image row that
    # exist only so every im2col tap stays a contiguous sublane window.
    Wp = W + 2
    rows = acc.shape[0]
    valid = lax.broadcasted_iota(jnp.int32, (rows, 1), 0) % Wp < W
    masked = jnp.where(valid, acc, 0.0)
    stats_ref[0:1, :] = jnp.sum(masked, axis=0, keepdims=True)
    stats_ref[1:2, :] = jnp.sum(masked * acc, axis=0, keepdims=True)


# ---------------------------------------------------------------------------
# wrapper
# ---------------------------------------------------------------------------
def _polyphase_weight(weight_pt, cin_pad, cout_pad, mxu_dtype):
    """ConvTranspose2d weight (Cin, Cout, 4, 4) -> (9*cin_pad, 4*cout_pad).

    Row (dy*3+dx)*cin_pad + ci  <-> padded-input tap (dy, dx), channel ci.
    Col (ph*2+pw)*cout_pad + co <-> output parity (ph, pw), channel co.
    Entry = W[ci, co, kh, kw] with kh = 3+ph-2*dy, kw = 3+pw-2*dx when valid
    (each phase uses a 2x2 subset of the 3x3 window); zero otherwise."""
    Cin, Cout = weight_pt.shape[0], weight_pt.shape[1]
    wmat = jnp.zeros((9 * cin_pad, 4 * cout_pad), jnp.float32)
    for dy in range(3):
        for dx in range(3):
            for ph in range(2):
                for pw in range(2):
                    kh = 3 + ph - 2 * dy
                    kw = 3 + pw - 2 * dx
                    if 0 <= kh < KH and 0 <= kw < KW:
                        r0 = (dy * 3 + dx) * cin_pad
                        c0 = (ph * 2 + pw) * cout_pad
                        wmat = wmat.at[r0:r0 + Cin, c0:c0 + Cout].set(
                            weight_pt[:, :, kh, kw].astype(jnp.float32))
    return wmat.astype(mxu_dtype)


@functools.partial(jax.jit, static_argnames=("batch_norm", "mxu_dtype"))
def conv_transpose_layer(x_nchw, weight_pt, gamma, beta, *, batch_norm=True,
                         mxu_dtype=jnp.bfloat16):
    """Forward pass of the PyTorch ConvTransposeLayer.

    x_nchw:    (N, Cin, H, W)      NCHW, like PyTorch
    weight_pt: (Cin, Cout, 4, 4)   PyTorch ConvTranspose2d weight layout
    gamma/beta:(Cout,)             BatchNorm2d affine parameters
    returns:   (N, Cout, 2H, 2W)   NCHW, float32
    """
    N, Cin, H, W = x_nchw.shape
    Cout = weight_pt.shape[1]
    OH, OW = STRIDE * H, STRIDE * W
    Wp = W + 2                        # padded row length
    Mp = H * Wp                       # matmul rows per image (W valid + 2 junk/row)
    Sp = (H + 2) * Wp + 2             # flattened padded spatial extent (+2 guard rows)
    cin_pad = _round_up(Cin, 128)     # lane-aligned im2col tap stores
    cout_pad = _round_up(Cout, 32)    # 4*cout_pad is a multiple of 128 -> lane-dense
    C4 = 4 * cout_pad

    # ---- layout plumbing (plain JAX): NCHW -> flattened, halo-padded, bf16 ----
    x = jnp.transpose(x_nchw, (0, 2, 3, 1)).astype(mxu_dtype)          # (N,H,W,Cin)
    x = jnp.pad(x, ((0, 0), (1, 1), (1, 1), (0, cin_pad - Cin)))       # halo + chan pad
    x = jnp.pad(x.reshape(N, (H + 2) * Wp, cin_pad), ((0, 0), (0, 2), (0, 0)))

    wmat = _polyphase_weight(weight_pt, cin_pad, cout_pad, mxu_dtype)  # (9*cin_pad, C4)

    vmem_limit = _vmem_limit_bytes()
    bt = _pick_batch_tile(N, Sp, Mp, cin_pad, C4, vmem_limit * 3 // 4)
    ntiles = N // bt

    cparams = pltpu.CompilerParams(
        dimension_semantics=("parallel",),       # shard batch tiles across TCs
        vmem_limit_bytes=vmem_limit)

    x_spec = pl.BlockSpec((bt, Sp, cin_pad), lambda n: (n, 0, 0))
    w_spec = pl.BlockSpec((9 * cin_pad, C4), lambda n: (0, 0))
    y_spec = pl.BlockSpec((bt, Mp, C4), lambda n: (n, 0, 0))
    scratch = [pltpu.VMEM((bt * Mp, 9 * cin_pad), mxu_dtype)]          # bf16 im2col
    # TODO(synk): for Cin >= 128 a no-im2col variant (9 accumulating tap matmuls
    # straight off x_ref windows) trades MXU issues for the im2col VMEM traffic.

    if batch_norm:
        y_pre, stats = pl.pallas_call(
            functools.partial(_convt_bnstats_kernel, H=H, W=W, bt=bt),
            grid=(ntiles,),
            in_specs=[x_spec, w_spec],
            out_specs=[y_spec, pl.BlockSpec((None, 2, C4), lambda n: (n, 0, 0))],
            out_shape=[jax.ShapeDtypeStruct((N, Mp, C4), mxu_dtype),
                       jax.ShapeDtypeStruct((ntiles, 2, C4), jnp.float32)],
            scratch_shapes=scratch,
            compiler_params=cparams,
        )(x, wmat)

        # ---- finalize batch statistics across tiles and phases (tiny, f32) ----
        s = jnp.sum(stats, axis=0)                          # (2, C4)
        s1 = jnp.sum(s[0].reshape(4, cout_pad), axis=0)[:Cout]
        s2 = jnp.sum(s[1].reshape(4, cout_pad), axis=0)[:Cout]
        m = float(N * OH * OW)                              # biased (training) stats
        mean = s1 / m
        var = jnp.maximum(s2 / m - mean * mean, 0.0)        # clamp cancellation
        inv_std = lax.rsqrt(var + EPS)
        scale_c = gamma.astype(jnp.float32) * inv_std       # (Cout,)
        shift_c = beta.astype(jnp.float32) - mean * scale_c
        # TODO(synk): BatchNorm2d running_mean/running_var buffer updates are a
        # training-time side effect with no forward-output equivalent here.
        y_big = y_pre
    else:
        y_big = pl.pallas_call(
            functools.partial(_convt_relu_kernel, H=H, W=W, bt=bt),
            grid=(ntiles,),
            in_specs=[x_spec, w_spec],
            out_specs=y_spec,
            out_shape=jax.ShapeDtypeStruct((N, Mp, C4), mxu_dtype),
            scratch_shapes=scratch,
            compiler_params=cparams,
        )(x, wmat)

    # ---- fused epilogue (plain JAX, single pass over the big bf16 tensor):
    # crop junk columns / padded channels, (BN scale/shift + ReLU), pixel-shuffle,
    # back to NCHW float32.  XLA fuses the elementwise math into the transpose.
    y6 = y_big.reshape(N, H, Wp, 2, 2, cout_pad)[:, :, :W, :, :, :Cout]
    y6 = y6.astype(jnp.float32)
    if batch_norm:
        y6 = jnp.maximum(y6 * scale_c + shift_c, 0.0)
    y = jnp.transpose(y6, (0, 1, 3, 2, 4, 5)).reshape(N, OH, OW, Cout)
    return jnp.transpose(y, (0, 3, 1, 2))


# ---------------------------------------------------------------------------
# pure-JAX reference (torch semantics of the module)
# ---------------------------------------------------------------------------
def _reference(x_nchw, weight_pt, gamma, beta, *, batch_norm=True,
               mxu_dtype=jnp.bfloat16):
    """Reference with the same operand quantization the kernel feeds the MXU
    (bf16 operands, f32 accumulation), so the comparison isolates kernel
    correctness from bf16 rounding."""
    xq = x_nchw.astype(mxu_dtype).astype(jnp.float32)
    wq = weight_pt.astype(mxu_dtype).astype(jnp.float32)
    w_flip = jnp.transpose(wq[:, :, ::-1, ::-1], (1, 0, 2, 3))   # (Cout, Cin, KH, KW)
    y = lax.conv_general_dilated(
        xq, w_flip, window_strides=(1, 1),
        padding=((KH - 1 - PAD,) * 2, (KW - 1 - PAD,) * 2),
        lhs_dilation=(STRIDE, STRIDE),
        dimension_numbers=("NCHW", "OIHW", "NCHW"),
        precision=lax.Precision.HIGHEST)
    if batch_norm:
        mean = jnp.mean(y, axis=(0, 2, 3), keepdims=True)
        var = jnp.mean((y - mean) ** 2, axis=(0, 2, 3), keepdims=True)
        y = (y - mean) * lax.rsqrt(var + EPS)
        y = y * gamma.reshape(1, -1, 1, 1) + beta.reshape(1, -1, 1, 1)
    return jnp.maximum(y, 0.0)


if __name__ == "__main__":
    key = jax.random.PRNGKey(0)
    N, Cin, Cout, H, W = 2, 4, 8, 16, 16

    k_x, k_w, k_g, k_b = jax.random.split(key, 4)
    x = jax.random.normal(k_x, (N, Cin, H, W), jnp.float32)
    bound = 1.0 / np.sqrt(Cin * KH * KW)   # PyTorch ConvTranspose2d default init scale
    weight = jax.random.uniform(k_w, (Cin, Cout, KH, KW), jnp.float32, -bound, bound)
    gamma = jax.random.uniform(k_g, (Cout,), jnp.float32, 0.8, 1.2)
    beta = jax.random.uniform(k_b, (Cout,), jnp.float32, -0.1, 0.1)

    # batch_norm=True path (ConvT -> BN -> ReLU)
    out = conv_transpose_layer(x, weight, gamma, beta, batch_norm=True)
    out = jax.block_until_ready(out)
    assert out.shape == (N, Cout, STRIDE * H, STRIDE * W)
    ref = _reference(x, weight, gamma, beta, batch_norm=True)
    np.testing.assert_allclose(np.asarray(out), np.asarray(ref), rtol=2e-2, atol=2e-2)

    # batch_norm=False path (ConvT -> ReLU)
    out_nb = conv_transpose_layer(x, weight, gamma, beta, batch_norm=False)
    out_nb = jax.block_until_ready(out_nb)
    ref_nb = _reference(x, weight, gamma, beta, batch_norm=False)
    np.testing.assert_allclose(np.asarray(out_nb), np.asarray(ref_nb),
                               rtol=2e-2, atol=2e-2)

    print("KERNEL_OK")
</pallas_src>

<mosaic_0001>
module attributes {stable_mosaic.version = 11 : i64} {
  func.func @_convt_bnstats_kernel(%arg0: i32, %arg1: memref<2x326x128xbf16, #tpu.memory_space<vmem>>, %arg2: memref<1152x128xbf16, #tpu.memory_space<vmem>>, %arg3: memref<2x288x128xbf16, #tpu.memory_space<vmem>>, %arg4: memref<1x2x128xf32, #tpu.memory_space<vmem>>, %arg5: memref<576x1152xbf16, #tpu.memory_space<vmem>>) attributes {dimension_semantics = [#tpu.dimension_semantics<parallel>], iteration_bounds = array<i64: 1>, scalar_prefetch = 0 : i64, scratch_operands = 1 : i64, tpu.core_type = #tpu.core_type<tc>, window_params = [{transform_indices = @transform_0, window_bounds = array<i64: 2, 326, 128>}, {pipeline_mode = #tpu.pipeline_mode<synchronous>, transform_indices = @transform_1, window_bounds = array<i64: 1152, 128>}, {transform_indices = @transform_2, window_bounds = array<i64: 2, 288, 128>}, {transform_indices = @transform_3, window_bounds = array<i64: 1, 2, 128>}]} {
    %c0 = arith.constant 0 : index
    %c0_0 = arith.constant 0 : index
    %c0_1 = arith.constant 0 : index
    %0 = vector.load %arg1[%c0, %c0_0, %c0_1] : memref<2x326x128xbf16, #tpu.memory_space<vmem>>, vector<1x288x128xbf16>
    %1 = vector.shape_cast %0 : vector<1x288x128xbf16> to vector<288x128xbf16>
    %c0_2 = arith.constant 0 : index
    %c0_3 = arith.constant 0 : index
    %2 = vector.load %arg5[%c0_2, %c0_3] : memref<576x1152xbf16, #tpu.memory_space<vmem>>, vector<288x128xbf16>
    tpu.vector_store %arg5[%c0_2, %c0_3], %1 {strides = array<i32>} : memref<576x1152xbf16, #tpu.memory_space<vmem>>, vector<288x128xbf16>,
    %c0_4 = arith.constant 0 : index
    %c1 = arith.constant 1 : index
    %c0_5 = arith.constant 0 : index
    %3 = vector.load %arg1[%c0_4, %c1, %c0_5] : memref<2x326x128xbf16, #tpu.memory_space<vmem>>, vector<1x288x128xbf16>
    %4 = vector.shape_cast %3 : vector<1x288x128xbf16> to vector<288x128xbf16>
    %c0_6 = arith.constant 0 : index
    %c128 = arith.constant 128 : index
    %5 = vector.load %arg5[%c0_6, %c128] : memref<576x1152xbf16, #tpu.memory_space<vmem>>, vector<288x128xbf16>
    tpu.vector_store %arg5[%c0_6, %c128], %4 {strides = array<i32>} : memref<576x1152xbf16, #tpu.memory_space<vmem>>, vector<288x128xbf16>,
    %c0_7 = arith.constant 0 : index
    %c2 = arith.constant 2 : index
    %c0_8 = arith.constant 0 : index
    %6 = vector.load %arg1[%c0_7, %c2, %c0_8] : memref<2x326x128xbf16, #tpu.memory_space<vmem>>, vector<1x288x128xbf16>
    %7 = vector.shape_cast %6 : vector<1x288x128xbf16> to vector<288x128xbf16>
    %c0_9 = arith.constant 0 : index
    %c256 = arith.constant 256 : index
    %8 = vector.load %arg5[%c0_9, %c256] : memref<576x1152xbf16, #tpu.memory_space<vmem>>, vector<288x128xbf16>
    tpu.vector_store %arg5[%c0_9, %c256], %7 {strides = array<i32>} : memref<576x1152xbf16, #tpu.memory_space<vmem>>, vector<288x128xbf16>,
    %c0_10 = arith.constant 0 : index
    %c18 = arith.constant 18 : index
    %c0_11 = arith.constant 0 : index
    %9 = vector.load %arg1[%c0_10, %c18, %c0_11] : memref<2x326x128xbf16, #tpu.memory_space<vmem>>, vector<1x288x128xbf16>
    %10 = vector.shape_cast %9 : vector<1x288x128xbf16> to vector<288x128xbf16>
    %c0_12 = arith.constant 0 : index
    %c384 = arith.constant 384 : index
    %11 = vector.load %arg5[%c0_12, %c384] : memref<576x1152xbf16, #tpu.memory_space<vmem>>, vector<288x128xbf16>
    tpu.vector_store %arg5[%c0_12, %c384], %10 {strides = array<i32>} : memref<576x1152xbf16, #tpu.memory_space<vmem>>, vector<288x128xbf16>,
    %c0_13 = arith.constant 0 : index
    %c19 = arith.constant 19 : index
    %c0_14 = arith.constant 0 : index
    %12 = vector.load %arg1[%c0_13, %c19, %c0_14] : memref<2x326x128xbf16, #tpu.memory_space<vmem>>, vector<1x288x128xbf16>
    %13 = vector.shape_cast %12 : vector<1x288x128xbf16> to vector<288x128xbf16>
    %c0_15 = arith.constant 0 : index
    %c512 = arith.constant 512 : index
    %14 = vector.load %arg5[%c0_15, %c512] : memref<576x1152xbf16, #tpu.memory_space<vmem>>, vector<288x128xbf16>
    tpu.vector_store %arg5[%c0_15, %c512], %13 {strides = array<i32>} : memref<576x1152xbf16, #tpu.memory_space<vmem>>, vector<288x128xbf16>,
    %c0_16 = arith.constant 0 : index
    %c20 = arith.constant 20 : index
    %c0_17 = arith.constant 0 : index
    %15 = vector.load %arg1[%c0_16, %c20, %c0_17] : memref<2x326x128xbf16, #tpu.memory_space<vmem>>, vector<1x288x128xbf16>
    %16 = vector.shape_cast %15 : vector<1x288x128xbf16> to vector<288x128xbf16>
    %c0_18 = arith.constant 0 : index
    %c640 = arith.constant 640 : index
    %17 = vector.load %arg5[%c0_18, %c640] : memref<576x1152xbf16, #tpu.memory_space<vmem>>, vector<288x128xbf16>
    tpu.vector_store %arg5[%c0_18, %c640], %16 {strides = array<i32>} : memref<576x1152xbf16, #tpu.memory_space<vmem>>, vector<288x128xbf16>,
    %c0_19 = arith.constant 0 : index
    %c36 = arith.constant 36 : index
    %c0_20 = arith.constant 0 : index
    %18 = vector.load %arg1[%c0_19, %c36, %c0_20] : memref<2x326x128xbf16, #tpu.memory_space<vmem>>, vector<1x288x128xbf16>
    %19 = vector.shape_cast %18 : vector<1x288x128xbf16> to vector<288x128xbf16>
    %c0_21 = arith.constant 0 : index
    %c768 = arith.constant 768 : index
    %20 = vector.load %arg5[%c0_21, %c768] : memref<576x1152xbf16, #tpu.memory_space<vmem>>, vector<288x128xbf16>
    tpu.vector_store %arg5[%c0_21, %c768], %19 {strides = array<i32>} : memref<576x1152xbf16, #tpu.memory_space<vmem>>, vector<288x128xbf16>,
    %c0_22 = arith.constant 0 : index
    %c37 = arith.constant 37 : index
    %c0_23 = arith.constant 0 : index
    %21 = vector.load %arg1[%c0_22, %c37, %c0_23] : memref<2x326x128xbf16, #tpu.memory_space<vmem>>, vector<1x288x128xbf16>
    %22 = vector.shape_cast %21 : vector<1x288x128xbf16> to vector<288x128xbf16>
    %c0_24 = arith.constant 0 : index
    %c896 = arith.constant 896 : index
    %23 = vector.load %arg5[%c0_24, %c896] : memref<576x1152xbf16, #tpu.memory_space<vmem>>, vector<288x128xbf16>
    tpu.vector_store %arg5[%c0_24, %c896], %22 {strides = array<i32>} : memref<576x1152xbf16, #tpu.memory_space<vmem>>, vector<288x128xbf16>,
    %c0_25 = arith.constant 0 : index
    %c38 = arith.constant 38 : index
    %c0_26 = arith.constant 0 : index
    %24 = vector.load %arg1[%c0_25, %c38, %c0_26] : memref<2x326x128xbf16, #tpu.memory_space<vmem>>, vector<1x288x128xbf16>
    %25 = vector.shape_cast %24 : vector<1x288x128xbf16> to vector<288x128xbf16>
    %c0_27 = arith.constant 0 : index
    %c1024 = arith.constant 1024 : index
    %26 = vector.load %arg5[%c0_27, %c1024] : memref<576x1152xbf16, #tpu.memory_space<vmem>>, vector<288x128xbf16>
    tpu.vector_store %arg5[%c0_27, %c1024], %25 {strides = array<i32>} : memref<576x1152xbf16, #tpu.memory_space<vmem>>, vector<288x128xbf16>,
    %c1_28 = arith.constant 1 : index
    %c0_29 = arith.constant 0 : index
    %c0_30 = arith.constant 0 : index
    %27 = vector.load %arg1[%c1_28, %c0_29, %c0_30] : memref<2x326x128xbf16, #tpu.memory_space<vmem>>, vector<1x288x128xbf16>
    %28 = vector.shape_cast %27 : vector<1x288x128xbf16> to vector<288x128xbf16>
    %c288 = arith.constant 288 : index
    %c0_31 = arith.constant 0 : index
    %29 = vector.load %arg5[%c288, %c0_31] : memref<576x1152xbf16, #tpu.memory_space<vmem>>, vector<288x128xbf16>
    tpu.vector_store %arg5[%c288, %c0_31], %28 {strides = array<i32>} : memref<576x1152xbf16, #tpu.memory_space<vmem>>, vector<288x128xbf16>,
    %c1_32 = arith.constant 1 : index
    %c1_33 = arith.constant 1 : index
    %c0_34 = arith.constant 0 : index
    %30 = vector.load %arg1[%c1_32, %c1_33, %c0_34] : memref<2x326x128xbf16, #tpu.memory_space<vmem>>, vector<1x288x128xbf16>
    %31 = vector.shape_cast %30 : vector<1x288x128xbf16> to vector<288x128xbf16>
    %c288_35 = arith.constant 288 : index
    %c128_36 = arith.constant 128 : index
    %32 = vector.load %arg5[%c288_35, %c128_36] : memref<576x1152xbf16, #tpu.memory_space<vmem>>, vector<288x128xbf16>
    tpu.vector_store %arg5[%c288_35, %c128_36], %31 {strides = array<i32>} : memref<576x1152xbf16, #tpu.memory_space<vmem>>, vector<288x128xbf16>,
    %c1_37 = arith.constant 1 : index
    %c2_38 = arith.constant 2 : index
    %c0_39 = arith.constant 0 : index
    %33 = vector.load %arg1[%c1_37, %c2_38, %c0_39] : memref<2x326x128xbf16, #tpu.memory_space<vmem>>, vector<1x288x128xbf16>
    %34 = vector.shape_cast %33 : vector<1x288x128xbf16> to vector<288x128xbf16>
    %c288_40 = arith.constant 288 : index
    %c256_41 = arith.constant 256 : index
    %35 = vector.load %arg5[%c288_40, %c256_41] : memref<576x1152xbf16, #tpu.memory_space<vmem>>, vector<288x128xbf16>
    tpu.vector_store %arg5[%c288_40, %c256_41], %34 {strides = array<i32>} : memref<576x1152xbf16, #tpu.memory_space<vmem>>, vector<288x128xbf16>,
    %c1_42 = arith.constant 1 : index
    %c18_43 = arith.constant 18 : index
    %c0_44 = arith.constant 0 : index
    %36 = vector.load %arg1[%c1_42, %c18_43, %c0_44] : memref<2x326x128xbf16, #tpu.memory_space<vmem>>, vector<1x288x128xbf16>
    %37 = vector.shape_cast %36 : vector<1x288x128xbf16> to vector<288x128xbf16>
    %c288_45 = arith.constant 288 : index
    %c384_46 = arith.constant 384 : index
    %38 = vector.load %arg5[%c288_45, %c384_46] : memref<576x1152xbf16, #tpu.memory_space<vmem>>, vector<288x128xbf16>
    tpu.vector_store %arg5[%c288_45, %c384_46], %37 {strides = array<i32>} : memref<576x1152xbf16, #tpu.memory_space<vmem>>, vector<288x128xbf16>,
    %c1_47 = arith.constant 1 : index
    %c19_48 = arith.constant 19 : index
    %c0_49 = arith.constant 0 : index
    %39 = vector.load %arg1[%c1_47, %c19_48, %c0_49] : memref<2x326x128xbf16, #tpu.memory_space<vmem>>, vector<1x288x128xbf16>
    %40 = vector.shape_cast %39 : vector<1x288x128xbf16> to vector<288x128xbf16>
    %c288_50 = arith.constant 288 : index
    %c512_51 = arith.constant 512 : index
    %41 = vector.load %arg5[%c288_50, %c512_51] : memref<576x1152xbf16, #tpu.memory_space<vmem>>, vector<288x128xbf16>
    tpu.vector_store %arg5[%c288_50, %c512_51], %40 {strides = array<i32>} : memref<576x1152xbf16, #tpu.memory_space<vmem>>, vector<288x128xbf16>,
    %c1_52 = arith.constant 1 : index
    %c20_53 = arith.constant 20 : index
    %c0_54 = arith.constant 0 : index
    %42 = vector.load %arg1[%c1_52, %c20_53, %c0_54] : memref<2x326x128xbf16, #tpu.memory_space<vmem>>, vector<1x288x128xbf16>
    %43 = vector.shape_cast %42 : vector<1x288x128xbf16> to vector<288x128xbf16>
    %c288_55 = arith.constant 288 : index
    %c640_56 = arith.constant 640 : index
    %44 = vector.load %arg5[%c288_55, %c640_56] : memref<576x1152xbf16, #tpu.memory_space<vmem>>, vector<288x128xbf16>
    tpu.vector_store %arg5[%c288_55, %c640_56], %43 {strides = array<i32>} : memref<576x1152xbf16, #tpu.memory_space<vmem>>, vector<288x128xbf16>,
    %c1_57 = arith.constant 1 : index
    %c36_58 = arith.constant 36 : index
    %c0_59 = arith.constant 0 : index
    %45 = vector.load %arg1[%c1_57, %c36_58, %c0_59] : memref<2x326x128xbf16, #tpu.memory_space<vmem>>, vector<1x288x128xbf16>
    %46 = vector.shape_cast %45 : vector<1x288x128xbf16> to vector<288x128xbf16>
    %c288_60 = arith.constant 288 : index
    %c768_61 = arith.constant 768 : index
    %47 = vector.load %arg5[%c288_60, %c768_61] : memref<576x1152xbf16, #tpu.memory_space<vmem>>, vector<288x128xbf16>
    tpu.vector_store %arg5[%c288_60, %c768_61], %46 {strides = array<i32>} : memref<576x1152xbf16, #tpu.memory_space<vmem>>, vector<288x128xbf16>,
    %c1_62 = arith.constant 1 : index
    %c37_63 = arith.constant 37 : index
    %c0_64 = arith.constant 0 : index
    %48 = vector.load %arg1[%c1_62, %c37_63, %c0_64] : memref<2x326x128xbf16, #tpu.memory_space<vmem>>, vector<1x288x128xbf16>
    %49 = vector.shape_cast %48 : vector<1x288x128xbf16> to vector<288x128xbf16>
    %c288_65 = arith.constant 288 : index
    %c896_66 = arith.constant 896 : index
    %50 = vector.load %arg5[%c288_65, %c896_66] : memref<576x1152xbf16, #tpu.memory_space<vmem>>, vector<288x128xbf16>
    tpu.vector_store %arg5[%c288_65, %c896_66], %49 {strides = array<i32>} : memref<576x1152xbf16, #tpu.memory_space<vmem>>, vector<288x128xbf16>,
    %c1_67 = arith.constant 1 : index
    %c38_68 = arith.constant 38 : index
    %c0_69 = arith.constant 0 : index
    %51 = vector.load %arg1[%c1_67, %c38_68, %c0_69] : memref<2x326x128xbf16, #tpu.memory_space<vmem>>, vector<1x288x128xbf16>
    %52 = vector.shape_cast %51 : vector<1x288x128xbf16> to vector<288x128xbf16>
    %c288_70 = arith.constant 288 : index
    %c1024_71 = arith.constant 1024 : index
    %53 = vector.load %arg5[%c288_70, %c1024_71] : memref<576x1152xbf16, #tpu.memory_space<vmem>>, vector<288x128xbf16>
    tpu.vector_store %arg5[%c288_70, %c1024_71], %52 {strides = array<i32>} : memref<576x1152xbf16, #tpu.memory_space<vmem>>, vector<288x128xbf16>,
    %c0_72 = arith.constant 0 : index
    %c0_73 = arith.constant 0 : index
    %54 = vector.load %arg5[%c0_72, %c0_73] : memref<576x1152xbf16, #tpu.memory_space<vmem>>, vector<576x1152xbf16>
    %c0_74 = arith.constant 0 : index
    %c0_75 = arith.constant 0 : index
    %55 = vector.load %arg2[%c0_74, %c0_75] : memref<1152x128xbf16, #tpu.memory_space<vmem>>, vector<1152x128xbf16>
    %cst = arith.constant dense<0.000000e+00> : vector<576x128xf32>
    %56 = tpu.matmul %54, %55, %cst {dimension_numbers = #tpu.dot_dimension_numbers<[1], [0], [0], [1], [0, 0, 1, 1], [], []>} : vector<576x1152xbf16>, vector<1152x128xbf16>, vector<576x128xf32> -> vector<576x128xf32>
    %57 = vector.shape_cast %56 : vector<576x128xf32> to vector<2x288x128xf32>
    %58 = arith.truncf %57 : vector<2x288x128xf32> to vector<2x288x128xbf16>
    %c0_76 = arith.constant 0 : index
    %c0_77 = arith.constant 0 : index
    %c0_78 = arith.constant 0 : index
    %59 = vector.load %arg3[%c0_76, %c0_77, %c0_78] : memref<2x288x128xbf16, #tpu.memory_space<vmem>>, vector<2x288x128xbf16>
    tpu.vector_store %arg3[%c0_76, %c0_77, %c0_78], %58 {strides = array<i32>} : memref<2x288x128xbf16, #tpu.memory_space<vmem>>, vector<2x288x128xbf16>,
    %60 = tpu.iota {dimensions = array<i32: 0>} : vector<576x1xi32>
    %c18_i32 = arith.constant 18 : i32
    %c0_i32 = arith.constant 0 : i32
    %61 = arith.cmpi eq, %c18_i32, %c0_i32 : i32
    %c1_i32 = arith.constant 1 : i32
    %62 = arith.select %61, %c1_i32, %c18_i32 : i32
    %63 = vector.broadcast %62 : i32 to vector<576x1xi32>
    %64 = arith.remsi %60, %63 : vector<576x1xi32>
    %c0_i32_79 = arith.constant 0 : i32
    %65 = vector.broadcast %c0_i32_79 : i32 to vector<576x1xi32>
    %66 = arith.cmpi ne, %64, %65 : vector<576x1xi32>
    %c0_i32_80 = arith.constant 0 : i32
    %67 = vector.broadcast %c0_i32_80 : i32 to vector<576x1xi32>
    %68 = arith.cmpi slt, %64, %67 : vector<576x1xi32>
    %c0_i32_81 = arith.constant 0 : i32
    %69 = arith.cmpi slt, %62, %c0_i32_81 : i32
    %70 = vector.broadcast %69 : i1 to vector<576x1xi1>
    %71 = vector.broadcast %70 : vector<576x1xi1> to vector<576x1xi1>
    %72 = arith.xori %68, %71 : vector<576x1xi1>
    %73 = arith.andi %72, %66 : vector<576x1xi1>
    %74 = vector.broadcast %62 : i32 to vector<576x1xi32>
    %75 = arith.addi %64, %74 : vector<576x1xi32>
    %76 = arith.select %73, %75, %64 : vector<576x1xi1>, vector<576x1xi32>
    %c16_i32 = arith.constant 16 : i32
    %77 = vector.broadcast %c16_i32 : i32 to vector<576x1xi32>
    %78 = arith.cmpi slt, %76, %77 : vector<576x1xi32>
    %cst_82 = arith.constant 0.000000e+00 : f32
    %79 = vector.shape_cast %78 : vector<576x1xi1> to vector<576x1xi1>
    %80 = vector.broadcast %79 : vector<576x1xi1> to vector<576x128xi1>
    %81 = vector.broadcast %cst_82 : f32 to vector<576x128xf32>
    %82 = arith.select %80, %56, %81 : vector<576x128xi1>, vector<576x128xf32>
    %cst_83 = arith.constant dense<0.000000e+00> : vector<128xf32>
    %83 = vector.multi_reduction <add>, %82, %cst_83 [0] : vector<576x128xf32> to vector<128xf32>
    %84 = vector.shape_cast %83 : vector<128xf32> to vector<1x128xf32>
    %c0_84 = arith.constant 0 : index
    %c0_85 = arith.constant 0 : index
    %c0_86 = arith.constant 0 : index
    %85 = vector.load %arg4[%c0_84, %c0_85, %c0_86] : memref<1x2x128xf32, #tpu.memory_space<vmem>>, vector<1x1x128xf32>
    %86 = vector.shape_cast %85 : vector<1x1x128xf32> to vector<1x128xf32>
    %87 = vector.shape_cast %84 : vector<1x128xf32> to vector<1x1x128xf32>
    tpu.vector_store %arg4[%c0_84, %c0_85, %c0_86], %87 {strides = array<i32>} : memref<1x2x128xf32, #tpu.memory_space<vmem>>, vector<1x1x128xf32>,
    %88 = arith.mulf %82, %56 : vector<576x128xf32>
    %cst_87 = arith.constant dense<0.000000e+00> : vector<128xf32>
    %89 = vector.multi_reduction <add>, %88, %cst_87 [0] : vector<576x128xf32> to vector<128xf32>
    %90 = vector.shape_cast %89 : vector<128xf32> to vector<1x128xf32>
    %c0_88 = arith.constant 0 : index
    %c1_89 = arith.constant 1 : index
    %c0_90 = arith.constant 0 : index
    %91 = vector.load %arg4[%c0_88, %c1_89, %c0_90] : memref<1x2x128xf32, #tpu.memory_space<vmem>>, vector<1x1x128xf32>
    %92 = vector.shape_cast %91 : vector<1x1x128xf32> to vector<1x128xf32>
    %93 = vector.shape_cast %90 : vector<1x128xf32> to vector<1x1x128xf32>
    tpu.vector_store %arg4[%c0_88, %c1_89, %c0_90], %93 {strides = array<i32>} : memref<1x2x128xf32, #tpu.memory_space<vmem>>, vector<1x1x128xf32>,
    return
  }
  func.func @transform_0(%arg0: i32) -> (i32, i32, i32) {
    %c0_i32 = arith.constant 0 : i32
    %c0_i32_0 = arith.constant 0 : i32
    %c0_i32_1 = arith.constant 0 : i32
    return %arg0, %c0_i32, %c0_i32_0 : i32, i32, i32
  }
  func.func @transform_1(%arg0: i32) -> (i32, i32) {
    %c0_i32 = arith.constant 0 : i32
    %c0_i32_0 = arith.constant 0 : i32
    %c0_i32_1 = arith.constant 0 : i32
    return %c0_i32, %c0_i32_0 : i32, i32
  }
  func.func @transform_2(%arg0: i32) -> (i32, i32, i32) {
    %c0_i32 = arith.constant 0 : i32
    %c0_i32_0 = arith.constant 0 : i32
    %c0_i32_1 = arith.constant 0 : i32
    return %arg0, %c0_i32, %c0_i32_0 : i32, i32, i32
  }
  func.func @transform_3(%arg0: i32) -> (i32, i32, i32) {
    %c0_i32 = arith.constant 0 : i32
    %c0_i32_0 = arith.constant 0 : i32
    %c0_i32_1 = arith.constant 0 : i32
    return %arg0, %c0_i32, %c0_i32_0 : i32, i32, i32
  }
}

</mosaic_0001>

<bundles_post_ra>
// kernel: squeeze.34
= control target key start
LH: loop header
LB: loop body
LE: loop exit
PB: predicated region body
PF: predicated region fallthrough
CT: control target
= control target key end

     0   :  { %s40_s8 = smov 32   ;;  %vm8_vm0 = vcmask 261120   ;;  %s41_s9 = smov 64   ;;  %s58_s0 = inlined_call_operand.vmem [shape: f32[128], index: 0, kind: input, shape index: {}]   ;;  %s59_s1 = inlined_call_operand.vmem [shape: f32[4,32], index: 1, kind: output, shape index: {}]  }
   0x1   :  { %v5_v0 = vld [vmem:[%s58_s0] sm:$0x1]  ;;  %s39_s0 = smov 96  }
   0x2   :  { %6 = vst [vmem:[#allocation1] sm:$0x1] %v5_v0 }
   0x9   :  { %v10_v1 = vld [vmem:[#allocation1] sm:$0x1]  }
   0xa   :  { %v22_v2 = vld [vmem:[#allocation1] sm:$0x1]   ;;  %11 = vrot.lane.b32.xlu0 %v10_v1, %s39_s0 }
   0xb   :  { %23 = vrot.lane.b32.xlu1 %v22_v2, %s40_s8  ;;  %v7_v3 = vld [vmem:[#allocation1] sm:$0x1]  }
   0xc   :  { %v16_v4 = vld [vmem:[#allocation1] sm:$0x1]   ;;  %9 = vst.msk [vmem:[#allocation0] sm:$0x1] %vm8_vm0, %v7_v3  }
   0xe   :  { %17 = vrot.lane.b32.xlu0 %v16_v4, %s41_s9 }
  0x7c   :  { %v12_v5 = vpop.permute.xlu0 %11  }
  0x7d   :  { %v24_v6 = vpop.permute.xlu1 %23   ;;  %15 = vst.msk [vmem:[#allocation0 + $0x1] sm:$0x1] %vm8_vm0, %v12_v5  }
  0x7e   :  { %27 = vst.msk [vmem:[#allocation0 + $0x3] sm:$0x1] %vm8_vm0, %v24_v6  }
  0x80   :  { %v18_v7 = vpop.permute.xlu0 %17  }
  0x81   :  { %21 = vst.msk [vmem:[#allocation0 + $0x2] sm:$0x1] %vm8_vm0, %v18_v7  }
  0x88   :  { %v32_v8 = vld [vmem:[#allocation0] sm:$0xf] }
  0x89   :  { %35 = vst [vmem:[%s59_s1] sm:$0xf] %v32_v8 }

// kernel: conv_transpose_layer.1
= control target key start
LH: loop header
LB: loop body
LE: loop exit
PB: predicated region body
PF: predicated region fallthrough
CT: control target
= control target key end

     0   :  { %v13833_v0 = vmov 0   ;;  %vm123_vm0 = vsmask.f32 3328  ;;  %vm124_vm1 = vsmask.f32 7440  ;;  %vm636_vm3 = vcmask 1042432   ;;  %s20878_s1 = inlined_call_operand.vmem [shape: bf16[1152,128], index: 1, kind: input, shape index: {}]   ;;  %s20879_s0 = inlined_call_operand.vmem [shape: bf16[2,326,128], index: 0, kind: input, shape index: {}]   ;;  %s20880_s2 = inlined_call_operand.vmem [shape: bf16[2,288,128], index: 2, kind: output, shape index: {0}]   ;;  %s20881_s3 = inlined_call_operand.vmem [shape: f32[1,2,128], index: 3, kind: output, shape index: {1}]  }
   0x1   :  { %8173 = vmatprep.subr.bf16.mxu0 %v13833_v0  ;;  %13116 = vmatprep.subr.bf16.mxu1 %v13833_v0  ;;  %v13293_v1 = vld [vmem:[%s20878_s1 + $0x38] sm:$0xff]   ;;  %v13294_v2 = vld [vmem:[%s20878_s1 + $0x30] sm:$0xff]   ;;  %v13295_v3 = vld [vmem:[%s20878_s1 + $0x28] sm:$0xff]   ;;  %vm637_vm4 = vcmask 1046532   ;;  %vm1629_vm6 = vcmask 1041408   ;;  %vm1630_vm9 = vcmask 1045508  }
   0x2   :  { %8174 = vmatpush1.bf16.msra.mxu0 %v13293_v1  ;;  %13132 = vmatpush1.bf16.msra.mxu1 %v13293_v1  ;;  %v13296_v4 = vld [vmem:[%s20878_s1 + $0x20] sm:$0xff]   ;;  %v13297_v5 = vld [vmem:[%s20878_s1 + $0x18] sm:$0xff]   ;;  %v13298_v6 = vld [vmem:[%s20878_s1 + $0x10] sm:$0xff]   ;;  %vm1112_vm7 = vsmask.f32 2304  ;;  %vm2622_vm15 = vcmask 1040384  }
   0x3   :  { %8175 = vmatprep.subr.bf16.mxu0 %v13833_v0  ;;  %13117 = vmatprep.subr.bf16.mxu1 %v13833_v0  ;;  %v14_v7 = vld [vmem:[%s20879_s0] sm:$0xf]  ;;  %v15_v8 = vld [vmem:[%s20879_s0 + $0x4] sm:$0xf]  ;;  %v88_v11 = vld [vmem:[%s20879_s0 + $0x8] sm:$0xf] }
   0x4   :  { %v86_v9 = vld [vmem:[%s20879_s0] sm:$0xf]  ;;  %50 = vst [vmem:[#allocation2] sm:$0xf] %v14_v7  ;;  %51 = vst [vmem:[#allocation2 + $0x24] sm:$0xf] %v15_v8 }
   0x5   :  { %v87_v10 = vld [vmem:[%s20879_s0 + $0x4] sm:$0xf]  ;;  %v127_v12 = vshrl.u32 %v86_v9, 16  ;;  %v130_v13 = vshll.u32 %v86_v9, 16  ;;  %v146_v16 = vshll.u32 %v88_v11, 16  ;;  %v150_v17 = vshrl.u32 %v88_v11, 16  ;;  %vm13919_vm2 = vmor %vm123_vm0, %vm124_vm1 }
   0x6   :  { %8176 = vmatpush1.bf16.msra.mxu0 %v13294_v2  ;;  %13133 = vmatpush1.bf16.msra.mxu1 %v13294_v2  ;;  %v136_v14 = vshll.u32 %v87_v10, 16  ;;  %v140_v15 = vshrl.u32 %v87_v10, 16  ;;  %v11910_v18 = vld [vmem:[%s20879_s0 + $0xec] sm:$0xf]  ;;  %v11911_v21 = vld [vmem:[%s20879_s0 + $0xf0] sm:$0xf]  ;;  %vm14344_vm5 = vmor %vm636_vm3, %vm637_vm4 }
   0x7   :  { %8177 = vmatprep.subr.bf16.mxu0 %v13833_v0  ;;  %13118 = vmatprep.subr.bf16.mxu1 %v13833_v0  ;;  %v129_v19 = vrot.slane %v127_v12, 4  ;;  %v132_v20 = vrot.slane %v130_v13, 5  ;;  %2861 = vst [vmem:[#allocation2 + $0x798] sm:$0xf] %v11910_v18  ;;  %v11946_v22 = vld [vmem:[%s20879_s0 + $0xec] sm:$0xf]  ;;  %vm15161_vm10 = vmor %vm1629_vm6, %vm1630_vm9 }
   0x8   :  { %v138_v23 = vrot.slane %v136_v14, 5  ;;  %v142_v24 = vrot.slane %v140_v15, 4  ;;  %v148_v25 = vrot.slane %v146_v16, 5  ;;  %v152_v26 = vrot.slane %v150_v17, 4  ;;  %2862 = vst [vmem:[#allocation2 + $0x7bc] sm:$0xf] %v11911_v21 }
   0x9   :  { %v11947_v27 = vld [vmem:[%s20879_s0 + $0xf0] sm:$0xf]  ;;  %v13299_v28 = vld [vmem:[%s20878_s1 + $0x8] sm:$0xff]   ;;  %v133_v29 = vor.u32 %v132_v20, %v129_v19  ;;  %v11948_v30 = vld [vmem:[%s20879_s0 + $0xf4] sm:$0xf]  ;;  %v3096_v31 = vshll.u32 %v11946_v22, 16 }
   0xa   :  { %8178 = vmatpush1.bf16.msra.mxu0 %v13295_v3  ;;  %13134 = vmatpush1.bf16.msra.mxu1 %v13295_v3  ;;  %v3100_v32 = vshrl.u32 %v11946_v22, 16  ;;  %v3106_v33 = vshll.u32 %v11947_v27, 16  ;;  %v143_v35 = vor.u32 %v142_v24, %v138_v23  ;;  %v153_v36 = vor.u32 %v152_v26, %v148_v25  ;;  %v13300_v43 = vld [vmem:[%s20878_s1] sm:$0xff]   ;;  %v16_v51 = vld [vmem:[%s20879_s0 + $0x8] sm:$0xf]  ;;  %v13301_v9 = vld [vmem:[%s20878_s1 + $0x78] sm:$0xff]  }
   0xb   :  { %8179 = vmatprep.subr.bf16.mxu0 %v13833_v0  ;;  %13119 = vmatprep.subr.bf16.mxu1 %v13833_v0  ;;  %v3110_v37 = vshrl.u32 %v11947_v27, 16  ;;  %v3116_v38 = vshll.u32 %v11948_v30, 16  ;;  %v134_v39 = vrot.slane %v133_v29, 4  ;;  %v13925_v40 = vrot.slane %v3096_v31, 5  ;;  %v17_v52 = vld [vmem:[%s20879_s0 + $0xc] sm:$0xf] }
   0xc   :  { %v3102_v41 = vrot.slane %v3100_v32, 4  ;;  %v3108_v42 = vrot.slane %v3106_v33, 5  ;;  %v144_v44 = vrot.slane %v143_v35, 4  ;;  %v154_v45 = vrot.slane %v153_v36, 4  ;;  %52 = vst [vmem:[#allocation2 + $0x48] sm:$0xf] %v16_v51 }
   0xd   :  { %v3112_v46 = vrot.slane %v3110_v37, 4  ;;  %v139_v47 = vsel %vm13919_vm2, %v134_v39, %v138_v23  ;;  %v3118_v49 = vrot.slane %v3116_v38, 5  ;;  %v3120_v50 = vshrl.u32 %v11948_v30, 16  ;;  %53 = vst [vmem:[#allocation2 + $0x6c] sm:$0xf] %v17_v52  ;;  %v13302_v26 = vld [vmem:[%s20878_s1 + $0x70] sm:$0xff]  }
   0xe   :  { %8180 = vmatpush1.bf16.msra.mxu0 %v13296_v4  ;;  %13135 = vmatpush1.bf16.msra.mxu1 %v13296_v4  ;;  %v3103_v48 = vor.u32 %v3102_v41, %v13925_v40  ;;  %v149_v53 = vsel %vm13919_vm2, %v144_v44, %v148_v25  ;;  %526 = vst [vmem:[#allocation2 + $0x4] sm:$0xf] %v139_v47  ;;  %v89_v55 = vld [vmem:[%s20879_s0 + $0xc] sm:$0xf]  ;;  %v90_v56 = vld [vmem:[%s20879_s0 + $0x10] sm:$0xf] }
   0xf   :  { %8181 = vmatprep.subr.bf16.mxu0 %v13833_v0  ;;  %13120 = vmatprep.subr.bf16.mxu1 %v13833_v0  ;;  %v3113_v54 = vor.u32 %v3112_v46, %v3108_v42  ;;  %v11912_v57 = vld [vmem:[%s20879_s0 + $0xf4] sm:$0xf]  ;;  %527 = vst [vmem:[#allocation2 + $0x28] sm:$0xf] %v149_v53  ;;  %v3122_v59 = vrot.slane %v3120_v50, 4  ;;  %v156_v60 = vshll.u32 %v89_v55, 16 }
  0x10   :  { %v3104_v58 = vrot.slane %v3103_v48, 4  ;;  %v160_v61 = vshrl.u32 %v89_v55, 16  ;;  %v11913_v62 = vld [vmem:[%s20879_s0 + $0xf8] sm:$0xf]  ;;  %2863 = vst [vmem:[#allocation2 + $0x7e0] sm:$0xf] %v11912_v57 }
  0x11   :  { %v3114_v63 = vrot.slane %v3113_v54, 4  ;;  %v166_v1 = vshll.u32 %v90_v56, 16  ;;  %v170_v2 = vshrl.u32 %v90_v56, 16  ;;  %2864 = vst [vmem:[#allocation2 + $0x804] sm:$0xf] %v11913_v62  ;;  %v13303_v47 = vld [vmem:[%s20878_s1 + $0x68] sm:$0xff]  }
  0x12   :  { %8182 = vmatpush1.bf16.msra.mxu0 %v13297_v5  ;;  %13136 = vmatpush1.bf16.msra.mxu1 %v13297_v5  ;;  %v11949_v3 = vld [vmem:[%s20879_s0 + $0xf8] sm:$0xf]  ;;  %v3109_v4 = vsel %vm13919_vm2, %v3104_v58, %v3108_v42  ;;  %v3123_v5 = vor.u32 %v3122_v59, %v3118_v49  ;;  %v162_v7 = vrot.slane %v160_v61, 4  ;;  %v11950_v8 = vld [vmem:[%s20879_s0 + $0xfc] sm:$0xf]  ;;  %v13304_v61 = vld [vmem:[%s20878_s1 + $0x60] sm:$0xff]  }
  0x13   :  { %8183 = vmatprep.subr.bf16.mxu0 %v13833_v0  ;;  %13121 = vmatprep.subr.bf16.mxu1 %v13833_v0  ;;  %v3119_v10 = vsel %vm13919_vm2, %v3114_v63, %v3118_v49  ;;  %3334 = vst [vmem:[#allocation2 + $0x79c] sm:$0xf] %v3109_v4  ;;  %v168_v11 = vrot.slane %v166_v1, 5  ;;  %v3126_v12 = vshll.u32 %v11949_v3, 16  ;;  %v3130_v13 = vshrl.u32 %v11949_v3, 16 }
  0x14   :  { %v3124_v14 = vrot.slane %v3123_v5, 4  ;;  %3335 = vst [vmem:[#allocation2 + $0x7c0] sm:$0xf] %v3119_v10  ;;  %v3136_v17 = vshll.u32 %v11950_v8, 16  ;;  %v3140_v20 = vshrl.u32 %v11950_v8, 16  ;;  %v172_v22 = vrot.slane %v170_v2, 4 }
  0x15   :  { %v3128_v18 = vrot.slane %v3126_v12, 5  ;;  %v3132_v19 = vrot.slane %v3130_v13, 4  ;;  %v18_v21 = vld [vmem:[%s20879_s0 + $0x10] sm:$0xf]  ;;  %v19_v25 = vld [vmem:[%s20879_s0 + $0x14] sm:$0xf] }
  0x16   :  { %8184 = vmatpush1.bf16.msra.mxu0 %v13298_v6  ;;  %13137 = vmatpush1.bf16.msra.mxu1 %v13298_v6  ;;  %v158_v6 = vrot.slane %v156_v60, 5  ;;  %v3138_v24 = vrot.slane %v3136_v17, 5  ;;  %54 = vst [vmem:[#allocation2 + $0x90] sm:$0xf] %v18_v21  ;;  %v13311_v27 = vld [vmem:[#allocation2 + $0x4] ss:$36 sps:$4 sm:$0xff]   ;;  %v173_v30 = vor.u32 %v172_v22, %v168_v11 }
  0x17   :  { %8185 = vmatprep.subr.bf16.mxu0 %v13833_v0  ;;  %13122 = vmatprep.subr.bf16.mxu1 %v13833_v0  ;;  %v3133_v29 = vor.u32 %v3132_v19, %v3128_v18  ;;  %55 = vst [vmem:[#allocation2 + $0xb4] sm:$0xf] %v19_v25  ;;  %v3142_v31 = vrot.slane %v3140_v20, 4  ;;  %v91_v33 = vld [vmem:[%s20879_s0 + $0x14] sm:$0xf]  ;;  %vm2623_vm0 = vcmask 1044484  }
  0x18   :  { %v159_v15 = vsel %vm13919_vm2, %v154_v45, %v158_v6  ;;  %v163_v16 = vor.u32 %v162_v7, %v158_v6  ;;  %v92_v35 = vld [vmem:[%s20879_s0 + $0x18] sm:$0xf]  ;;  %v11914_v36 = vld [vmem:[%s20879_s0 + $0xfc] sm:$0xf]  ;;  %8205 = vmatprep.mubr.bf16.mxu0 %v13311_v27  ;;  %v174_v38 = vrot.slane %v173_v30, 4  ;;  %v176_v39 = vshll.u32 %v91_v33, 16  ;;  %vm17832_vm1 = vmor %vm2622_vm15, %vm2623_vm0 }
  0x19   :  { %528 = vst [vmem:[#allocation2 + $0x4c] sm:$0xf] %v159_v15  ;;  %v3134_v37 = vrot.slane %v3133_v29, 4  ;;  %v180_v41 = vshrl.u32 %v91_v33, 16  ;;  %v11915_v42 = vld [vmem:[%s20879_s0 + $0x100] sm:$0xf]  ;;  %v3143_v46 = vor.u32 %v3142_v31, %v3138_v24 }
  0x1a   :  { %8186 = vmatpush1.bf16.msra.mxu0 %v13299_v28  ;;  %13138 = vmatpush1.bf16.msra.mxu1 %v13299_v28  ;;  %v164_v23 = vrot.slane %v163_v16, 4  ;;  %v3129_v28 = vsel %vm13919_vm2, %v3124_v14, %v3128_v18  ;;  %2865 = vst [vmem:[#allocation2 + $0x828] sm:$0xf] %v11914_v36  ;;  %v190_v44 = vshrl.u32 %v92_v35, 16  ;;  %2866 = vst [vmem:[#allocation2 + $0x84c] sm:$0xf] %v11915_v42 }
  0x1b   :  { %8187 = vmatprep.subr.bf16.mxu0 %v13833_v0  ;;  %13123 = vmatprep.subr.bf16.mxu1 %v13833_v0  ;;  %3336 = vst [vmem:[#allocation2 + $0x7e4] sm:$0xf] %v3129_v28  ;;  %v11951_v45 = vld [vmem:[%s20879_s0 + $0x100] sm:$0xf]  ;;  %v3139_v49 = vsel %vm13919_vm2, %v3134_v37, %v3138_v24  ;;  %v178_v50 = vrot.slane %v176_v39, 5  ;;  %v182_v51 = vrot.slane %v180_v41, 4 }
  0x1c   :  { %v169_v32 = vsel %vm13919_vm2, %v164_v23, %v168_v11  ;;  %v13314_v48 = vld [vmem:[#allocation2 + $0x79c] ss:$36 sps:$4 sm:$0xff]   ;;  %3337 = vst [vmem:[#allocation2 + $0x808] sm:$0xf] %v3139_v49  ;;  %v11952_v52 = vld [vmem:[%s20879_s0 + $0x104] sm:$0xf] }
  0x1d   :  { %529 = vst [vmem:[#allocation2 + $0x70] sm:$0xf] %v169_v32  ;;  %v3144_v53 = vrot.slane %v3143_v46, 4  ;;  %8421 = vmatprep.mubr.bf16.mxu1 %v13314_v48  ;;  %v179_v54 = vsel %vm13919_vm2, %v174_v38, %v178_v50  ;;  %v3146_v55 = vshll.u32 %v11951_v45, 16  ;;  %v3150_v56 = vshrl.u32 %v11951_v45, 16  ;;  %v13305_v15 = vld [vmem:[%s20878_s1 + $0x58] sm:$0xff]  }
  0x1e   :  { %8188 = vmatpush1.bf16.msra.mxu0 %v13300_v43  ;;  %13139 = vmatpush1.bf16.msra.mxu1 %v13300_v43  ;;  %v186_v43 = vshll.u32 %v92_v35, 16  ;;  %v3156_v57 = vshll.u32 %v11952_v52, 16  ;;  %v183_v58 = vor.u32 %v182_v51, %v178_v50  ;;  %530 = vst [vmem:[#allocation2 + $0x94] sm:$0xf] %v179_v54  ;;  %v192_v60 = vrot.slane %v190_v44, 4  ;;  %v13306_v31 = vld [vmem:[%s20878_s1 + $0x50] sm:$0xff]  }
  0x1f   :  { %8189 = vmatprep.subr.bf16.mxu0 %v13833_v0  ;;  %13124 = vmatprep.subr.bf16.mxu1 %v13833_v0  ;;  %v3148_v62 = vrot.slane %v3146_v55, 5  ;;  %v3152_v63 = vrot.slane %v3150_v56, 4  ;;  %v3160_v3 = vshrl.u32 %v11952_v52, 16  ;;  %v20_v7 = vld [vmem:[%s20879_s0 + $0x18] sm:$0xf]  ;;  %v13307_v41 = vld [vmem:[%s20878_s1 + $0x48] sm:$0xff]  }
  0x20   :  { %v188_v59 = vrot.slane %v186_v43, 5  ;;  %v184_v1 = vrot.slane %v183_v58, 4  ;;  %v3158_v2 = vrot.slane %v3156_v57, 5  ;;  %v21_v8 = vld [vmem:[%s20879_s0 + $0x1c] sm:$0xf] }
  0x21   :  { %v3149_v5 = vsel %vm13919_vm2, %v3144_v53, %v3148_v62  ;;  %v3153_v6 = vor.u32 %v3152_v63, %v3148_v62  ;;  %56 = vst [vmem:[#allocation2 + $0xd8] sm:$0xf] %v20_v7  ;;  %57 = vst [vmem:[#allocation2 + $0xfc] sm:$0xf] %v21_v8  ;;  %v94_v11 = vld [vmem:[%s20879_s0 + $0x20] sm:$0xf] }
  0x22   :  { %8190 = vmatpush2.bf16.msra.mxu0 %v13301_v9  ;;  %13140 = vmatpush2.bf16.msra.mxu1 %v13301_v9  ;;  %v193_v4 = vor.u32 %v192_v60, %v188_v59  ;;  %v93_v9 = vld [vmem:[%s20879_s0 + $0x1c] sm:$0xf]  ;;  %v189_v10 = vsel %vm13919_vm2, %v184_v1, %v188_v59  ;;  %3338 = vst [vmem:[#allocation2 + $0x82c] sm:$0xf] %v3149_v5  ;;  %v206_v19 = vshll.u32 %v94_v11, 16  ;;  %v210_v20 = vshrl.u32 %v94_v11, 16 }
  0x23   :  { %8191 = vmatprep.subr.bf16.mxu0 %v13833_v0  ;;  %13125 = vmatprep.subr.bf16.mxu1 %v13833_v0  ;;  %v196_v13 = vshll.u32 %v93_v9, 16  ;;  %v200_v14 = vshrl.u32 %v93_v9, 16  ;;  %531 = vst [vmem:[#allocation2 + $0xb8] sm:$0xf] %v189_v10  ;;  %v3154_v16 = vrot.slane %v3153_v6, 4  ;;  %v3162_v25 = vrot.slane %v3160_v3, 4 }
  0x24   :  { %v194_v12 = vrot.slane %v193_v4, 4  ;;  %v11916_v21 = vld [vmem:[%s20879_s0 + $0x104] sm:$0xf]  ;;  %v11917_v23 = vld [vmem:[%s20879_s0 + $0x108] sm:$0xf]  ;;  %v208_v28 = vrot.slane %v206_v19, 5 }
  0x25   :  { %v198_v17 = vrot.slane %v196_v13, 5  ;;  %v202_v18 = vrot.slane %v200_v14, 4  ;;  %v3159_v22 = vsel %vm13919_vm2, %v3154_v16, %v3158_v2  ;;  %2867 = vst [vmem:[#allocation2 + $0x870] sm:$0xf] %v11916_v21  ;;  %v11953_v24 = vld [vmem:[%s20879_s0 + $0x108] sm:$0xf]  ;;  %v3163_v32 = vor.u32 %v3162_v25, %v3158_v2 }
  0x26   :  { %8192 = vmatpush2.bf16.msra.mxu0 %v13302_v26  ;;  %13141 = vmatpush2.bf16.msra.mxu1 %v13302_v26  ;;  %3339 = vst [vmem:[#allocation2 + $0x850] sm:$0xf] %v3159_v22  ;;  %2868 = vst [vmem:[#allocation2 + $0x894] sm:$0xf] %v11917_v23  ;;  %v11954_v29 = vld [vmem:[%s20879_s0 + $0x10c] sm:$0xf] }
  0x27   :  { %8193 = vmatprep.subr.bf16.mxu0 %v13833_v0  ;;  %13126 = vmatprep.subr.bf16.mxu1 %v13833_v0  ;;  %v199_v26 = vsel %vm13919_vm2, %v194_v12, %v198_v17  ;;  %v203_v27 = vor.u32 %v202_v18, %v198_v17  ;;  %v3166_v30 = vshll.u32 %v11953_v24, 16  ;;  %v3170_v33 = vshrl.u32 %v11953_v24, 16  ;;  %v22_v48 = vld [vmem:[%s20879_s0 + $0x20] sm:$0xf]  ;;  %v23_v49 = vld [vmem:[%s20879_s0 + $0x24] sm:$0xf] }
  0x28   :  { %532 = vst [vmem:[#allocation2 + $0xdc] sm:$0xf] %v199_v26  ;;  %v3176_v35 = vshll.u32 %v11954_v29, 16  ;;  %v3164_v38 = vrot.slane %v3163_v32, 4  ;;  %v3180_v44 = vshrl.u32 %v11954_v29, 16  ;;  %v212_v45 = vrot.slane %v210_v20, 4 }
  0x29   :  { %v204_v36 = vrot.slane %v203_v27, 4  ;;  %v3168_v37 = vrot.slane %v3166_v30, 5  ;;  %v3172_v39 = vrot.slane %v3170_v33, 4  ;;  %58 = vst [vmem:[#allocation2 + $0x120] sm:$0xf] %v22_v48  ;;  %v13308_v59 = vld [vmem:[%s20878_s1 + $0x40] sm:$0xff]  }
  0x2a   :  { %8194 = vmatpush2.bf16.msra.mxu0 %v13303_v47  ;;  %13142 = vmatpush2.bf16.msra.mxu1 %v13303_v47  ;;  %v3178_v43 = vrot.slane %v3176_v35, 5  ;;  %59 = vst [vmem:[#allocation2 + $0x144] sm:$0xf] %v23_v49  ;;  %v95_v50 = vld [vmem:[%s20879_s0 + $0x24] sm:$0xf]  ;;  %v213_v52 = vor.u32 %v212_v45, %v208_v28  ;;  %v3182_v63 = vrot.slane %v3180_v44, 4 }
  0x2b   :  { %8195 = vmatprep.subr.bf16.mxu0 %v13833_v0  ;;  %13127 = vmatprep.subr.bf16.mxu1 %v13833_v0  ;;  %v209_v42 = vsel %vm13919_vm2, %v204_v36, %v208_v28  ;;  %v3169_v46 = vsel %vm13919_vm2, %v3164_v38, %v3168_v37  ;;  %v3173_v47 = vor.u32 %v3172_v39, %v3168_v37  ;;  %v96_v51 = vld [vmem:[%s20879_s0 + $0x28] sm:$0xf]  ;;  %v11918_v53 = vld [vmem:[%s20879_s0 + $0x10c] sm:$0xf]  ;;  %v216_v56 = vshll.u32 %v95_v50, 16  ;;  %v13315_v8 = vld [vmem:[%s20878_s1 + $0x138] sm:$0xff]  }
  0x2c   :  { %533 = vst [vmem:[#allocation2 + $0x100] sm:$0xf] %v209_v42  ;;  %3340 = vst [vmem:[#allocation2 + $0x874] sm:$0xf] %v3169_v46  ;;  %v214_v55 = vrot.slane %v213_v52, 4  ;;  %v220_v57 = vshrl.u32 %v95_v50, 16  ;;  %v3183_v10 = vor.u32 %v3182_v63, %v3178_v43 }
  0x2d   :  { %v3174_v54 = vrot.slane %v3173_v47, 4  ;;  %2869 = vst [vmem:[#allocation2 + $0x8b8] sm:$0xf] %v11918_v53  ;;  %v226_v58 = vshll.u32 %v96_v51, 16  ;;  %v11955_v62 = vld [vmem:[%s20879_s0 + $0x110] sm:$0xf] }
  0x2e   :  { %8196 = vmatpush2.bf16.msra.mxu0 %v13304_v61  ;;  %13143 = vmatpush2.bf16.msra.mxu1 %v13304_v61  ;;  %v11919_v61 = vld [vmem:[%s20879_s0 + $0x110] sm:$0xf]  ;;  %v13309_v1 = vld [vmem:[#allocation2] ss:$36 sps:$4 sm:$0xff]   ;;  %v13312_v2 = vld [vmem:[#allocation2 + $0x798] ss:$36 sps:$4 sm:$0xff]  }
  0x2f   :  { %8197 = vmatprep.subr.bf16.mxu0 %v13833_v0  ;;  %13128 = vmatprep.subr.bf16.mxu1 %v13833_v0  ;;  %v3179_v60 = vsel %vm13919_vm2, %v3174_v54, %v3178_v43  ;;  %v218_v3 = vrot.slane %v216_v56, 5  ;;  %v222_v4 = vrot.slane %v220_v57, 4  ;;  %v230_v5 = vshrl.u32 %v96_v51, 16  ;;  %2870 = vst [vmem:[#allocation2 + $0x8dc] sm:$0xf] %v11919_v61  ;;  %v13316_v13 = vld [vmem:[%s20878_s1 + $0xb8] sm:$0xff]  }
  0x30   :  { %3341 = vst [vmem:[#allocation2 + $0x898] sm:$0xf] %v3179_v60  ;;  %v14101_v6 = vld [vmem:[%s20879_s0 + $0x114] sm:$0xf]  ;;  %v3186_v7 = vshll.u32 %v11955_v62, 16  ;;  %v228_v9 = vrot.slane %v226_v58, 5 }
  0x31   :  { %v3190_v11 = vshrl.u32 %v11955_v62, 16  ;;  %v3196_v12 = vshll.u32 %v14101_v6, 16  ;;  %v13317_v14 = vld [vmem:[#allocation2 + $0x4c] ss:$36 sps:$4 sm:$0xff]   ;;  %v219_v16 = vsel %vm13919_vm2, %v214_v55, %v218_v3  ;;  %v223_v17 = vor.u32 %v222_v4, %v218_v3  ;;  %v24_v27 = vld [vmem:[%s20879_s0 + $0x28] sm:$0xf] }
  0x32   :  { %8198 = vmatpush2.bf16.msra.mxu0 %v13305_v15  ;;  %13144 = vmatpush2.bf16.msra.mxu1 %v13305_v15  ;;  %v13319_v15 = vld [vmem:[#allocation2 + $0x7e4] ss:$36 sps:$4 sm:$0xff]   ;;  %v3188_v18 = vrot.slane %v3186_v7, 5  ;;  %v3200_v19 = vshrl.u32 %v14101_v6, 16  ;;  %534 = vst [vmem:[#allocation2 + $0x124] sm:$0xf] %v219_v16 }
  0x33   :  { %8199 = vmatprep.subr.bf16.mxu0 %v13833_v0  ;;  %13129 = vmatprep.subr.bf16.mxu1 %v13833_v0  ;;  %v3184_v20 = vrot.slane %v3183_v10, 4  ;;  %v3192_v21 = vrot.slane %v3190_v11, 4  ;;  %v14113_v22 = vrot.slane %v3196_v12, 5  ;;  %v224_v23 = vrot.slane %v223_v17, 4  ;;  %v25_v28 = vld [vmem:[%s20879_s0 + $0x2c] sm:$0xf] }
  0x34   :  { %v232_v24 = vrot.slane %v230_v5, 4  ;;  %v97_v29 = vld [vmem:[%s20879_s0 + $0x2c] sm:$0xf]  ;;  %60 = vst [vmem:[#allocation2 + $0x168] sm:$0xf] %v24_v27  ;;  %v13323_v37 = vld [vmem:[%s20878_s1 + $0xb0] sm:$0xff]  }
  0x35   :  { %v3189_v25 = vsel %vm13919_vm2, %v3184_v20, %v3188_v18  ;;  %v3193_v26 = vor.u32 %v3192_v21, %v3188_v18  ;;  %v229_v30 = vsel %vm13919_vm2, %v224_v23, %v228_v9  ;;  %61 = vst [vmem:[#allocation2 + $0x18c] sm:$0xf] %v25_v28  ;;  %v236_v33 = vshll.u32 %v97_v29, 16  ;;  %v11920_v36 = vld [vmem:[%s20879_s0 + $0x114] sm:$0xf]  ;;  %v13341_v3 = vld [vmem:[%s20878_s1 + $0x128] sm:$0xff]  }
  0x36   :  { %8200 = vmatpush2.bf16.msra.mxu0 %v13306_v31  ;;  %13145 = vmatpush2.bf16.msra.mxu1 %v13306_v31  ;;  %3342 = vst [vmem:[#allocation2 + $0x8bc] sm:$0xf] %v3189_v25  ;;  %v98_v31 = vld [vmem:[%s20879_s0 + $0x30] sm:$0xf]  ;;  %v233_v32 = vor.u32 %v232_v24, %v228_v9  ;;  %v240_v35 = vshrl.u32 %v97_v29, 16  ;;  %v3202_v53 = vrot.slane %v3200_v19, 4 }
  0x37   :  { %8201 = vmatprep.subr.bf16.mxu0 %v13833_v0  ;;  %13130 = vmatprep.subr.bf16.mxu1 %v13833_v0  ;;  %v13329_v38 = vld [vmem:[%s20878_s1 + $0x130] sm:$0xff]   ;;  %535 = vst [vmem:[#allocation2 + $0x148] sm:$0xf] %v229_v30  ;;  %v3194_v39 = vrot.slane %v3193_v26, 4  ;;  %2871 = vst [vmem:[#allocation2 + $0x900] sm:$0xf] %v11920_v36 }
  0x38   :  { %v13322_v42 = vld [vmem:[#allocation2 + $0x7e0] ss:$36 sps:$4 sm:$0xff]   ;;  %v234_v43 = vrot.slane %v233_v32, 4  ;;  %v238_v44 = vrot.slane %v236_v33, 5  ;;  %v242_v45 = vrot.slane %v240_v35, 4  ;;  %v246_v46 = vshll.u32 %v98_v31, 16 }
  0x39   :  { %v11921_v47 = vld [vmem:[%s20879_s0 + $0x118] sm:$0xf]  ;;  %v3199_v49 = vsel %vm13919_vm2, %v3194_v39, %v14113_v22  ;;  %v250_v50 = vshrl.u32 %v98_v31, 16  ;;  %v11958_v52 = vld [vmem:[%s20879_s0 + $0x11c] sm:$0xf]  ;;  %v3203_v60 = vor.u32 %v3202_v53, %v14113_v22  ;;  %v13332_v6 = vld [vmem:[%s20878_s1 + $0xa0] sm:$0xff]  }
  0x3a   :  { %8202 = vmatpush2.bf16.msra.mxu0 %v13307_v41  ;;  %13146 = vmatpush2.bf16.msra.mxu1 %v13307_v41  ;;  %v13321_v41 = vld [vmem:[#allocation2 + $0x48] ss:$36 sps:$4 sm:$0xff]   ;;  %v13325_v48 = vld [vmem:[#allocation2 + $0x94] ss:$36 sps:$4 sm:$0xff]   ;;  %2872 = vst [vmem:[#allocation2 + $0x924] sm:$0xf] %v11921_v47  ;;  %v239_v55 = vsel %vm13919_vm2, %v234_v43, %v238_v44  ;;  %v243_v56 = vor.u32 %v242_v45, %v238_v44 }
  0x3b   :  { %8203 = vmatprep.subr.bf16.mxu0 %v13833_v0  ;;  %13131 = vmatprep.subr.bf16.mxu1 %v13833_v0  ;;  %v11957_v51 = vld [vmem:[%s20879_s0 + $0x118] sm:$0xf]  ;;  %v13327_v54 = vld [vmem:[#allocation2 + $0x82c] ss:$36 sps:$4 sm:$0xff]   ;;  %3343 = vst [vmem:[#allocation2 + $0x8e0] sm:$0xf] %v3199_v49 }
  0x3c   :  { %v248_v57 = vrot.slane %v246_v46, 5  ;;  %v3206_v58 = vshll.u32 %v11957_v51, 16  ;;  %536 = vst [vmem:[#allocation2 + $0x16c] sm:$0xf] %v239_v55  ;;  %v3210_v61 = vshrl.u32 %v11957_v51, 16  ;;  %v3216_v62 = vshll.u32 %v11958_v52, 16 }
  0x3d   :  { %v3220_v63 = vshrl.u32 %v11958_v52, 16  ;;  %v3204_v4 = vrot.slane %v3203_v60, 4  ;;  %v26_v12 = vld [vmem:[%s20879_s0 + $0x30] sm:$0xf]  ;;  %v27_v16 = vld [vmem:[%s20879_s0 + $0x34] sm:$0xf] }
  0x3e   :  { %8204 = vmatpush2.bf16.msra.mxu0 %v13308_v59  ;;  %13147 = vmatpush2.bf16.msra.mxu1 %v13308_v59  ;;  %v13324_v59 = vld [vmem:[%s20878_s1 + $0xa8] sm:$0xff]   ;;  %v3212_v5 = vrot.slane %v3210_v61, 4  ;;  %v3218_v11 = vrot.slane %v3216_v62, 5  ;;  %62 = vst [vmem:[#allocation2 + $0x1b0] sm:$0xf] %v26_v12  ;;  %v13357_v22 = vld [vmem:[%s20878_s1 + $0x120] sm:$0xff]  }
  0x3f   :  { %8815 = vmatprep.subr.bf16.mxu0 %v13833_v0  ;;  %8494 = vmatprep.subr.bf16.mxu1 %v13833_v0  ;;  %v99_v17 = vld [vmem:[%s20879_s0 + $0x34] sm:$0xf]  ;;  %v100_v18 = vld [vmem:[%s20879_s0 + $0x38] sm:$0xf]  ;;  %v13333_v20 = vld [vmem:[#allocation2 + $0xdc] ss:$36 sps:$4 sm:$0xff]  }
  0x40   :  { %63 = vst [vmem:[#allocation2 + $0x1d4] sm:$0xf] %v27_v16  ;;  %v13337_v24 = vld [vmem:[%s20878_s1 + $0x98] sm:$0xff]   ;;  %v256_v26 = vshll.u32 %v99_v17, 16  ;;  %v260_v27 = vshrl.u32 %v99_v17, 16  ;;  %v266_v28 = vshll.u32 %v100_v18, 16 }
  0x41   :  { %8206 = vmatmul.mubr.bf16.vlgmr.msra.gmra.mxu0 %v13309_v1  ;;  %8422 = vmatmul.mubr.bf16.vlgmr.msra.gmra.mxu1 %v13312_v2  ;;  %v244_v1 = vrot.slane %v243_v56, 4  ;;  %v3208_v2 = vrot.slane %v3206_v58, 5  ;;  %v13335_v29 = vld [vmem:[#allocation2 + $0x874] ss:$36 sps:$4 sm:$0xff]   ;;  %v11922_v31 = vld [vmem:[%s20879_s0 + $0x11c] sm:$0xf] }
  0x42   :  { %8816 = vmatpush1.bf16.msra.mxu0 %v13315_v8  ;;  %8495 = vmatpush1.bf16.msra.mxu1 %v13316_v13  ;;  %v252_v8 = vrot.slane %v250_v50, 4  ;;  %v3222_v13 = vrot.slane %v3220_v63, 4  ;;  %v11923_v32 = vld [vmem:[%s20879_s0 + $0x120] sm:$0xf]  ;;  %v258_v33 = vrot.slane %v256_v26, 5  ;;  %v262_v35 = vrot.slane %v260_v27, 4 }
  0x43   :  { %8213 = vmatprep.mubr.bf16.mxu0 %v13317_v14  ;;  %8429 = vmatprep.mubr.bf16.mxu1 %v13319_v15  ;;  %v249_v7 = vsel %vm13919_vm2, %v244_v1, %v248_v57  ;;  %v3209_v9 = vsel %vm13919_vm2, %v3204_v4, %v3208_v2  ;;  %v3213_v10 = vor.u32 %v3212_v5, %v3208_v2  ;;  %v13330_v14 = vld [vmem:[#allocation2 + $0x90] ss:$36 sps:$4 sm:$0xff]   ;;  %v13331_v15 = vld [vmem:[#allocation2 + $0x828] ss:$36 sps:$4 sm:$0xff]   ;;  %v270_v36 = vshrl.u32 %v100_v18, 16  ;;  %v13371_v2 = vld [vmem:[%s20878_s1 + $0x118] sm:$0xff]  }
  0x44   :  { %8496 = vmatprep.subr.bf16.mxu1 %v13833_v0  ;;  %8817 = vmatprep.subr.bf16.mxu0 %v13833_v0  ;;  %537 = vst [vmem:[#allocation2 + $0x190] sm:$0xf] %v249_v7  ;;  %3344 = vst [vmem:[#allocation2 + $0x904] sm:$0xf] %v3209_v9  ;;  %v253_v19 = vor.u32 %v252_v8, %v248_v57  ;;  %v3223_v23 = vor.u32 %v3222_v13, %v3218_v11  ;;  %v11960_v39 = vld [vmem:[%s20879_s0 + $0x124] sm:$0xf] }
  0x45   :  { %v3214_v21 = vrot.slane %v3213_v10, 4  ;;  %2873 = vst [vmem:[#allocation2 + $0x948] sm:$0xf] %v11922_v31  ;;  %2874 = vst [vmem:[#allocation2 + $0x96c] sm:$0xf] %v11923_v32  ;;  %v13340_v43 = vld [vmem:[%s20878_s1 + $0x90] sm:$0xff]   ;;  %v263_v45 = vor.u32 %v262_v35, %v258_v33 }
  0x46   :  { %8497 = vmatpush1.bf16.msra.mxu1 %v13323_v37  ;;  %8818 = vmatpush1.bf16.msra.mxu0 %v13329_v38  ;;  %v254_v25 = vrot.slane %v253_v19, 4  ;;  %v11959_v37 = vld [vmem:[%s20879_s0 + $0x120] sm:$0xf]  ;;  %v3224_v38 = vrot.slane %v3223_v23, 4  ;;  %v268_v46 = vrot.slane %v266_v28, 5  ;;  %v3236_v47 = vshll.u32 %v11960_v39, 16 }
  0x47   :  { %8498 = vmatprep.subr.bf16.mxu1 %v13833_v0  ;;  %8819 = vmatprep.subr.bf16.mxu0 %v13833_v0  ;;  %v3219_v30 = vsel %vm13919_vm2, %v3214_v21, %v3218_v11  ;;  %v3240_v50 = vshrl.u32 %v11960_v39, 16  ;;  %v13338_v51 = vld [vmem:[#allocation2 + $0xd8] ss:$36 sps:$4 sm:$0xff]   ;;  %v13339_v52 = vld [vmem:[#allocation2 + $0x870] ss:$36 sps:$4 sm:$0xff]   ;;  %v264_v53 = vrot.slane %v263_v45, 4 }
  0x48   :  { %3345 = vst [vmem:[#allocation2 + $0x928] sm:$0xf] %v3219_v30  ;;  %v259_v44 = vsel %vm13919_vm2, %v254_v25, %v258_v33  ;;  %v28_v57 = vld [vmem:[%s20879_s0 + $0x38] sm:$0xf]  ;;  %v29_v58 = vld [vmem:[%s20879_s0 + $0x3c] sm:$0xf] }
  0x49   :  { %8214 = vmatmul.mubr.bf16.gmra.mxu0 %v13321_v41  ;;  %8430 = vmatmul.mubr.bf16.gmra.mxu1 %v13322_v42  ;;  %v3226_v41 = vshll.u32 %v11959_v37, 16  ;;  %v3230_v42 = vshrl.u32 %v11959_v37, 16  ;;  %538 = vst [vmem:[#allocation2 + $0x1b4] sm:$0xf] %v259_v44  ;;  %v269_v60 = vsel %vm13919_vm2, %v264_v53, %v268_v46  ;;  %64 = vst [vmem:[#allocation2 + $0x1f8] sm:$0xf] %v28_v57 }
  0x4a   :  { %8499 = vmatpush1.bf16.msra.mxu1 %v13324_v59  ;;  %8221 = vmatprep.mubr.bf16.mxu0 %v13325_v48  ;;  %v101_v59 = vld [vmem:[%s20879_s0 + $0x3c] sm:$0xf]  ;;  %65 = vst [vmem:[#allocation2 + $0x21c] sm:$0xf] %v29_v58  ;;  %v102_v61 = vld [vmem:[%s20879_s0 + $0x40] sm:$0xf] }
  0x4b   :  { %8437 = vmatprep.mubr.bf16.mxu1 %v13327_v54  ;;  %8500 = vmatprep.subr.bf16.mxu1 %v13833_v0  ;;  %v3228_v48 = vrot.slane %v3226_v41, 5  ;;  %v3232_v49 = vrot.slane %v3230_v42, 4  ;;  %v3238_v54 = vrot.slane %v3236_v47, 5  ;;  %v272_v62 = vrot.slane %v270_v36, 4  ;;  %v13344_v4 = vld [vmem:[#allocation2 + $0x8bc] ss:$36 sps:$4 sm:$0xff]  }
  0x4c   :  { %8820 = vmatpush1.bf16.msra.mxu0 %v13341_v3  ;;  %v276_v63 = vshll.u32 %v101_v59, 16  ;;  %v280_v1 = vshrl.u32 %v101_v59, 16  ;;  %v13342_v3 = vld [vmem:[#allocation2 + $0x124] ss:$36 sps:$4 sm:$0xff]   ;;  %539 = vst [vmem:[#allocation2 + $0x1d8] sm:$0xf] %v269_v60 }
  0x4d   :  { %8821 = vmatprep.subr.bf16.mxu0 %v13833_v0  ;;  %v3229_v55 = vsel %vm13919_vm2, %v3224_v38, %v3228_v48  ;;  %v3233_v56 = vor.u32 %v3232_v49, %v3228_v48  ;;  %v273_v7 = vor.u32 %v272_v62, %v268_v46  ;;  %v286_v10 = vshll.u32 %v102_v61, 16  ;;  %v11924_v11 = vld [vmem:[%s20879_s0 + $0x124] sm:$0xf]  ;;  %v13347_v27 = vld [vmem:[#allocation2 + $0x8b8] ss:$36 sps:$4 sm:$0xff]   ;;  %v13358_v62 = vld [vmem:[%s20878_s1 + $0xf0] sm:$0xff]  }
  0x4e   :  { %8501 = vmatpush1.bf16.msra.mxu1 %v13332_v6  ;;  %3346 = vst [vmem:[#allocation2 + $0x94c] sm:$0xf] %v3229_v55  ;;  %v13348_v6 = vld [vmem:[%s20878_s1 + $0x88] sm:$0xff]   ;;  %v278_v8 = vrot.slane %v276_v63, 5  ;;  %v282_v9 = vrot.slane %v280_v1, 4  ;;  %v290_v13 = vshrl.u32 %v102_v61, 16 }
  0x4f   :  { %8502 = vmatprep.subr.bf16.mxu1 %v13833_v0  ;;  %v3234_v5 = vrot.slane %v3233_v56, 4  ;;  %2875 = vst [vmem:[#allocation2 + $0x990] sm:$0xf] %v11924_v11  ;;  %v3242_v16 = vrot.slane %v3240_v50, 4  ;;  %v274_v17 = vrot.slane %v273_v7, 4  ;;  %v288_v19 = vrot.slane %v286_v10, 5 }
  0x50   :  { %8822 = vmatpush1.bf16.msra.mxu0 %v13357_v22  ;;  %v283_v18 = vor.u32 %v282_v9, %v278_v8  ;;  %v13349_v22 = vld [vmem:[%s20878_s1 + $0x80] sm:$0xff]   ;;  %v13350_v31 = vld [vmem:[#allocation2 + $0x16c] ss:$36 sps:$4 sm:$0xff]   ;;  %v13356_v36 = vld [vmem:[%s20878_s1 + $0xf8] sm:$0xff]   ;;  %v292_v41 = vrot.slane %v290_v13, 4 }
  0x51   :  { %8222 = vmatmul.mubr.bf16.gmra.mxu0 %v13330_v14  ;;  %8438 = vmatmul.mubr.bf16.gmra.mxu1 %v13331_v15  ;;  %v3239_v12 = vsel %vm13919_vm2, %v3234_v5, %v3238_v54  ;;  %v11925_v14 = vld [vmem:[%s20879_s0 + $0x128] sm:$0xf]  ;;  %v3243_v23 = vor.u32 %v3242_v16, %v3238_v54  ;;  %v13346_v26 = vld [vmem:[#allocation2 + $0x120] ss:$36 sps:$4 sm:$0xff]   ;;  %v279_v28 = vsel %vm13919_vm2, %v274_v17, %v278_v8  ;;  %v11926_v54 = vld [vmem:[%s20879_s0 + $0x12c] sm:$0xf] }
  0x52   :  { %8229 = vmatprep.mubr.bf16.mxu0 %v13333_v20  ;;  %8445 = vmatprep.mubr.bf16.mxu1 %v13335_v29  ;;  %v11961_v15 = vld [vmem:[%s20879_s0 + $0x128] sm:$0xf]  ;;  %3347 = vst [vmem:[#allocation2 + $0x970] sm:$0xf] %v3239_v12  ;;  %2876 = vst [vmem:[#allocation2 + $0x9b4] sm:$0xf] %v11925_v14  ;;  %v293_v48 = vor.u32 %v292_v41, %v288_v19 }
  0x53   :  { %8503 = vmatpush1.bf16.msra.mxu1 %v13337_v24  ;;  %8823 = vmatprep.subr.bf16.mxu0 %v13833_v0  ;;  %v11962_v20 = vld [vmem:[%s20879_s0 + $0x12c] sm:$0xf]  ;;  %v3246_v21 = vshll.u32 %v11961_v15, 16  ;;  %v3250_v24 = vshrl.u32 %v11961_v15, 16  ;;  %v284_v29 = vrot.slane %v283_v18, 4  ;;  %v3244_v32 = vrot.slane %v3243_v23, 4 }
  0x54   :  { %8504 = vmatprep.subr.bf16.mxu1 %v13833_v0  ;;  %8824 = vmatpush1.bf16.msra.mxu0 %v13371_v2  ;;  %v3256_v25 = vshll.u32 %v11962_v20, 16  ;;  %540 = vst [vmem:[#allocation2 + $0x1fc] sm:$0xf] %v279_v28  ;;  %v13352_v35 = vld [vmem:[#allocation2 + $0x904] ss:$36 sps:$4 sm:$0xff]   ;;  %v3260_v39 = vshrl.u32 %v11962_v20, 16 }
  0x55   :  { %8825 = vmatprep.subr.bf16.mxu0 %v13833_v0  ;;  %v3248_v30 = vrot.slane %v3246_v21, 5  ;;  %v3252_v33 = vrot.slane %v3250_v24, 4  ;;  %v289_v37 = vsel %vm13919_vm2, %v284_v29, %v288_v19  ;;  %v30_v44 = vld [vmem:[%s20879_s0 + $0x40] sm:$0xf]  ;;  %v31_v45 = vld [vmem:[%s20879_s0 + $0x44] sm:$0xf] }
  0x56   :  { %v3258_v38 = vrot.slane %v3256_v25, 5  ;;  %541 = vst [vmem:[#allocation2 + $0x220] sm:$0xf] %v289_v37  ;;  %66 = vst [vmem:[#allocation2 + $0x240] sm:$0xf] %v30_v44  ;;  %v294_v50 = vrot.slane %v293_v48, 4 }
  0x57   :  { %8505 = vmatpush1.bf16.msra.mxu1 %v13340_v43  ;;  %v3249_v42 = vsel %vm13919_vm2, %v3244_v32, %v3248_v30  ;;  %v3253_v43 = vor.u32 %v3252_v33, %v3248_v30  ;;  %v103_v46 = vld [vmem:[%s20879_s0 + $0x44] sm:$0xf]  ;;  %v104_v47 = vld [vmem:[%s20879_s0 + $0x48] sm:$0xf]  ;;  %67 = vst [vmem:[#allocation2 + $0x264] sm:$0xf] %v31_v45 }
  0x58   :  { %8506 = vmatprep.subr.bf16.mxu1 %v13833_v0  ;;  %3348 = vst [vmem:[#allocation2 + $0x994] sm:$0xf] %v3249_v42  ;;  %v306_v53 = vshll.u32 %v104_v47, 16  ;;  %v310_v56 = vshrl.u32 %v104_v47, 16  ;;  %v11927_v57 = vld [vmem:[%s20879_s0 + $0x130] sm:$0xf] }
  0x59   :  { %8230 = vmatmul.mubr.bf16.gmra.mxu0 %v13338_v51  ;;  %8446 = vmatmul.mubr.bf16.gmra.mxu1 %v13339_v52  ;;  %v3254_v49 = vrot.slane %v3253_v43, 4  ;;  %v296_v51 = vshll.u32 %v103_v46, 16  ;;  %v300_v52 = vshrl.u32 %v103_v46, 16  ;;  %2877 = vst [vmem:[#allocation2 + $0x9d8] sm:$0xf] %v11926_v54  ;;  %v3262_v59 = vrot.slane %v3260_v39, 4 }
  0x5a   :  { %8237 = vmatprep.mubr.bf16.mxu0 %v13342_v3  ;;  %8453 = vmatprep.mubr.bf16.mxu1 %v13344_v4  ;;  %v11963_v58 = vld [vmem:[%s20879_s0 + $0x130] sm:$0xf]  ;;  %v13354_v60 = vld [vmem:[#allocation2 + $0x168] ss:$36 sps:$4 sm:$0xff]   ;;  %v13355_v61 = vld [vmem:[#allocation2 + $0x900] ss:$36 sps:$4 sm:$0xff]  }
  0x5b   :  { %8507 = vmatpush1.bf16.msra.mxu1 %v13348_v6  ;;  %v3259_v55 = vsel %vm13919_vm2, %v3254_v49, %v3258_v38  ;;  %v298_v63 = vrot.slane %v296_v51, 5  ;;  %v302_v1 = vrot.slane %v300_v52, 4  ;;  %2878 = vst [vmem:[#allocation2 + $0x9fc] sm:$0xf] %v11927_v57  ;;  %v11964_v2 = vld [vmem:[%s20879_s0 + $0x134] sm:$0x1]  ;;  %v3263_v4 = vor.u32 %v3262_v59, %v3258_v38 }
  0x5c   :  { %8508 = vmatprep.subr.bf16.mxu1 %v13833_v0  ;;  %3349 = vst [vmem:[#allocation2 + $0x9b8] sm:$0xf] %v3259_v55  ;;  %v13359_v3 = vld [vmem:[#allocation2 + $0x1b4] ss:$36 sps:$4 sm:$0xff]   ;;  %v3266_v5 = vshll.u32 %v11963_v58, 16  ;;  %v3270_v6 = vshrl.u32 %v11963_v58, 16 }
  0x5d   :  { %v3276_v7 = vshll.u32 %v11964_v2, 16  ;;  %v13361_v8 = vld [vmem:[#allocation2 + $0x94c] ss:$36 sps:$4 sm:$0xff]   ;;  %v299_v9 = vsel %vm13919_vm2, %v294_v50, %v298_v63  ;;  %v303_v10 = vor.u32 %v302_v1, %v298_v63  ;;  %v308_v11 = vrot.slane %v306_v53, 5  ;;  %v32_v24 = vld [vmem:[%s20879_s0 + $0x48] sm:$0xf] }
  0x5e   :  { %v312_v12 = vrot.slane %v310_v56, 4  ;;  %v13365_v13 = vld [vmem:[%s20878_s1 + $0xe8] sm:$0xff]   ;;  %542 = vst [vmem:[#allocation2 + $0x244] sm:$0xf] %v299_v9  ;;  %v3264_v14 = vrot.slane %v3263_v4, 4  ;;  %v3268_v15 = vrot.slane %v3266_v5, 5 }
  0x5f   :  { %8509 = vmatpush1.bf16.msra.mxu1 %v13349_v22  ;;  %v3272_v16 = vrot.slane %v3270_v6, 4  ;;  %v3278_v17 = vrot.slane %v3276_v7, 5  ;;  %v304_v18 = vrot.slane %v303_v10, 4  ;;  %v13384_v19 = vld [vmem:[%s20878_s1 + $0x110] sm:$0xff]   ;;  %v33_v25 = vld [vmem:[%s20879_s0 + $0x4c] sm:$0xf] }
  0x60   :  { %8510 = vmatprep.subr.bf16.mxu1 %v13833_v0  ;;  %v313_v20 = vor.u32 %v312_v12, %v308_v11  ;;  %v3269_v21 = vsel %vm13919_vm2, %v3264_v14, %v3268_v15  ;;  %68 = vst [vmem:[#allocation2 + $0x288] sm:$0xf] %v32_v24  ;;  %69 = vst [vmem:[#allocation2 + $0x2ac] sm:$0xf] %v33_v25  ;;  %v13363_v28 = vld [vmem:[#allocation2 + $0x1b0] ss:$36 sps:$4 sm:$0xff]   ;;  %8826 = vmatpush1.bf16.msra.mxu0 %v13384_v19 }
  0x61   :  { %8238 = vmatmul.mubr.bf16.gmra.mxu0 %v13346_v26  ;;  %8454 = vmatmul.mubr.bf16.gmra.mxu1 %v13347_v27  ;;  %v3273_v22 = vor.u32 %v3272_v16, %v3268_v15  ;;  %v309_v23 = vsel %vm13919_vm2, %v304_v18, %v308_v11  ;;  %3350 = vst [vmem:[#allocation2 + $0x9dc] sm:$0xf] %v3269_v21  ;;  %v105_v26 = vld [vmem:[%s20879_s0 + $0x4c] sm:$0xf]  ;;  %v13366_v30 = vld [vmem:[%s20878_s1 + $0xe0] sm:$0xff]   ;;  %v13374_v44 = vld [vmem:[%s20878_s1 + $0xd8] sm:$0xff]  }
  0x62   :  { %8245 = vmatprep.mubr.bf16.mxu0 %v13350_v31  ;;  %8461 = vmatprep.mubr.bf16.mxu1 %v13352_v35  ;;  %543 = vst [vmem:[#allocation2 + $0x268] sm:$0xf] %v309_v23  ;;  %v13364_v29 = vld [vmem:[#allocation2 + $0x948] ss:$36 sps:$4 sm:$0xff]   ;;  %v106_v31 = vld [vmem:[%s20879_s0 + $0x50] sm:$0xf] }
  0x63   :  { %8511 = vmatpush2.bf16.msra.mxu1 %v13356_v36  ;;  %v3274_v27 = vrot.slane %v3273_v22, 4  ;;  %v314_v32 = vrot.slane %v313_v20, 4  ;;  %v316_v33 = vshll.u32 %v105_v26, 16  ;;  %v320_v35 = vshrl.u32 %v105_v26, 16  ;;  %v13367_v36 = vld [vmem:[#allocation2 + $0x1fc] ss:$36 sps:$4 sm:$0xff]   ;;  %8827 = vmatprep.subr.bf16.mxu0 %v13833_v0 }
  0x64   :  { %8512 = vmatprep.subr.bf16.mxu1 %v13833_v0  ;;  %v13369_v37 = vld [vmem:[#allocation2 + $0x994] ss:$36 sps:$4 sm:$0xff]   ;;  %v326_v39 = vshll.u32 %v106_v31, 16  ;;  %v330_v41 = vshrl.u32 %v106_v31, 16  ;;  %v562_v42 = vld [vmem:[%s20879_s0] sm:$0xe] }
  0x65   :  { %v3279_v38 = vsel %vm13919_vm2, %v3274_v27, %v3278_v17  ;;  %v563_v43 = vld [vmem:[%s20879_s0 + $0x4] sm:$0xf]  ;;  %v318_v45 = vrot.slane %v316_v33, 5  ;;  %v322_v46 = vrot.slane %v320_v35, 4  ;;  %v564_v47 = vld [vmem:[%s20879_s0 + $0x8] sm:$0xf] }
  0x66   :  { %3351 = vst [vmem:[#allocation2 + $0xa00] sm:$0xf] %v3279_v38  ;;  %v11887_v49 = vrot.slane %v562_v42, 9  ;;  %v328_v50 = vrot.slane %v326_v39, 5  ;;  %v641_v51 = vrot.slane %v563_v43, 5  ;;  %v644_v52 = vrot.slane %v564_v47, 5 }
  0x67   :  { %8513 = vmatpush2.bf16.msra.mxu1 %v13358_v62  ;;  %v820_v53 = vld [vmem:[%s20879_s0 + $0x8] sm:$0xe]  ;;  %v332_v54 = vrot.slane %v330_v41, 4  ;;  %v319_v55 = vsel %vm13919_vm2, %v314_v32, %v318_v45  ;;  %v323_v56 = vor.u32 %v322_v46, %v318_v45  ;;  %v821_v57 = vld [vmem:[%s20879_s0 + $0xc] sm:$0xf]  ;;  %v13375_v4 = vld [vmem:[%s20878_s1 + $0xd0] sm:$0xff]  }
  0x68   :  { %8514 = vmatprep.subr.bf16.mxu1 %v13833_v0  ;;  %v822_v58 = vld [vmem:[%s20879_s0 + $0x10] sm:$0xf]  ;;  %v11888_v59 = vrot.slane %v820_v53, 9  ;;  %544 = vst [vmem:[#allocation2 + $0x28c] sm:$0xf] %v319_v55  ;;  %v643_v62 = vrot.slane %v641_v51, 4 }
  0x69   :  { %8246 = vmatmul.mubr.bf16.gmra.mxu0 %v13354_v60  ;;  %8462 = vmatmul.mubr.bf16.gmra.mxu1 %v13355_v61  ;;  %v13398_v60 = vld [vmem:[%s20878_s1 + $0x108] sm:$0xff]   ;;  %v642_v61 = vsel %vm14344_vm5, %v11887_v49, %v641_v51  ;;  %v896_v63 = vrot.slane %v821_v57, 5  ;;  %v899_v1 = vrot.slane %v822_v58, 5  ;;  %v324_v2 = vrot.slane %v323_v56, 4  ;;  %v13372_v9 = vld [vmem:[#allocation2 + $0x1f8] ss:$36 sps:$4 sm:$0xff]  }
  0x6a   :  { %8253 = vmatprep.mubr.bf16.mxu0 %v13359_v3  ;;  %8469 = vmatprep.mubr.bf16.mxu1 %v13361_v8  ;;  %784 = vst [vmem:[#allocation2 + $0x8] sm:$0xf] %v642_v61  ;;  %v333_v3 = vor.u32 %v332_v54, %v328_v50  ;;  %v645_v5 = vsel %vm14344_vm5, %v643_v62, %v644_v52  ;;  %v34_v8 = vld [vmem:[%s20879_s0 + $0x50] sm:$0xf]  ;;  %v35_v12 = vld [vmem:[%s20879_s0 + $0x54] sm:$0xf] }
  0x6b   :  { %8515 = vmatpush2.bf16.msra.mxu1 %v13365_v13  ;;  %v897_v6 = vsel %vm14344_vm5, %v11888_v59, %v896_v63  ;;  %v898_v7 = vrot.slane %v896_v63, 4  ;;  %v13373_v10 = vld [vmem:[#allocation2 + $0x990] ss:$36 sps:$4 sm:$0xff]   ;;  %v329_v11 = vsel %vm13919_vm2, %v324_v2, %v328_v50  ;;  %785 = vst [vmem:[#allocation2 + $0x2c] sm:$0xf] %v645_v5  ;;  %8828 = vmatpush1.bf16.msra.mxu0 %v13398_v60  ;;  %v646_v19 = vrot.slane %v644_v52, 4 }
  0x6c   :  { %8516 = vmatprep.subr.bf16.mxu1 %v13833_v0  ;;  %1039 = vst [vmem:[#allocation2 + $0xc] sm:$0xf] %v897_v6  ;;  %70 = vst [vmem:[#allocation2 + $0x2d0] sm:$0xf] %v34_v8  ;;  %v107_v13 = vld [vmem:[%s20879_s0 + $0x54] sm:$0xf]  ;;  %8829 = vmatprep.subr.bf16.mxu0 %v13833_v0 }
  0x6d   :  { %v108_v14 = vld [vmem:[%s20879_s0 + $0x58] sm:$0xf]  ;;  %v13376_v15 = vld [vmem:[#allocation2 + $0x244] ss:$36 sps:$4 sm:$0xff]   ;;  %v13378_v16 = vld [vmem:[#allocation2 + $0x9dc] ss:$36 sps:$4 sm:$0xff]   ;;  %v900_v17 = vsel %vm14344_vm5, %v898_v7, %v899_v1 }
  0x6e   :  { %545 = vst [vmem:[#allocation2 + $0x2b0] sm:$0xf] %v329_v11  ;;  %71 = vst [vmem:[#allocation2 + $0x2f4] sm:$0xf] %v35_v12  ;;  %v334_v18 = vrot.slane %v333_v3, 4  ;;  %v336_v20 = vshll.u32 %v107_v13, 16 }
  0x6f   :  { %8517 = vmatpush2.bf16.msra.mxu1 %v13366_v30  ;;  %1040 = vst [vmem:[#allocation2 + $0x30] sm:$0xf] %v900_v17  ;;  %v340_v21 = vshrl.u32 %v107_v13, 16  ;;  %v346_v22 = vshll.u32 %v108_v14, 16  ;;  %v350_v23 = vshrl.u32 %v108_v14, 16  ;;  %v13383_v39 = vld [vmem:[%s20878_s1 + $0xc0] sm:$0xff]  }
  0x70   :  { %8518 = vmatprep.subr.bf16.mxu1 %v13833_v0  ;;  %v565_v24 = vld [vmem:[%s20879_s0 + $0xc] sm:$0xf]  ;;  %v566_v25 = vld [vmem:[%s20879_s0 + $0x10] sm:$0xf]  ;;  %v823_v27 = vld [vmem:[%s20879_s0 + $0x14] sm:$0xf] }
  0x71   :  { %8254 = vmatmul.mubr.bf16.gmra.mxu0 %v13363_v28  ;;  %8470 = vmatmul.mubr.bf16.gmra.mxu1 %v13364_v29  ;;  %v647_v26 = vrot.slane %v565_v24, 5  ;;  %v901_v28 = vrot.slane %v899_v1, 4  ;;  %v13382_v29 = vld [vmem:[%s20878_s1 + $0xc8] sm:$0xff]   ;;  %v338_v30 = vrot.slane %v336_v20, 5  ;;  %v342_v31 = vrot.slane %v340_v21, 4 }
  0x72   :  { %8261 = vmatprep.mubr.bf16.mxu0 %v13367_v36  ;;  %8477 = vmatprep.mubr.bf16.mxu1 %v13369_v37  ;;  %v348_v32 = vrot.slane %v346_v22, 5  ;;  %v650_v33 = vrot.slane %v566_v25, 5  ;;  %v824_v37 = vld [vmem:[%s20879_s0 + $0x18] sm:$0xf]  ;;  %v902_v38 = vrot.slane %v823_v27, 5  ;;  %v352_v45 = vrot.slane %v350_v23, 4 }
  0x73   :  { %8519 = vmatpush2.bf16.msra.mxu1 %v13374_v44  ;;  %v648_v35 = vsel %vm14344_vm5, %v646_v19, %v647_v26  ;;  %v649_v36 = vrot.slane %v647_v26, 4  ;;  %v339_v41 = vsel %vm13919_vm2, %v334_v18, %v338_v30  ;;  %v343_v42 = vor.u32 %v342_v31, %v338_v30  ;;  %v36_v44 = vld [vmem:[%s20879_s0 + $0x58] sm:$0xf]  ;;  %v37_v50 = vld [vmem:[%s20879_s0 + $0x5c] sm:$0xf]  ;;  %v13412_v22 = vld [vmem:[%s20878_s1 + $0x100] sm:$0xff]  }
  0x74   :  { %8520 = vmatprep.subr.bf16.mxu1 %v13833_v0  ;;  %786 = vst [vmem:[#allocation2 + $0x50] sm:$0xf] %v648_v35  ;;  %v905_v43 = vrot.slane %v824_v37, 5  ;;  %546 = vst [vmem:[#allocation2 + $0x2d4] sm:$0xf] %v339_v41  ;;  %v903_v47 = vsel %vm14344_vm5, %v901_v28, %v902_v38  ;;  %v904_v49 = vrot.slane %v902_v38, 4  ;;  %v353_v55 = vor.u32 %v352_v45, %v348_v32 }
  0x75   :  { %v651_v46 = vsel %vm14344_vm5, %v649_v36, %v650_v33  ;;  %72 = vst [vmem:[#allocation2 + $0x318] sm:$0xf] %v36_v44  ;;  %v109_v51 = vld [vmem:[%s20879_s0 + $0x5c] sm:$0xf]  ;;  %v13380_v52 = vld [vmem:[#allocation2 + $0x240] ss:$36 sps:$4 sm:$0xff]   ;;  %8830 = vmatpush1.bf16.msra.mxu0 %v13412_v22 }
  0x76   :  { %v13381_v53 = vld [vmem:[#allocation2 + $0x9d8] ss:$36 sps:$4 sm:$0xff]   ;;  %v344_v54 = vrot.slane %v343_v42, 4  ;;  %787 = vst [vmem:[#allocation2 + $0x74] sm:$0xf] %v651_v46  ;;  %v906_v58 = vsel %vm14344_vm5, %v904_v49, %v905_v43  ;;  %v356_v59 = vshll.u32 %v109_v51, 16  ;;  %8831 = vmatprep.subr.bf16.mxu0 %v13833_v0 }
  0x77   :  { %8521 = vmatpush2.bf16.msra.mxu1 %v13375_v4  ;;  %1041 = vst [vmem:[#allocation2 + $0x54] sm:$0xf] %v903_v47  ;;  %73 = vst [vmem:[#allocation2 + $0x33c] sm:$0xf] %v37_v50  ;;  %v13385_v56 = vld [vmem:[#allocation2 + $0x28c] ss:$36 sps:$4 sm:$0xff]  }
  0x78   :  { %8522 = vmatprep.subr.bf16.mxu1 %v13833_v0  ;;  %v13389_v57 = vld [vmem:[#allocation2 + $0xc] ss:$36 sps:$4 sm:$0xff]   ;;  %v349_v60 = vsel %vm13919_vm2, %v344_v54, %v348_v32  ;;  %1042 = vst [vmem:[#allocation2 + $0x78] sm:$0xf] %v906_v58  ;;  %v110_v61 = vld [vmem:[%s20879_s0 + $0x60] sm:$0xf] }
  0x79   :  { %8262 = vmatmul.mubr.bf16.gmra.mxu0 %v13372_v9  ;;  %8478 = vmatmul.mubr.bf16.gmra.mxu1 %v13373_v10  ;;  %v354_v62 = vrot.slane %v353_v55, 4  ;;  %v360_v63 = vshrl.u32 %v109_v51, 16  ;;  %v567_v1 = vld [vmem:[%s20879_s0 + $0x14] sm:$0xf]  ;;  %547 = vst [vmem:[#allocation2 + $0x2f8] sm:$0xf] %v349_v60 }
  0x7a   :  { %8269 = vmatprep.mubr.bf16.mxu0 %v13376_v15  ;;  %8485 = vmatprep.mubr.bf16.mxu1 %v13378_v16  ;;  %v358_v2 = vrot.slane %v356_v59, 5  ;;  %v366_v3 = vshll.u32 %v110_v61, 16  ;;  %v370_v4 = vshrl.u32 %v110_v61, 16  ;;  %v568_v5 = vld [vmem:[%s20879_s0 + $0x18] sm:$0xf]  ;;  %v652_v6 = vrot.slane %v650_v33, 4 }
  0x7b   :  { %8523 = vmatpush2.bf16.msra.mxu1 %v13382_v29  ;;  %v362_v7 = vrot.slane %v360_v63, 4  ;;  %v653_v8 = vrot.slane %v567_v1, 5  ;;  %v656_v9 = vrot.slane %v568_v5, 5  ;;  %v825_v10 = vld [vmem:[%s20879_s0 + $0x1c] sm:$0xf]  ;;  %v907_v11 = vrot.slane %v905_v43, 4 }
  0x7c   :  { %8524 = vmatprep.subr.bf16.mxu1 %v13833_v0  ;;  %v359_v12 = vsel %vm13919_vm2, %v354_v62, %v358_v2  ;;  %v368_v13 = vrot.slane %v366_v3, 5  ;;  %v826_v14 = vld [vmem:[%s20879_s0 + $0x20] sm:$0xf]  ;;  %v908_v15 = vrot.slane %v825_v10, 5  ;;  %v39_v21 = vld [vmem:[%s20879_s0 + $0x64] sm:$0xf] }
  0x7d   :  { %v38_v16 = vld [vmem:[%s20879_s0 + $0x60] sm:$0xf]  ;;  %v363_v17 = vor.u32 %v362_v7, %v358_v2  ;;  %548 = vst [vmem:[#allocation2 + $0x31c] sm:$0xf] %v359_v12  ;;  %v654_v18 = vsel %vm14344_vm5, %v652_v6, %v653_v8  ;;  %v655_v19 = vrot.slane %v653_v8, 4  ;;  %v911_v20 = vrot.slane %v826_v14, 5 }
  0x7e   :  { %74 = vst [vmem:[#allocation2 + $0x360] sm:$0xf] %v38_v16  ;;  %788 = vst [vmem:[#allocation2 + $0x98] sm:$0xf] %v654_v18  ;;  %v909_v23 = vsel %vm14344_vm5, %v907_v11, %v908_v15  ;;  %v910_v24 = vrot.slane %v908_v15, 4  ;;  %v372_v30 = vrot.slane %v370_v4, 4 }
  0x7f   :  { %8525 = vmatpush2.bf16.msra.mxu1 %v13383_v39  ;;  %75 = vst [vmem:[#allocation2 + $0x384] sm:$0xf] %v39_v21  ;;  %v111_v25 = vld [vmem:[%s20879_s0 + $0x64] sm:$0xf]  ;;  %v13390_v26 = vld [vmem:[#allocation2 + $0x288] ss:$36 sps:$4 sm:$0xff]   ;;  %v657_v28 = vsel %vm14344_vm5, %v655_v19, %v656_v9 }
  0x80   :  { %9136 = vmatprep.subr.bf16.mxu1 %v13833_v0  ;;  %v364_v27 = vrot.slane %v363_v17, 4  ;;  %1043 = vst [vmem:[#allocation2 + $0x9c] sm:$0xf] %v909_v23  ;;  %v112_v29 = vld [vmem:[%s20879_s0 + $0x68] sm:$0xf]  ;;  %v376_v31 = vshll.u32 %v111_v25, 16  ;;  %v912_v36 = vsel %vm14344_vm5, %v910_v24, %v911_v20  ;;  %v373_v43 = vor.u32 %v372_v30, %v368_v13 }
  0x81   :  { %8270 = vmatmul.mubr.bf16.gmra.mxu0 %v13380_v52  ;;  %8486 = vmatmul.mubr.bf16.gmra.mxu1 %v13381_v53  ;;  %v13419_v32 = vld [vmem:[%s20878_s1 + $0x178] sm:$0xff]   ;;  %v13387_v33 = vld [vmem:[#allocation2 + $0x8] ss:$36 sps:$4 sm:$0xff]   ;;  %789 = vst [vmem:[#allocation2 + $0xbc] sm:$0xf] %v657_v28  ;;  %v380_v37 = vshrl.u32 %v111_v25, 16 }
  0x82   :  { %8277 = vmatprep.mubr.bf16.mxu0 %v13385_v56  ;;  %8526 = vmatprep.mubr.bf16.mxu1 %v13389_v57  ;;  %v13391_v35 = vld [vmem:[%s20878_s1 + $0x1b8] sm:$0xff]   ;;  %v369_v42 = vsel %vm13919_vm2, %v364_v27, %v368_v13  ;;  %1044 = vst [vmem:[#allocation2 + $0xc0] sm:$0xf] %v912_v36  ;;  %v378_v44 = vrot.slane %v376_v31, 5  ;;  %v386_v46 = vshll.u32 %v112_v29, 16  ;;  %v390_v47 = vshrl.u32 %v112_v29, 16 }
  0x83   :  { %v569_v38 = vld [vmem:[%s20879_s0 + $0x1c] sm:$0xf]  ;;  %v13392_v39 = vld [vmem:[#allocation2 + $0x2d4] ss:$36 sps:$4 sm:$0xff]   ;;  %549 = vst [vmem:[#allocation2 + $0x340] sm:$0xf] %v369_v42  ;;  %8832 = vmatpush2.bf16.msra.mxu0 %v13419_v32 }
  0x84   :  { %v13394_v41 = vld [vmem:[#allocation2 + $0x54] ss:$36 sps:$4 sm:$0xff]   ;;  %v382_v45 = vrot.slane %v380_v37, 4  ;;  %v570_v49 = vld [vmem:[%s20879_s0 + $0x20] sm:$0xf]  ;;  %v658_v50 = vrot.slane %v656_v9, 4  ;;  %8833 = vmatprep.subr.bf16.mxu0 %v13833_v0 }
  0x85   :  { %v374_v51 = vrot.slane %v373_v43, 4  ;;  %v659_v52 = vrot.slane %v569_v38, 5  ;;  %v662_v53 = vrot.slane %v570_v49, 5  ;;  %v827_v54 = vld [vmem:[%s20879_s0 + $0x24] sm:$0xf]  ;;  %v913_v55 = vrot.slane %v911_v20, 4 }
  0x86   :  { %v383_v56 = vor.u32 %v382_v45, %v378_v44  ;;  %v388_v57 = vrot.slane %v386_v46, 5  ;;  %v828_v58 = vld [vmem:[%s20879_s0 + $0x28] sm:$0xf]  ;;  %v914_v59 = vrot.slane %v827_v54, 5  ;;  %v392_v60 = vrot.slane %v390_v47, 4  ;;  %v13409_v5 = vld [vmem:[%s20878_s1 + $0x1b0] sm:$0xff]  }
  0x87   :  { %v379_v61 = vsel %vm13919_vm2, %v374_v51, %v378_v44  ;;  %v660_v62 = vsel %vm14344_vm5, %v658_v50, %v659_v52  ;;  %v661_v63 = vrot.slane %v659_v52, 4  ;;  %v917_v1 = vrot.slane %v828_v58, 5  ;;  %v13397_v7 = vld [vmem:[#allocation2 + $0x50] ss:$36 sps:$4 sm:$0xff]   ;;  %v40_v9 = vld [vmem:[%s20879_s0 + $0x68] sm:$0xf] }
  0x88   :  { %v384_v2 = vrot.slane %v383_v56, 4  ;;  %550 = vst [vmem:[#allocation2 + $0x364] sm:$0xf] %v379_v61  ;;  %790 = vst [vmem:[#allocation2 + $0xe0] sm:$0xf] %v660_v62  ;;  %v915_v3 = vsel %vm14344_vm5, %v913_v55, %v914_v59  ;;  %v916_v4 = vrot.slane %v914_v59, 4  ;;  %v393_v6 = vor.u32 %v392_v60, %v388_v57 }
  0x89   :  { %8278 = vmatmul.mubr.bf16.gmra.mxu0 %v13390_v26  ;;  %8527 = vmatmul.mubr.bf16.vlgmr.msra.gmra.mxu1 %v13387_v33  ;;  %v663_v8 = vsel %vm14344_vm5, %v661_v63, %v662_v53  ;;  %1045 = vst [vmem:[#allocation2 + $0xe4] sm:$0xf] %v915_v3  ;;  %v41_v10 = vld [vmem:[%s20879_s0 + $0x6c] sm:$0xf]  ;;  %v13396_v11 = vld [vmem:[#allocation2 + $0x2d0] ss:$36 sps:$4 sm:$0xff]  }
  0x8a   :  { %9137 = vmatpush1.bf16.msra.mxu1 %v13391_v35  ;;  %8285 = vmatprep.mubr.bf16.mxu0 %v13392_v39  ;;  %v13401_v12 = vld [vmem:[#allocation2 + $0x9c] ss:$36 sps:$4 sm:$0xff]   ;;  %v389_v13 = vsel %vm13919_vm2, %v384_v2, %v388_v57  ;;  %791 = vst [vmem:[#allocation2 + $0x104] sm:$0xf] %v663_v8  ;;  %v918_v14 = vsel %vm14344_vm5, %v916_v4, %v917_v1  ;;  %76 = vst [vmem:[#allocation2 + $0x3a8] sm:$0xf] %v40_v9 }
  0x8b   :  { %8534 = vmatprep.mubr.bf16.mxu1 %v13394_v41  ;;  %9138 = vmatprep.subr.bf16.mxu1 %v13833_v0  ;;  %77 = vst [vmem:[#allocation2 + $0x3cc] sm:$0xf] %v41_v10  ;;  %v13399_v15 = vld [vmem:[#allocation2 + $0x31c] ss:$36 sps:$4 sm:$0xff]   ;;  %551 = vst [vmem:[#allocation2 + $0x388] sm:$0xf] %v389_v13 }
  0x8c   :  { %1046 = vst [vmem:[#allocation2 + $0x108] sm:$0xf] %v918_v14  ;;  %v394_v16 = vrot.slane %v393_v6, 4  ;;  %v664_v17 = vrot.slane %v662_v53, 4  ;;  %v13426_v18 = vld [vmem:[%s20878_s1 + $0x1a8] sm:$0xff]   ;;  %v919_v35 = vrot.slane %v917_v1, 4 }
  0x8d   :  { %v113_v19 = vld [vmem:[%s20879_s0 + $0x6c] sm:$0xf]  ;;  %v114_v20 = vld [vmem:[%s20879_s0 + $0x70] sm:$0xf]  ;;  %v571_v21 = vld [vmem:[%s20879_s0 + $0x24] sm:$0xf] }
  0x8e   :  { %9139 = vmatpush1.bf16.msra.mxu1 %v13409_v5  ;;  %v396_v22 = vshll.u32 %v113_v19, 16  ;;  %v400_v23 = vshrl.u32 %v113_v19, 16  ;;  %v406_v24 = vshll.u32 %v114_v20, 16  ;;  %v410_v25 = vshrl.u32 %v114_v20, 16  ;;  %v572_v26 = vld [vmem:[%s20879_s0 + $0x28] sm:$0xf] }
  0x8f   :  { %9140 = vmatprep.subr.bf16.mxu1 %v13833_v0  ;;  %v665_v27 = vrot.slane %v571_v21, 5  ;;  %v668_v28 = vrot.slane %v572_v26, 5  ;;  %v829_v29 = vld [vmem:[%s20879_s0 + $0x2c] sm:$0xf]  ;;  %v14538_v30 = vld [vmem:[%s20879_s0 + $0x30] sm:$0xf] }
  0x90   :  { %v398_v31 = vrot.slane %v396_v22, 5  ;;  %v402_v32 = vrot.slane %v400_v23, 4  ;;  %v408_v33 = vrot.slane %v406_v24, 5  ;;  %v13433_v36 = vld [vmem:[%s20878_s1 + $0x170] sm:$0xff]   ;;  %v920_v39 = vrot.slane %v829_v29, 5 }
  0x91   :  { %8286 = vmatmul.mubr.bf16.gmra.mxu0 %v13396_v11  ;;  %8535 = vmatmul.mubr.bf16.gmra.mxu1 %v13397_v7  ;;  %v666_v37 = vsel %vm14344_vm5, %v664_v17, %v665_v27  ;;  %v667_v38 = vrot.slane %v665_v27, 4  ;;  %v923_v41 = vrot.slane %v14538_v30, 5  ;;  %v42_v44 = vld [vmem:[%s20879_s0 + $0x70] sm:$0xf]  ;;  %v43_v45 = vld [vmem:[%s20879_s0 + $0x74] sm:$0xf] }
  0x92   :  { %8293 = vmatprep.mubr.bf16.mxu0 %v13399_v15  ;;  %8542 = vmatprep.mubr.bf16.mxu1 %v13401_v12  ;;  %v399_v42 = vsel %vm13919_vm2, %v394_v16, %v398_v31  ;;  %v403_v43 = vor.u32 %v402_v32, %v398_v31  ;;  %792 = vst [vmem:[#allocation2 + $0x128] sm:$0xf] %v666_v37  ;;  %v13404_v46 = vld [vmem:[#allocation2 + $0x98] ss:$36 sps:$4 sm:$0xff]   ;;  %v922_v50 = vrot.slane %v920_v39, 4  ;;  %v412_v51 = vrot.slane %v410_v25, 4 }
  0x93   :  { %9141 = vmatpush1.bf16.msra.mxu1 %v13426_v18  ;;  %8834 = vmatpush2.bf16.msra.mxu0 %v13433_v36  ;;  %552 = vst [vmem:[#allocation2 + $0x3ac] sm:$0xf] %v399_v42  ;;  %v669_v47 = vsel %vm14344_vm5, %v667_v38, %v668_v28  ;;  %v921_v49 = vsel %vm14344_vm5, %v919_v35, %v920_v39  ;;  %78 = vst [vmem:[#allocation2 + $0x3f0] sm:$0xf] %v42_v44  ;;  %v13403_v52 = vld [vmem:[#allocation2 + $0x318] ss:$36 sps:$4 sm:$0xff]  }
  0x94   :  { %79 = vst [vmem:[#allocation2 + $0x414] sm:$0xf] %v43_v45  ;;  %9142 = vmatprep.subr.bf16.mxu1 %v13833_v0  ;;  %8835 = vmatprep.subr.bf16.mxu0 %v13833_v0  ;;  %v13405_v53 = vld [vmem:[#allocation2 + $0x364] ss:$36 sps:$4 sm:$0xff]   ;;  %793 = vst [vmem:[#allocation2 + $0x14c] sm:$0xf] %v669_v47  ;;  %v924_v56 = vsel %vm14344_vm5, %v922_v50, %v923_v41  ;;  %v413_v59 = vor.u32 %v412_v51, %v408_v33 }
  0x95   :  { %v13407_v54 = vld [vmem:[#allocation2 + $0xe4] ss:$36 sps:$4 sm:$0xff]   ;;  %1047 = vst [vmem:[#allocation2 + $0x12c] sm:$0xf] %v921_v49  ;;  %v404_v55 = vrot.slane %v403_v43, 4  ;;  %v670_v60 = vrot.slane %v668_v28, 4 }
  0x96   :  { %v115_v57 = vld [vmem:[%s20879_s0 + $0x74] sm:$0xf]  ;;  %v116_v58 = vld [vmem:[%s20879_s0 + $0x78] sm:$0xf]  ;;  %1048 = vst [vmem:[#allocation2 + $0x150] sm:$0xf] %v924_v56 }
  0x97   :  { %v416_v61 = vshll.u32 %v115_v57, 16  ;;  %v420_v62 = vshrl.u32 %v115_v57, 16  ;;  %v426_v63 = vshll.u32 %v116_v58, 16  ;;  %v430_v1 = vshrl.u32 %v116_v58, 16  ;;  %v573_v2 = vld [vmem:[%s20879_s0 + $0x2c] sm:$0xf] }
  0x98   :  { %v409_v3 = vsel %vm13919_vm2, %v404_v55, %v408_v33  ;;  %v414_v4 = vrot.slane %v413_v59, 4  ;;  %v574_v5 = vld [vmem:[%s20879_s0 + $0x30] sm:$0xf]  ;;  %v671_v6 = vrot.slane %v573_v2, 5  ;;  %v831_v7 = vld [vmem:[%s20879_s0 + $0x34] sm:$0xf] }
  0x99   :  { %8294 = vmatmul.mubr.bf16.gmra.mxu0 %v13403_v52  ;;  %8543 = vmatmul.mubr.bf16.gmra.mxu1 %v13404_v46  ;;  %553 = vst [vmem:[#allocation2 + $0x3d0] sm:$0xf] %v409_v3  ;;  %v418_v8 = vrot.slane %v416_v61, 5  ;;  %v422_v9 = vrot.slane %v420_v62, 4  ;;  %v428_v10 = vrot.slane %v426_v63, 5  ;;  %v674_v11 = vrot.slane %v574_v5, 5 }
  0x9a   :  { %v832_v12 = vld [vmem:[%s20879_s0 + $0x38] sm:$0xf]  ;;  %8301 = vmatprep.mubr.bf16.mxu0 %v13405_v53  ;;  %8550 = vmatprep.mubr.bf16.mxu1 %v13407_v54  ;;  %v672_v13 = vsel %vm14344_vm5, %v670_v60, %v671_v6  ;;  %v673_v14 = vrot.slane %v671_v6, 4  ;;  %v925_v15 = vrot.slane %v923_v41, 4  ;;  %v926_v16 = vrot.slane %v831_v7, 5  ;;  %v13440_v17 = vld [vmem:[%s20878_s1 + $0x1a0] sm:$0xff]  }
  0x9b   :  { %v13410_v18 = vld [vmem:[#allocation2 + $0x360] ss:$36 sps:$4 sm:$0xff]   ;;  %v419_v20 = vsel %vm13919_vm2, %v414_v4, %v418_v8  ;;  %v423_v21 = vor.u32 %v422_v9, %v418_v8  ;;  %794 = vst [vmem:[#allocation2 + $0x170] sm:$0xf] %v672_v13  ;;  %v929_v22 = vrot.slane %v832_v12, 5  ;;  %9143 = vmatpush1.bf16.msra.mxu1 %v13440_v17  ;;  %v432_v31 = vrot.slane %v430_v1, 4 }
  0x9c   :  { %v13411_v19 = vld [vmem:[#allocation2 + $0xe0] ss:$36 sps:$4 sm:$0xff]   ;;  %v44_v23 = vld [vmem:[%s20879_s0 + $0x78] sm:$0xf]  ;;  %554 = vst [vmem:[#allocation2 + $0x3f4] sm:$0xf] %v419_v20  ;;  %v675_v24 = vsel %vm14344_vm5, %v673_v14, %v674_v11  ;;  %v927_v25 = vsel %vm14344_vm5, %v925_v15, %v926_v16  ;;  %9144 = vmatprep.subr.bf16.mxu1 %v13833_v0 }
  0x9d   :  { %v928_v26 = vrot.slane %v926_v16, 4  ;;  %v45_v27 = vld [vmem:[%s20879_s0 + $0x7c] sm:$0xf]  ;;  %80 = vst [vmem:[#allocation2 + $0x438] sm:$0xf] %v44_v23  ;;  %v424_v29 = vrot.slane %v423_v21, 4  ;;  %v433_v39 = vor.u32 %v432_v31, %v428_v10 }
  0x9e   :  { %v117_v28 = vld [vmem:[%s20879_s0 + $0x7c] sm:$0xf]  ;;  %795 = vst [vmem:[#allocation2 + $0x194] sm:$0xf] %v675_v24  ;;  %1049 = vst [vmem:[#allocation2 + $0x174] sm:$0xf] %v927_v25 }
  0x9f   :  { %81 = vst [vmem:[#allocation2 + $0x45c] sm:$0xf] %v45_v27  ;;  %v118_v30 = vld [vmem:[%s20879_s0 + $0x80] sm:$0xf]  ;;  %v436_v32 = vshll.u32 %v117_v28, 16  ;;  %v440_v33 = vshrl.u32 %v117_v28, 16  ;;  %v930_v36 = vsel %vm14344_vm5, %v928_v26, %v929_v22  ;;  %v429_v38 = vsel %vm13919_vm2, %v424_v29, %v428_v10 }
  0xa0   :  { %v13415_v35 = vld [vmem:[#allocation2 + $0x12c] ss:$36 sps:$4 sm:$0xff]   ;;  %v446_v37 = vshll.u32 %v118_v30, 16  ;;  %1050 = vst [vmem:[#allocation2 + $0x198] sm:$0xf] %v930_v36  ;;  %v434_v47 = vrot.slane %v433_v39, 4 }
  0xa1   :  { %v438_v41 = vrot.slane %v436_v32, 5  ;;  %v442_v42 = vrot.slane %v440_v33, 4  ;;  %v575_v43 = vld [vmem:[%s20879_s0 + $0x34] sm:$0xf]  ;;  %v576_v44 = vld [vmem:[%s20879_s0 + $0x38] sm:$0xf]  ;;  %8302 = vmatmul.mubr.bf16.gmra.mxu0 %v13410_v18  ;;  %8551 = vmatmul.mubr.bf16.gmra.mxu1 %v13411_v19 }
  0xa2   :  { %v13413_v45 = vld [vmem:[#allocation2 + $0x3ac] ss:$36 sps:$4 sm:$0xff]   ;;  %555 = vst [vmem:[#allocation2 + $0x418] sm:$0xf] %v429_v38  ;;  %v448_v46 = vrot.slane %v446_v37, 5  ;;  %v450_v50 = vshrl.u32 %v118_v30, 16  ;;  %8558 = vmatprep.mubr.bf16.mxu1 %v13415_v35 }
  0xa3   :  { %v443_v49 = vor.u32 %v442_v42, %v438_v41  ;;  %v676_v51 = vrot.slane %v674_v11, 4  ;;  %v833_v52 = vld [vmem:[%s20879_s0 + $0x3c] sm:$0xf]  ;;  %v13447_v53 = vld [vmem:[%s20878_s1 + $0x168] sm:$0xff]   ;;  %8309 = vmatprep.mubr.bf16.mxu0 %v13413_v45  ;;  %v677_v54 = vrot.slane %v575_v43, 5  ;;  %v680_v55 = vrot.slane %v576_v44, 5 }
  0xa4   :  { %v834_v56 = vld [vmem:[%s20879_s0 + $0x40] sm:$0xf]  ;;  %v931_v57 = vrot.slane %v929_v22, 4  ;;  %v932_v58 = vrot.slane %v833_v52, 5  ;;  %v13417_v59 = vld [vmem:[#allocation2 + $0x3a8] ss:$36 sps:$4 sm:$0xff]   ;;  %v439_v61 = vsel %vm13919_vm2, %v434_v47, %v438_v41  ;;  %8836 = vmatpush2.bf16.msra.mxu0 %v13447_v53 }
  0xa5   :  { %v13418_v60 = vld [vmem:[#allocation2 + $0x128] ss:$36 sps:$4 sm:$0xff]   ;;  %v444_v62 = vrot.slane %v443_v49, 4  ;;  %v935_v63 = vrot.slane %v834_v56, 5  ;;  %v452_v1 = vrot.slane %v450_v50, 4  ;;  %v678_v2 = vsel %vm14344_vm5, %v676_v51, %v677_v54  ;;  %8837 = vmatprep.subr.bf16.mxu0 %v13833_v0  ;;  %v13454_v6 = vld [vmem:[%s20878_s1 + $0x198] sm:$0xff]  }
  0xa6   :  { %556 = vst [vmem:[#allocation2 + $0x43c] sm:$0xf] %v439_v61  ;;  %v679_v3 = vrot.slane %v677_v54, 4  ;;  %v933_v4 = vsel %vm14344_vm5, %v931_v57, %v932_v58  ;;  %v934_v5 = vrot.slane %v932_v58, 4  ;;  %796 = vst [vmem:[#allocation2 + $0x1b8] sm:$0xf] %v678_v2  ;;  %9145 = vmatpush1.bf16.msra.mxu1 %v13454_v6 }
  0xa7   :  { %v449_v7 = vsel %vm13919_vm2, %v444_v62, %v448_v46  ;;  %1051 = vst [vmem:[#allocation2 + $0x1bc] sm:$0xf] %v933_v4  ;;  %v46_v8 = vld [vmem:[%s20879_s0 + $0x80] sm:$0xf]  ;;  %v47_v9 = vld [vmem:[%s20879_s0 + $0x84] sm:$0xf]  ;;  %v453_v11 = vor.u32 %v452_v1, %v448_v46  ;;  %9146 = vmatprep.subr.bf16.mxu1 %v13833_v0 }
  0xa8   :  { %v119_v10 = vld [vmem:[%s20879_s0 + $0x84] sm:$0xf]  ;;  %v13422_v12 = vld [vmem:[#allocation2 + $0x174] ss:$36 sps:$4 sm:$0xff]   ;;  %557 = vst [vmem:[#allocation2 + $0x460] sm:$0xf] %v449_v7  ;;  %v681_v13 = vsel %vm14344_vm5, %v679_v3, %v680_v55  ;;  %v936_v14 = vsel %vm14344_vm5, %v934_v5, %v935_v63 }
  0xa9   :  { %82 = vst [vmem:[#allocation2 + $0x480] sm:$0xf] %v46_v8  ;;  %83 = vst [vmem:[#allocation2 + $0x4a4] sm:$0xf] %v47_v9  ;;  %v456_v15 = vshll.u32 %v119_v10, 16  ;;  %v454_v17 = vrot.slane %v453_v11, 4  ;;  %8310 = vmatmul.mubr.bf16.gmra.mxu0 %v13417_v59  ;;  %8559 = vmatmul.mubr.bf16.gmra.mxu1 %v13418_v60 }
  0xaa   :  { %v13420_v16 = vld [vmem:[#allocation2 + $0x3f4] ss:$36 sps:$4 sm:$0xff]   ;;  %797 = vst [vmem:[#allocation2 + $0x1dc] sm:$0xf] %v681_v13  ;;  %1052 = vst [vmem:[#allocation2 + $0x1e0] sm:$0xf] %v936_v14  ;;  %8566 = vmatprep.mubr.bf16.mxu1 %v13422_v12 }
  0xab   :  { %v120_v18 = vld [vmem:[%s20879_s0 + $0x88] sm:$0xf]  ;;  %v458_v19 = vrot.slane %v456_v15, 5  ;;  %v460_v20 = vshrl.u32 %v119_v10, 16  ;;  %v577_v21 = vld [vmem:[%s20879_s0 + $0x3c] sm:$0xf]  ;;  %8317 = vmatprep.mubr.bf16.mxu0 %v13420_v16 }
  0xac   :  { %v466_v22 = vshll.u32 %v120_v18, 16  ;;  %v470_v23 = vshrl.u32 %v120_v18, 16  ;;  %v578_v24 = vld [vmem:[%s20879_s0 + $0x40] sm:$0xf]  ;;  %v682_v25 = vrot.slane %v680_v55, 4  ;;  %v683_v26 = vrot.slane %v577_v21, 5 }
  0xad   :  { %v459_v27 = vsel %vm13919_vm2, %v454_v17, %v458_v19  ;;  %v462_v28 = vrot.slane %v460_v20, 4  ;;  %v686_v29 = vrot.slane %v578_v24, 5  ;;  %v835_v30 = vld [vmem:[%s20879_s0 + $0x44] sm:$0xf]  ;;  %v836_v31 = vld [vmem:[%s20879_s0 + $0x48] sm:$0xf] }
  0xae   :  { %v13425_v32 = vld [vmem:[#allocation2 + $0x170] ss:$36 sps:$4 sm:$0xff]   ;;  %558 = vst [vmem:[#allocation2 + $0x484] sm:$0xf] %v459_v27  ;;  %v684_v33 = vsel %vm14344_vm5, %v682_v25, %v683_v26  ;;  %v685_v35 = vrot.slane %v683_v26, 4  ;;  %v937_v36 = vrot.slane %v935_v63, 4 }
  0xaf   :  { %v463_v37 = vor.u32 %v462_v28, %v458_v19  ;;  %v468_v38 = vrot.slane %v466_v22, 5  ;;  %798 = vst [vmem:[#allocation2 + $0x200] sm:$0xf] %v684_v33  ;;  %v938_v39 = vrot.slane %v835_v30, 5  ;;  %v472_v41 = vrot.slane %v470_v23, 4  ;;  %v13455_v60 = vld [vmem:[%s20878_s1 + $0x160] sm:$0xff]  }
  0xb0   :  { %v13424_v42 = vld [vmem:[#allocation2 + $0x3f0] ss:$36 sps:$4 sm:$0xff]   ;;  %v13427_v43 = vld [vmem:[#allocation2 + $0x43c] ss:$36 sps:$4 sm:$0xff]   ;;  %v687_v44 = vsel %vm14344_vm5, %v685_v35, %v686_v29  ;;  %v941_v45 = vrot.slane %v836_v31, 5  ;;  %v688_v51 = vrot.slane %v686_v29, 4  ;;  %8838 = vmatpush2.bf16.msra.mxu0 %v13455_v60 }
  0xb1   :  { %v13429_v46 = vld [vmem:[#allocation2 + $0x1bc] ss:$36 sps:$4 sm:$0xff]   ;;  %v464_v47 = vrot.slane %v463_v37, 4  ;;  %799 = vst [vmem:[#allocation2 + $0x224] sm:$0xf] %v687_v44  ;;  %v939_v49 = vsel %vm14344_vm5, %v937_v36, %v938_v39  ;;  %v473_v50 = vor.u32 %v472_v41, %v468_v38  ;;  %v940_v52 = vrot.slane %v938_v39, 4  ;;  %8318 = vmatmul.mubr.bf16.gmra.mxu0 %v13424_v42  ;;  %8567 = vmatmul.mubr.bf16.gmra.mxu1 %v13425_v32 }
  0xb2   :  { %1053 = vst [vmem:[#allocation2 + $0x204] sm:$0xf] %v939_v49  ;;  %v48_v53 = vld [vmem:[%s20879_s0 + $0x88] sm:$0xf]  ;;  %v49_v54 = vld [vmem:[%s20879_s0 + $0x8c] sm:$0xf]  ;;  %8325 = vmatprep.mubr.bf16.mxu0 %v13427_v43  ;;  %8574 = vmatprep.mubr.bf16.mxu1 %v13429_v46 }
  0xb3   :  { %v943_v55 = vrot.slane %v941_v45, 4  ;;  %v469_v56 = vsel %vm13919_vm2, %v464_v47, %v468_v38  ;;  %84 = vst [vmem:[#allocation2 + $0x4c8] sm:$0xf] %v48_v53  ;;  %85 = vst [vmem:[#allocation2 + $0x4ec] sm:$0xf] %v49_v54  ;;  %v474_v59 = vrot.slane %v473_v50, 4  ;;  %v942_v61 = vsel %vm14344_vm5, %v940_v52, %v941_v45  ;;  %8839 = vmatprep.subr.bf16.mxu0 %v13833_v0 }
  0xb4   :  { %v121_v57 = vld [vmem:[%s20879_s0 + $0x8c] sm:$0xf]  ;;  %v122_v58 = vld [vmem:[%s20879_s0 + $0x90] sm:$0x1]  ;;  %559 = vst [vmem:[#allocation2 + $0x4a8] sm:$0xf] %v469_v56 }
  0xb5   :  { %v476_v62 = vshll.u32 %v121_v57, 16  ;;  %v480_v63 = vshrl.u32 %v121_v57, 16  ;;  %v486_v1 = vshll.u32 %v122_v58, 16  ;;  %v579_v2 = vld [vmem:[%s20879_s0 + $0x44] sm:$0xf]  ;;  %v13468_v3 = vld [vmem:[%s20878_s1 + $0x158] sm:$0xff]  }
  0xb6   :  { %1054 = vst [vmem:[#allocation2 + $0x228] sm:$0xf] %v942_v61  ;;  %v580_v4 = vld [vmem:[%s20879_s0 + $0x48] sm:$0xf]  ;;  %v689_v5 = vrot.slane %v579_v2, 5  ;;  %v13473_v18 = vld [vmem:[%s20878_s1 + $0x190] sm:$0xff]   ;;  %8840 = vmatpush2.bf16.msra.mxu0 %v13468_v3 }
  0xb7   :  { %v837_v6 = vld [vmem:[%s20879_s0 + $0x4c] sm:$0xf]  ;;  %v13431_v7 = vld [vmem:[#allocation2 + $0x438] ss:$36 sps:$4 sm:$0xff]   ;;  %v478_v9 = vrot.slane %v476_v62, 5  ;;  %v482_v10 = vrot.slane %v480_v63, 4  ;;  %9147 = vmatpush1.bf16.msra.mxu1 %v13473_v18  ;;  %8841 = vmatprep.subr.bf16.mxu0 %v13833_v0 }
  0xb8   :  { %v13432_v8 = vld [vmem:[#allocation2 + $0x1b8] ss:$36 sps:$4 sm:$0xff]   ;;  %v488_v11 = vrot.slane %v486_v1, 5  ;;  %v692_v12 = vrot.slane %v580_v4, 5  ;;  %v838_v13 = vld [vmem:[%s20879_s0 + $0x50] sm:$0xf]  ;;  %v690_v14 = vsel %vm14344_vm5, %v688_v51, %v689_v5  ;;  %9148 = vmatprep.subr.bf16.mxu1 %v13833_v0 }
  0xb9   :  { %v691_v15 = vrot.slane %v689_v5, 4  ;;  %v944_v16 = vrot.slane %v837_v6, 5  ;;  %v947_v17 = vrot.slane %v838_v13, 5  ;;  %v479_v19 = vsel %vm13919_vm2, %v474_v59, %v478_v9  ;;  %800 = vst [vmem:[#allocation2 + $0x248] sm:$0xf] %v690_v14  ;;  %8326 = vmatmul.mubr.bf16.gmra.mxu0 %v13431_v7  ;;  %8575 = vmatmul.mubr.bf16.gmra.mxu1 %v13432_v8 }
  0xba   :  { %v483_v20 = vor.u32 %v482_v10, %v478_v9  ;;  %v11892_v21 = vld [vmem:[%s20879_s0 + $0xa4] sm:$0xf]  ;;  %v11893_v22 = vld [vmem:[%s20879_s0 + $0xa8] sm:$0xf]  ;;  %560 = vst [vmem:[#allocation2 + $0x4cc] sm:$0xf] %v479_v19 }
  0xbb   :  { %v693_v23 = vsel %vm14344_vm5, %v691_v15, %v692_v12  ;;  %v945_v24 = vsel %vm14344_vm5, %v943_v55, %v944_v16  ;;  %v946_v25 = vrot.slane %v944_v16, 4  ;;  %2843 = vst [vmem:[#allocation2 + $0x510] sm:$0xf] %v11892_v21  ;;  %2844 = vst [vmem:[#allocation2 + $0x534] sm:$0xf] %v11893_v22  ;;  %v694_v51 = vrot.slane %v692_v12, 4 }
  0xbc   :  { %v11928_v26 = vld [vmem:[%s20879_s0 + $0xa4] sm:$0xf]  ;;  %v11929_v27 = vld [vmem:[%s20879_s0 + $0xa8] sm:$0xf]  ;;  %v484_v28 = vrot.slane %v483_v20, 4  ;;  %v949_v53 = vrot.slane %v947_v17, 4 }
  0xbd   :  { %801 = vst [vmem:[#allocation2 + $0x26c] sm:$0xf] %v693_v23  ;;  %1055 = vst [vmem:[#allocation2 + $0x24c] sm:$0xf] %v945_v24  ;;  %v11930_v29 = vld [vmem:[%s20879_s0 + $0xac] sm:$0xf]  ;;  %v948_v35 = vsel %vm14344_vm5, %v946_v25, %v947_v17 }
  0xbe   :  { %v2917_v30 = vshrl.u32 %v11928_v26, 16  ;;  %v2920_v31 = vshll.u32 %v11928_v26, 16  ;;  %v2926_v32 = vshll.u32 %v11929_v27, 16  ;;  %v13434_v33 = vld [vmem:[#allocation2 + $0x484] ss:$36 sps:$4 sm:$0xff]   ;;  %v2930_v36 = vshrl.u32 %v11929_v27, 16 }
  0xbf   :  { %v13436_v37 = vld [vmem:[#allocation2 + $0x204] ss:$36 sps:$4 sm:$0xff]   ;;  %v489_v38 = vsel %vm13919_vm2, %v484_v28, %v488_v11  ;;  %1056 = vst [vmem:[#allocation2 + $0x270] sm:$0xf] %v948_v35  ;;  %8333 = vmatprep.mubr.bf16.mxu0 %v13434_v33  ;;  %v2936_v44 = vshll.u32 %v11930_v29, 16  ;;  %v2940_v49 = vshrl.u32 %v11930_v29, 16 }
  0xc0   :  { %v2919_v39 = vrot.slane %v2917_v30, 4  ;;  %561 = vst [vmem:[#allocation2 + $0x4f0] sm:$0xf] %v489_v38  ;;  %v2922_v41 = vrot.slane %v2920_v31, 5  ;;  %v2928_v42 = vrot.slane %v2926_v32, 5  ;;  %v2932_v43 = vrot.slane %v2930_v36, 4  ;;  %8582 = vmatprep.mubr.bf16.mxu1 %v13436_v37 }
  0xc1   :  { %v581_v45 = vld [vmem:[%s20879_s0 + $0x4c] sm:$0xf]  ;;  %v13438_v46 = vld [vmem:[#allocation2 + $0x480] ss:$36 sps:$4 sm:$0xff]   ;;  %v582_v50 = vld [vmem:[%s20879_s0 + $0x50] sm:$0xf] }
  0xc2   :  { %v13439_v47 = vld [vmem:[#allocation2 + $0x200] ss:$36 sps:$4 sm:$0xff]   ;;  %v695_v52 = vrot.slane %v581_v45, 5  ;;  %v2923_v54 = vor.u32 %v2922_v41, %v2919_v39  ;;  %v2933_v55 = vor.u32 %v2932_v43, %v2928_v42  ;;  %v2938_v56 = vrot.slane %v2936_v44, 5  ;;  %v839_v58 = vld [vmem:[%s20879_s0 + $0x54] sm:$0xf]  ;;  %8334 = vmatmul.mubr.bf16.gmra.mxu0 %v13438_v46 }
  0xc3   :  { %v698_v57 = vrot.slane %v582_v50, 5  ;;  %v840_v59 = vld [vmem:[%s20879_s0 + $0x58] sm:$0xf]  ;;  %v950_v62 = vrot.slane %v839_v58, 5  ;;  %v2942_v3 = vrot.slane %v2940_v49, 4  ;;  %8583 = vmatmul.mubr.bf16.gmra.mxu1 %v13439_v47  ;;  %v13482_v24 = vld [vmem:[%s20878_s1 + $0x150] sm:$0xff]  }
  0xc4   :  { %v696_v60 = vsel %vm14344_vm5, %v694_v51, %v695_v52  ;;  %v697_v61 = vrot.slane %v695_v52, 4  ;;  %v953_v63 = vrot.slane %v840_v59, 5  ;;  %v2924_v1 = vrot.slane %v2923_v54, 4  ;;  %v11894_v15 = vld [vmem:[%s20879_s0 + $0xac] sm:$0xf]  ;;  %8842 = vmatpush2.bf16.msra.mxu0 %v13482_v24 }
  0xc5   :  { %v2934_v2 = vrot.slane %v2933_v55, 4  ;;  %802 = vst [vmem:[#allocation2 + $0x290] sm:$0xf] %v696_v60  ;;  %v951_v5 = vsel %vm14344_vm5, %v949_v53, %v950_v62  ;;  %v952_v6 = vrot.slane %v950_v62, 4  ;;  %v2943_v10 = vor.u32 %v2942_v3, %v2938_v56  ;;  %v11895_v16 = vld [vmem:[%s20879_s0 + $0xb0] sm:$0xf]  ;;  %8843 = vmatprep.subr.bf16.mxu0 %v13833_v0 }
  0xc6   :  { %v699_v4 = vsel %vm14344_vm5, %v697_v61, %v698_v57  ;;  %v13443_v7 = vld [vmem:[#allocation2 + $0x24c] ss:$36 sps:$4 sm:$0xff]   ;;  %v2929_v8 = vsel %vm13919_vm2, %v2924_v1, %v2928_v42  ;;  %1057 = vst [vmem:[#allocation2 + $0x294] sm:$0xf] %v951_v5  ;;  %v700_v13 = vrot.slane %v698_v57, 4  ;;  %v955_v14 = vrot.slane %v953_v63, 4 }
  0xc7   :  { %v2939_v9 = vsel %vm13919_vm2, %v2934_v2, %v2938_v56  ;;  %803 = vst [vmem:[#allocation2 + $0x2b4] sm:$0xf] %v699_v4  ;;  %v13441_v11 = vld [vmem:[#allocation2 + $0x4cc] ss:$36 sps:$4 sm:$0xff]   ;;  %3316 = vst [vmem:[#allocation2 + $0x514] sm:$0xf] %v2929_v8  ;;  %v954_v12 = vsel %vm14344_vm5, %v952_v6, %v953_v63  ;;  %8590 = vmatprep.mubr.bf16.mxu1 %v13443_v7 }
  0xc8   :  { %3317 = vst [vmem:[#allocation2 + $0x538] sm:$0xf] %v2939_v9  ;;  %1058 = vst [vmem:[#allocation2 + $0x2b8] sm:$0xf] %v954_v12  ;;  %v11931_v17 = vld [vmem:[%s20879_s0 + $0xb0] sm:$0xf]  ;;  %8341 = vmatprep.mubr.bf16.mxu0 %v13441_v11 }
  0xc9   :  { %v13445_v18 = vld [vmem:[#allocation2 + $0x4c8] ss:$36 sps:$4 sm:$0xff]   ;;  %2845 = vst [vmem:[#allocation2 + $0x558] sm:$0xf] %v11894_v15  ;;  %2846 = vst [vmem:[#allocation2 + $0x57c] sm:$0xf] %v11895_v16 }
  0xca   :  { %v13446_v19 = vld [vmem:[#allocation2 + $0x248] ss:$36 sps:$4 sm:$0xff]   ;;  %v11932_v20 = vld [vmem:[%s20879_s0 + $0xb4] sm:$0xf]  ;;  %v2944_v21 = vrot.slane %v2943_v10, 4  ;;  %v2946_v22 = vshll.u32 %v11931_v17, 16  ;;  %8342 = vmatmul.mubr.bf16.gmra.mxu0 %v13445_v18 }
  0xcb   :  { %v2950_v23 = vshrl.u32 %v11931_v17, 16  ;;  %v2956_v25 = vshll.u32 %v11932_v20, 16  ;;  %v2960_v26 = vshrl.u32 %v11932_v20, 16  ;;  %v583_v27 = vld [vmem:[%s20879_s0 + $0x54] sm:$0xf]  ;;  %8591 = vmatmul.mubr.bf16.gmra.mxu1 %v13446_v19  ;;  %v13489_v2 = vld [vmem:[%s20878_s1 + $0x188] sm:$0xff]  }
  0xcc   :  { %v584_v28 = vld [vmem:[%s20879_s0 + $0x58] sm:$0xf]  ;;  %v2948_v29 = vrot.slane %v2946_v22, 5  ;;  %v701_v31 = vrot.slane %v583_v27, 5  ;;  %v841_v33 = vld [vmem:[%s20879_s0 + $0x5c] sm:$0xf]  ;;  %9149 = vmatpush1.bf16.msra.mxu1 %v13489_v2 }
  0xcd   :  { %v2952_v30 = vrot.slane %v2950_v23, 4  ;;  %v704_v32 = vrot.slane %v584_v28, 5  ;;  %v2958_v35 = vrot.slane %v2956_v25, 5  ;;  %v842_v36 = vld [vmem:[%s20879_s0 + $0x60] sm:$0xf]  ;;  %v956_v37 = vrot.slane %v841_v33, 5  ;;  %9150 = vmatprep.subr.bf16.mxu1 %v13833_v0 }
  0xce   :  { %v11896_v38 = vld [vmem:[%s20879_s0 + $0xb4] sm:$0xf]  ;;  %v2949_v39 = vsel %vm13919_vm2, %v2944_v21, %v2948_v29  ;;  %v702_v42 = vsel %vm14344_vm5, %v700_v13, %v701_v31  ;;  %v703_v43 = vrot.slane %v701_v31, 4  ;;  %v11897_v44 = vld [vmem:[%s20879_s0 + $0xb8] sm:$0xf]  ;;  %v959_v50 = vrot.slane %v842_v36, 5 }
  0xcf   :  { %v2953_v41 = vor.u32 %v2952_v30, %v2948_v29  ;;  %2847 = vst [vmem:[#allocation2 + $0x5a0] sm:$0xf] %v11896_v38  ;;  %v11933_v45 = vld [vmem:[%s20879_s0 + $0xb8] sm:$0xf]  ;;  %3318 = vst [vmem:[#allocation2 + $0x55c] sm:$0xf] %v2949_v39  ;;  %v957_v47 = vsel %vm14344_vm5, %v955_v14, %v956_v37 }
  0xd0   :  { %v13448_v46 = vld [vmem:[#allocation2 + $0x514] ss:$36 sps:$4 sm:$0xff]   ;;  %804 = vst [vmem:[#allocation2 + $0x2d8] sm:$0xf] %v702_v42  ;;  %v958_v49 = vrot.slane %v956_v37, 4  ;;  %v705_v53 = vsel %vm14344_vm5, %v703_v43, %v704_v32  ;;  %v2962_v56 = vrot.slane %v2960_v26, 4 }
  0xd1   :  { %2848 = vst [vmem:[#allocation2 + $0x5c4] sm:$0xf] %v11897_v44  ;;  %v13450_v51 = vld [vmem:[#allocation2 + $0x294] ss:$36 sps:$4 sm:$0xff]   ;;  %v2954_v52 = vrot.slane %v2953_v41, 4  ;;  %8349 = vmatprep.mubr.bf16.mxu0 %v13448_v46  ;;  %v2966_v57 = vshll.u32 %v11933_v45, 16 }
  0xd2   :  { %1059 = vst [vmem:[#allocation2 + $0x2dc] sm:$0xf] %v957_v47  ;;  %805 = vst [vmem:[#allocation2 + $0x2fc] sm:$0xf] %v705_v53  ;;  %v960_v54 = vsel %vm14344_vm5, %v958_v49, %v959_v50  ;;  %v11934_v55 = vld [vmem:[%s20879_s0 + $0xbc] sm:$0xf]  ;;  %8598 = vmatprep.mubr.bf16.mxu1 %v13450_v51  ;;  %v2963_v3 = vor.u32 %v2962_v56, %v2958_v35 }
  0xd3   :  { %v13452_v58 = vld [vmem:[#allocation2 + $0x510] ss:$36 sps:$4 sm:$0xff]   ;;  %v2959_v60 = vsel %vm13919_vm2, %v2954_v52, %v2958_v35  ;;  %1060 = vst [vmem:[#allocation2 + $0x300] sm:$0xf] %v960_v54  ;;  %v2970_v61 = vshrl.u32 %v11933_v45, 16  ;;  %v2976_v62 = vshll.u32 %v11934_v55, 16 }
  0xd4   :  { %v13453_v59 = vld [vmem:[#allocation2 + $0x290] ss:$36 sps:$4 sm:$0xff]   ;;  %v2980_v63 = vshrl.u32 %v11934_v55, 16  ;;  %v585_v1 = vld [vmem:[%s20879_s0 + $0x5c] sm:$0xf]  ;;  %v2968_v4 = vrot.slane %v2966_v57, 5  ;;  %8350 = vmatmul.mubr.bf16.gmra.mxu0 %v13452_v58 }
  0xd5   :  { %3319 = vst [vmem:[#allocation2 + $0x580] sm:$0xf] %v2959_v60  ;;  %v586_v5 = vld [vmem:[%s20879_s0 + $0x60] sm:$0xf]  ;;  %v706_v6 = vrot.slane %v704_v32, 4  ;;  %v707_v7 = vrot.slane %v585_v1, 5  ;;  %8599 = vmatmul.mubr.bf16.gmra.mxu1 %v13453_v59 }
  0xd6   :  { %v13490_v8 = vld [vmem:[%s20878_s1 + $0x148] sm:$0xff]   ;;  %v2972_v9 = vrot.slane %v2970_v61, 4  ;;  %v2978_v10 = vrot.slane %v2976_v62, 5  ;;  %v710_v11 = vrot.slane %v586_v5, 5  ;;  %v843_v12 = vld [vmem:[%s20879_s0 + $0x64] sm:$0xf] }
  0xd7   :  { %v961_v13 = vrot.slane %v959_v50, 4  ;;  %v2964_v14 = vrot.slane %v2963_v3, 4  ;;  %v708_v15 = vsel %vm14344_vm5, %v706_v6, %v707_v7  ;;  %v709_v16 = vrot.slane %v707_v7, 4  ;;  %v844_v17 = vld [vmem:[%s20879_s0 + $0x68] sm:$0xf]  ;;  %8844 = vmatpush2.bf16.msra.mxu0 %v13490_v8  ;;  %v13503_v19 = vld [vmem:[%s20878_s1 + $0x180] sm:$0xff]  }
  0xd8   :  { %v962_v18 = vrot.slane %v843_v12, 5  ;;  %v2973_v20 = vor.u32 %v2972_v9, %v2968_v4  ;;  %806 = vst [vmem:[#allocation2 + $0x320] sm:$0xf] %v708_v15  ;;  %v965_v21 = vrot.slane %v844_v17, 5  ;;  %8845 = vmatprep.subr.bf16.mxu0 %v13833_v0  ;;  %v11898_v26 = vld [vmem:[%s20879_s0 + $0xbc] sm:$0xf]  ;;  %9151 = vmatpush1.bf16.msra.mxu1 %v13503_v19 }
  0xd9   :  { %v2969_v22 = vsel %vm13919_vm2, %v2964_v14, %v2968_v4  ;;  %v711_v23 = vsel %vm14344_vm5, %v709_v16, %v710_v11  ;;  %v11899_v27 = vld [vmem:[%s20879_s0 + $0xc0] sm:$0xf]  ;;  %2849 = vst [vmem:[#allocation2 + $0x5e8] sm:$0xf] %v11898_v26  ;;  %v11936_v30 = vld [vmem:[%s20879_s0 + $0xc4] sm:$0xf]  ;;  %9152 = vmatprep.subr.bf16.mxu1 %v13833_v0 }
  0xda   :  { %v963_v24 = vsel %vm14344_vm5, %v961_v13, %v962_v18  ;;  %v964_v25 = vrot.slane %v962_v18, 4  ;;  %v2974_v28 = vrot.slane %v2973_v20, 4  ;;  %3320 = vst [vmem:[#allocation2 + $0x5a4] sm:$0xf] %v2969_v22  ;;  %807 = vst [vmem:[#allocation2 + $0x344] sm:$0xf] %v711_v23 }
  0xdb   :  { %1061 = vst [vmem:[#allocation2 + $0x324] sm:$0xf] %v963_v24  ;;  %2850 = vst [vmem:[#allocation2 + $0x60c] sm:$0xf] %v11899_v27  ;;  %v11935_v29 = vld [vmem:[%s20879_s0 + $0xc0] sm:$0xf] }
  0xdc   :  { %v2982_v31 = vrot.slane %v2980_v63, 4  ;;  %v13458_v32 = vld [vmem:[#allocation2 + $0x2dc] ss:$36 sps:$4 sm:$0xff]   ;;  %v966_v33 = vsel %vm14344_vm5, %v964_v25, %v965_v21  ;;  %v2986_v35 = vshll.u32 %v11935_v29, 16  ;;  %v2979_v39 = vsel %vm13919_vm2, %v2974_v28, %v2978_v10  ;;  %v587_v46 = vld [vmem:[%s20879_s0 + $0x64] sm:$0xf] }
  0xdd   :  { %v13456_v36 = vld [vmem:[#allocation2 + $0x55c] ss:$36 sps:$4 sm:$0xff]   ;;  %1062 = vst [vmem:[#allocation2 + $0x348] sm:$0xf] %v966_v33  ;;  %v2990_v42 = vshrl.u32 %v11935_v29, 16  ;;  %8606 = vmatprep.mubr.bf16.mxu1 %v13458_v32  ;;  %v2996_v44 = vshll.u32 %v11936_v30, 16 }
  0xde   :  { %v13460_v37 = vld [vmem:[#allocation2 + $0x558] ss:$36 sps:$4 sm:$0xff]   ;;  %v2983_v41 = vor.u32 %v2982_v31, %v2978_v10  ;;  %3321 = vst [vmem:[#allocation2 + $0x5c8] sm:$0xf] %v2979_v39  ;;  %v2988_v43 = vrot.slane %v2986_v35, 5  ;;  %v3000_v45 = vshrl.u32 %v11936_v30, 16  ;;  %8357 = vmatprep.mubr.bf16.mxu0 %v13456_v36 }
  0xdf   :  { %v13461_v38 = vld [vmem:[#allocation2 + $0x2d8] ss:$36 sps:$4 sm:$0xff]   ;;  %v712_v47 = vrot.slane %v710_v11, 4  ;;  %v2992_v50 = vrot.slane %v2990_v42, 4  ;;  %v588_v51 = vld [vmem:[%s20879_s0 + $0x68] sm:$0xf]  ;;  %8358 = vmatmul.mubr.bf16.gmra.mxu0 %v13460_v37 }
  0xe0   :  { %v2984_v49 = vrot.slane %v2983_v41, 4  ;;  %v713_v52 = vrot.slane %v587_v46, 5  ;;  %v967_v53 = vrot.slane %v965_v21, 4  ;;  %v2998_v54 = vrot.slane %v2996_v44, 5  ;;  %v845_v56 = vld [vmem:[%s20879_s0 + $0x6c] sm:$0xf]  ;;  %8607 = vmatmul.mubr.bf16.gmra.mxu1 %v13461_v38 }
  0xe1   :  { %v716_v55 = vrot.slane %v588_v51, 5  ;;  %v846_v57 = vld [vmem:[%s20879_s0 + $0x70] sm:$0xf]  ;;  %v2993_v59 = vor.u32 %v2992_v50, %v2988_v43  ;;  %v13504_v62 = vld [vmem:[%s20878_s1 + $0x140] sm:$0xff]   ;;  %v968_v63 = vrot.slane %v845_v56, 5  ;;  %v3002_v7 = vrot.slane %v3000_v45, 4 }
  0xe2   :  { %v2989_v58 = vsel %vm13919_vm2, %v2984_v49, %v2988_v43  ;;  %v714_v60 = vsel %vm14344_vm5, %v712_v47, %v713_v52  ;;  %v715_v61 = vrot.slane %v713_v52, 4  ;;  %v971_v1 = vrot.slane %v846_v57, 5  ;;  %v11900_v2 = vld [vmem:[%s20879_s0 + $0xc4] sm:$0xf]  ;;  %v11901_v5 = vld [vmem:[%s20879_s0 + $0xc8] sm:$0xf]  ;;  %8846 = vmatpush2.bf16.msra.mxu0 %v13504_v62 }
  0xe3   :  { %3322 = vst [vmem:[#allocation2 + $0x5ec] sm:$0xf] %v2989_v58  ;;  %808 = vst [vmem:[#allocation2 + $0x368] sm:$0xf] %v714_v60  ;;  %v2994_v3 = vrot.slane %v2993_v59, 4  ;;  %v969_v9 = vsel %vm14344_vm5, %v967_v53, %v968_v63  ;;  %v970_v10 = vrot.slane %v968_v63, 4  ;;  %v3003_v15 = vor.u32 %v3002_v7, %v2998_v54 }
  0xe4   :  { %v717_v4 = vsel %vm14344_vm5, %v715_v61, %v716_v55  ;;  %2851 = vst [vmem:[#allocation2 + $0x630] sm:$0xf] %v11900_v2  ;;  %v11937_v6 = vld [vmem:[%s20879_s0 + $0xc8] sm:$0xf]  ;;  %2852 = vst [vmem:[#allocation2 + $0x654] sm:$0xf] %v11901_v5 }
  0xe5   :  { %v13464_v8 = vld [vmem:[#allocation2 + $0x324] ss:$36 sps:$4 sm:$0xff]   ;;  %809 = vst [vmem:[#allocation2 + $0x38c] sm:$0xf] %v717_v4  ;;  %v2999_v14 = vsel %vm13919_vm2, %v2994_v3, %v2998_v54  ;;  %1063 = vst [vmem:[#allocation2 + $0x36c] sm:$0xf] %v969_v9  ;;  %v972_v17 = vsel %vm14344_vm5, %v970_v10, %v971_v1 }
  0xe6   :  { %v13462_v11 = vld [vmem:[#allocation2 + $0x5a4] ss:$36 sps:$4 sm:$0xff]   ;;  %v3006_v16 = vshll.u32 %v11937_v6, 16  ;;  %8614 = vmatprep.mubr.bf16.mxu1 %v13464_v8  ;;  %3323 = vst [vmem:[#allocation2 + $0x610] sm:$0xf] %v2999_v14  ;;  %v3010_v19 = vshrl.u32 %v11937_v6, 16 }
  0xe7   :  { %v13466_v12 = vld [vmem:[#allocation2 + $0x5a0] ss:$36 sps:$4 sm:$0xff]   ;;  %v11938_v18 = vld [vmem:[%s20879_s0 + $0xcc] sm:$0xf]  ;;  %v718_v21 = vrot.slane %v716_v55, 4  ;;  %8365 = vmatprep.mubr.bf16.mxu0 %v13462_v11  ;;  %v3004_v22 = vrot.slane %v3003_v15, 4 }
  0xe8   :  { %v13467_v13 = vld [vmem:[#allocation2 + $0x320] ss:$36 sps:$4 sm:$0xff]   ;;  %v589_v20 = vld [vmem:[%s20879_s0 + $0x6c] sm:$0xf]  ;;  %1064 = vst [vmem:[#allocation2 + $0x390] sm:$0xf] %v972_v17  ;;  %8366 = vmatmul.mubr.bf16.gmra.mxu0 %v13466_v12 }
  0xe9   :  { %v3008_v23 = vrot.slane %v3006_v16, 5  ;;  %v3016_v24 = vshll.u32 %v11938_v18, 16  ;;  %v3020_v25 = vshrl.u32 %v11938_v18, 16  ;;  %v590_v26 = vld [vmem:[%s20879_s0 + $0x70] sm:$0xf]  ;;  %v3012_v27 = vrot.slane %v3010_v19, 4  ;;  %8615 = vmatmul.mubr.bf16.gmra.mxu1 %v13467_v13 }
  0xea   :  { %v719_v28 = vrot.slane %v589_v20, 5  ;;  %v722_v29 = vrot.slane %v590_v26, 5  ;;  %v847_v30 = vld [vmem:[%s20879_s0 + $0x74] sm:$0xf]  ;;  %v973_v31 = vrot.slane %v971_v1, 4 }
  0xeb   :  { %v3009_v32 = vsel %vm13919_vm2, %v3004_v22, %v3008_v23  ;;  %v3018_v33 = vrot.slane %v3016_v24, 5  ;;  %v848_v35 = vld [vmem:[%s20879_s0 + $0x78] sm:$0xf]  ;;  %v974_v36 = vrot.slane %v847_v30, 5  ;;  %v3022_v37 = vrot.slane %v3020_v25, 4 }
  0xec   :  { %v3013_v38 = vor.u32 %v3012_v27, %v3008_v23  ;;  %3324 = vst [vmem:[#allocation2 + $0x634] sm:$0xf] %v3009_v32  ;;  %v720_v39 = vsel %vm14344_vm5, %v718_v21, %v719_v28  ;;  %v721_v41 = vrot.slane %v719_v28, 4  ;;  %v977_v42 = vrot.slane %v848_v35, 5  ;;  %v11902_v45 = vld [vmem:[%s20879_s0 + $0xcc] sm:$0xf] }
  0xed   :  { %810 = vst [vmem:[#allocation2 + $0x3b0] sm:$0xf] %v720_v39  ;;  %v975_v43 = vsel %vm14344_vm5, %v973_v31, %v974_v36  ;;  %v976_v44 = vrot.slane %v974_v36, 4  ;;  %v11903_v46 = vld [vmem:[%s20879_s0 + $0xd0] sm:$0xf]  ;;  %v3023_v47 = vor.u32 %v3022_v37, %v3018_v33  ;;  %v724_v49 = vrot.slane %v722_v29, 4 }
  0xee   :  { %v3014_v50 = vrot.slane %v3013_v38, 4  ;;  %v723_v51 = vsel %vm14344_vm5, %v721_v41, %v722_v29  ;;  %1065 = vst [vmem:[#allocation2 + $0x3b4] sm:$0xf] %v975_v43  ;;  %2853 = vst [vmem:[#allocation2 + $0x678] sm:$0xf] %v11902_v45  ;;  %v979_v3 = vrot.slane %v977_v42, 4 }
  0xef   :  { %2854 = vst [vmem:[#allocation2 + $0x69c] sm:$0xf] %v11903_v46  ;;  %v11939_v52 = vld [vmem:[%s20879_s0 + $0xd0] sm:$0xf]  ;;  %v11940_v53 = vld [vmem:[%s20879_s0 + $0xd4] sm:$0xf]  ;;  %v978_v56 = vsel %vm14344_vm5, %v976_v44, %v977_v42 }
  0xf0   :  { %v13469_v54 = vld [vmem:[#allocation2 + $0x5ec] ss:$36 sps:$4 sm:$0xff]   ;;  %811 = vst [vmem:[#allocation2 + $0x3d4] sm:$0xf] %v723_v51  ;;  %v3024_v57 = vrot.slane %v3023_v47, 4  ;;  %v3019_v60 = vsel %vm13919_vm2, %v3014_v50, %v3018_v33  ;;  %v3026_v61 = vshll.u32 %v11939_v52, 16 }
  0xf1   :  { %v13474_v55 = vld [vmem:[#allocation2 + $0x5e8] ss:$36 sps:$4 sm:$0xff]   ;;  %1066 = vst [vmem:[#allocation2 + $0x3d8] sm:$0xf] %v978_v56  ;;  %8373 = vmatprep.mubr.bf16.mxu0 %v13469_v54  ;;  %3325 = vst [vmem:[#allocation2 + $0x658] sm:$0xf] %v3019_v60 }
  0xf2   :  { %v13471_v58 = vld [vmem:[#allocation2 + $0x36c] ss:$36 sps:$4 sm:$0xff]   ;;  %v3030_v62 = vshrl.u32 %v11939_v52, 16  ;;  %v3036_v63 = vshll.u32 %v11940_v53, 16  ;;  %v3040_v1 = vshrl.u32 %v11940_v53, 16  ;;  %v3028_v4 = vrot.slane %v3026_v61, 5  ;;  %8374 = vmatmul.mubr.bf16.gmra.mxu0 %v13474_v55 }
  0xf3   :  { %v13475_v59 = vld [vmem:[#allocation2 + $0x368] ss:$36 sps:$4 sm:$0xff]   ;;  %v591_v2 = vld [vmem:[%s20879_s0 + $0x74] sm:$0xf]  ;;  %8622 = vmatprep.mubr.bf16.mxu1 %v13471_v58  ;;  %v592_v5 = vld [vmem:[%s20879_s0 + $0x78] sm:$0xf] }
  0xf4   :  { %v725_v6 = vrot.slane %v591_v2, 5  ;;  %v849_v7 = vld [vmem:[%s20879_s0 + $0x7c] sm:$0xf]  ;;  %v3032_v8 = vrot.slane %v3030_v62, 4  ;;  %v3038_v9 = vrot.slane %v3036_v63, 5  ;;  %v728_v10 = vrot.slane %v592_v5, 5  ;;  %8623 = vmatmul.mubr.bf16.gmra.mxu1 %v13475_v59 }
  0xf5   :  { %v850_v11 = vld [vmem:[%s20879_s0 + $0x80] sm:$0xf]  ;;  %v3029_v12 = vsel %vm13919_vm2, %v3024_v57, %v3028_v4  ;;  %v980_v15 = vrot.slane %v849_v7, 5  ;;  %v11904_v21 = vld [vmem:[%s20879_s0 + $0xd4] sm:$0xf]  ;;  %v3042_v23 = vrot.slane %v3040_v1, 4 }
  0xf6   :  { %v726_v13 = vsel %vm14344_vm5, %v724_v49, %v725_v6  ;;  %v727_v14 = vrot.slane %v725_v6, 4  ;;  %v3033_v16 = vor.u32 %v3032_v8, %v3028_v4  ;;  %3326 = vst [vmem:[#allocation2 + $0x67c] sm:$0xf] %v3029_v12  ;;  %v983_v17 = vrot.slane %v850_v11, 5  ;;  %v11905_v22 = vld [vmem:[%s20879_s0 + $0xd8] sm:$0xf] }
  0xf7   :  { %812 = vst [vmem:[#allocation2 + $0x3f8] sm:$0xf] %v726_v13  ;;  %v981_v19 = vsel %vm14344_vm5, %v979_v3, %v980_v15  ;;  %v982_v20 = vrot.slane %v980_v15, 4  ;;  %v13481_v25 = vld [vmem:[#allocation2 + $0x3b0] ss:$36 sps:$4 sm:$0xff]   ;;  %v3043_v30 = vor.u32 %v3042_v23, %v3038_v9  ;;  %v730_v31 = vrot.slane %v728_v10, 4 }
  0xf8   :  { %v729_v18 = vsel %vm14344_vm5, %v727_v14, %v728_v10  ;;  %v13478_v24 = vld [vmem:[#allocation2 + $0x3b4] ss:$36 sps:$4 sm:$0xff]   ;;  %v3034_v26 = vrot.slane %v3033_v16, 4  ;;  %1067 = vst [vmem:[#allocation2 + $0x3fc] sm:$0xf] %v981_v19  ;;  %v985_v47 = vrot.slane %v983_v17, 4 }
  0xf9   :  { %813 = vst [vmem:[#allocation2 + $0x41c] sm:$0xf] %v729_v18  ;;  %2855 = vst [vmem:[#allocation2 + $0x6c0] sm:$0xf] %v11904_v21  ;;  %v13476_v27 = vld [vmem:[#allocation2 + $0x634] ss:$36 sps:$4 sm:$0xff]   ;;  %v984_v29 = vsel %vm14344_vm5, %v982_v20, %v983_v17  ;;  %8630 = vmatprep.mubr.bf16.mxu1 %v13478_v24 }
  0xfa   :  { %2856 = vst [vmem:[#allocation2 + $0x6e4] sm:$0xf] %v11905_v22  ;;  %v13480_v28 = vld [vmem:[#allocation2 + $0x630] ss:$36 sps:$4 sm:$0xff]   ;;  %v3039_v32 = vsel %vm13919_vm2, %v3034_v26, %v3038_v9  ;;  %1068 = vst [vmem:[#allocation2 + $0x420] sm:$0xf] %v984_v29  ;;  %8381 = vmatprep.mubr.bf16.mxu0 %v13476_v27 }
  0xfb   :  { %v11941_v33 = vld [vmem:[%s20879_s0 + $0xd8] sm:$0xf]  ;;  %v11942_v35 = vld [vmem:[%s20879_s0 + $0xdc] sm:$0xf]  ;;  %3327 = vst [vmem:[#allocation2 + $0x6a0] sm:$0xf] %v3039_v32  ;;  %8382 = vmatmul.mubr.bf16.gmra.mxu0 %v13480_v28 }
  0xfc   :  { %v593_v36 = vld [vmem:[%s20879_s0 + $0x7c] sm:$0xf]  ;;  %v3044_v37 = vrot.slane %v3043_v30, 4  ;;  %v3046_v38 = vshll.u32 %v11941_v33, 16  ;;  %v3050_v39 = vshrl.u32 %v11941_v33, 16  ;;  %v3056_v41 = vshll.u32 %v11942_v35, 16  ;;  %8631 = vmatmul.mubr.bf16.gmra.mxu1 %v13481_v25 }
  0xfd   :  { %v594_v42 = vld [vmem:[%s20879_s0 + $0x80] sm:$0xf]  ;;  %v3060_v43 = vshrl.u32 %v11942_v35, 16  ;;  %v731_v44 = vrot.slane %v593_v36, 5  ;;  %v851_v46 = vld [vmem:[%s20879_s0 + $0x84] sm:$0xf] }
  0xfe   :  { %v734_v45 = vrot.slane %v594_v42, 5  ;;  %v3048_v49 = vrot.slane %v3046_v38, 5  ;;  %v3052_v50 = vrot.slane %v3050_v39, 4  ;;  %v3058_v51 = vrot.slane %v3056_v41, 5  ;;  %v852_v52 = vld [vmem:[%s20879_s0 + $0x88] sm:$0xf] }
  0xff   :  { %v732_v53 = vsel %vm14344_vm5, %v730_v31, %v731_v44  ;;  %v733_v54 = vrot.slane %v731_v44, 4  ;;  %v986_v55 = vrot.slane %v851_v46, 5  ;;  %v989_v56 = vrot.slane %v852_v52, 5  ;;  %v11906_v57 = vld [vmem:[%s20879_s0 + $0xdc] sm:$0xf]  ;;  %v13537_v31 = vld [vmem:[%s20878_s1 + $0x1f0] sm:$0xff]  }
 0x100   :  { %v14996_v58 = vld [vmem:[%s20878_s1 + $0x238] sm:$0xff]   ;;  %v3049_v59 = vsel %vm13919_vm2, %v3044_v37, %v3048_v49  ;;  %v3053_v60 = vor.u32 %v3052_v50, %v3048_v49  ;;  %814 = vst [vmem:[#allocation2 + $0x440] sm:$0xf] %v732_v53  ;;  %v11907_v61 = vld [vmem:[%s20879_s0 + $0xe0] sm:$0xf]  ;;  %v3062_v63 = vrot.slane %v3060_v43, 4 }
 0x101   :  { %2857 = vst [vmem:[#allocation2 + $0x708] sm:$0xf] %v11906_v57  ;;  %v11943_v62 = vld [vmem:[%s20879_s0 + $0xe0] sm:$0xf]  ;;  %3328 = vst [vmem:[#allocation2 + $0x6c4] sm:$0xf] %v3049_v59  ;;  %v735_v1 = vsel %vm14344_vm5, %v733_v54, %v734_v45  ;;  %v987_v2 = vsel %vm14344_vm5, %v985_v47, %v986_v55  ;;  %13028 = vmatprep.subr.bf16.mxu0 %v14996_v58 }
 0x102   :  { %v988_v3 = vrot.slane %v986_v55, 4  ;;  %2858 = vst [vmem:[#allocation2 + $0x72c] sm:$0xf] %v11907_v61  ;;  %v11944_v4 = vld [vmem:[%s20879_s0 + $0xe4] sm:$0xf]  ;;  %v3066_v5 = vshll.u32 %v11943_v62, 16  ;;  %v3063_v10 = vor.u32 %v3062_v63, %v3058_v51 }
 0x103   :  { %v595_v6 = vld [vmem:[%s20879_s0 + $0x84] sm:$0xf]  ;;  %v13485_v7 = vld [vmem:[#allocation2 + $0x3fc] ss:$36 sps:$4 sm:$0xff]   ;;  %v3054_v9 = vrot.slane %v3053_v60, 4  ;;  %v3070_v17 = vshrl.u32 %v11943_v62, 16 }
 0x104   :  { %v13488_v8 = vld [vmem:[#allocation2 + $0x3f8] ss:$36 sps:$4 sm:$0xff]   ;;  %815 = vst [vmem:[#allocation2 + $0x464] sm:$0xf] %v735_v1  ;;  %1069 = vst [vmem:[#allocation2 + $0x444] sm:$0xf] %v987_v2  ;;  %v990_v13 = vsel %vm14344_vm5, %v988_v3, %v989_v56  ;;  %8638 = vmatprep.mubr.bf16.mxu1 %v13485_v7 }
 0x105   :  { %v13483_v11 = vld [vmem:[#allocation2 + $0x67c] ss:$36 sps:$4 sm:$0xff]   ;;  %v3068_v14 = vrot.slane %v3066_v5, 5  ;;  %v3059_v15 = vsel %vm13919_vm2, %v3054_v9, %v3058_v51  ;;  %1070 = vst [vmem:[#allocation2 + $0x468] sm:$0xf] %v990_v13  ;;  %v3064_v16 = vrot.slane %v3063_v10, 4  ;;  %8639 = vmatmul.mubr.bf16.gmra.mxu1 %v13488_v8  ;;  %v15070_v5 = vpop.f32.mrf.mxu1 }
 0x106   :  { %v13487_v12 = vld [vmem:[#allocation2 + $0x678] ss:$36 sps:$4 sm:$0xff]   ;;  %v3076_v18 = vshll.u32 %v11944_v4, 16  ;;  %v596_v19 = vld [vmem:[%s20879_s0 + $0x88] sm:$0xf]  ;;  %8389 = vmatprep.mubr.bf16.mxu0 %v13483_v11  ;;  %v3080_v21 = vshrl.u32 %v11944_v4, 16  ;;  %v15068_v4 = vpop.f32.mrf.mxu0 }
 0x107   :  { %v13518_v20 = vld [vmem:[%s20878_s1 + $0x1f8] sm:$0xff]   ;;  %3329 = vst [vmem:[#allocation2 + $0x6e8] sm:$0xf] %v3059_v15  ;;  %v736_v22 = vrot.slane %v734_v45, 4  ;;  %v737_v23 = vrot.slane %v595_v6, 5  ;;  %v740_v24 = vrot.slane %v596_v19, 5  ;;  %v3069_v26 = vsel %vm13919_vm2, %v3064_v16, %v3068_v14  ;;  %8390 = vmatmul.mubr.bf16.gmra.mxu0 %v13487_v12 }
 0x108   :  { %v853_v25 = vld [vmem:[%s20879_s0 + $0x8c] sm:$0xf]  ;;  %v3072_v27 = vrot.slane %v3070_v17, 4  ;;  %v3078_v28 = vrot.slane %v3076_v18, 5  ;;  %v854_v29 = vld [vmem:[%s20879_s0 + $0x90] sm:$0xf]  ;;  %9153 = vmatpush2.bf16.msra.mxu1 %v13518_v20  ;;  %v8209_v16 = vpop.f32.mrf.mxu0  ;;  %v8425_v17 = vpop.f32.mrf.mxu1 }
 0x109   :  { %v991_v30 = vrot.slane %v989_v56, 4  ;;  %3330 = vst [vmem:[#allocation2 + $0x70c] sm:$0xf] %v3069_v26  ;;  %v738_v32 = vsel %vm14344_vm5, %v736_v22, %v737_v23  ;;  %v739_v33 = vrot.slane %v737_v23, 4  ;;  %v992_v35 = vrot.slane %v853_v25, 5  ;;  %9154 = vmatprep.subr.bf16.mxu1 %v13833_v0  ;;  %20898 = vst [vmem:[#allocation3_spill] sm:$0xff] %v15070_v5 }
 0x10a   :  { %v995_v36 = vrot.slane %v854_v29, 5  ;;  %v3073_v37 = vor.u32 %v3072_v27, %v3068_v14  ;;  %816 = vst [vmem:[#allocation2 + $0x488] sm:$0xf] %v738_v32  ;;  %v3082_v38 = vrot.slane %v3080_v21, 4  ;;  %v11908_v43 = vld [vmem:[%s20879_s0 + $0xe4] sm:$0xf]  ;;  %v15109_v29 = vpop.f32.mrf.mxu0 }
 0x10b   :  { %v741_v39 = vsel %vm14344_vm5, %v739_v33, %v740_v24  ;;  %v993_v41 = vsel %vm14344_vm5, %v991_v30, %v992_v35  ;;  %v994_v42 = vrot.slane %v992_v35, 4  ;;  %v11909_v45 = vld [vmem:[%s20879_s0 + $0xe8] sm:$0xf]  ;;  %2859 = vst [vmem:[#allocation2 + $0x750] sm:$0xf] %v11908_v43  ;;  %v742_v49 = vrot.slane %v740_v24, 4  ;;  %v15111_v30 = vpop.f32.mrf.mxu1 }
 0x10c   :  { %v3074_v44 = vrot.slane %v3073_v37, 4  ;;  %817 = vst [vmem:[#allocation2 + $0x4ac] sm:$0xf] %v741_v39  ;;  %1071 = vst [vmem:[#allocation2 + $0x48c] sm:$0xf] %v993_v41  ;;  %v3083_v47 = vor.u32 %v3082_v38, %v3078_v28  ;;  %9155 = vmatpush2.bf16.msra.mxu1 %v13537_v31  ;;  %v997_v3 = vrot.slane %v995_v36, 4  ;;  %v8212_v41 = vpop.f32.mrf.mxu0 }
 0x10d   :  { %v11945_v46 = vld [vmem:[%s20879_s0 + $0xe8] sm:$0xf]  ;;  %v13496_v51 = vld [vmem:[#allocation2 + $0x440] ss:$36 sps:$4 sm:$0xff]   ;;  %v996_v52 = vsel %vm14344_vm5, %v994_v42, %v995_v36  ;;  %2860 = vst [vmem:[#allocation2 + $0x774] sm:$0xf] %v11909_v45  ;;  %9156 = vmatprep.subr.bf16.mxu1 %v13833_v0  ;;  %v8428_v42 = vpop.f32.mrf.mxu1 }
 0x10e   :  { %v13493_v50 = vld [vmem:[#allocation2 + $0x444] ss:$36 sps:$4 sm:$0xff]   ;;  %v3086_v53 = vshll.u32 %v11945_v46, 16  ;;  %v3079_v56 = vsel %vm13919_vm2, %v3074_v44, %v3078_v28  ;;  %1072 = vst [vmem:[#allocation2 + $0x4b0] sm:$0xf] %v996_v52  ;;  %v3084_v57 = vrot.slane %v3083_v47, 4 }
 0x10f   :  { %v13491_v54 = vld [vmem:[#allocation2 + $0x6c4] ss:$36 sps:$4 sm:$0xff]   ;;  %8646 = vmatprep.mubr.bf16.mxu1 %v13493_v50  ;;  %3331 = vst [vmem:[#allocation2 + $0x730] sm:$0xf] %v3079_v56  ;;  %v3090_v60 = vshrl.u32 %v11945_v46, 16  ;;  %20899 = vst [vmem:[#allocation4_spill] sm:$0xff] %v15111_v30  ;;  %v15140_v52 = vpop.f32.mrf.mxu1 }
 0x110   :  { %v13495_v55 = vld [vmem:[#allocation2 + $0x6c0] ss:$36 sps:$4 sm:$0xff]   ;;  %v3088_v59 = vrot.slane %v3086_v53, 5  ;;  %v597_v61 = vld [vmem:[%s20879_s0 + $0x8c] sm:$0xf]  ;;  %8397 = vmatprep.mubr.bf16.mxu0 %v13491_v54  ;;  %8647 = vmatmul.mubr.bf16.gmra.mxu1 %v13496_v51  ;;  %v15138_v51 = vpop.f32.mrf.mxu0  ;;  %20900 = vst [vmem:[#allocation5_spill] sm:$0xff] %v15140_v52 }
 0x111   :  { %v598_v62 = vld [vmem:[%s20879_s0 + $0x90] sm:$0x1]  ;;  %v743_v63 = vrot.slane %v597_v61, 5  ;;  %v855_v2 = vld [vmem:[%s20879_s0 + $0x94] sm:$0xf]  ;;  %8398 = vmatmul.mubr.bf16.gmra.mxu0 %v13495_v55  ;;  %v3092_v7 = vrot.slane %v3090_v60, 4 }
 0x112   :  { %v746_v1 = vrot.slane %v598_v62, 5  ;;  %v3089_v6 = vsel %vm13919_vm2, %v3084_v57, %v3088_v59  ;;  %v856_v8 = vld [vmem:[%s20879_s0 + $0x98] sm:$0x1]  ;;  %v998_v9 = vrot.slane %v855_v2, 5  ;;  %v11965_v10 = vld [vmem:[%s20879_s0 + $0xa4] sm:$0xe]  ;;  %v8217_v62 = vpop.f32.mrf.mxu0 }
 0x113   :  { %3332 = vst [vmem:[#allocation2 + $0x754] sm:$0xf] %v3089_v6  ;;  %v744_v11 = vsel %vm14344_vm5, %v742_v49, %v743_v63  ;;  %v745_v12 = vrot.slane %v743_v63, 4  ;;  %v1001_v13 = vrot.slane %v856_v8, 5  ;;  %v11966_v14 = vld [vmem:[%s20879_s0 + $0xa8] sm:$0xf]  ;;  %v3093_v18 = vor.u32 %v3092_v7, %v3088_v59  ;;  %v8433_v63 = vpop.f32.mrf.mxu1 }
 0x114   :  { %v15088_v15 = vld [vmem:[%s20879_s0 + $0xac] sm:$0xf]  ;;  %818 = vst [vmem:[#allocation2 + $0x4d0] sm:$0xf] %v744_v11  ;;  %v999_v19 = vsel %vm14344_vm5, %v997_v3, %v998_v9  ;;  %v1000_v20 = vrot.slane %v998_v9, 4  ;;  %v12002_v21 = vrot.slane %v11965_v10, 9 }
 0x115   :  { %v12003_v22 = vld [vmem:[%s20879_s0 + $0xac] sm:$0xe]  ;;  %v747_v24 = vsel %vm14344_vm5, %v745_v12, %v746_v1  ;;  %1073 = vst [vmem:[#allocation2 + $0x4d4] sm:$0xf] %v999_v19  ;;  %v3428_v25 = vrot.slane %v11966_v14, 5  ;;  %v3431_v26 = vrot.slane %v15088_v15, 5  ;;  %v15167_v14 = vpop.f32.mrf.mxu1 }
 0x116   :  { %v13551_v23 = vld [vmem:[%s20878_s1 + $0x1e8] sm:$0xff]   ;;  %v12004_v27 = vld [vmem:[%s20879_s0 + $0xb0] sm:$0xf]  ;;  %v15107_v28 = vld [vmem:[%s20879_s0 + $0xb4] sm:$0xf]  ;;  %v3094_v33 = vrot.slane %v3093_v18, 4  ;;  %v1002_v35 = vsel %vm14344_vm5, %v1000_v20, %v1001_v13  ;;  %v15165_v13 = vpop.f32.mrf.mxu0 }
 0x117   :  { %v13499_v31 = vld [vmem:[#allocation2 + $0x48c] ss:$36 sps:$4 sm:$0xff]   ;;  %819 = vst [vmem:[#allocation2 + $0x4f4] sm:$0xf] %v747_v24  ;;  %9157 = vmatpush2.bf16.msra.mxu1 %v13551_v23  ;;  %1074 = vst [vmem:[#allocation2 + $0x4f8] sm:$0xf] %v1002_v35  ;;  %v3429_v38 = vsel %vm14344_vm5, %v12002_v21, %v3428_v25 }
 0x118   :  { %v13502_v32 = vld [vmem:[#allocation2 + $0x488] ss:$36 sps:$4 sm:$0xff]   ;;  %v3430_v39 = vrot.slane %v3428_v25, 4  ;;  %9158 = vmatprep.subr.bf16.mxu1 %v13833_v0  ;;  %8654 = vmatprep.mubr.bf16.mxu1 %v13499_v31  ;;  %v3099_v43 = vsel %vm13919_vm2, %v3094_v33, %v13925_v40  ;;  %3571 = vst [vmem:[#allocation2 + $0x518] sm:$0xf] %v3429_v38  ;;  %v12040_v44 = vrot.slane %v12003_v22, 9  ;;  %v8220_v24 = vpop.f32.mrf.mxu0  ;;  %v8436_v25 = vpop.f32.mrf.mxu1 }
 0x119   :  { %v13497_v36 = vld [vmem:[#allocation2 + $0x70c] ss:$36 sps:$4 sm:$0xff]   ;;  %v3683_v45 = vrot.slane %v12004_v27, 5  ;;  %v3686_v46 = vrot.slane %v15107_v28, 5  ;;  %v1075_v47 = vld [vmem:[%s20879_s0 + $0x8] sm:$0xe]  ;;  %8655 = vmatmul.mubr.bf16.gmra.mxu1 %v13502_v32 }
 0x11a   :  { %v13501_v37 = vld [vmem:[#allocation2 + $0x708] ss:$36 sps:$4 sm:$0xff]   ;;  %v13564_v49 = vld [vmem:[%s20878_s1 + $0x1e0] sm:$0xff]   ;;  %8405 = vmatprep.mubr.bf16.mxu0 %v13497_v36  ;;  %3333 = vst [vmem:[#allocation2 + $0x778] sm:$0xf] %v3099_v43  ;;  %v3432_v34 = vsel %vm14344_vm5, %v3430_v39, %v3431_v26  ;;  %v1116_v55 = vshrl.u32 %v1075_v47, 16  ;;  %v15183_v41 = vpop.f32.mrf.mxu0  ;;  %v15185_v42 = vpop.f32.mrf.mxu1 }
 0x11b   :  { %v1076_v40 = vld [vmem:[%s20879_s0 + $0xc] sm:$0xf]  ;;  %v1077_v50 = vld [vmem:[%s20879_s0 + $0x10] sm:$0xf]  ;;  %8406 = vmatmul.mubr.bf16.gmra.mxu0 %v13501_v37  ;;  %3572 = vst [vmem:[#allocation2 + $0x53c] sm:$0xf] %v3432_v34  ;;  %v3684_v53 = vsel %vm14344_vm5, %v12040_v44, %v3683_v45  ;;  %9159 = vmatpush2.bf16.msra.mxu1 %v13564_v49 }
 0x11c   :  { %v3685_v54 = vrot.slane %v3683_v45, 4  ;;  %vm1113_vm8 = vsmask.f32 6416  ;;  %3826 = vst [vmem:[#allocation2 + $0x51c] sm:$0xf] %v3684_v53  ;;  %v1119_v56 = vshll.u32 %v1075_v47, 16  ;;  %9160 = vmatprep.subr.bf16.mxu1 %v13833_v0  ;;  %v8441_v53 = vpop.f32.mrf.mxu1 }
 0x11d   :  { %v1125_v57 = vshrl.u32 %v1076_v40, 16  ;;  %v1128_v59 = vshll.u32 %v1076_v40, 16  ;;  %v1135_v60 = vshrl.u32 %v1077_v50, 16  ;;  %v1555_v61 = vld [vmem:[%s20879_s0 + $0x8] sm:$0xc]  ;;  %v1118_v2 = vrot.slane %v1116_v55, 5  ;;  %vm15171_vm11 = vmor %vm1112_vm7, %vm1113_vm8 }
 0x11e   :  { %v3687_v1 = vsel %vm14344_vm5, %v3685_v54, %v3686_v46  ;;  %v1138_v3 = vshll.u32 %v1077_v50, 16  ;;  %v1556_v6 = vld [vmem:[%s20879_s0 + $0xc] sm:$0xf]  ;;  %v1121_v7 = vrot.slane %v1119_v56, 6  ;;  %v15158_v11 = vld [vmem:[%s20879_s0 + $0x10] sm:$0xf]  ;;  %v8225_v50 = vpop.f32.mrf.mxu0 }
 0x11f   :  { %3827 = vst [vmem:[#allocation2 + $0x540] sm:$0xf] %v3687_v1  ;;  %v1127_v8 = vrot.slane %v1125_v57, 5  ;;  %v1130_v9 = vrot.slane %v1128_v59, 6  ;;  %v1137_v10 = vrot.slane %v1135_v60, 5  ;;  %20903 = vst [vmem:[#allocation6_spill] sm:$0xff] %v15167_v14  ;;  %v15218_v1 = vpop.f32.mrf.mxu1 }
 0x120   :  { %v13507_v16 = vld [vmem:[#allocation2 + $0x4d4] ss:$36 sps:$4 sm:$0xff]   ;;  %v1140_v18 = vrot.slane %v1138_v3, 6  ;;  %v1122_v20 = vor.u32 %v1121_v7, %v1118_v2  ;;  %v11889_v22 = vrot.slane %v1555_v61, 10  ;;  %v1634_v23 = vrot.slane %v1556_v6, 6  ;;  %20906 = vst [vmem:[#allocation7_spill] sm:$0xff] %v15185_v42  ;;  %v15216_v63 = vpop.f32.mrf.mxu0 }
 0x121   :  { %v13510_v17 = vld [vmem:[#allocation2 + $0x4d0] ss:$36 sps:$4 sm:$0xff]   ;;  %v1131_v21 = vor.u32 %v1130_v9, %v1127_v8  ;;  %8662 = vmatprep.mubr.bf16.mxu1 %v13507_v16  ;;  %v1637_v33 = vrot.slane %v15158_v11, 6  ;;  %v13578_v39 = vld [vmem:[%s20878_s1 + $0x1d8] sm:$0xff]   ;;  %v3433_v44 = vrot.slane %v3431_v26, 4  ;;  %v3688_v61 = vrot.slane %v3686_v46, 4 }
 0x122   :  { %v13505_v27 = vld [vmem:[#allocation2 + $0x754] ss:$36 sps:$4 sm:$0xff]   ;;  %v15175_v32 = vor.u32 %v1140_v18, %v1137_v10  ;;  %v1123_v35 = vrot.slane %v1122_v20, 4  ;;  %v1635_v37 = vsel %vm15161_vm10, %v11889_v22, %v1634_v23  ;;  %v1636_v38 = vrot.slane %v1634_v23, 4  ;;  %8663 = vmatmul.mubr.bf16.gmra.mxu1 %v13510_v17  ;;  %v11968_v43 = vld [vmem:[%s20879_s0 + $0xb0] sm:$0xf]  ;;  %v8228_v16 = vpop.f32.mrf.mxu0  ;;  %v8444_v17 = vpop.f32.mrf.mxu1 }
 0x123   :  { %v13509_v31 = vld [vmem:[#allocation2 + $0x750] ss:$36 sps:$4 sm:$0xff]   ;;  %v1133_v36 = vrot.slane %v1131_v21, 4  ;;  %8413 = vmatprep.mubr.bf16.mxu0 %v13505_v27  ;;  %1777 = vst [vmem:[#allocation2 + $0x14] sm:$0xf] %v1635_v37  ;;  %v3434_v40 = vrot.slane %v11968_v43, 5  ;;  %9161 = vmatpush2.bf16.msra.mxu1 %v13578_v39 }
 0x124   :  { %8414 = vmatmul.mubr.bf16.gmra.mxu0 %v13509_v31  ;;  %v1132_v45 = vsel %vm15171_vm11, %v1123_v35, %v1131_v21  ;;  %v1638_v49 = vsel %vm15161_vm10, %v1636_v38, %v1637_v33  ;;  %v11969_v34 = vld [vmem:[%s20879_s0 + $0xb4] sm:$0xf]  ;;  %v12006_v15 = vld [vmem:[%s20879_s0 + $0xb8] sm:$0xf]  ;;  %9162 = vmatprep.subr.bf16.mxu1 %v13833_v0  ;;  %v12007_v60 = vld [vmem:[%s20879_s0 + $0xbc] sm:$0xf]  ;;  %v15251_v35 = vpop.f32.mrf.mxu0 }
 0x125   :  { %v1142_v47 = vsel %vm15171_vm11, %v1133_v36, %v15175_v32  ;;  %v13597_v26 = vld [vmem:[%s20878_s1 + $0x1d0] sm:$0xff]   ;;  %1519 = vst [vmem:[#allocation2 + $0x10] sm:$0xf] %v1132_v45  ;;  %1778 = vst [vmem:[#allocation2 + $0x38] sm:$0xf] %v1638_v49  ;;  %v3437_v56 = vrot.slane %v11969_v34, 5  ;;  %v3435_v57 = vsel %vm14344_vm5, %v3433_v44, %v3434_v40 }
 0x126   :  { %v13511_v54 = vld [vmem:[#allocation2 + $0x51c] ss:$36 sps:$4 sm:$0xff]   ;;  %1520 = vst [vmem:[#allocation2 + $0x34] sm:$0xf] %v1142_v47  ;;  %v3436_v59 = vrot.slane %v3434_v40, 4  ;;  %v3689_v62 = vrot.slane %v12006_v15, 5  ;;  %v8233_v15 = vpop.f32.mrf.mxu0 }
 0x127   :  { %v13516_v55 = vld [vmem:[#allocation2 + $0x518] ss:$36 sps:$4 sm:$0xff]   ;;  %20907 = vst [vmem:[#allocation8_spill] sm:$0xff] %v15218_v1  ;;  %8670 = vmatprep.mubr.bf16.mxu1 %v13511_v54  ;;  %3573 = vst [vmem:[#allocation2 + $0x560] sm:$0xf] %v3435_v57  ;;  %v3692_v2 = vrot.slane %v12007_v60, 5  ;;  %9163 = vmatpush2.bf16.msra.mxu1 %v13597_v26 }
 0x128   :  { %v1078_v3 = vld [vmem:[%s20879_s0 + $0x14] sm:$0xf]  ;;  %v1079_v6 = vld [vmem:[%s20879_s0 + $0x18] sm:$0xf]  ;;  %v1143_v7 = vrot.slane %v15175_v32, 4  ;;  %v3438_v28 = vsel %vm14344_vm5, %v3436_v59, %v3437_v56  ;;  %v3690_v46 = vsel %vm14344_vm5, %v3688_v61, %v3689_v62  ;;  %v3691_v8 = vrot.slane %v3689_v62, 4  ;;  %9164 = vmatprep.subr.bf16.mxu1 %v13833_v0 }
 0x129   :  { %v1145_v9 = vshrl.u32 %v1078_v3, 16  ;;  %v1558_v10 = vld [vmem:[%s20879_s0 + $0x14] sm:$0xf]  ;;  %v15237_v11 = vld [vmem:[%s20879_s0 + $0x18] sm:$0xf]  ;;  %v1148_v18 = vshll.u32 %v1078_v3, 16 }
 0x12a   :  { %3574 = vst [vmem:[#allocation2 + $0x584] sm:$0xf] %v3438_v28  ;;  %3828 = vst [vmem:[#allocation2 + $0x564] sm:$0xf] %v3690_v46  ;;  %v1155_v20 = vshrl.u32 %v1079_v6, 16  ;;  %v1158_v21 = vshll.u32 %v1079_v6, 16  ;;  %v3693_v24 = vsel %vm14344_vm5, %v3691_v8, %v3692_v2  ;;  %8671 = vmatmul.mubr.bf16.gmra.mxu1 %v13516_v55 }
 0x12b   :  { %v1639_v22 = vrot.slane %v1637_v33, 4  ;;  %v11970_v23 = vld [vmem:[%s20879_s0 + $0xb8] sm:$0xf]  ;;  %v1147_v25 = vrot.slane %v1145_v9, 5  ;;  %v1640_v27 = vrot.slane %v1558_v10, 6  ;;  %v1643_v31 = vrot.slane %v15237_v11, 6  ;;  %v15253_v33 = vpop.f32.mrf.mxu1 }
 0x12c   :  { %v15249_v32 = vld [vmem:[%s20879_s0 + $0xbc] sm:$0xf]  ;;  %20908 = vst [vmem:[#allocation9_spill] sm:$0xff] %v15253_v33  ;;  %3829 = vst [vmem:[#allocation2 + $0x588] sm:$0xf] %v3693_v24  ;;  %v1150_v36 = vrot.slane %v1148_v18, 6 }
 0x12d   :  { %v1157_v37 = vrot.slane %v1155_v20, 5  ;;  %v1160_v38 = vrot.slane %v1158_v21, 6  ;;  %v3439_v39 = vrot.slane %v3437_v56, 4  ;;  %v12008_v43 = vld [vmem:[%s20879_s0 + $0xc0] sm:$0xf]  ;;  %v1641_v45 = vsel %vm15161_vm10, %v1639_v22, %v1640_v27  ;;  %v15263_v34 = vld [vmem:[%s20878_s1 + $0x230] sm:$0xff]   ;;  %v8449_v26 = vpop.f32.mrf.mxu1 }
 0x12e   :  { %v13513_v44 = vld [vmem:[#allocation2 + $0x10] ss:$36 sps:$4 sm:$0xff]   ;;  %v1642_v47 = vrot.slane %v1640_v27, 4  ;;  %v3440_v49 = vrot.slane %v11970_v23, 5  ;;  %v1151_v50 = vor.u32 %v1150_v36, %v1147_v25  ;;  %1779 = vst [vmem:[#allocation2 + $0x5c] sm:$0xf] %v1641_v45 }
 0x12f   :  { %v13515_v40 = vld [vmem:[#allocation2 + $0x14] ss:$36 sps:$4 sm:$0xff]   ;;  %v15265_v53 = vor.u32 %v1160_v38, %v1157_v37  ;;  %v3443_v54 = vrot.slane %v15249_v32, 5  ;;  %v15271_v55 = vld [vmem:[%s20879_s0 + $0xc4] sm:$0xf]  ;;  %v3694_v56 = vrot.slane %v3692_v2, 4  ;;  %v15285_v2 = vpop.f32.mrf.mxu0  ;;  %v15287_v6 = vpop.f32.mrf.mxu1 }
 0x130   :  { %v1644_v57 = vsel %vm15161_vm10, %v1642_v47, %v1643_v31  ;;  %v3441_v59 = vsel %vm14344_vm5, %v3439_v39, %v3440_v49  ;;  %v3442_v60 = vrot.slane %v3440_v49, 4  ;;  %v3695_v61 = vrot.slane %v12008_v43, 5  ;;  %v1080_v62 = vld [vmem:[%s20879_s0 + $0x1c] sm:$0xf]  ;;  %v1081_v3 = vld [vmem:[%s20879_s0 + $0x20] sm:$0xf]  ;;  %8847 = vmatprep.mubr.bf16.mxu0 %v13515_v40 }
 0x131   :  { %20909 = vst [vmem:[#allocation10_spill] sm:$0xff] %v15287_v6  ;;  %v1152_v28 = vsel %vm15171_vm11, %v1143_v7, %v1151_v50  ;;  %v1153_v46 = vrot.slane %v1151_v50, 4  ;;  %1780 = vst [vmem:[#allocation2 + $0x80] sm:$0xf] %v1644_v57  ;;  %v3698_v8 = vrot.slane %v15271_v55, 5  ;;  %v1163_v9 = vrot.slane %v15265_v53, 4  ;;  %8848 = vmatmul.mubr.bf16.vlgmr.msra.gmra.mxu0 %v13513_v44  ;;  %v8236_v21 = vpop.f32.mrf.mxu0  ;;  %v8452_v22 = vpop.f32.mrf.mxu1 }
 0x132   :  { %3575 = vst [vmem:[#allocation2 + $0x5a8] sm:$0xf] %v3441_v59  ;;  %v1560_v10 = vld [vmem:[%s20879_s0 + $0x1c] sm:$0xf]  ;;  %1521 = vst [vmem:[#allocation2 + $0x58] sm:$0xf] %v1152_v28  ;;  %v3444_v16 = vsel %vm14344_vm5, %v3442_v60, %v3443_v54  ;;  %v3696_v17 = vsel %vm14344_vm5, %v3694_v56, %v3695_v61  ;;  %13029 = vmatpush3.bf16.msra.mxu0 %v14996_v58 }
 0x133   :  { %v3697_v7 = vrot.slane %v3695_v61, 4  ;;  %v1165_v18 = vshrl.u32 %v1080_v62, 16  ;;  %v15303_v20 = vld [vmem:[%s20879_s0 + $0x20] sm:$0xf]  ;;  %v1162_v23 = vsel %vm15171_vm11, %v1153_v46, %v15265_v53  ;;  %3576 = vst [vmem:[#allocation2 + $0x5cc] sm:$0xf] %v3444_v16  ;;  %13030 = vmatprep.subr.bf16.mxu0 %v15263_v34  ;;  %v15320_v43 = vpop.f32.mrf.mxu0  ;;  %v15322_v44 = vpop.f32.mrf.mxu1 }
 0x134   :  { %3830 = vst [vmem:[#allocation2 + $0x5ac] sm:$0xf] %v3696_v17  ;;  %v1168_v24 = vshll.u32 %v1080_v62, 16  ;;  %v1175_v25 = vshrl.u32 %v1081_v3, 16  ;;  %v1178_v27 = vshll.u32 %v1081_v3, 16  ;;  %v15315_v36 = vld [vmem:[%s20878_s1 + $0x228] sm:$0xff]  }
 0x135   :  { %v11972_v32 = vld [vmem:[%s20879_s0 + $0xc0] sm:$0xf]  ;;  %v13521_v37 = vld [vmem:[#allocation2 + $0x564] ss:$36 sps:$4 sm:$0xff]   ;;  %1522 = vst [vmem:[#allocation2 + $0x7c] sm:$0xf] %v1162_v23  ;;  %v3699_v38 = vsel %vm14344_vm5, %v3697_v7, %v3698_v8  ;;  %v8241_v57 = vpop.f32.mrf.mxu0  ;;  %v8457_v59 = vpop.f32.mrf.mxu1 }
 0x136   :  { %v13519_v58 = vld [vmem:[#allocation2 + $0x560] ss:$36 sps:$4 sm:$0xff]   ;;  %v1167_v39 = vrot.slane %v1165_v18, 5  ;;  %20910 = vst [vmem:[#allocation11_spill] sm:$0xff] %v15322_v44  ;;  %3831 = vst [vmem:[#allocation2 + $0x5d0] sm:$0xf] %v3699_v38  ;;  %8678 = vmatprep.mubr.bf16.mxu1 %v13521_v37  ;;  %13031 = vmatpush3.bf16.msra.mxu0 %v15263_v34 }
 0x137   :  { %v1170_v45 = vrot.slane %v1168_v24, 6  ;;  %v1177_v47 = vrot.slane %v1175_v25, 5  ;;  %v1180_v49 = vrot.slane %v1178_v27, 6  ;;  %v1645_v40 = vrot.slane %v1643_v31, 4  ;;  %v15329_v15 = vld [vmem:[%s20879_s0 + $0xc4] sm:$0xf]  ;;  %8679 = vmatmul.mubr.bf16.gmra.mxu1 %v13519_v58  ;;  %13032 = vmatprep.subr.bf16.mxu0 %v15315_v36  ;;  %v15358_v17 = vpop.f32.mrf.mxu0  ;;  %v15360_v34 = vpop.f32.mrf.mxu1 }
 0x138   :  { %v1646_v26 = vrot.slane %v1560_v10, 6  ;;  %v1649_v50 = vrot.slane %v15303_v20, 6  ;;  %v3445_v53 = vrot.slane %v3443_v54, 4  ;;  %v3446_v55 = vrot.slane %v11972_v32, 5  ;;  %v12010_v56 = vld [vmem:[%s20879_s0 + $0xc8] sm:$0xf] }
 0x139   :  { %v1171_v11 = vor.u32 %v1170_v45, %v1167_v39  ;;  %v15335_v31 = vor.u32 %v1180_v49, %v1177_v47  ;;  %v3449_v60 = vrot.slane %v15329_v15, 5  ;;  %v15341_v61 = vld [vmem:[%s20879_s0 + $0xcc] sm:$0xf]  ;;  %v3700_v62 = vrot.slane %v3698_v8, 4  ;;  %v1082_v54 = vld [vmem:[%s20879_s0 + $0x24] sm:$0xf]  ;;  %v8244_v39 = vpop.f32.mrf.mxu0  ;;  %v8460_v45 = vpop.f32.mrf.mxu1 }
 0x13a   :  { %v1647_v3 = vsel %vm15161_vm10, %v1645_v40, %v1646_v26  ;;  %v1648_v28 = vrot.slane %v1646_v26, 4  ;;  %v3447_v46 = vsel %vm14344_vm5, %v3445_v53, %v3446_v55  ;;  %v3448_v10 = vrot.slane %v3446_v55, 4  ;;  %v1083_v16 = vld [vmem:[%s20879_s0 + $0x28] sm:$0xf]  ;;  %v13604_v8 = vld [vmem:[%s20878_s1 + $0x220] sm:$0xff]   ;;  %20911 = vst [vmem:[#allocation12_spill] sm:$0xff] %v15360_v34  ;;  %13033 = vmatpush3.bf16.msra.mxu0 %v15315_v36 }
 0x13b   :  { %v1172_v7 = vsel %vm15171_vm11, %v1163_v9, %v1171_v11  ;;  %v1173_v18 = vrot.slane %v1171_v11, 4  ;;  %1781 = vst [vmem:[#allocation2 + $0xa4] sm:$0xf] %v1647_v3  ;;  %3577 = vst [vmem:[#allocation2 + $0x5f0] sm:$0xf] %v3447_v46  ;;  %v3701_v21 = vrot.slane %v12010_v56, 5  ;;  %13034 = vmatprep.subr.bf16.mxu0 %v13604_v8  ;;  %v15389_v55 = vpop.f32.mrf.mxu0  ;;  %v15391_v56 = vpop.f32.mrf.mxu1 }
 0x13c   :  { %v3704_v22 = vrot.slane %v15341_v61, 5  ;;  %v1562_v23 = vld [vmem:[%s20879_s0 + $0x24] sm:$0xf]  ;;  %v15371_v24 = vld [vmem:[%s20879_s0 + $0x28] sm:$0xf]  ;;  %v1650_v9 = vsel %vm15161_vm10, %v1648_v28, %v1649_v50  ;;  %v3450_v25 = vsel %vm14344_vm5, %v3448_v10, %v3449_v60  ;;  %v1183_v27 = vrot.slane %v15335_v31, 4 }
 0x13d   :  { %1523 = vst [vmem:[#allocation2 + $0xa0] sm:$0xf] %v1172_v7  ;;  %v1185_v32 = vshrl.u32 %v1082_v54, 16  ;;  %v13611_v58 = vld [vmem:[%s20878_s1 + $0x1c8] sm:$0xff]   ;;  %v13522_v37 = vld [vmem:[#allocation2 + $0x58] ss:$36 sps:$4 sm:$0xff]   ;;  %v1182_v47 = vsel %vm15171_vm11, %v1173_v18, %v15335_v31  ;;  %v3702_v49 = vsel %vm14344_vm5, %v3700_v62, %v3701_v21  ;;  %v8465_v7 = vpop.f32.mrf.mxu1 }
 0x13e   :  { %v13524_v38 = vld [vmem:[#allocation2 + $0x5c] ss:$36 sps:$4 sm:$0xff]   ;;  %1782 = vst [vmem:[#allocation2 + $0xc8] sm:$0xf] %v1650_v9  ;;  %3578 = vst [vmem:[#allocation2 + $0x614] sm:$0xf] %v3450_v25  ;;  %9165 = vmatpush2.bf16.msra.mxu1 %v13611_v58  ;;  %13035 = vmatpush3.bf16.msra.mxu0 %v13604_v8 }
 0x13f   :  { %v3703_v40 = vrot.slane %v3701_v21, 4  ;;  %v13525_v15 = vld [vmem:[#allocation2 + $0x5a8] ss:$36 sps:$4 sm:$0xff]   ;;  %1524 = vst [vmem:[#allocation2 + $0xc4] sm:$0xf] %v1182_v47  ;;  %v1187_v53 = vrot.slane %v1185_v32, 5  ;;  %8855 = vmatprep.mubr.bf16.mxu0 %v13524_v38  ;;  %9166 = vmatprep.subr.bf16.mxu1 %v13833_v0  ;;  %v15422_v58 = vpop.f32.mrf.mxu1 }
 0x140   :  { %v13527_v26 = vld [vmem:[#allocation2 + $0x5ac] ss:$36 sps:$4 sm:$0xff]   ;;  %3832 = vst [vmem:[#allocation2 + $0x5f4] sm:$0xf] %v3702_v49  ;;  %20912 = vst [vmem:[#allocation13_spill] sm:$0xff] %v15391_v56  ;;  %v1188_v59 = vshll.u32 %v1082_v54, 16  ;;  %8856 = vmatmul.mubr.bf16.gmra.mxu0 %v13522_v37  ;;  %v8249_v54 = vpop.f32.mrf.mxu0 }
 0x141   :  { %v3705_v57 = vsel %vm14344_vm5, %v3703_v40, %v3704_v22  ;;  %v1195_v11 = vshrl.u32 %v1083_v16, 16  ;;  %v1198_v36 = vshll.u32 %v1083_v16, 16  ;;  %8686 = vmatprep.mubr.bf16.mxu1 %v13527_v26  ;;  %v1651_v62 = vrot.slane %v1649_v50, 4  ;;  %v11974_v46 = vld [vmem:[%s20879_s0 + $0xc8] sm:$0xf]  ;;  %20913 = vst [vmem:[#allocation14_spill] sm:$0xff] %v15422_v58 }
 0x142   :  { %3833 = vst [vmem:[#allocation2 + $0x618] sm:$0xf] %v3705_v57  ;;  %v1652_v3 = vrot.slane %v1562_v23, 6  ;;  %v1655_v28 = vrot.slane %v15371_v24, 6  ;;  %v3451_v10 = vrot.slane %v3449_v60, 4  ;;  %8687 = vmatmul.mubr.bf16.gmra.mxu1 %v13525_v15  ;;  %v1190_v16 = vrot.slane %v1188_v59, 6  ;;  %v15420_v32 = vpop.f32.mrf.mxu0 }
 0x143   :  { %v1197_v18 = vrot.slane %v1195_v11, 5  ;;  %v1200_v0 = vrot.slane %v1198_v36, 6  ;;  %v15407_v21 = vld [vmem:[%s20879_s0 + $0xcc] sm:$0xf]  ;;  %v3452_v20 = vrot.slane %v11974_v46, 5  ;;  %v3706_v40 = vrot.slane %v3704_v22, 4  ;;  %v8468_v36 = vpop.f32.mrf.mxu1 }
 0x144   :  { %v1653_v50 = vsel %vm15161_vm10, %v1651_v62, %v1652_v3  ;;  %v1654_v23 = vrot.slane %v1652_v3, 4  ;;  %v3455_v9 = vrot.slane %v15407_v21, 5  ;;  %v12012_v60 = vld [vmem:[%s20879_s0 + $0xd0] sm:$0xf]  ;;  %v15418_v25 = vld [vmem:[%s20879_s0 + $0xd4] sm:$0xf]  ;;  %v1191_v8 = vor.u32 %v1190_v16, %v1187_v53  ;;  %v8252_v11 = vpop.f32.mrf.mxu0 }
 0x145   :  { %v15424_v37 = vor.u32 %v1200_v0, %v1197_v18  ;;  %1783 = vst [vmem:[#allocation2 + $0xec] sm:$0xf] %v1653_v50  ;;  %v3453_v38 = vsel %vm14344_vm5, %v3451_v10, %v3452_v20  ;;  %v3454_v39 = vrot.slane %v3452_v20, 4  ;;  %v1084_v45 = vld [vmem:[%s20879_s0 + $0x2c] sm:$0xf]  ;;  %v3707_v15 = vrot.slane %v12012_v60, 5  ;;  %v15465_v0 = vpop.f32.mrf.mxu1 }
 0x146   :  { %v1085_v47 = vld [vmem:[%s20879_s0 + $0x30] sm:$0xf]  ;;  %v1656_v49 = vsel %vm15161_vm10, %v1654_v23, %v1655_v28  ;;  %3579 = vst [vmem:[#allocation2 + $0x638] sm:$0xf] %v3453_v38  ;;  %v3710_v26 = vrot.slane %v15418_v25, 5  ;;  %v1192_v62 = vsel %vm15171_vm11, %v1183_v27, %v1191_v8  ;;  %v1193_v3 = vrot.slane %v1191_v8, 4  ;;  %v15463_v18 = vpop.f32.mrf.mxu0 }
 0x147   :  { %v1564_v53 = vld [vmem:[%s20879_s0 + $0x2c] sm:$0xf]  ;;  %v13528_v57 = vld [vmem:[#allocation2 + $0xa0] ss:$36 sps:$4 sm:$0xff]   ;;  %1784 = vst [vmem:[#allocation2 + $0x110] sm:$0xf] %v1656_v49  ;;  %v3456_v61 = vsel %vm14344_vm5, %v3454_v39, %v3455_v9  ;;  %v3708_v22 = vsel %vm14344_vm5, %v3706_v40, %v3707_v15  ;;  %v8473_v38 = vpop.f32.mrf.mxu1 }
 0x148   :  { %v13530_v59 = vld [vmem:[#allocation2 + $0xa4] ss:$36 sps:$4 sm:$0xff]   ;;  %1525 = vst [vmem:[#allocation2 + $0xe8] sm:$0xf] %v1192_v62  ;;  %3580 = vst [vmem:[#allocation2 + $0x65c] sm:$0xf] %v3456_v61  ;;  %v1202_v16 = vsel %vm15171_vm11, %v1193_v3, %v15424_v37  ;;  %v8257_v8 = vpop.f32.mrf.mxu0 }
 0x149   :  { %v3709_v46 = vrot.slane %v3707_v15, 4  ;;  %v1203_v10 = vrot.slane %v15424_v37, 4  ;;  %v1205_v54 = vshrl.u32 %v1084_v45, 16  ;;  %v15458_v31 = vld [vmem:[%s20879_s0 + $0x30] sm:$0xf]  ;;  %8863 = vmatprep.mubr.bf16.mxu0 %v13530_v59  ;;  %20914 = vst [vmem:[#allocation15_spill] sm:$0xff] %v15465_v0  ;;  %v15482_v11 = vpop.f32.mrf.mxu1 }
 0x14a   :  { %v13531_v27 = vld [vmem:[#allocation2 + $0x5f0] ss:$36 sps:$4 sm:$0xff]   ;;  %3834 = vst [vmem:[#allocation2 + $0x63c] sm:$0xf] %v3708_v22  ;;  %v1208_v20 = vshll.u32 %v1084_v45, 16  ;;  %8864 = vmatmul.mubr.bf16.gmra.mxu0 %v13528_v57  ;;  %v1215_v60 = vshrl.u32 %v1085_v47, 16  ;;  %v15480_v59 = vpop.f32.mrf.mxu0 }
 0x14b   :  { %v13533_v7 = vld [vmem:[#allocation2 + $0x5f4] ss:$36 sps:$4 sm:$0xff]   ;;  %1526 = vst [vmem:[#allocation2 + $0x10c] sm:$0xf] %v1202_v16  ;;  %v3711_v50 = vsel %vm14344_vm5, %v3709_v46, %v3710_v26  ;;  %v1207_v23 = vrot.slane %v1205_v54, 5  ;;  %v1218_v25 = vshll.u32 %v1085_v47, 16 }
 0x14c   :  { %8694 = vmatprep.mubr.bf16.mxu1 %v13533_v7  ;;  %3835 = vst [vmem:[#allocation2 + $0x660] sm:$0xf] %v3711_v50  ;;  %v1210_v39 = vrot.slane %v1208_v20, 6  ;;  %v1657_v37 = vrot.slane %v1655_v28, 4  ;;  %v1658_v49 = vrot.slane %v1564_v53, 6  ;;  %v1661_v40 = vrot.slane %v15458_v31, 6  ;;  %v8260_v31 = vpop.f32.mrf.mxu0 }
 0x14d   :  { %8695 = vmatmul.mubr.bf16.gmra.mxu1 %v13531_v27  ;;  %v1217_v45 = vrot.slane %v1215_v60, 5  ;;  %v1220_v15 = vrot.slane %v1218_v25, 6  ;;  %v11976_v57 = vld [vmem:[%s20879_s0 + $0xd0] sm:$0xf]  ;;  %v15478_v47 = vld [vmem:[%s20879_s0 + $0xd4] sm:$0xf]  ;;  %v8476_v27 = vpop.f32.mrf.mxu1 }
 0x14e   :  { %20915 = vst [vmem:[#allocation16_spill] sm:$0xff] %v15482_v11  ;;  %v1211_v24 = vor.u32 %v1210_v39, %v1207_v23  ;;  %v1659_v28 = vsel %vm15161_vm10, %v1657_v37, %v1658_v49  ;;  %v1660_v53 = vrot.slane %v1658_v49, 4  ;;  %v3457_v36 = vrot.slane %v3455_v9, 4  ;;  %v12014_v62 = vld [vmem:[%s20879_s0 + $0xd8] sm:$0xf]  ;;  %v13624_v9 = vld [vmem:[%s20878_s1 + $0x1c0] sm:$0xff]   ;;  %v15522_v49 = vpop.f32.mrf.mxu0 }
 0x14f   :  { %v15494_v3 = vld [vmem:[%s20879_s0 + $0xdc] sm:$0xf]  ;;  %v15496_v61 = vor.u32 %v1220_v15, %v1217_v45  ;;  %1785 = vst [vmem:[#allocation2 + $0x134] sm:$0xf] %v1659_v28  ;;  %v3458_v22 = vrot.slane %v11976_v57, 5  ;;  %v3461_v46 = vrot.slane %v15478_v47, 5  ;;  %9167 = vmatpush2.bf16.msra.mxu1 %v13624_v9  ;;  %v15524_v45 = vpop.f32.mrf.mxu1 }
 0x150   :  { %v3712_v54 = vrot.slane %v3710_v26, 4  ;;  %v1086_v21 = vld [vmem:[%s20879_s0 + $0x34] sm:$0xf]  ;;  %v1212_v7 = vsel %vm15171_vm11, %v1203_v10, %v1211_v24  ;;  %v1213_v16 = vrot.slane %v1211_v24, 4  ;;  %v1662_v20 = vsel %vm15161_vm10, %v1660_v53, %v1661_v40  ;;  %v1087_v26 = vld [vmem:[%s20879_s0 + $0x38] sm:$0xf] }
 0x151   :  { %v3713_v50 = vrot.slane %v12014_v62, 5  ;;  %1527 = vst [vmem:[#allocation2 + $0x130] sm:$0xf] %v1212_v7  ;;  %1786 = vst [vmem:[#allocation2 + $0x158] sm:$0xf] %v1662_v20  ;;  %v3459_v23 = vsel %vm14344_vm5, %v3457_v36, %v3458_v22  ;;  %v3460_v60 = vrot.slane %v3458_v22, 4  ;;  %v8265_v36 = vpop.f32.mrf.mxu0  ;;  %v8481_v62 = vpop.f32.mrf.mxu1 }
 0x152   :  { %v3716_v25 = vrot.slane %v15494_v3, 5  ;;  %v1223_v8 = vrot.slane %v15496_v61, 4  ;;  %v1566_v10 = vld [vmem:[%s20879_s0 + $0x34] sm:$0xf]  ;;  %v13534_v38 = vld [vmem:[#allocation2 + $0xe8] ss:$36 sps:$4 sm:$0xff]   ;;  %v1222_v37 = vsel %vm15171_vm11, %v1213_v16, %v15496_v61 }
 0x153   :  { %v13536_v39 = vld [vmem:[#allocation2 + $0xec] ss:$36 sps:$4 sm:$0xff]   ;;  %20916 = vst [vmem:[#allocation17_spill] sm:$0xff] %v15524_v45  ;;  %3581 = vst [vmem:[#allocation2 + $0x680] sm:$0xf] %v3459_v23  ;;  %v3714_v15 = vsel %vm14344_vm5, %v3712_v54, %v3713_v50  ;;  %v3715_v57 = vrot.slane %v3713_v50, 4  ;;  %v3462_v28 = vsel %vm14344_vm5, %v3460_v60, %v3461_v46  ;;  %v15535_v20 = vpop.f32.mrf.mxu0  ;;  %v15537_v50 = vpop.f32.mrf.mxu1 }
 0x154   :  { %v13538_v47 = vld [vmem:[#allocation2 + $0x638] ss:$36 sps:$4 sm:$0xff]   ;;  %1528 = vst [vmem:[#allocation2 + $0x154] sm:$0xf] %v1222_v37  ;;  %3836 = vst [vmem:[#allocation2 + $0x684] sm:$0xf] %v3714_v15  ;;  %8871 = vmatprep.mubr.bf16.mxu0 %v13536_v39 }
 0x155   :  { %v13540_v24 = vld [vmem:[#allocation2 + $0x63c] ss:$36 sps:$4 sm:$0xff]   ;;  %v1225_v53 = vshrl.u32 %v1086_v21, 16  ;;  %3582 = vst [vmem:[#allocation2 + $0x6a4] sm:$0xf] %v3462_v28  ;;  %v3717_v3 = vsel %vm14344_vm5, %v3715_v57, %v3716_v25  ;;  %v1228_v61 = vshll.u32 %v1086_v21, 16  ;;  %8872 = vmatmul.mubr.bf16.gmra.mxu0 %v13534_v38  ;;  %v8268_v15 = vpop.f32.mrf.mxu0  ;;  %v8484_v57 = vpop.f32.mrf.mxu1 }
 0x156   :  { %v1235_v22 = vshrl.u32 %v1087_v26, 16  ;;  %v1238_v9 = vshll.u32 %v1087_v26, 16  ;;  %v1567_v54 = vld [vmem:[%s20879_s0 + $0x38] sm:$0xf]  ;;  %8702 = vmatprep.mubr.bf16.mxu1 %v13540_v24  ;;  %3837 = vst [vmem:[#allocation2 + $0x6a8] sm:$0xf] %v3717_v3 }
 0x157   :  { %v1227_v31 = vrot.slane %v1225_v53, 5  ;;  %v1663_v27 = vrot.slane %v1661_v40, 4  ;;  %v1664_v7 = vrot.slane %v1566_v10, 6  ;;  %v1667_v16 = vrot.slane %v1567_v54, 6  ;;  %8703 = vmatmul.mubr.bf16.gmra.mxu1 %v13538_v47  ;;  %20917 = vst [vmem:[#allocation18_spill] sm:$0xff] %v15537_v50 }
 0x158   :  { %v1230_v23 = vrot.slane %v1228_v61, 6  ;;  %v1237_v21 = vrot.slane %v1235_v22, 5  ;;  %v1240_v60 = vrot.slane %v1238_v9, 6  ;;  %v3463_v26 = vrot.slane %v3461_v46, 4  ;;  %v11978_v38 = vld [vmem:[%s20879_s0 + $0xd8] sm:$0xf] }
 0x159   :  { %v1665_v39 = vsel %vm15161_vm10, %v1663_v27, %v1664_v7  ;;  %v1666_v37 = vrot.slane %v1664_v7, 4  ;;  %v11979_v40 = vld [vmem:[%s20879_s0 + $0xdc] sm:$0xf]  ;;  %v3718_v10 = vrot.slane %v3716_v25, 4  ;;  %v3464_v46 = vrot.slane %v11978_v38, 5  ;;  %v15564_v27 = vpop.f32.mrf.mxu0  ;;  %v15566_v7 = vpop.f32.mrf.mxu1 }
 0x15a   :  { %v1231_v47 = vor.u32 %v1230_v23, %v1227_v31  ;;  %v15547_v24 = vor.u32 %v1240_v60, %v1237_v21  ;;  %1787 = vst [vmem:[#allocation2 + $0x17c] sm:$0xf] %v1665_v39  ;;  %v3467_v28 = vrot.slane %v11979_v40, 5  ;;  %v12016_v53 = vld [vmem:[%s20879_s0 + $0xe0] sm:$0xf]  ;;  %v1669_v61 = vrot.slane %v1667_v16, 4 }
 0x15b   :  { %v1668_v36 = vsel %vm15161_vm10, %v1666_v37, %v1667_v16  ;;  %v15557_v62 = vld [vmem:[%s20879_s0 + $0xe4] sm:$0xf]  ;;  %v3719_v25 = vrot.slane %v12016_v53, 5  ;;  %v1088_v3 = vld [vmem:[%s20879_s0 + $0x3c] sm:$0xf]  ;;  %20918 = vst [vmem:[#allocation19_spill] sm:$0xff] %v15566_v7  ;;  %v3465_v23 = vsel %vm14344_vm5, %v3463_v26, %v3464_v46  ;;  %v8273_v40 = vpop.f32.mrf.mxu0  ;;  %v8489_v15 = vpop.f32.mrf.mxu1 }
 0x15c   :  { %v13541_v22 = vld [vmem:[#allocation2 + $0x130] ss:$36 sps:$4 sm:$0xff]   ;;  %v1232_v54 = vsel %vm15171_vm11, %v1223_v8, %v1231_v47  ;;  %v1233_v31 = vrot.slane %v1231_v47, 4  ;;  %1788 = vst [vmem:[#allocation2 + $0x1a0] sm:$0xf] %v1668_v36  ;;  %v3466_v21 = vrot.slane %v3464_v46, 4 }
 0x15d   :  { %v13543_v9 = vld [vmem:[#allocation2 + $0x134] ss:$36 sps:$4 sm:$0xff]   ;;  %1529 = vst [vmem:[#allocation2 + $0x178] sm:$0xf] %v1232_v54  ;;  %3583 = vst [vmem:[#allocation2 + $0x6c8] sm:$0xf] %v3465_v23  ;;  %v3720_v16 = vsel %vm14344_vm5, %v3718_v10, %v3719_v25 }
 0x15e   :  { %v3721_v60 = vrot.slane %v3719_v25, 4  ;;  %v3722_v39 = vrot.slane %v15557_v62, 5  ;;  %v1089_v8 = vld [vmem:[%s20879_s0 + $0x40] sm:$0xf]  ;;  %8879 = vmatprep.mubr.bf16.mxu0 %v13543_v9  ;;  %v13547_v38 = vld [vmem:[#allocation2 + $0x684] ss:$36 sps:$4 sm:$0xff]   ;;  %v1242_v26 = vsel %vm15171_vm11, %v1233_v31, %v15547_v24  ;;  %v3468_v10 = vsel %vm14344_vm5, %v3466_v21, %v3467_v28  ;;  %v15594_v25 = vpop.f32.mrf.mxu1 }
 0x15f   :  { %v13545_v37 = vld [vmem:[#allocation2 + $0x680] ss:$36 sps:$4 sm:$0xff]   ;;  %3838 = vst [vmem:[#allocation2 + $0x6cc] sm:$0xf] %v3720_v16  ;;  %v1243_v57 = vrot.slane %v15547_v24, 4  ;;  %8880 = vmatmul.mubr.bf16.gmra.mxu0 %v13541_v22  ;;  %v1245_v46 = vshrl.u32 %v1088_v3, 16  ;;  %8710 = vmatprep.mubr.bf16.mxu1 %v13547_v38  ;;  %v15592_v24 = vpop.f32.mrf.mxu0 }
 0x160   :  { %1530 = vst [vmem:[#allocation2 + $0x19c] sm:$0xf] %v1242_v26  ;;  %v3723_v47 = vsel %vm14344_vm5, %v3721_v60, %v3722_v39  ;;  %v1248_v53 = vshll.u32 %v1088_v3, 16  ;;  %v1568_v36 = vld [vmem:[%s20879_s0 + $0x3c] sm:$0xf]  ;;  %20919 = vst [vmem:[#allocation20_spill] sm:$0xff] %v15594_v25  ;;  %8711 = vmatmul.mubr.bf16.gmra.mxu1 %v13545_v37  ;;  %v8492_v40 = vpop.f32.mrf.mxu1 }
 0x161   :  { %v15590_v62 = vld [vmem:[%s20879_s0 + $0x40] sm:$0xf]  ;;  %3584 = vst [vmem:[#allocation2 + $0x6ec] sm:$0xf] %v3468_v10  ;;  %3839 = vst [vmem:[#allocation2 + $0x6f0] sm:$0xf] %v3723_v47  ;;  %v8276_v26 = vpop.f32.mrf.mxu0 }
 0x162   :  { %v1255_v22 = vshrl.u32 %v1089_v8, 16  ;;  %v1258_v9 = vshll.u32 %v1089_v8, 16  ;;  %v1670_v54 = vrot.slane %v1568_v36, 6  ;;  %v1673_v3 = vrot.slane %v15590_v62, 6  ;;  %v11980_v31 = vld [vmem:[%s20879_s0 + $0xe0] sm:$0xf] }
 0x163   :  { %v1247_v23 = vrot.slane %v1245_v46, 5  ;;  %v1250_v21 = vrot.slane %v1248_v53, 6  ;;  %v15603_v16 = vld [vmem:[%s20879_s0 + $0xe4] sm:$0xf]  ;;  %v3469_v60 = vrot.slane %v3467_v28, 4  ;;  %v3470_v38 = vrot.slane %v11980_v31, 5 }
 0x164   :  { %v1257_v8 = vrot.slane %v1255_v22, 5  ;;  %v1260_v15 = vrot.slane %v1258_v9, 6  ;;  %v1671_v10 = vsel %vm15161_vm10, %v1669_v61, %v1670_v54  ;;  %v1672_v47 = vrot.slane %v1670_v54, 4  ;;  %v12018_v37 = vld [vmem:[%s20879_s0 + $0xe8] sm:$0xf]  ;;  %v15622_v9 = vpop.f32.mrf.mxu0  ;;  %v15624_v54 = vpop.f32.mrf.mxu1 }
 0x165   :  { %v1251_v46 = vor.u32 %v1250_v21, %v1247_v23  ;;  %1789 = vst [vmem:[#allocation2 + $0x1c4] sm:$0xf] %v1671_v10  ;;  %v3471_v53 = vsel %vm14344_vm5, %v3469_v60, %v3470_v38  ;;  %v3472_v36 = vrot.slane %v3470_v38, 4  ;;  %v3473_v28 = vrot.slane %v15603_v16, 5  ;;  %v15616_v62 = vld [vmem:[%s20879_s0 + $0xec] sm:$0xf] }
 0x166   :  { %v15618_v22 = vor.u32 %v1260_v15, %v1257_v8  ;;  %v1674_v61 = vsel %vm15161_vm10, %v1672_v47, %v1673_v3  ;;  %20920 = vst [vmem:[#allocation21_spill] sm:$0xff] %v15622_v9  ;;  %3585 = vst [vmem:[#allocation2 + $0x710] sm:$0xf] %v3471_v53  ;;  %v3724_v31 = vrot.slane %v3722_v39, 4  ;;  %v3725_v23 = vrot.slane %v12018_v37, 5  ;;  %v8281_v15 = vpop.f32.mrf.mxu0  ;;  %v8530_v10 = vpop.f32.mrf.mxu1 }
 0x167   :  { %v1090_v21 = vld [vmem:[%s20879_s0 + $0x44] sm:$0xf]  ;;  %v1252_v16 = vsel %vm15171_vm11, %v1243_v57, %v1251_v46  ;;  %v1253_v60 = vrot.slane %v1251_v46, 4  ;;  %1790 = vst [vmem:[#allocation2 + $0x1e8] sm:$0xf] %v1674_v61  ;;  %v3474_v38 = vsel %vm14344_vm5, %v3472_v36, %v3473_v28  ;;  %v3728_v61 = vrot.slane %v15616_v62, 5 }
 0x168   :  { %v1091_v26 = vld [vmem:[%s20879_s0 + $0x48] sm:$0xf]  ;;  %v1570_v39 = vld [vmem:[%s20879_s0 + $0x44] sm:$0xf]  ;;  %v13548_v40 = vld [vmem:[#allocation2 + $0x178] ss:$36 sps:$4 sm:$0xff]   ;;  %v3726_v57 = vsel %vm14344_vm5, %v3724_v31, %v3725_v23  ;;  %v15652_v31 = vpop.f32.mrf.mxu1 }
 0x169   :  { %v13550_v8 = vld [vmem:[#allocation2 + $0x17c] ss:$36 sps:$4 sm:$0xff]   ;;  %1531 = vst [vmem:[#allocation2 + $0x1c0] sm:$0xf] %v1252_v16  ;;  %3586 = vst [vmem:[#allocation2 + $0x734] sm:$0xf] %v3474_v38  ;;  %v1262_v36 = vsel %vm15171_vm11, %v1253_v60, %v15618_v22  ;;  %v15650_v16 = vpop.f32.mrf.mxu0 }
 0x16a   :  { %v3727_v47 = vrot.slane %v3725_v23, 4  ;;  %v15644_v37 = vld [vmem:[%s20879_s0 + $0x48] sm:$0xf]  ;;  %v13554_v53 = vld [vmem:[#allocation2 + $0x6cc] ss:$36 sps:$4 sm:$0xff]   ;;  %8887 = vmatprep.mubr.bf16.mxu0 %v13550_v8  ;;  %20921 = vst [vmem:[#allocation22_spill] sm:$0xff] %v15650_v16 }
 0x16b   :  { %v13552_v46 = vld [vmem:[#allocation2 + $0x6c8] ss:$36 sps:$4 sm:$0xff]   ;;  %3840 = vst [vmem:[#allocation2 + $0x714] sm:$0xf] %v3726_v57  ;;  %1532 = vst [vmem:[#allocation2 + $0x1e4] sm:$0xf] %v1262_v36  ;;  %8888 = vmatmul.mubr.bf16.gmra.mxu0 %v13548_v40  ;;  %8718 = vmatprep.mubr.bf16.mxu1 %v13554_v53  ;;  %v8284_v8 = vpop.f32.mrf.mxu0  ;;  %v8533_v57 = vpop.f32.mrf.mxu1 }
 0x16c   :  { %v1263_v23 = vrot.slane %v15618_v22, 4  ;;  %v1265_v38 = vshrl.u32 %v1090_v21, 16  ;;  %v1268_v15 = vshll.u32 %v1090_v21, 16  ;;  %v1275_v10 = vshrl.u32 %v1091_v26, 16  ;;  %v11982_v62 = vld [vmem:[%s20879_s0 + $0xe8] sm:$0xf]  ;;  %8719 = vmatmul.mubr.bf16.gmra.mxu1 %v13552_v46 }
 0x16d   :  { %v3729_v25 = vsel %vm14344_vm5, %v3727_v47, %v3728_v61  ;;  %v1278_v60 = vshll.u32 %v1091_v26, 16  ;;  %v1675_v7 = vrot.slane %v1673_v3, 4  ;;  %v1676_v21 = vrot.slane %v1570_v39, 6  ;;  %v15663_v40 = vld [vmem:[%s20879_s0 + $0xec] sm:$0xf] }
 0x16e   :  { %3841 = vst [vmem:[#allocation2 + $0x738] sm:$0xf] %v3729_v25  ;;  %v1267_v36 = vrot.slane %v1265_v38, 5  ;;  %v1270_v22 = vrot.slane %v1268_v15, 6  ;;  %v1277_v50 = vrot.slane %v1275_v10, 5  ;;  %v1679_v3 = vrot.slane %v15644_v37, 6  ;;  %v15668_v25 = vpop.f32.mrf.mxu0  ;;  %v15670_v38 = vpop.f32.mrf.mxu1 }
 0x16f   :  { %v1280_v47 = vrot.slane %v1278_v60, 6  ;;  %v3475_v26 = vrot.slane %v3473_v28, 4  ;;  %v3476_v53 = vrot.slane %v11982_v62, 5  ;;  %v1677_v46 = vsel %vm15161_vm10, %v1675_v7, %v1676_v21  ;;  %20922 = vst [vmem:[#allocation23_spill] sm:$0xff] %v15668_v25  ;;  %v12020_v15 = vld [vmem:[%s20879_s0 + $0xf0] sm:$0xf] }
 0x170   :  { %v1271_v45 = vor.u32 %v1270_v22, %v1267_v36  ;;  %v1678_v8 = vrot.slane %v1676_v21, 4  ;;  %v3479_v39 = vrot.slane %v15663_v40, 5  ;;  %v15679_v28 = vld [vmem:[%s20879_s0 + $0xf4] sm:$0xf]  ;;  %1791 = vst [vmem:[#allocation2 + $0x20c] sm:$0xf] %v1677_v46  ;;  %v8289_v22 = vpop.f32.mrf.mxu0  ;;  %v8538_v21 = vpop.f32.mrf.mxu1 }
 0x171   :  { %v15681_v37 = vor.u32 %v1280_v47, %v1277_v50  ;;  %v3477_v7 = vsel %vm14344_vm5, %v3475_v26, %v3476_v53  ;;  %v3478_v10 = vrot.slane %v3476_v53, 4  ;;  %v1092_v60 = vld [vmem:[%s20879_s0 + $0x4c] sm:$0xf]  ;;  %v1093_v62 = vld [vmem:[%s20879_s0 + $0x50] sm:$0xf]  ;;  %v3730_v40 = vrot.slane %v3728_v61, 4 }
 0x172   :  { %v1272_v57 = vsel %vm15171_vm11, %v1263_v23, %v1271_v45  ;;  %v1273_v36 = vrot.slane %v1271_v45, 4  ;;  %v1680_v50 = vsel %vm15161_vm10, %v1678_v8, %v1679_v3  ;;  %3587 = vst [vmem:[#allocation2 + $0x758] sm:$0xf] %v3477_v7  ;;  %v1572_v47 = vld [vmem:[%s20879_s0 + $0x4c] sm:$0xf]  ;;  %v13637_v26 = vld [vmem:[%s20878_s1 + $0x218] sm:$0xff]   ;;  %v15706_v8 = vpop.f32.mrf.mxu0  ;;  %v15708_v7 = vpop.f32.mrf.mxu1 }
 0x173   :  { %v13555_v53 = vld [vmem:[#allocation2 + $0x1c0] ss:$36 sps:$4 sm:$0xff]   ;;  %1533 = vst [vmem:[#allocation2 + $0x208] sm:$0xf] %v1272_v57  ;;  %1792 = vst [vmem:[#allocation2 + $0x230] sm:$0xf] %v1680_v50  ;;  %v3480_v45 = vsel %vm14344_vm5, %v3478_v10, %v3479_v39  ;;  %13036 = vmatprep.subr.bf16.mxu0 %v13637_v26 }
 0x174   :  { %v13557_v46 = vld [vmem:[#allocation2 + $0x1c4] ss:$36 sps:$4 sm:$0xff]   ;;  %v3731_v23 = vrot.slane %v12020_v15, 5  ;;  %v1282_v61 = vsel %vm15171_vm11, %v1273_v36, %v15681_v37  ;;  %20923 = vst [vmem:[#allocation24_spill] sm:$0xff] %v15706_v8  ;;  %3588 = vst [vmem:[#allocation2 + $0x77c] sm:$0xf] %v3480_v45  ;;  %13037 = vmatpush3.bf16.msra.mxu0 %v13637_v26  ;;  %v8541_v45 = vpop.f32.mrf.mxu1 }
 0x175   :  { %v3734_v22 = vrot.slane %v15679_v28, 5  ;;  %v1283_v21 = vrot.slane %v15681_v37, 4  ;;  %v1285_v11 = vshrl.u32 %v1092_v60, 16  ;;  %v15715_v57 = vld [vmem:[%s20879_s0 + $0x50] sm:$0xf]  ;;  %8895 = vmatprep.mubr.bf16.mxu0 %v13557_v46  ;;  %v8292_v28 = vpop.f32.mrf.mxu0  ;;  %v1288_v0 = vshll.u32 %v1092_v60, 16 }
 0x176   :  { %v13558_v15 = vld [vmem:[#allocation2 + $0x710] ss:$36 sps:$4 sm:$0xff]   ;;  %1534 = vst [vmem:[#allocation2 + $0x22c] sm:$0xf] %v1282_v61  ;;  %v3732_v36 = vsel %vm14344_vm5, %v3730_v40, %v3731_v23  ;;  %v3733_v50 = vrot.slane %v3731_v23, 4  ;;  %8896 = vmatmul.mubr.bf16.gmra.mxu0 %v13555_v53  ;;  %v1295_v58 = vshrl.u32 %v1093_v62, 16 }
 0x177   :  { %v13560_v10 = vld [vmem:[#allocation2 + $0x714] ss:$36 sps:$4 sm:$0xff]   ;;  %3842 = vst [vmem:[#allocation2 + $0x75c] sm:$0xf] %v3732_v36  ;;  %v1287_v37 = vrot.slane %v1285_v11, 5  ;;  %v1298_v56 = vshll.u32 %v1093_v62, 16  ;;  %v15730_v23 = vpop.f32.mrf.mxu0 }
 0x178   :  { %v11984_v46 = vld [vmem:[%s20879_s0 + $0xf0] sm:$0xf]  ;;  %8726 = vmatprep.mubr.bf16.mxu1 %v13560_v10  ;;  %v3735_v61 = vsel %vm14344_vm5, %v3733_v50, %v3734_v22  ;;  %v1681_v34 = vrot.slane %v1679_v3, 4  ;;  %v1682_v40 = vrot.slane %v1572_v47, 6  ;;  %v20882_v26 = vrot.slane %v15715_v57, 6  ;;  %20924 = vst [vmem:[#allocation25_spill] sm:$0xff] %v15730_v23  ;;  %v15732_v10 = vpop.f32.mrf.mxu1 }
 0x179   :  { %v15728_v53 = vld [vmem:[%s20879_s0 + $0xf4] sm:$0xf]  ;;  %8727 = vmatmul.mubr.bf16.gmra.mxu1 %v13558_v15  ;;  %3843 = vst [vmem:[#allocation2 + $0x780] sm:$0xf] %v3735_v61  ;;  %v1290_v11 = vrot.slane %v1288_v0, 6  ;;  %v1297_v60 = vrot.slane %v1295_v58, 5  ;;  %v8297_v15 = vpop.f32.mrf.mxu0 }
 0x17a   :  { %v1300_v62 = vrot.slane %v1298_v56, 6  ;;  %v3481_v36 = vrot.slane %v3479_v39, 4  ;;  %v12022_v3 = vld [vmem:[%s20879_s0 + $0xf8] sm:$0xf]  ;;  %v1683_v47 = vsel %vm15161_vm10, %v1681_v34, %v1682_v40  ;;  %v1684_v50 = vrot.slane %v1682_v40, 4  ;;  %v8546_v39 = vpop.f32.mrf.mxu1 }
 0x17b   :  { %v3482_v28 = vrot.slane %v11984_v46, 5  ;;  %v15742_v0 = vld [vmem:[%s20879_s0 + $0xfc] sm:$0xf]  ;;  %v1291_v56 = vor.u32 %v1290_v11, %v1287_v37  ;;  %1793 = vst [vmem:[#allocation2 + $0x254] sm:$0xf] %v1683_v47  ;;  %v3485_v45 = vrot.slane %v15728_v53, 5  ;;  %v15761_v15 = vpop.f32.mrf.mxu0 }
 0x17c   :  { %v15744_v58 = vor.u32 %v1300_v62, %v1297_v60  ;;  %v3736_v61 = vrot.slane %v3734_v22, 4  ;;  %v1094_v34 = vld [vmem:[%s20879_s0 + $0x54] sm:$0xf]  ;;  %v1686_v46 = vsel %vm15161_vm10, %v1684_v50, %v20882_v26  ;;  %v3737_v11 = vrot.slane %v12022_v3, 5  ;;  %v1095_v60 = vld [vmem:[%s20879_s0 + $0x58] sm:$0xf]  ;;  %v15763_v39 = vpop.f32.mrf.mxu1 }
 0x17d   :  { %v3483_v37 = vsel %vm14344_vm5, %v3481_v36, %v3482_v28  ;;  %v3484_v40 = vrot.slane %v3482_v28, 4  ;;  %v13561_v53 = vld [vmem:[#allocation2 + $0x208] ss:$36 sps:$4 sm:$0xff]   ;;  %v1292_v62 = vsel %vm15171_vm11, %v1283_v21, %v1291_v56  ;;  %v1293_v47 = vrot.slane %v1291_v56, 4  ;;  %1794 = vst [vmem:[#allocation2 + $0x278] sm:$0xf] %v1686_v46  ;;  %v8300_v46 = vpop.f32.mrf.mxu0 }
 0x17e   :  { %v13563_v22 = vld [vmem:[#allocation2 + $0x20c] ss:$36 sps:$4 sm:$0xff]   ;;  %20925 = vst [vmem:[#allocation26_spill] sm:$0xff] %v15761_v15  ;;  %3589 = vst [vmem:[#allocation2 + $0x7a0] sm:$0xf] %v3483_v37  ;;  %v3738_v50 = vsel %vm14344_vm5, %v3736_v61, %v3737_v11  ;;  %v3739_v28 = vrot.slane %v3737_v11, 4  ;;  %v8549_v37 = vpop.f32.mrf.mxu1 }
 0x17f   :  { %v1574_v36 = vld [vmem:[%s20879_s0 + $0x54] sm:$0xf]  ;;  %v15771_v3 = vld [vmem:[%s20879_s0 + $0x58] sm:$0xf]  ;;  %1535 = vst [vmem:[#allocation2 + $0x250] sm:$0xf] %v1292_v62  ;;  %v3486_v21 = vsel %vm14344_vm5, %v3484_v40, %v3485_v45  ;;  %8903 = vmatprep.mubr.bf16.mxu0 %v13563_v22  ;;  %v1302_v56 = vsel %vm15171_vm11, %v1293_v47, %v15744_v58  ;;  %v15784_v46 = vpop.f32.mrf.mxu0 }
 0x180   :  { %3590 = vst [vmem:[#allocation2 + $0x7c4] sm:$0xf] %v3486_v21  ;;  %v3740_v26 = vrot.slane %v15742_v0, 5  ;;  %3844 = vst [vmem:[#allocation2 + $0x7a4] sm:$0xf] %v3738_v50  ;;  %v1303_v62 = vrot.slane %v15744_v58, 4  ;;  %8904 = vmatmul.mubr.bf16.gmra.mxu0 %v13561_v53  ;;  %v15786_v21 = vpop.f32.mrf.mxu1 }
 0x181   :  { %v1305_v44 = vshrl.u32 %v1094_v34, 16  ;;  %v13565_v40 = vld [vmem:[#allocation2 + $0x758] ss:$36 sps:$4 sm:$0xff]   ;;  %1536 = vst [vmem:[#allocation2 + $0x274] sm:$0xf] %v1302_v56  ;;  %v1308_v61 = vshll.u32 %v1094_v34, 16  ;;  %v8305_v37 = vpop.f32.mrf.mxu0 }
 0x182   :  { %v13567_v6 = vld [vmem:[#allocation2 + $0x75c] ss:$36 sps:$4 sm:$0xff]   ;;  %v3741_v11 = vsel %vm14344_vm5, %v3739_v28, %v3740_v26  ;;  %v1315_v33 = vshrl.u32 %v1095_v60, 16  ;;  %v1318_v47 = vshll.u32 %v1095_v60, 16  ;;  %20926 = vst [vmem:[#allocation27_spill] sm:$0xff] %v15784_v46  ;;  %v20927_v53 = vrot.slane %v15715_v57, 6  ;;  %v8554_v1 = vpop.f32.mrf.mxu1 }
 0x183   :  { %v1307_v22 = vrot.slane %v1305_v44, 5  ;;  %v11986_v0 = vld [vmem:[%s20879_s0 + $0xf8] sm:$0xf]  ;;  %8734 = vmatprep.mubr.bf16.mxu1 %v13567_v6  ;;  %3845 = vst [vmem:[#allocation2 + $0x7c8] sm:$0xf] %v3741_v11  ;;  %v1310_v58 = vrot.slane %v1308_v61, 6 }
 0x184   :  { %v1687_v34 = vrot.slane %v20927_v53, 4  ;;  %v1688_v50 = vrot.slane %v1574_v36, 6  ;;  %v1691_v28 = vrot.slane %v15771_v3, 6  ;;  %v15797_v44 = vld [vmem:[%s20879_s0 + $0xfc] sm:$0xf]  ;;  %8735 = vmatmul.mubr.bf16.gmra.mxu1 %v13565_v40  ;;  %v1317_v60 = vrot.slane %v1315_v33, 5  ;;  %v15806_v53 = vpop.f32.mrf.mxu0  ;;  %v15808_v33 = vpop.f32.mrf.mxu1 }
 0x185   :  { %v1320_v56 = vrot.slane %v1318_v47, 6  ;;  %v3487_v42 = vrot.slane %v3485_v45, 4  ;;  %v12024_v6 = vld [vmem:[%s20879_s0 + $0x100] sm:$0xf]  ;;  %v1311_v57 = vor.u32 %v1310_v58, %v1307_v22  ;;  %v3488_v61 = vrot.slane %v11986_v0, 5  ;;  %20928 = vst [vmem:[#allocation28_spill] sm:$0xff] %v15806_v53 }
 0x186   :  { %v1689_v36 = vsel %vm15161_vm10, %v1687_v34, %v1688_v50  ;;  %v1690_v3 = vrot.slane %v1688_v50, 4  ;;  %v3491_v1 = vrot.slane %v15797_v44, 5  ;;  %v15814_v45 = vld [vmem:[%s20879_s0 + $0x104] sm:$0xf]  ;;  %v3742_v40 = vrot.slane %v3740_v26, 4  ;;  %v8308_v26 = vpop.f32.mrf.mxu0 }
 0x187   :  { %v15804_v11 = vor.u32 %v1320_v56, %v1317_v60  ;;  %1795 = vst [vmem:[#allocation2 + $0x29c] sm:$0xf] %v1689_v36  ;;  %v3743_v22 = vrot.slane %v12024_v6, 5  ;;  %v1312_v47 = vsel %vm15171_vm11, %v1303_v62, %v1311_v57  ;;  %v1313_v0 = vrot.slane %v1311_v57, 4  ;;  %v1096_v34 = vld [vmem:[%s20879_s0 + $0x5c] sm:$0xf]  ;;  %v8557_v56 = vpop.f32.mrf.mxu1 }
 0x188   :  { %v1692_v58 = vsel %vm15161_vm10, %v1690_v3, %v1691_v28  ;;  %v1097_v50 = vld [vmem:[%s20879_s0 + $0x60] sm:$0xf]  ;;  %v13568_v44 = vld [vmem:[#allocation2 + $0x250] ss:$36 sps:$4 sm:$0xff]   ;;  %1537 = vst [vmem:[#allocation2 + $0x298] sm:$0xf] %v1312_v47  ;;  %v3489_v62 = vsel %vm14344_vm5, %v3487_v42, %v3488_v61 }
 0x189   :  { %v13570_v60 = vld [vmem:[#allocation2 + $0x254] ss:$36 sps:$4 sm:$0xff]   ;;  %1796 = vst [vmem:[#allocation2 + $0x2c0] sm:$0xf] %v1692_v58  ;;  %v3490_v37 = vrot.slane %v3488_v61, 4  ;;  %v3744_v6 = vsel %vm14344_vm5, %v3742_v40, %v3743_v22  ;;  %v1322_v57 = vsel %vm15171_vm11, %v1313_v0, %v15804_v11  ;;  %v3745_v36 = vrot.slane %v3743_v22, 4  ;;  %v15844_v58 = vpop.f32.mrf.mxu0 }
 0x18a   :  { %3591 = vst [vmem:[#allocation2 + $0x7e8] sm:$0xf] %v3489_v62  ;;  %v3746_v3 = vrot.slane %v15814_v45, 5  ;;  %3846 = vst [vmem:[#allocation2 + $0x7ec] sm:$0xf] %v3744_v6  ;;  %8911 = vmatprep.mubr.bf16.mxu0 %v13570_v60  ;;  %v1325_v22 = vshrl.u32 %v1096_v34, 16  ;;  %v15846_v45 = vpop.f32.mrf.mxu1 }
 0x18b   :  { %v1576_v47 = vld [vmem:[%s20879_s0 + $0x5c] sm:$0xf]  ;;  %v15840_v42 = vld [vmem:[%s20879_s0 + $0x60] sm:$0xf]  ;;  %v13573_v40 = vld [vmem:[#allocation2 + $0x7a4] ss:$36 sps:$4 sm:$0xff]   ;;  %v3492_v0 = vsel %vm14344_vm5, %v3490_v37, %v3491_v1  ;;  %8912 = vmatmul.mubr.bf16.gmra.mxu0 %v13568_v44  ;;  %v8313_v30 = vpop.f32.mrf.mxu0 }
 0x18c   :  { %v13571_v61 = vld [vmem:[#allocation2 + $0x7a0] ss:$36 sps:$4 sm:$0xff]   ;;  %1538 = vst [vmem:[#allocation2 + $0x2bc] sm:$0xf] %v1322_v57  ;;  %20929 = vst [vmem:[#allocation29_spill] sm:$0xff] %v15844_v58  ;;  %v3747_v26 = vsel %vm14344_vm5, %v3745_v36, %v3746_v3  ;;  %v1328_v56 = vshll.u32 %v1096_v34, 16  ;;  %8742 = vmatprep.mubr.bf16.mxu1 %v13573_v40  ;;  %v8562_v44 = vpop.f32.mrf.mxu1 }
 0x18d   :  { %3592 = vst [vmem:[#allocation2 + $0x80c] sm:$0xf] %v3492_v0  ;;  %v1335_v62 = vshrl.u32 %v1097_v50, 16  ;;  %v1338_v6 = vshll.u32 %v1097_v50, 16  ;;  %v11988_v60 = vld [vmem:[%s20879_s0 + $0x100] sm:$0xf]  ;;  %8743 = vmatmul.mubr.bf16.gmra.mxu1 %v13571_v61 }
 0x18e   :  { %3847 = vst [vmem:[#allocation2 + $0x810] sm:$0xf] %v3747_v26  ;;  %v1327_v37 = vrot.slane %v1325_v22, 5  ;;  %v1693_v57 = vrot.slane %v1691_v28, 4  ;;  %v1694_v14 = vrot.slane %v1576_v47, 6  ;;  %v1697_v52 = vrot.slane %v15840_v42, 6  ;;  %v15865_v42 = vpop.f32.mrf.mxu0  ;;  %v15867_v40 = vpop.f32.mrf.mxu1 }
 0x18f   :  { %v15857_v36 = vld [vmem:[%s20879_s0 + $0x104] sm:$0xf]  ;;  %v1323_v34 = vrot.slane %v15804_v11, 4  ;;  %v1330_v50 = vrot.slane %v1328_v56, 6  ;;  %v1337_v0 = vrot.slane %v1335_v62, 5  ;;  %v1340_v5 = vrot.slane %v1338_v6, 6 }
 0x190   :  { %v12026_v28 = vld [vmem:[%s20879_s0 + $0x108] sm:$0xf]  ;;  %v1695_v47 = vsel %vm15161_vm10, %v1693_v57, %v1694_v14  ;;  %v1696_v30 = vrot.slane %v1694_v14, 4  ;;  %20930 = vst [vmem:[#allocation30_spill] sm:$0xff] %v15865_v42  ;;  %v3493_v22 = vrot.slane %v3491_v1, 4  ;;  %v3494_v26 = vrot.slane %v11988_v60, 5  ;;  %v8316_v60 = vpop.f32.mrf.mxu0  ;;  %v8565_v57 = vpop.f32.mrf.mxu1 }
 0x191   :  { %v15872_v11 = vld [vmem:[%s20879_s0 + $0x10c] sm:$0xf]  ;;  %v1331_v61 = vor.u32 %v1330_v50, %v1327_v37  ;;  %v15874_v56 = vor.u32 %v1340_v5, %v1337_v0  ;;  %1797 = vst [vmem:[#allocation2 + $0x2e4] sm:$0xf] %v1695_v47  ;;  %v3497_v62 = vrot.slane %v15857_v36, 5  ;;  %v3748_v44 = vrot.slane %v3746_v3, 4 }
 0x192   :  { %v1098_v14 = vld [vmem:[%s20879_s0 + $0x64] sm:$0xf]  ;;  %v1099_v1 = vld [vmem:[%s20879_s0 + $0x68] sm:$0xf]  ;;  %v1698_v6 = vsel %vm15161_vm10, %v1696_v30, %v1697_v52  ;;  %v3495_v5 = vsel %vm14344_vm5, %v3493_v22, %v3494_v26  ;;  %v3496_v37 = vrot.slane %v3494_v26, 4  ;;  %v3749_v60 = vrot.slane %v12026_v28, 5  ;;  %v15901_v57 = vpop.f32.mrf.mxu0 }
 0x193   :  { %v1578_v36 = vld [vmem:[%s20879_s0 + $0x64] sm:$0xf]  ;;  %v13574_v50 = vld [vmem:[#allocation2 + $0x298] ss:$36 sps:$4 sm:$0xff]   ;;  %v1332_v47 = vsel %vm15171_vm11, %v1323_v34, %v1331_v61  ;;  %v1333_v42 = vrot.slane %v1331_v61, 4  ;;  %v3752_v22 = vrot.slane %v15872_v11, 5  ;;  %v15903_v34 = vpop.f32.mrf.mxu1 }
 0x194   :  { %v13576_v0 = vld [vmem:[#allocation2 + $0x29c] ss:$36 sps:$4 sm:$0xff]   ;;  %1798 = vst [vmem:[#allocation2 + $0x308] sm:$0xf] %v1698_v6  ;;  %3593 = vst [vmem:[#allocation2 + $0x830] sm:$0xf] %v3495_v5  ;;  %v3498_v30 = vsel %vm14344_vm5, %v3496_v37, %v3497_v62  ;;  %v3750_v5 = vsel %vm14344_vm5, %v3748_v44, %v3749_v60 }
 0x195   :  { %1539 = vst [vmem:[#allocation2 + $0x2e0] sm:$0xf] %v1332_v47  ;;  %v1343_v3 = vrot.slane %v15874_v56, 4  ;;  %v15899_v26 = vld [vmem:[%s20879_s0 + $0x68] sm:$0xf]  ;;  %20931 = vst [vmem:[#allocation31_spill] sm:$0xff] %v15901_v57  ;;  %8919 = vmatprep.mubr.bf16.mxu0 %v13576_v0  ;;  %v1342_v28 = vsel %vm15171_vm11, %v1333_v42, %v15874_v56  ;;  %v8321_v57 = vpop.f32.mrf.mxu0  ;;  %v8570_v53 = vpop.f32.mrf.mxu1 }
 0x196   :  { %v13579_v61 = vld [vmem:[#allocation2 + $0x7e8] ss:$36 sps:$4 sm:$0xff]   ;;  %3594 = vst [vmem:[#allocation2 + $0x854] sm:$0xf] %v3498_v30  ;;  %v1345_v11 = vshrl.u32 %v1098_v14, 16  ;;  %8920 = vmatmul.mubr.bf16.gmra.mxu0 %v13574_v50  ;;  %v3751_v37 = vrot.slane %v3749_v60, 4 }
 0x197   :  { %v13581_v6 = vld [vmem:[#allocation2 + $0x7ec] ss:$36 sps:$4 sm:$0xff]   ;;  %1540 = vst [vmem:[#allocation2 + $0x304] sm:$0xf] %v1342_v28  ;;  %v1348_v47 = vshll.u32 %v1098_v14, 16  ;;  %v1355_v58 = vshrl.u32 %v1099_v1, 16  ;;  %v15921_v57 = vpop.f32.mrf.mxu0 }
 0x198   :  { %v11990_v0 = vld [vmem:[%s20879_s0 + $0x108] sm:$0xf]  ;;  %8750 = vmatprep.mubr.bf16.mxu1 %v13581_v6  ;;  %3848 = vst [vmem:[#allocation2 + $0x834] sm:$0xf] %v3750_v5  ;;  %v1347_v46 = vrot.slane %v1345_v11, 5  ;;  %v1358_v42 = vshll.u32 %v1099_v1, 16  ;;  %v3753_v14 = vsel %vm14344_vm5, %v3751_v37, %v3752_v22  ;;  %v15923_v6 = vpop.f32.mrf.mxu1 }
 0x199   :  { %v1699_v56 = vrot.slane %v1697_v52, 4  ;;  %v1700_v30 = vrot.slane %v1578_v36, 6  ;;  %v15916_v50 = vld [vmem:[%s20879_s0 + $0x10c] sm:$0xf]  ;;  %8751 = vmatmul.mubr.bf16.gmra.mxu1 %v13579_v61  ;;  %v1350_v53 = vrot.slane %v1348_v47, 6  ;;  %v1357_v44 = vrot.slane %v1355_v58, 5  ;;  %v8324_v28 = vpop.f32.mrf.mxu0 }
 0x19a   :  { %v1703_v60 = vrot.slane %v15899_v26, 6  ;;  %20932 = vst [vmem:[#allocation32_spill] sm:$0xff] %v15921_v57  ;;  %v12028_v52 = vld [vmem:[%s20879_s0 + $0x110] sm:$0xf]  ;;  %3849 = vst [vmem:[#allocation2 + $0x858] sm:$0xf] %v3753_v14  ;;  %v8573_v11 = vpop.f32.mrf.mxu1 }
 0x19b   :  { %v1360_v1 = vrot.slane %v1358_v42, 6  ;;  %v1701_v36 = vsel %vm15161_vm10, %v1699_v56, %v1700_v30  ;;  %v1702_v61 = vrot.slane %v1700_v30, 4  ;;  %v15933_v58 = vld [vmem:[%s20879_s0 + $0x114] sm:$0xf]  ;;  %v1351_v26 = vor.u32 %v1350_v53, %v1347_v46  ;;  %v1100_v42 = vld [vmem:[%s20879_s0 + $0x6c] sm:$0xf] }
 0x19c   :  { %1799 = vst [vmem:[#allocation2 + $0x32c] sm:$0xf] %v1701_v36  ;;  %v3499_v5 = vrot.slane %v3497_v62, 4  ;;  %v3500_v37 = vrot.slane %v11990_v0, 5  ;;  %v3503_v47 = vrot.slane %v15916_v50, 5  ;;  %v13662_v56 = vld [vmem:[%s20878_s1 + $0x210] sm:$0xff]  }
 0x19d   :  { %v15942_v30 = vor.u32 %v1360_v1, %v1357_v44  ;;  %v1704_v46 = vsel %vm15161_vm10, %v1702_v61, %v1703_v60  ;;  %v3754_v14 = vrot.slane %v3752_v22, 4  ;;  %v3755_v53 = vrot.slane %v12028_v52, 5  ;;  %v1101_v62 = vld [vmem:[%s20879_s0 + $0x70] sm:$0xf]  ;;  %v15953_v44 = vpop.f32.mrf.mxu0  ;;  %v15955_v1 = vpop.f32.mrf.mxu1  ;;  %13038 = vmatprep.subr.bf16.mxu0 %v13662_v56  ;;  %v13584_v52 = vld [vmem:[#allocation2 + $0x2e4] ss:$36 sps:$4 sm:$0xff]  }
 0x19e   :  { %v1352_v0 = vsel %vm15171_vm11, %v1343_v3, %v1351_v26  ;;  %v1353_v50 = vrot.slane %v1351_v26, 4  ;;  %1800 = vst [vmem:[#allocation2 + $0x350] sm:$0xf] %v1704_v46  ;;  %v3501_v36 = vsel %vm14344_vm5, %v3499_v5, %v3500_v37  ;;  %v3502_v28 = vrot.slane %v3500_v37, 4  ;;  %20933 = vst [vmem:[#allocation33_spill] sm:$0xff] %v15953_v44  ;;  %13039 = vmatpush3.bf16.msra.mxu0 %v13662_v56 }
 0x19f   :  { %v13582_v22 = vld [vmem:[#allocation2 + $0x2e0] ss:$36 sps:$4 sm:$0xff]   ;;  %1541 = vst [vmem:[#allocation2 + $0x328] sm:$0xf] %v1352_v0  ;;  %3595 = vst [vmem:[#allocation2 + $0x878] sm:$0xf] %v3501_v36  ;;  %v3756_v61 = vsel %vm14344_vm5, %v3754_v14, %v3755_v53  ;;  %v8578_v0 = vpop.f32.mrf.mxu1  ;;  %8927 = vmatprep.mubr.bf16.mxu0 %v13584_v52 }
 0x1a0   :  { %v3757_v11 = vrot.slane %v3755_v53, 4  ;;  %v1580_v3 = vld [vmem:[%s20879_s0 + $0x6c] sm:$0xf]  ;;  %v15965_v26 = vld [vmem:[%s20879_s0 + $0x70] sm:$0xf]  ;;  %v1362_v5 = vsel %vm15171_vm11, %v1353_v50, %v15942_v30  ;;  %v3504_v37 = vsel %vm14344_vm5, %v3502_v28, %v3503_v47  ;;  %v3758_v46 = vrot.slane %v15933_v58, 5  ;;  %v8329_v53 = vpop.f32.mrf.mxu0  ;;  %8928 = vmatmul.mubr.bf16.gmra.mxu0 %v13582_v22 }
 0x1a1   :  { %3850 = vst [vmem:[#allocation2 + $0x87c] sm:$0xf] %v3756_v61  ;;  %v1363_v14 = vrot.slane %v15942_v30, 4  ;;  %v11992_v36 = vld [vmem:[%s20879_s0 + $0x110] sm:$0xf]  ;;  %v1365_v56 = vshrl.u32 %v1100_v42, 16  ;;  %v15986_v52 = vpop.f32.mrf.mxu1 }
 0x1a2   :  { %1542 = vst [vmem:[#allocation2 + $0x34c] sm:$0xf] %v1362_v5  ;;  %3596 = vst [vmem:[#allocation2 + $0x89c] sm:$0xf] %v3504_v37  ;;  %v1368_v44 = vshll.u32 %v1100_v42, 16  ;;  %v1375_v50 = vshrl.u32 %v1101_v62, 16  ;;  %v3759_v61 = vsel %vm14344_vm5, %v3757_v11, %v3758_v46  ;;  %v15984_v0 = vpop.f32.mrf.mxu0 }
 0x1a3   :  { %v1378_v57 = vshll.u32 %v1101_v62, 16  ;;  %v15980_v58 = vld [vmem:[%s20879_s0 + $0x114] sm:$0xf]  ;;  %v1705_v53 = vrot.slane %v1703_v60, 4  ;;  %20934 = vst [vmem:[#allocation34_spill] sm:$0xff] %v15984_v0  ;;  %v1367_v42 = vrot.slane %v1365_v56, 5  ;;  %v8581_v11 = vpop.f32.mrf.mxu1 }
 0x1a4   :  { %v13585_v30 = vld [vmem:[#allocation2 + $0x830] ss:$36 sps:$4 sm:$0xff]   ;;  %3851 = vst [vmem:[#allocation2 + $0x8a0] sm:$0xf] %v3759_v61  ;;  %v1370_v5 = vrot.slane %v1368_v44, 6  ;;  %v1377_v62 = vrot.slane %v1375_v50, 5  ;;  %v8332_v8 = vpop.f32.mrf.mxu0 }
 0x1a5   :  { %v13587_v28 = vld [vmem:[#allocation2 + $0x834] ss:$36 sps:$4 sm:$0xff]   ;;  %v1380_v37 = vrot.slane %v1378_v57, 6  ;;  %v1706_v22 = vrot.slane %v1580_v3, 6  ;;  %v1709_v23 = vrot.slane %v15965_v26, 6  ;;  %v3505_v60 = vrot.slane %v3503_v47, 4 }
 0x1a6   :  { %v12030_v15 = vld [vmem:[%s20879_s0 + $0x118] sm:$0xf]  ;;  %8758 = vmatprep.mubr.bf16.mxu1 %v13587_v28  ;;  %v1371_v0 = vor.u32 %v1370_v5, %v1367_v42  ;;  %v3506_v61 = vrot.slane %v11992_v36, 5  ;;  %v3509_v44 = vrot.slane %v15980_v58, 5  ;;  %v15998_v57 = vld [vmem:[%s20879_s0 + $0x11c] sm:$0xf]  ;;  %v16008_v50 = vpop.f32.mrf.mxu0  ;;  %v16010_v58 = vpop.f32.mrf.mxu1 }
 0x1a7   :  { %8759 = vmatmul.mubr.bf16.gmra.mxu1 %v13585_v30  ;;  %v15992_v25 = vor.u32 %v1380_v37, %v1377_v62  ;;  %v1102_v3 = vld [vmem:[%s20879_s0 + $0x74] sm:$0xf]  ;;  %v1707_v8 = vsel %vm15161_vm10, %v1705_v53, %v1706_v22  ;;  %v1708_v47 = vrot.slane %v1706_v22, 4  ;;  %v3760_v26 = vrot.slane %v3758_v46, 4  ;;  %v1103_v36 = vld [vmem:[%s20879_s0 + $0x78] sm:$0xf] }
 0x1a8   :  { %v3761_v56 = vrot.slane %v12030_v15, 5  ;;  %20935 = vst [vmem:[#allocation35_spill] sm:$0xff] %v16008_v50  ;;  %v1372_v30 = vsel %vm15171_vm11, %v1363_v14, %v1371_v0  ;;  %v1373_v28 = vrot.slane %v1371_v0, 4  ;;  %1801 = vst [vmem:[#allocation2 + $0x374] sm:$0xf] %v1707_v8  ;;  %v3507_v42 = vsel %vm14344_vm5, %v3505_v60, %v3506_v61  ;;  %v8337_v22 = vpop.f32.mrf.mxu0  ;;  %v8586_v11 = vpop.f32.mrf.mxu1 }
 0x1a9   :  { %v3508_v53 = vrot.slane %v3506_v61, 4  ;;  %v1582_v15 = vld [vmem:[%s20879_s0 + $0x74] sm:$0xf]  ;;  %v16022_v46 = vld [vmem:[%s20879_s0 + $0x78] sm:$0xf]  ;;  %v1710_v14 = vsel %vm15161_vm10, %v1708_v47, %v1709_v23  ;;  %v3764_v8 = vrot.slane %v15998_v57, 5 }
 0x1aa   :  { %v13588_v5 = vld [vmem:[#allocation2 + $0x328] ss:$36 sps:$4 sm:$0xff]   ;;  %1543 = vst [vmem:[#allocation2 + $0x370] sm:$0xf] %v1372_v30  ;;  %3597 = vst [vmem:[#allocation2 + $0x8c0] sm:$0xf] %v3507_v42  ;;  %v3762_v0 = vsel %vm14344_vm5, %v3760_v26, %v3761_v56  ;;  %v1382_v60 = vsel %vm15171_vm11, %v1373_v28, %v15992_v25  ;;  %v16036_v42 = vpop.f32.mrf.mxu1 }
 0x1ab   :  { %v13590_v62 = vld [vmem:[#allocation2 + $0x32c] ss:$36 sps:$4 sm:$0xff]   ;;  %v3763_v37 = vrot.slane %v3761_v56, 4  ;;  %1802 = vst [vmem:[#allocation2 + $0x398] sm:$0xf] %v1710_v14  ;;  %v3510_v61 = vsel %vm14344_vm5, %v3508_v53, %v3509_v44  ;;  %v1385_v26 = vshrl.u32 %v1102_v3, 16  ;;  %v16034_v56 = vpop.f32.mrf.mxu0 }
 0x1ac   :  { %3852 = vst [vmem:[#allocation2 + $0x8c4] sm:$0xf] %v3762_v0  ;;  %8935 = vmatprep.mubr.bf16.mxu0 %v13590_v62  ;;  %v13591_v47 = vld [vmem:[#allocation2 + $0x878] ss:$36 sps:$4 sm:$0xff]   ;;  %1544 = vst [vmem:[#allocation2 + $0x394] sm:$0xf] %v1382_v60 }
 0x1ad   :  { %v13593_v30 = vld [vmem:[#allocation2 + $0x87c] ss:$36 sps:$4 sm:$0xff]   ;;  %3598 = vst [vmem:[#allocation2 + $0x8e4] sm:$0xf] %v3510_v61  ;;  %20936 = vst [vmem:[#allocation36_spill] sm:$0xff] %v16034_v56  ;;  %8936 = vmatmul.mubr.bf16.gmra.mxu0 %v13588_v5  ;;  %v3765_v28 = vsel %vm14344_vm5, %v3763_v37, %v3764_v8  ;;  %v1388_v14 = vshll.u32 %v1102_v3, 16  ;;  %v8340_v61 = vpop.f32.mrf.mxu0  ;;  %v8589_v56 = vpop.f32.mrf.mxu1 }
 0x1ae   :  { %v1395_v22 = vshrl.u32 %v1103_v36, 16  ;;  %v1398_v53 = vshll.u32 %v1103_v36, 16  ;;  %v11994_v57 = vld [vmem:[%s20879_s0 + $0x118] sm:$0xf]  ;;  %8766 = vmatprep.mubr.bf16.mxu1 %v13593_v30  ;;  %3853 = vst [vmem:[#allocation2 + $0x8e8] sm:$0xf] %v3765_v28 }
 0x1af   :  { %v1387_v62 = vrot.slane %v1385_v26, 5  ;;  %v1711_v0 = vrot.slane %v1709_v23, 4  ;;  %v1712_v11 = vrot.slane %v1582_v15, 6  ;;  %v1715_v60 = vrot.slane %v16022_v46, 6  ;;  %v16047_v5 = vld [vmem:[%s20879_s0 + $0x11c] sm:$0xf]  ;;  %8767 = vmatmul.mubr.bf16.gmra.mxu1 %v13591_v47  ;;  %v16060_v47 = vpop.f32.mrf.mxu0 }
 0x1b0   :  { %v1383_v3 = vrot.slane %v15992_v25, 4  ;;  %v1390_v36 = vrot.slane %v1388_v14, 6  ;;  %v1397_v37 = vrot.slane %v1395_v22, 5  ;;  %v1400_v50 = vrot.slane %v1398_v53, 6  ;;  %v12032_v23 = vld [vmem:[%s20879_s0 + $0x120] sm:$0xf]  ;;  %v16062_v25 = vpop.f32.mrf.mxu1 }
 0x1b1   :  { %v1713_v15 = vsel %vm15161_vm10, %v1711_v0, %v1712_v11  ;;  %v1714_v46 = vrot.slane %v1712_v11, 4  ;;  %v3511_v30 = vrot.slane %v3509_v44, 4  ;;  %v3512_v26 = vrot.slane %v11994_v57, 5  ;;  %v16058_v56 = vld [vmem:[%s20879_s0 + $0x124] sm:$0xf]  ;;  %20937 = vst [vmem:[#allocation37_spill] sm:$0xff] %v16060_v47 }
 0x1b2   :  { %v1391_v28 = vor.u32 %v1390_v36, %v1387_v62  ;;  %v16064_v14 = vor.u32 %v1400_v50, %v1397_v37  ;;  %1803 = vst [vmem:[#allocation2 + $0x3bc] sm:$0xf] %v1713_v15  ;;  %v3515_v22 = vrot.slane %v16047_v5, 5  ;;  %v3766_v53 = vrot.slane %v3764_v8, 4  ;;  %v1104_v44 = vld [vmem:[%s20879_s0 + $0x7c] sm:$0xf]  ;;  %v8345_v62 = vpop.f32.mrf.mxu0  ;;  %v8594_v36 = vpop.f32.mrf.mxu1 }
 0x1b3   :  { %v1716_v57 = vsel %vm15161_vm10, %v1714_v46, %v1715_v60  ;;  %v3513_v0 = vsel %vm14344_vm5, %v3511_v30, %v3512_v26  ;;  %v3514_v11 = vrot.slane %v3512_v26, 4  ;;  %v3767_v61 = vrot.slane %v12032_v23, 5  ;;  %v1105_v50 = vld [vmem:[%s20879_s0 + $0x80] sm:$0xf]  ;;  %v13594_v5 = vld [vmem:[#allocation2 + $0x370] ss:$36 sps:$4 sm:$0xff]  }
 0x1b4   :  { %v13596_v8 = vld [vmem:[#allocation2 + $0x374] ss:$36 sps:$4 sm:$0xff]   ;;  %v1392_v37 = vsel %vm15171_vm11, %v1383_v3, %v1391_v28  ;;  %v1393_v15 = vrot.slane %v1391_v28, 4  ;;  %1804 = vst [vmem:[#allocation2 + $0x3e0] sm:$0xf] %v1716_v57  ;;  %v3770_v26 = vrot.slane %v16058_v56, 5  ;;  %v16092_v28 = vpop.f32.mrf.mxu0  ;;  %v16094_v57 = vpop.f32.mrf.mxu1 }
 0x1b5   :  { %3599 = vst [vmem:[#allocation2 + $0x908] sm:$0xf] %v3513_v0  ;;  %1545 = vst [vmem:[#allocation2 + $0x3b8] sm:$0xf] %v1392_v37  ;;  %v3516_v46 = vsel %vm14344_vm5, %v3514_v11, %v3515_v22  ;;  %v3768_v23 = vsel %vm14344_vm5, %v3766_v53, %v3767_v61  ;;  %v3769_v30 = vrot.slane %v3767_v61, 4  ;;  %8943 = vmatprep.mubr.bf16.mxu0 %v13596_v8  ;;  %v1403_v53 = vrot.slane %v16064_v14, 4 }
 0x1b6   :  { %v1584_v62 = vld [vmem:[%s20879_s0 + $0x7c] sm:$0xf]  ;;  %v16090_v3 = vld [vmem:[%s20879_s0 + $0x80] sm:$0xf]  ;;  %20938 = vst [vmem:[#allocation38_spill] sm:$0xff] %v16092_v28  ;;  %20939 = vst [vmem:[#allocation39_spill] sm:$0xff] %v16094_v57  ;;  %v1402_v56 = vsel %vm15171_vm11, %v1393_v15, %v16064_v14  ;;  %8944 = vmatmul.mubr.bf16.gmra.mxu0 %v13594_v5  ;;  %v8348_v47 = vpop.f32.mrf.mxu0  ;;  %v8597_v8 = vpop.f32.mrf.mxu1 }
 0x1b7   :  { %v13598_v0 = vld [vmem:[#allocation2 + $0x8c0] ss:$36 sps:$4 sm:$0xff]   ;;  %3600 = vst [vmem:[#allocation2 + $0x92c] sm:$0xf] %v3516_v46  ;;  %3854 = vst [vmem:[#allocation2 + $0x90c] sm:$0xf] %v3768_v23  ;;  %v3771_v61 = vsel %vm14344_vm5, %v3769_v30, %v3770_v26 }
 0x1b8   :  { %v13600_v11 = vld [vmem:[#allocation2 + $0x8c4] ss:$36 sps:$4 sm:$0xff]   ;;  %1546 = vst [vmem:[#allocation2 + $0x3dc] sm:$0xf] %v1402_v56  ;;  %v1405_v36 = vshrl.u32 %v1104_v44, 16  ;;  %v1408_v37 = vshll.u32 %v1104_v44, 16  ;;  %v16106_v44 = vpop.f32.mrf.mxu0  ;;  %v16108_v47 = vpop.f32.mrf.mxu1 }
 0x1b9   :  { %v1415_v28 = vshrl.u32 %v1105_v50, 16  ;;  %8774 = vmatprep.mubr.bf16.mxu1 %v13600_v11  ;;  %3855 = vst [vmem:[#allocation2 + $0x930] sm:$0xf] %v3771_v61  ;;  %v1418_v16 = vshll.u32 %v1105_v50, 16  ;;  %v1717_v9 = vrot.slane %v1715_v60, 4  ;;  %v1718_v57 = vrot.slane %v1584_v62, 6 }
 0x1ba   :  { %v20883_v15 = vrot.slane %v16090_v3, 6  ;;  %8775 = vmatmul.mubr.bf16.gmra.mxu1 %v13598_v0  ;;  %v1407_v46 = vrot.slane %v1405_v36, 5  ;;  %v1410_v14 = vrot.slane %v1408_v37, 6  ;;  %v11996_v23 = vld [vmem:[%s20879_s0 + $0x120] sm:$0xf]  ;;  %v3517_v30 = vrot.slane %v3515_v22, 4  ;;  %v8602_v61 = vpop.f32.mrf.mxu1 }
 0x1bb   :  { %v1417_v5 = vrot.slane %v1415_v28, 5  ;;  %20940 = vst [vmem:[#allocation40_spill] sm:$0xff] %v16106_v44  ;;  %v1420_v11 = vrot.slane %v1418_v16, 6  ;;  %v1719_v60 = vsel %vm15161_vm10, %v1717_v9, %v1718_v57  ;;  %v1720_v50 = vrot.slane %v1718_v57, 4  ;;  %v16115_v62 = vld [vmem:[%s20879_s0 + $0x124] sm:$0xf]  ;;  %v8353_v57 = vpop.f32.mrf.mxu0 }
 0x1bc   :  { %v3518_v28 = vrot.slane %v11996_v23, 5  ;;  %v1411_v0 = vor.u32 %v1410_v14, %v1407_v46  ;;  %1805 = vst [vmem:[#allocation2 + $0x404] sm:$0xf] %v1719_v60  ;;  %v3521_v56 = vrot.slane %v16115_v62, 5  ;;  %v12034_v22 = vld [vmem:[%s20879_s0 + $0x128] sm:$0xf]  ;;  %v16148_v62 = vpop.f32.mrf.mxu1 }
 0x1bd   :  { %v16124_v16 = vld [vmem:[%s20879_s0 + $0x12c] sm:$0xf]  ;;  %v3772_v9 = vrot.slane %v3770_v26, 4  ;;  %v16126_v36 = vor.u32 %v1420_v11, %v1417_v5  ;;  %v1722_v37 = vsel %vm15161_vm10, %v1720_v50, %v20883_v15  ;;  %v1106_v14 = vld [vmem:[%s20879_s0 + $0x84] sm:$0xf]  ;;  %v3773_v11 = vrot.slane %v12034_v22, 5  ;;  %v16146_v50 = vpop.f32.mrf.mxu0 }
 0x1be   :  { %v3519_v8 = vsel %vm14344_vm5, %v3517_v30, %v3518_v28  ;;  %v3520_v46 = vrot.slane %v3518_v28, 4  ;;  %v1107_v26 = vld [vmem:[%s20879_s0 + $0x88] sm:$0xf]  ;;  %v1412_v5 = vsel %vm15171_vm11, %v1403_v53, %v1411_v0  ;;  %v1413_v23 = vrot.slane %v1411_v0, 4  ;;  %1806 = vst [vmem:[#allocation2 + $0x428] sm:$0xf] %v1722_v37  ;;  %v8605_v15 = vpop.f32.mrf.mxu1 }
 0x1bf   :  { %3601 = vst [vmem:[#allocation2 + $0x950] sm:$0xf] %v3519_v8  ;;  %v3776_v60 = vrot.slane %v16124_v16, 5  ;;  %v1586_v30 = vld [vmem:[%s20879_s0 + $0x84] sm:$0xf]  ;;  %20941 = vst [vmem:[#allocation41_spill] sm:$0xff] %v16146_v50  ;;  %v16152_v28 = vadd.f32 %v15624_v54, %v15068_v4  ;;  %v16159_v16 = vadd.f32 %v15652_v31, %v15109_v29  ;;  %v3774_v4 = vsel %vm14344_vm5, %v3772_v9, %v3773_v11 }
 0x1c0   :  { %v13601_v57 = vld [vmem:[#allocation2 + $0x3b8] ss:$36 sps:$4 sm:$0xff]   ;;  %1547 = vst [vmem:[#allocation2 + $0x400] sm:$0xf] %v1412_v5  ;;  %v3522_v0 = vsel %vm14344_vm5, %v3520_v46, %v3521_v56  ;;  %v1423_v22 = vrot.slane %v16126_v36, 4  ;;  %v1422_v8 = vsel %vm15171_vm11, %v1413_v23, %v16126_v36  ;;  %v3775_v54 = vrot.slane %v3773_v11, 4  ;;  %v8356_v5 = vpop.f32.mrf.mxu0 }
 0x1c1   :  { %v13603_v53 = vld [vmem:[#allocation2 + $0x3bc] ss:$36 sps:$4 sm:$0xff]   ;;  %v13605_v61 = vld [vmem:[#allocation2 + $0x908] ss:$36 sps:$4 sm:$0xff]   ;;  %3602 = vst [vmem:[#allocation2 + $0x974] sm:$0xf] %v3522_v0 }
 0x1c2   :  { %v13607_v37 = vld [vmem:[#allocation2 + $0x90c] ss:$36 sps:$4 sm:$0xff]   ;;  %8951 = vmatprep.mubr.bf16.mxu0 %v13603_v53  ;;  %1548 = vst [vmem:[#allocation2 + $0x424] sm:$0xf] %v1422_v8  ;;  %3856 = vst [vmem:[#allocation2 + $0x954] sm:$0xf] %v3774_v4  ;;  %v3777_v9 = vsel %vm14344_vm5, %v3775_v54, %v3776_v60  ;;  %v16181_v53 = vpop.f32.mrf.mxu1 }
 0x1c3   :  { %v1425_v46 = vshrl.u32 %v1106_v14, 16  ;;  %v1428_v50 = vshll.u32 %v1106_v14, 16  ;;  %v1435_v29 = vshrl.u32 %v1107_v26, 16  ;;  %v1438_v31 = vshll.u32 %v1107_v26, 16  ;;  %v16169_v44 = vld [vmem:[%s20879_s0 + $0x88] sm:$0xf]  ;;  %8952 = vmatmul.mubr.bf16.gmra.mxu0 %v13601_v57  ;;  %8782 = vmatprep.mubr.bf16.mxu1 %v13607_v37  ;;  %v16179_v26 = vpop.f32.mrf.mxu0 }
 0x1c4   :  { %v20942_v36 = vrot.slane %v16090_v3, 6  ;;  %v1724_v23 = vrot.slane %v1586_v30, 6  ;;  %v20884_v11 = vrot.slane %v16169_v44, 6  ;;  %v11998_v14 = vld [vmem:[%s20879_s0 + $0x128] sm:$0xf]  ;;  %20943 = vst [vmem:[#allocation42_spill] sm:$0xff] %v16179_v26  ;;  %8783 = vmatmul.mubr.bf16.gmra.mxu1 %v13605_v61 }
 0x1c5   :  { %3857 = vst [vmem:[#allocation2 + $0x978] sm:$0xf] %v3777_v9  ;;  %v1427_v57 = vrot.slane %v1425_v46, 5  ;;  %v1430_v0 = vrot.slane %v1428_v50, 6  ;;  %v1437_v37 = vrot.slane %v1435_v29, 5  ;;  %v1440_v8 = vrot.slane %v1438_v31, 6  ;;  %v8361_v9 = vpop.f32.mrf.mxu0  ;;  %v8610_v46 = vpop.f32.mrf.mxu1 }
 0x1c6   :  { %v1723_v15 = vrot.slane %v20942_v36, 4  ;;  %v16186_v3 = vld [vmem:[%s20879_s0 + $0x12c] sm:$0xf]  ;;  %v1726_v4 = vrot.slane %v1724_v23, 4  ;;  %v3523_v54 = vrot.slane %v3521_v56, 4  ;;  %v3524_v5 = vrot.slane %v11998_v14, 5 }
 0x1c7   :  { %v12036_v61 = vld [vmem:[%s20879_s0 + $0x130] sm:$0xf]  ;;  %v1431_v50 = vor.u32 %v1430_v0, %v1427_v57  ;;  %v16193_v29 = vor.u32 %v1440_v8, %v1437_v37  ;;  %v3527_v31 = vrot.slane %v16186_v3, 5  ;;  %v16199_v36 = vld [vmem:[%s20879_s0 + $0x134] sm:$0xf]  ;;  %v16213_v8 = vpop.f32.mrf.mxu0 }
 0x1c8   :  { %v1725_v30 = vsel %vm15161_vm10, %v1723_v15, %v1724_v23  ;;  %v3778_v15 = vrot.slane %v3776_v60, 4  ;;  %v1108_v56 = vld [vmem:[%s20879_s0 + $0x8c] sm:$0xf]  ;;  %v1728_v23 = vsel %vm15161_vm10, %v1726_v4, %v20884_v11  ;;  %v3525_v14 = vsel %vm14344_vm5, %v3523_v54, %v3524_v5  ;;  %v1109_v37 = vld [vmem:[%s20879_s0 + $0x90] sm:$0xf]  ;;  %20944 = vst [vmem:[#allocation43_spill] sm:$0xff] %v16213_v8  ;;  %v16215_v60 = vpop.f32.mrf.mxu1 }
 0x1c9   :  { %1807 = vst [vmem:[#allocation2 + $0x44c] sm:$0xf] %v1725_v30  ;;  %v3526_v57 = vrot.slane %v3524_v5, 4  ;;  %v3779_v0 = vrot.slane %v12036_v61, 5  ;;  %v1432_v3 = vsel %vm15171_vm11, %v1423_v22, %v1431_v50  ;;  %v1433_v30 = vrot.slane %v1431_v50, 4 }
 0x1ca   :  { %1808 = vst [vmem:[#allocation2 + $0x470] sm:$0xf] %v1728_v23  ;;  %3603 = vst [vmem:[#allocation2 + $0x998] sm:$0xf] %v3525_v14  ;;  %v3782_v4 = vrot.slane %v16199_v36, 5  ;;  %v1443_v54 = vrot.slane %v16193_v29, 4  ;;  %v16226_v61 = vadd.f32 %v15670_v38, %v15138_v51  ;;  %v8364_v23 = vpop.f32.mrf.mxu0  ;;  %v8613_v14 = vpop.f32.mrf.mxu1 }
 0x1cb   :  { %v1588_v5 = vld [vmem:[%s20879_s0 + $0x8c] sm:$0xf]  ;;  %v13608_v9 = vld [vmem:[#allocation2 + $0x400] ss:$36 sps:$4 sm:$0xff]   ;;  %1549 = vst [vmem:[#allocation2 + $0x448] sm:$0xf] %v1432_v3  ;;  %v3528_v22 = vsel %vm14344_vm5, %v3526_v57, %v3527_v31  ;;  %v3780_v50 = vsel %vm14344_vm5, %v3778_v15, %v3779_v0  ;;  %v1442_v11 = vsel %vm15171_vm11, %v1433_v30, %v16193_v29  ;;  %v16242_v15 = vadd.f32 %v15708_v7, %v15165_v13 }
 0x1cc   :  { %v13610_v46 = vld [vmem:[#allocation2 + $0x404] ss:$36 sps:$4 sm:$0xff]   ;;  %v3781_v36 = vrot.slane %v3779_v0, 4  ;;  %3604 = vst [vmem:[#allocation2 + $0x9bc] sm:$0xf] %v3528_v22  ;;  %v1445_v51 = vshrl.u32 %v1108_v56, 16  ;;  %v16246_v57 = vadd.f32 %v15732_v10, %v15183_v41  ;;  %v16250_v22 = vpop.f32.mrf.mxu0 }
 0x1cd   :  { %3858 = vst [vmem:[#allocation2 + $0x99c] sm:$0xf] %v3780_v50  ;;  %v1448_v38 = vshll.u32 %v1108_v56, 16  ;;  %v1455_v8 = vshrl.u32 %v1109_v37, 16  ;;  %v16238_v3 = vld [vmem:[%s20879_s0 + $0x90] sm:$0xf]  ;;  %8959 = vmatprep.mubr.bf16.mxu0 %v13610_v46  ;;  %v16252_v50 = vpop.f32.mrf.mxu1 }
 0x1ce   :  { %v13612_v29 = vld [vmem:[#allocation2 + $0x950] ss:$36 sps:$4 sm:$0xff]   ;;  %1550 = vst [vmem:[#allocation2 + $0x46c] sm:$0xf] %v1442_v11  ;;  %v3783_v56 = vsel %vm14344_vm5, %v3781_v36, %v3782_v4  ;;  %v1458_v30 = vshll.u32 %v1109_v37, 16  ;;  %20945 = vst [vmem:[#allocation44_spill] sm:$0xff] %v16250_v22  ;;  %8960 = vmatmul.mubr.bf16.gmra.mxu0 %v13608_v9  ;;  %v8369_v36 = vpop.f32.mrf.mxu0  ;;  %v16259_v22 = vadd.f32 %v15763_v39, %v15216_v63 }
 0x1cf   :  { %v13614_v0 = vld [vmem:[#allocation2 + $0x954] ss:$36 sps:$4 sm:$0xff]   ;;  %3859 = vst [vmem:[#allocation2 + $0x9c0] sm:$0xf] %v3783_v56  ;;  %v1447_v13 = vrot.slane %v1445_v51, 5  ;;  %v1450_v7 = vrot.slane %v1448_v38, 6  ;;  %v8618_v37 = vpop.f32.mrf.mxu1  ;;  %v16263_v9 = vadd.f32 %v15786_v21, %v15251_v35  ;;  %v16308_v36 = vadd.f32 %v15846_v45, %v15320_v43 }
 0x1d0   :  { %v1457_v23 = vrot.slane %v1455_v8, 5  ;;  %v20946_v41 = vrot.slane %v16169_v44, 6  ;;  %8790 = vmatprep.mubr.bf16.mxu1 %v13614_v0  ;;  %v1460_v46 = vrot.slane %v1458_v30, 6  ;;  %v1730_v14 = vrot.slane %v1588_v5, 6  ;;  %v12001_v5 = vld [vmem:[%s20879_s0 + $0x134] sm:$0x1]  ;;  %v16288_v38 = vpop.f32.mrf.mxu0 }
 0x1d1   :  { %v1733_v11 = vrot.slane %v16238_v3, 6  ;;  %v3529_v26 = vrot.slane %v3527_v31, 4  ;;  %v16267_v44 = vadd.f32 %v15808_v33, %v15285_v2  ;;  %8791 = vmatmul.mubr.bf16.gmra.mxu1 %v13612_v29  ;;  %v1451_v8 = vor.u32 %v1450_v7, %v1447_v13  ;;  %v12000_v31 = vld [vmem:[%s20879_s0 + $0x130] sm:$0xf]  ;;  %v12038_v63 = vld [vmem:[%s20879_s0 + $0x138] sm:$0xf]  ;;  %v16290_v29 = vpop.f32.mrf.mxu1 }
 0x1d2   :  { %v1729_v10 = vrot.slane %v20946_v41, 4  ;;  %v16278_v35 = vor.u32 %v1460_v46, %v1457_v23  ;;  %v1732_v39 = vrot.slane %v1730_v14, 4  ;;  %v3530_v21 = vrot.slane %v12000_v31, 5  ;;  %v12039_v33 = vld [vmem:[%s20879_s0 + $0x13c] sm:$0x1] }
 0x1d3   :  { %v1110_v51 = vld [vmem:[%s20879_s0 + $0x94] sm:$0xf]  ;;  %v1452_v0 = vsel %vm15171_vm11, %v1443_v54, %v1451_v8  ;;  %v1453_v56 = vrot.slane %v1451_v8, 4  ;;  %v3533_v30 = vrot.slane %v12001_v5, 5  ;;  %v3784_v13 = vrot.slane %v3782_v4, 4  ;;  %v8372_v4 = vpop.f32.mrf.mxu0 }
 0x1d4   :  { %v1731_v2 = vsel %vm15161_vm10, %v1729_v10, %v1730_v14  ;;  %v1111_v7 = vld [vmem:[%s20879_s0 + $0x98] sm:$0x3]  ;;  %1551 = vst [vmem:[#allocation2 + $0x490] sm:$0xf] %v1452_v0  ;;  %v1734_v23 = vsel %vm15161_vm10, %v1732_v39, %v1733_v11  ;;  %v3531_v41 = vsel %vm14344_vm5, %v3529_v26, %v3530_v21  ;;  %v3532_v10 = vrot.slane %v3530_v21, 4  ;;  %v8621_v14 = vpop.f32.mrf.mxu1 }
 0x1d5   :  { %1809 = vst [vmem:[#allocation2 + $0x494] sm:$0xf] %v1731_v2  ;;  %v3785_v46 = vrot.slane %v12038_v63, 5  ;;  %v1590_v54 = vld [vmem:[%s20879_s0 + $0x94] sm:$0xf]  ;;  %v16312_v37 = vadd.f32 %v15867_v40, %v15358_v17  ;;  %v1462_v26 = vsel %vm15171_vm11, %v1453_v56, %v16278_v35  ;;  %v3788_v5 = vrot.slane %v12039_v33, 5  ;;  %v16325_v39 = vpop.f32.mrf.mxu0 }
 0x1d6   :  { %v13615_v8 = vld [vmem:[#allocation2 + $0x448] ss:$36 sps:$4 sm:$0xff]   ;;  %1810 = vst [vmem:[#allocation2 + $0x4b8] sm:$0xf] %v1734_v23  ;;  %3605 = vst [vmem:[#allocation2 + $0x9e0] sm:$0xf] %v3531_v41  ;;  %v16319_v63 = vadd.f32 %v15903_v34, %v15389_v55  ;;  %v3534_v17 = vsel %vm14344_vm5, %v3532_v10, %v3533_v30  ;;  %v16327_v21 = vpop.f32.mrf.mxu1 }
 0x1d7   :  { %v13617_v31 = vld [vmem:[#allocation2 + $0x44c] ss:$36 sps:$4 sm:$0xff]   ;;  %v13618_v2 = vld [vmem:[#allocation2 + $0x998] ss:$36 sps:$4 sm:$0xff]   ;;  %1552 = vst [vmem:[#allocation2 + $0x4b4] sm:$0xf] %v1462_v26  ;;  %v3786_v45 = vsel %vm14344_vm5, %v3784_v13, %v3785_v46 }
 0x1d8   :  { %v13620_v43 = vld [vmem:[#allocation2 + $0x99c] ss:$36 sps:$4 sm:$0xff]   ;;  %v3787_v40 = vrot.slane %v3785_v46, 4  ;;  %8967 = vmatprep.mubr.bf16.mxu0 %v13617_v31  ;;  %3606 = vst [vmem:[#allocation2 + $0xa04] sm:$0xf] %v3534_v17  ;;  %v1463_v55 = vrot.slane %v16278_v35, 4  ;;  %v8626_v10 = vpop.f32.mrf.mxu1 }
 0x1d9   :  { %3860 = vst [vmem:[#allocation2 + $0x9e4] sm:$0xf] %v3786_v45  ;;  %v1465_v34 = vshrl.u32 %v1110_v51, 16  ;;  %v1468_v33 = vshll.u32 %v1110_v51, 16  ;;  %v1475_v0 = vshrl.u32 %v1111_v7, 16  ;;  %8968 = vmatmul.mubr.bf16.gmra.mxu0 %v13615_v8  ;;  %8798 = vmatprep.mubr.bf16.mxu1 %v13620_v43  ;;  %v1478_v13 = vshll.u32 %v1111_v7, 16  ;;  %v8377_v51 = vpop.f32.mrf.mxu0 }
 0x1da   :  { %v1591_v56 = vld [vmem:[%s20879_s0 + $0x98] sm:$0x3]  ;;  %v3789_v30 = vsel %vm14344_vm5, %v3787_v40, %v3788_v5  ;;  %v1735_v23 = vrot.slane %v1733_v11, 4  ;;  %v1736_v41 = vrot.slane %v1590_v54, 6  ;;  %v12041_v35 = vld [vmem:[%s20879_s0 + $0xac] sm:$0xe]  ;;  %8799 = vmatmul.mubr.bf16.gmra.mxu1 %v13618_v2  ;;  %v16350_v5 = vpop.f32.mrf.mxu1  ;;  %v16370_v51 = vadd.f32 %v15923_v6, %v15420_v32 }
 0x1db   :  { %3861 = vst [vmem:[#allocation2 + $0xa08] sm:$0xf] %v3789_v30  ;;  %v1467_v46 = vrot.slane %v1465_v34, 5  ;;  %v1470_v4 = vrot.slane %v1468_v33, 6  ;;  %v1477_v14 = vrot.slane %v1475_v0, 5  ;;  %v1739_v8 = vrot.slane %v1591_v56, 6  ;;  %v16348_v26 = vpop.f32.mrf.mxu0 }
 0x1dc   :  { %v12042_v48 = vld [vmem:[%s20879_s0 + $0xb0] sm:$0xf]  ;;  %v1480_v7 = vrot.slane %v1478_v13, 6  ;;  %v1737_v3 = vsel %vm15161_vm10, %v1735_v23, %v1736_v41  ;;  %v1738_v11 = vrot.slane %v1736_v41, 4  ;;  %v12043_v54 = vld [vmem:[%s20879_s0 + $0xb4] sm:$0xf]  ;;  %v16374_v10 = vadd.f32 %v15955_v1, %v15463_v18 }
 0x1dd   :  { %v3900_v31 = vshrl.u32 %v12041_v35, 16  ;;  %20947 = vst [vmem:[#allocation45_spill] sm:$0xff] %v16348_v26  ;;  %v13693_v2 = vld [vmem:[%s20878_s1 + $0x208] sm:$0xff]   ;;  %v1471_v43 = vor.u32 %v1470_v4, %v1467_v46  ;;  %1811 = vst [vmem:[#allocation2 + $0x4dc] sm:$0xf] %v1737_v3  ;;  %v3903_v17 = vshll.u32 %v12041_v35, 16  ;;  %v8380_v41 = vpop.f32.mrf.mxu0  ;;  %v8629_v35 = vpop.f32.mrf.mxu1 }
 0x1de   :  { %v3909_v45 = vshrl.u32 %v12042_v48, 16  ;;  %v3912_v40 = vshll.u32 %v12042_v48, 16  ;;  %v12078_v34 = vld [vmem:[%s20879_s0 + $0xac] sm:$0xc]  ;;  %v1481_v33 = vor.u32 %v1480_v7, %v1477_v14  ;;  %v1740_v0 = vsel %vm15161_vm10, %v1738_v11, %v1739_v8  ;;  %v12079_v13 = vld [vmem:[%s20879_s0 + $0xb0] sm:$0xf]  ;;  %13040 = vmatprep.subr.bf16.mxu0 %v13693_v2 }
 0x1df   :  { %v3902_v56 = vrot.slane %v3900_v31, 5  ;;  %v3919_v30 = vshrl.u32 %v12043_v54, 16  ;;  %v16366_v23 = vld [vmem:[%s20879_s0 + $0xb4] sm:$0xf]  ;;  %v1472_v14 = vsel %vm15171_vm11, %v1463_v55, %v1471_v43  ;;  %v1473_v8 = vrot.slane %v1471_v43, 4  ;;  %13041 = vmatpush3.bf16.msra.mxu0 %v13693_v2  ;;  %v16378_v31 = vpop.f32.mrf.mxu0  ;;  %v16380_v32 = vpop.f32.mrf.mxu1 }
 0x1e0   :  { %v13621_v46 = vld [vmem:[#allocation2 + $0x490] ss:$36 sps:$4 sm:$0xff]   ;;  %1812 = vst [vmem:[#allocation2 + $0x500] sm:$0xf] %v1740_v0  ;;  %1553 = vst [vmem:[#allocation2 + $0x4d8] sm:$0xf] %v1472_v14  ;;  %v16389_v2 = vadd.f32 %v15986_v52, %v15480_v59 }
 0x1e1   :  { %v13623_v4 = vld [vmem:[#allocation2 + $0x494] ss:$36 sps:$4 sm:$0xff]   ;;  %v3905_v48 = vrot.slane %v3903_v17, 6  ;;  %v3911_v7 = vrot.slane %v3909_v45, 5  ;;  %v3914_v3 = vrot.slane %v3912_v40, 6  ;;  %v3921_v11 = vrot.slane %v3919_v30, 5 }
 0x1e2   :  { %20948 = vst [vmem:[#allocation46_spill] sm:$0xff] %v16378_v31  ;;  %8975 = vmatprep.mubr.bf16.mxu0 %v13623_v4  ;;  %v1482_v18 = vsel %vm15171_vm11, %v1473_v8, %v1481_v33  ;;  %v3922_v6 = vshll.u32 %v12043_v54, 16  ;;  %v12115_v1 = vrot.slane %v12078_v34, 10  ;;  %v4415_v41 = vrot.slane %v12079_v13, 6  ;;  %v1813_v55 = vld [vmem:[%s20879_s0 + $0x10] sm:$0xc]  ;;  %v8385_v33 = vpop.f32.mrf.mxu0  ;;  %v8634_v54 = vpop.f32.mrf.mxu1 }
 0x1e3   :  { %8976 = vmatmul.mubr.bf16.gmra.mxu0 %v13621_v46  ;;  %v13625_v43 = vld [vmem:[#allocation2 + $0x9e0] ss:$36 sps:$4 sm:$0xff]   ;;  %1554 = vst [vmem:[#allocation2 + $0x4fc] sm:$0xf] %v1482_v18  ;;  %v3906_v45 = vor.u32 %v3905_v48, %v3902_v56  ;;  %v3915_v40 = vor.u32 %v3914_v3, %v3911_v7  ;;  %v4418_v0 = vrot.slane %v16366_v23, 6  ;;  %v16394_v34 = vadd.f32 %v16010_v58, %v15522_v49 }
 0x1e4   :  { %v13627_v17 = vld [vmem:[#allocation2 + $0x9e4] ss:$36 sps:$4 sm:$0xff]   ;;  %v3924_v30 = vrot.slane %v3922_v6, 6  ;;  %v4416_v13 = vsel %vm15161_vm10, %v12115_v1, %v4415_v41  ;;  %v4417_v59 = vrot.slane %v4415_v41, 4  ;;  %v1814_v52 = vld [vmem:[%s20879_s0 + $0x14] sm:$0xf]  ;;  %v16409_v14 = vpop.f32.mrf.mxu0  ;;  %v16411_v8 = vpop.f32.mrf.mxu1 }
 0x1e5   :  { %v16404_v56 = vld [vmem:[%s20879_s0 + $0x18] sm:$0xf]  ;;  %8806 = vmatprep.mubr.bf16.mxu1 %v13627_v17  ;;  %v3907_v35 = vrot.slane %v3906_v45, 4  ;;  %v3917_v46 = vrot.slane %v3915_v40, 4  ;;  %4558 = vst [vmem:[#allocation2 + $0x524] sm:$0xf] %v4416_v13 }
 0x1e6   :  { %v11890_v49 = vrot.slane %v1813_v55, 10  ;;  %v1889_v58 = vrot.slane %v1814_v52, 6  ;;  %v2068_v4 = vld [vmem:[%s20879_s0 + $0x10] sm:$0xc]  ;;  %20949 = vst [vmem:[#allocation47_spill] sm:$0xff] %v16409_v14  ;;  %8807 = vmatmul.mubr.bf16.gmra.mxu1 %v13625_v43  ;;  %v16413_v48 = vor.u32 %v3924_v30, %v3921_v11  ;;  %v4419_v7 = vsel %vm15161_vm10, %v4417_v59, %v4418_v0  ;;  %v8388_v43 = vpop.f32.mrf.mxu0  ;;  %v8637_v17 = vpop.f32.mrf.mxu1 }
 0x1e7   :  { %v20885_v3 = vrot.slane %v16404_v56, 6  ;;  %v2069_v18 = vld [vmem:[%s20879_s0 + $0x14] sm:$0xf]  ;;  %v2070_v6 = vld [vmem:[%s20879_s0 + $0x18] sm:$0xf]  ;;  %v2109_v1 = vshrl.u32 %v2068_v4, 16  ;;  %v3916_v11 = vsel %vm15171_vm11, %v3907_v35, %v3915_v40 }
 0x1e8   :  { %4559 = vst [vmem:[#allocation2 + $0x548] sm:$0xf] %v4419_v7  ;;  %v1890_v41 = vsel %vm15161_vm10, %v11890_v49, %v1889_v58  ;;  %v1891_v55 = vrot.slane %v1889_v58, 4  ;;  %vm2105_vm12 = vsmask.f32 1280  ;;  %v3926_v45 = vsel %vm15171_vm11, %v3917_v46, %v16413_v48  ;;  %v16437_v52 = vpop.f32.mrf.mxu0  ;;  %v16439_v35 = vpop.f32.mrf.mxu1  ;;  %v20951_v58 = vld [vmem:[#allocation39_spill] sm:$0xff] }
 0x1e9   :  { %4303 = vst [vmem:[#allocation2 + $0x520] sm:$0xf] %v3916_v11  ;;  %2032 = vst [vmem:[#allocation2 + $0x18] sm:$0xf] %v1890_v41  ;;  %vm2106_vm13 = vsmask.f32 5392  ;;  %v16443_v46 = vadd.f32 %v16036_v42, %v15535_v20  ;;  %v16447_v49 = vadd.f32 %v16062_v25, %v15564_v27 }
 0x1ea   :  { %v2111_v33 = vrot.slane %v2109_v1, 6  ;;  %v2112_v54 = vshll.u32 %v2068_v4, 16  ;;  %4304 = vst [vmem:[#allocation2 + $0x544] sm:$0xf] %v3926_v45  ;;  %v1893_v40 = vsel %vm15161_vm10, %v1891_v55, %v20885_v3  ;;  %v2118_v30 = vshrl.u32 %v2069_v18, 16  ;;  %20950 = vst [vmem:[#allocation48_spill] sm:$0xff] %v16437_v52  ;;  %v8393_v42 = vpop.f32.mrf.mxu0  ;;  %v8642_v17 = vpop.f32.mrf.mxu1 }
 0x1eb   :  { %v2121_v13 = vshll.u32 %v2069_v18, 16  ;;  %v2128_v59 = vshrl.u32 %v2070_v6, 16  ;;  %v16451_v4 = vadd.f32 %v20951_v58, %v15592_v24  ;;  %v13628_v7 = vld [vmem:[#allocation2 + $0x4d8] ss:$36 sps:$4 sm:$0xff]   ;;  %2033 = vst [vmem:[#allocation2 + $0x3c] sm:$0xf] %v1893_v40  ;;  %vm16462_vm14 = vmor %vm2105_vm12, %vm2106_vm13 }
 0x1ec   :  { %v13630_v1 = vld [vmem:[#allocation2 + $0x4dc] ss:$36 sps:$4 sm:$0xff]   ;;  %v2114_v18 = vrot.slane %v2112_v54, 7  ;;  %v2120_v11 = vrot.slane %v2118_v30, 6  ;;  %v2131_v43 = vshll.u32 %v2070_v6, 16  ;;  %v3927_v25 = vrot.slane %v16413_v48, 4  ;;  %v16469_v58 = vpop.f32.mrf.mxu0  ;;  %v16471_v48 = vpop.f32.mrf.mxu1 }
 0x1ed   :  { %20952 = vst [vmem:[#allocation39_spill] sm:$0xff] %v16451_v4  ;;  %v2123_v41 = vrot.slane %v2121_v13, 7  ;;  %v2130_v55 = vrot.slane %v2128_v59, 6  ;;  %v12044_v20 = vld [vmem:[%s20879_s0 + $0xb8] sm:$0xf]  ;;  %8983 = vmatprep.mubr.bf16.mxu0 %v13630_v1  ;;  %20955 = vst [vmem:[#allocation49_spill] sm:$0xff] %v16469_v58 }
 0x1ee   :  { %v2115_v27 = vor.u32 %v2114_v18, %v2111_v33  ;;  %v12045_v24 = vld [vmem:[%s20879_s0 + $0xbc] sm:$0xf]  ;;  %v3929_v45 = vshrl.u32 %v12044_v20, 16  ;;  %v3932_v54 = vshll.u32 %v12044_v20, 16  ;;  %8984 = vmatmul.mubr.bf16.gmra.mxu0 %v13628_v7  ;;  %v2133_v30 = vrot.slane %v2131_v43, 7 }
 0x1ef   :  { %v2124_v40 = vor.u32 %v2123_v41, %v2120_v11  ;;  %v3939_v13 = vshrl.u32 %v12045_v24, 16  ;;  %v3942_v59 = vshll.u32 %v12045_v24, 16  ;;  %v12081_v33 = vld [vmem:[%s20879_s0 + $0xb8] sm:$0xf]  ;;  %v16476_v20 = vld [vmem:[%s20879_s0 + $0xbc] sm:$0xf] }
 0x1f0   :  { %v2116_v1 = vrot.slane %v2115_v27, 4  ;;  %v3931_v7 = vrot.slane %v3929_v45, 5  ;;  %v3934_v18 = vrot.slane %v3932_v54, 6  ;;  %v4420_v11 = vrot.slane %v4418_v0, 4  ;;  %v1816_v24 = vld [vmem:[%s20879_s0 + $0x1c] sm:$0xf]  ;;  %v8396_v27 = vpop.f32.mrf.mxu0  ;;  %v8645_v45 = vpop.f32.mrf.mxu1 }
 0x1f1   :  { %v2126_v41 = vrot.slane %v2124_v40, 4  ;;  %v16480_v43 = vor.u32 %v2133_v30, %v2130_v55  ;;  %v3941_v42 = vrot.slane %v3939_v13, 5  ;;  %v3944_v17 = vrot.slane %v3942_v59, 6  ;;  %v20956_v54 = vld [vmem:[#allocation21_spill] sm:$0xff]  ;;  %v13631_v58 = vld [vmem:[#allocation2 + $0x520] ss:$36 sps:$4 sm:$0xff]  }
 0x1f2   :  { %v16487_v3 = vadd.f32 %v16108_v47, %v20956_v54  ;;  %v13633_v52 = vld [vmem:[#allocation2 + $0x524] ss:$36 sps:$4 sm:$0xff]   ;;  %v2125_v23 = vsel %vm16462_vm14, %v2116_v1, %v2124_v40  ;;  %v3935_v0 = vor.u32 %v3934_v18, %v3931_v7  ;;  %v4421_v55 = vrot.slane %v12081_v33, 6  ;;  %v16500_v47 = vld [vmem:[%s20879_s0 + $0x20] sm:$0xf]  ;;  %v16507_v33 = vpop.f32.mrf.mxu0  ;;  %v16509_v1 = vpop.f32.mrf.mxu1 }
 0x1f3   :  { %v2135_v30 = vsel %vm16462_vm14, %v2126_v41, %v16480_v43  ;;  %2512 = vst [vmem:[#allocation2 + $0x1c] sm:$0xf] %v2125_v23  ;;  %v16494_v13 = vor.u32 %v3944_v17, %v3941_v42  ;;  %v4424_v59 = vrot.slane %v16476_v20, 6  ;;  %v20958_v27 = vrot.slane %v16404_v56, 6  ;;  %v2071_v40 = vld [vmem:[%s20879_s0 + $0x1c] sm:$0xf]  ;;  %8991 = vmatprep.mubr.bf16.mxu0 %v13633_v52 }
 0x1f4   :  { %20957 = vst [vmem:[#allocation21_spill] sm:$0xff] %v16487_v3  ;;  %20959 = vst [vmem:[#allocation50_spill] sm:$0xff] %v16507_v33  ;;  %v3936_v7 = vsel %vm15171_vm11, %v3927_v25, %v3935_v0  ;;  %v3937_v18 = vrot.slane %v3935_v0, 4  ;;  %v4422_v20 = vsel %vm15161_vm10, %v4420_v11, %v4421_v55  ;;  %v4423_v41 = vrot.slane %v4421_v55, 4  ;;  %v2072_v56 = vld [vmem:[%s20879_s0 + $0x20] sm:$0xf]  ;;  %v8401_v23 = vpop.f32.mrf.mxu0  ;;  %v8650_v0 = vpop.f32.mrf.mxu1 }
 0x1f5   :  { %v1894_v45 = vrot.slane %v20958_v27, 4  ;;  %2513 = vst [vmem:[#allocation2 + $0x40] sm:$0xf] %v2135_v30  ;;  %4305 = vst [vmem:[#allocation2 + $0x568] sm:$0xf] %v3936_v7  ;;  %v1895_v42 = vrot.slane %v1816_v24, 6 }
 0x1f6   :  { %4560 = vst [vmem:[#allocation2 + $0x56c] sm:$0xf] %v4422_v20  ;;  %v1898_v17 = vrot.slane %v16500_v47, 6  ;;  %v2136_v52 = vrot.slane %v16480_v43, 4  ;;  %v2138_v54 = vshrl.u32 %v2071_v40, 16  ;;  %v3946_v11 = vsel %vm15171_vm11, %v3937_v18, %v16494_v13  ;;  %8992 = vmatmul.mubr.bf16.gmra.mxu0 %v13631_v58  ;;  %v16533_v23 = vpop.f32.mrf.mxu0  ;;  %v16535_v18 = vpop.f32.mrf.mxu1 }
 0x1f7   :  { %v12046_v25 = vld [vmem:[%s20879_s0 + $0xc0] sm:$0xf]  ;;  %v4425_v55 = vsel %vm15161_vm10, %v4423_v41, %v4424_v59  ;;  %v2141_v30 = vshll.u32 %v2071_v40, 16  ;;  %v2148_v24 = vshrl.u32 %v2072_v56, 16  ;;  %v12047_v43 = vld [vmem:[%s20879_s0 + $0xc4] sm:$0xf]  ;;  %v1896_v47 = vsel %vm15161_vm10, %v1894_v45, %v1895_v42 }
 0x1f8   :  { %4306 = vst [vmem:[#allocation2 + $0x58c] sm:$0xf] %v3946_v11  ;;  %4561 = vst [vmem:[#allocation2 + $0x590] sm:$0xf] %v4425_v55  ;;  %v1897_v27 = vrot.slane %v1895_v42, 4  ;;  %v2140_v7 = vrot.slane %v2138_v54, 6  ;;  %v8404_v55 = vpop.f32.mrf.mxu0 }
 0x1f9   :  { %v2151_v20 = vshll.u32 %v2072_v56, 16  ;;  %20960 = vst [vmem:[#allocation51_spill] sm:$0xff] %v16533_v23  ;;  %2034 = vst [vmem:[#allocation2 + $0x60] sm:$0xf] %v1896_v47  ;;  %v2143_v40 = vrot.slane %v2141_v30, 7  ;;  %v2150_v41 = vrot.slane %v2148_v24, 6  ;;  %v8653_v30 = vpop.f32.mrf.mxu1 }
 0x1fa   :  { %v3947_v0 = vrot.slane %v16494_v13, 4  ;;  %v3949_v33 = vshrl.u32 %v12046_v25, 16  ;;  %v12083_v58 = vld [vmem:[%s20879_s0 + $0xc0] sm:$0xf]  ;;  %v1899_v45 = vsel %vm15161_vm10, %v1897_v27, %v1898_v17  ;;  %v3952_v54 = vshll.u32 %v12046_v25, 16  ;;  %v20961_v27 = vld [vmem:[#allocation22_spill] sm:$0xff] }
 0x1fb   :  { %v2153_v42 = vrot.slane %v2151_v20, 7  ;;  %v3959_v56 = vshrl.u32 %v12047_v43, 16  ;;  %v16546_v11 = vld [vmem:[%s20879_s0 + $0xc4] sm:$0xf]  ;;  %2035 = vst [vmem:[#allocation2 + $0x84] sm:$0xf] %v1899_v45  ;;  %v2144_v13 = vor.u32 %v2143_v40, %v2140_v7  ;;  %v16553_v25 = vadd.f32 %v16148_v62, %v20961_v27 }
 0x1fc   :  { %v3951_v24 = vrot.slane %v3949_v33, 5  ;;  %v3962_v47 = vshll.u32 %v12047_v43, 16  ;;  %v4426_v23 = vrot.slane %v4424_v59, 4  ;;  %v1818_v14 = vld [vmem:[%s20879_s0 + $0x24] sm:$0xf]  ;;  %v3954_v7 = vrot.slane %v3952_v54, 6  ;;  %v16561_v33 = vpop.f32.mrf.mxu0  ;;  %v16563_v59 = vpop.f32.mrf.mxu1 }
 0x1fd   :  { %20962 = vst [vmem:[#allocation22_spill] sm:$0xff] %v16553_v25  ;;  %v20963_v20 = vld [vmem:[#allocation23_spill] sm:$0xff]  ;;  %v13634_v31 = vld [vmem:[#allocation2 + $0x18] ss:$36 sps:$4 sm:$0xff]   ;;  %v16559_v30 = vor.u32 %v2153_v42, %v2150_v41  ;;  %20965 = vst [vmem:[#allocation52_spill] sm:$0xff] %v16561_v33  ;;  %v2145_v43 = vsel %vm16462_vm14, %v2136_v52, %v2144_v13  ;;  %v2146_v40 = vrot.slane %v2144_v13, 4 }
 0x1fe   :  { %v16557_v3 = vadd.f32 %v16181_v53, %v20963_v20  ;;  %v13636_v55 = vld [vmem:[#allocation2 + $0x1c] ss:$36 sps:$4 sm:$0xff]   ;;  %v3961_v45 = vrot.slane %v3959_v56, 5  ;;  %v3964_v62 = vrot.slane %v3962_v47, 6  ;;  %v16570_v53 = vld [vmem:[%s20879_s0 + $0x28] sm:$0xf]  ;;  %v3955_v41 = vor.u32 %v3954_v7, %v3951_v24  ;;  %v8409_v52 = vpop.f32.mrf.mxu0  ;;  %v8658_v13 = vpop.f32.mrf.mxu1 }
 0x1ff   :  { %9168 = vmatprep.mubr.bf16.mxu1 %v13636_v55  ;;  %2514 = vst [vmem:[#allocation2 + $0x64] sm:$0xf] %v2145_v43  ;;  %v4427_v42 = vrot.slane %v12083_v58, 6  ;;  %v4430_v54 = vrot.slane %v16546_v11, 6  ;;  %v1900_v27 = vrot.slane %v1898_v17, 4  ;;  %v20966_v56 = vld [vmem:[#allocation24_spill] sm:$0xff]  ;;  %v2155_v58 = vsel %vm16462_vm14, %v2146_v40, %v16559_v30 }
 0x200   :  { %20964 = vst [vmem:[#allocation23_spill] sm:$0xff] %v16557_v3  ;;  %v2073_v20 = vld [vmem:[%s20879_s0 + $0x24] sm:$0xf]  ;;  %v16578_v47 = vadd.f32 %v16215_v60, %v20966_v56  ;;  %9169 = vmatmul.mubr.bf16.vlgmr.msra.gmra.mxu1 %v13634_v31  ;;  %v13638_v33 = vld [vmem:[#allocation2 + $0x568] ss:$36 sps:$4 sm:$0xff]   ;;  %v16583_v24 = vor.u32 %v3964_v62, %v3961_v45  ;;  %v1901_v17 = vrot.slane %v1818_v14, 6  ;;  %v3956_v11 = vsel %vm15171_vm11, %v3947_v0, %v3955_v41  ;;  %v16592_v43 = vpop.f32.mrf.mxu0  ;;  %v16594_v52 = vpop.f32.mrf.mxu1 }
 0x201   :  { %v13640_v3 = vld [vmem:[#allocation2 + $0x56c] ss:$36 sps:$4 sm:$0xff]   ;;  %2515 = vst [vmem:[#allocation2 + $0x88] sm:$0xf] %v2155_v58  ;;  %v3957_v55 = vrot.slane %v3955_v41, 4  ;;  %v4428_v7 = vsel %vm15161_vm10, %v4426_v23, %v4427_v42  ;;  %v4429_v60 = vrot.slane %v4427_v42, 4 }
 0x202   :  { %20967 = vst [vmem:[#allocation24_spill] sm:$0xff] %v16578_v47  ;;  %v2074_v31 = vld [vmem:[%s20879_s0 + $0x28] sm:$0xf]  ;;  %20968 = vst [vmem:[#allocation53_spill] sm:$0xff] %v16592_v43  ;;  %8999 = vmatprep.mubr.bf16.mxu0 %v13640_v3  ;;  %v1902_v14 = vsel %vm15161_vm10, %v1900_v27, %v1901_v17  ;;  %v1903_v0 = vrot.slane %v1901_v17, 4  ;;  %v1904_v40 = vrot.slane %v16570_v53, 6  ;;  %v8661_v27 = vpop.f32.mrf.mxu1 }
 0x203   :  { %4307 = vst [vmem:[#allocation2 + $0x5b0] sm:$0xf] %v3956_v11  ;;  %4562 = vst [vmem:[#allocation2 + $0x5b4] sm:$0xf] %v4428_v7  ;;  %v2156_v23 = vrot.slane %v16559_v30, 4  ;;  %9000 = vmatmul.mubr.bf16.gmra.mxu0 %v13638_v33  ;;  %v3966_v62 = vsel %vm15171_vm11, %v3957_v55, %v16583_v24  ;;  %v4431_v3 = vsel %vm15161_vm10, %v4429_v60, %v4430_v54  ;;  %v2158_v41 = vshrl.u32 %v2073_v20, 16  ;;  %v8412_v30 = vpop.f32.mrf.mxu0 }
 0x204   :  { %v12048_v45 = vld [vmem:[%s20879_s0 + $0xc8] sm:$0xf]  ;;  %2036 = vst [vmem:[#allocation2 + $0xa8] sm:$0xf] %v1902_v14  ;;  %v2161_v42 = vshll.u32 %v2073_v20, 16  ;;  %v1905_v33 = vsel %vm15161_vm10, %v1903_v0, %v1904_v40  ;;  %v2168_v13 = vshrl.u32 %v2074_v31, 16  ;;  %v16622_v14 = vpop.f32.mrf.mxu1 }
 0x205   :  { %v12049_v53 = vld [vmem:[%s20879_s0 + $0xcc] sm:$0xf]  ;;  %4308 = vst [vmem:[#allocation2 + $0x5d4] sm:$0xf] %v3966_v62  ;;  %4563 = vst [vmem:[#allocation2 + $0x5d8] sm:$0xf] %v4431_v3  ;;  %v16624_v3 = vpop.f32.mrf.mxu0 }
 0x206   :  { %v2171_v56 = vshll.u32 %v2074_v31, 16  ;;  %v3967_v58 = vrot.slane %v16583_v24, 4  ;;  %2037 = vst [vmem:[#allocation2 + $0xcc] sm:$0xf] %v1905_v33  ;;  %v2160_v17 = vrot.slane %v2158_v41, 6  ;;  %v2163_v11 = vrot.slane %v2161_v42, 7  ;;  %v8666_v33 = vpop.f32.mrf.mxu1 }
 0x207   :  { %v3969_v55 = vshrl.u32 %v12048_v45, 16  ;;  %v3972_v20 = vshll.u32 %v12048_v45, 16  ;;  %v12085_v7 = vld [vmem:[%s20879_s0 + $0xc8] sm:$0xf]  ;;  %v16620_v60 = vld [vmem:[%s20879_s0 + $0xcc] sm:$0xf] }
 0x208   :  { %v2170_v0 = vrot.slane %v2168_v13, 6  ;;  %v2173_v31 = vrot.slane %v2171_v56, 7  ;;  %v3979_v62 = vshrl.u32 %v12049_v53, 16  ;;  %v3982_v24 = vshll.u32 %v12049_v53, 16  ;;  %20969 = vst [vmem:[#allocation54_spill] sm:$0xff] %v16624_v3  ;;  %v20970_v43 = vld [vmem:[#allocation25_spill] sm:$0xff] }
 0x209   :  { %v2164_v41 = vor.u32 %v2163_v11, %v2160_v17  ;;  %v3971_v42 = vrot.slane %v3969_v55, 5  ;;  %v3974_v45 = vrot.slane %v3972_v20, 6  ;;  %v4432_v30 = vrot.slane %v4430_v54, 4  ;;  %v1820_v27 = vld [vmem:[%s20879_s0 + $0x2c] sm:$0xf]  ;;  %v20972_v25 = vld [vmem:[#allocation26_spill] sm:$0xff]  ;;  %v8417_v11 = vpop.f32.mrf.mxu0 }
 0x20a   :  { %v16631_v47 = vadd.f32 %v16252_v50, %v20970_v43  ;;  %v16635_v13 = vadd.f32 %v16290_v29, %v20972_v25  ;;  %v13641_v53 = vld [vmem:[#allocation2 + $0x60] ss:$36 sps:$4 sm:$0xff]   ;;  %v16637_v3 = vor.u32 %v2173_v31, %v2170_v0  ;;  %v3981_v17 = vrot.slane %v3979_v62, 5  ;;  %v16642_v54 = vld [vmem:[%s20879_s0 + $0x30] sm:$0xf]  ;;  %v16649_v25 = vpop.f32.mrf.mxu1 }
 0x20b   :  { %v13643_v56 = vld [vmem:[#allocation2 + $0x64] ss:$36 sps:$4 sm:$0xff]   ;;  %v2165_v55 = vsel %vm16462_vm14, %v2156_v23, %v2164_v41  ;;  %v2166_v50 = vrot.slane %v2164_v41, 4  ;;  %v3975_v43 = vor.u32 %v3974_v45, %v3971_v42  ;;  %v3984_v20 = vrot.slane %v3982_v24, 6  ;;  %v2075_v29 = vld [vmem:[%s20879_s0 + $0x2c] sm:$0xf]  ;;  %v16655_v41 = vpop.f32.mrf.mxu0 }
 0x20c   :  { %20971 = vst [vmem:[#allocation25_spill] sm:$0xff] %v16631_v47  ;;  %20973 = vst [vmem:[#allocation26_spill] sm:$0xff] %v16635_v13  ;;  %9176 = vmatprep.mubr.bf16.mxu1 %v13643_v56  ;;  %v4433_v0 = vrot.slane %v12085_v7, 6  ;;  %v4436_v31 = vrot.slane %v16620_v60, 6  ;;  %v1906_v62 = vrot.slane %v1904_v40, 4  ;;  %v1907_v33 = vrot.slane %v1820_v27, 6  ;;  %v8669_v40 = vpop.f32.mrf.mxu1 }
 0x20d   :  { %2516 = vst [vmem:[#allocation2 + $0xac] sm:$0xf] %v2165_v55  ;;  %v2076_v23 = vld [vmem:[%s20879_s0 + $0x30] sm:$0xf]  ;;  %20974 = vst [vmem:[#allocation55_spill] sm:$0xff] %v16655_v41  ;;  %9177 = vmatmul.mubr.bf16.gmra.mxu1 %v13641_v53  ;;  %v2175_v45 = vsel %vm16462_vm14, %v2166_v50, %v16637_v3  ;;  %v3976_v7 = vsel %vm15171_vm11, %v3967_v58, %v3975_v43  ;;  %v3977_v56 = vrot.slane %v3975_v43, 4  ;;  %v8420_v41 = vpop.f32.mrf.mxu0 }
 0x20e   :  { %v13644_v24 = vld [vmem:[#allocation2 + $0x5b0] ss:$36 sps:$4 sm:$0xff]   ;;  %v16662_v60 = vor.u32 %v3984_v20, %v3981_v17  ;;  %2517 = vst [vmem:[#allocation2 + $0xd0] sm:$0xf] %v2175_v45  ;;  %4309 = vst [vmem:[#allocation2 + $0x5f8] sm:$0xf] %v3976_v7  ;;  %v4434_v27 = vsel %vm15161_vm10, %v4432_v30, %v4433_v0  ;;  %v1908_v53 = vsel %vm15161_vm10, %v1906_v62, %v1907_v33 }
 0x20f   :  { %v13646_v42 = vld [vmem:[#allocation2 + $0x5b4] ss:$36 sps:$4 sm:$0xff]   ;;  %v4435_v11 = vrot.slane %v4433_v0, 4  ;;  %v1909_v55 = vrot.slane %v1907_v33, 4  ;;  %v12050_v50 = vld [vmem:[%s20879_s0 + $0xd0] sm:$0xf]  ;;  %v16679_v0 = vpop.f32.mrf.mxu1 }
 0x210   :  { %9007 = vmatprep.mubr.bf16.mxu0 %v13646_v42  ;;  %v3986_v58 = vsel %vm15171_vm11, %v3977_v56, %v16662_v60  ;;  %4564 = vst [vmem:[#allocation2 + $0x5fc] sm:$0xf] %v4434_v27  ;;  %v1910_v17 = vrot.slane %v16642_v54, 6  ;;  %2038 = vst [vmem:[#allocation2 + $0xf0] sm:$0xf] %v1908_v53  ;;  %v2176_v30 = vrot.slane %v16637_v3, 4 }
 0x211   :  { %v2178_v43 = vshrl.u32 %v2075_v29, 16  ;;  %v12051_v20 = vld [vmem:[%s20879_s0 + $0xd4] sm:$0xf]  ;;  %v13718_v62 = vld [vmem:[%s20878_s1 + $0x200] sm:$0xff]   ;;  %9008 = vmatmul.mubr.bf16.gmra.mxu0 %v13644_v24  ;;  %4310 = vst [vmem:[#allocation2 + $0x61c] sm:$0xf] %v3986_v58  ;;  %v4437_v33 = vsel %vm15161_vm10, %v4435_v11, %v4436_v31  ;;  %v8674_v24 = vpop.f32.mrf.mxu1 }
 0x212   :  { %v2181_v54 = vshll.u32 %v2075_v29, 16  ;;  %v2188_v41 = vshrl.u32 %v2076_v23, 16  ;;  %v2191_v42 = vshll.u32 %v2076_v23, 16  ;;  %v12087_v3 = vld [vmem:[%s20879_s0 + $0xd0] sm:$0xf]  ;;  %v1911_v45 = vsel %vm15161_vm10, %v1909_v55, %v1910_v17  ;;  %13042 = vmatprep.subr.bf16.mxu0 %v13718_v62 }
 0x213   :  { %4565 = vst [vmem:[#allocation2 + $0x620] sm:$0xf] %v4437_v33  ;;  %v2180_v7 = vrot.slane %v2178_v43, 6  ;;  %v3987_v56 = vrot.slane %v16662_v60, 4  ;;  %v3989_v40 = vshrl.u32 %v12050_v50, 16  ;;  %v3992_v53 = vshll.u32 %v12050_v50, 16  ;;  %13043 = vmatpush3.bf16.msra.mxu0 %v13718_v62  ;;  %v16697_v13 = vpop.f32.mrf.mxu1  ;;  %v8849_v62 = vpop.f32.mrf.mxu0 }
 0x214   :  { %2039 = vst [vmem:[#allocation2 + $0x114] sm:$0xf] %v1911_v45  ;;  %v2183_v27 = vrot.slane %v2181_v54, 7  ;;  %v2190_v11 = vrot.slane %v2188_v41, 6  ;;  %v2193_v29 = vrot.slane %v2191_v42, 7  ;;  %v3999_v33 = vshrl.u32 %v12051_v20, 16 }
 0x215   :  { %v16695_v23 = vld [vmem:[%s20879_s0 + $0xd4] sm:$0xf]  ;;  %v3991_v58 = vrot.slane %v3989_v40, 5  ;;  %v4002_v55 = vshll.u32 %v12051_v20, 16  ;;  %v4438_v43 = vrot.slane %v4436_v31, 4  ;;  %v3994_v45 = vrot.slane %v3992_v53, 6 }
 0x216   :  { %v2184_v60 = vor.u32 %v2183_v27, %v2180_v7  ;;  %v16699_v24 = vor.u32 %v2193_v29, %v2190_v11  ;;  %v4439_v54 = vrot.slane %v12087_v3, 6  ;;  %v1822_v50 = vld [vmem:[%s20879_s0 + $0x34] sm:$0xf]  ;;  %v16707_v41 = vld [vmem:[%s20879_s0 + $0x38] sm:$0xf]  ;;  %v20975_v42 = vld [vmem:[#allocation27_spill] sm:$0xff]  ;;  %v16718_v11 = vadd.f32 %v8849_v62, %v16152_v28  ;;  %v8677_v29 = vpop.f32.mrf.mxu1 }
 0x217   :  { %v16711_v31 = vadd.f32 %v16327_v21, %v20975_v42  ;;  %v20977_v20 = vld [vmem:[#allocation28_spill] sm:$0xff]  ;;  %v4001_v27 = vrot.slane %v3999_v33, 5  ;;  %v3995_v26 = vor.u32 %v3994_v45, %v3991_v58  ;;  %v4004_v4 = vrot.slane %v4002_v55, 6  ;;  %v2077_v21 = vld [vmem:[%s20879_s0 + $0x34] sm:$0xf]  ;;  %v8851_v42 = vpop.f32.mrf.mxu0 }
 0x218   :  { %v16715_v7 = vadd.f32 %v16350_v5, %v20977_v20  ;;  %v13647_v40 = vld [vmem:[#allocation2 + $0xa8] ss:$36 sps:$4 sm:$0xff]   ;;  %20979 = vst [vmem:[#allocation56_spill] sm:$0xff] %v16718_v11  ;;  %v2185_v53 = vsel %vm16462_vm14, %v2176_v30, %v2184_v60  ;;  %v2186_v47 = vrot.slane %v2184_v60, 4  ;;  %v4440_v5 = vsel %vm15161_vm10, %v4438_v43, %v4439_v54  ;;  %v2078_v30 = vld [vmem:[%s20879_s0 + $0x38] sm:$0xf] }
 0x219   :  { %20976 = vst [vmem:[#allocation27_spill] sm:$0xff] %v16711_v31  ;;  %v13649_v3 = vld [vmem:[#allocation2 + $0xac] ss:$36 sps:$4 sm:$0xff]   ;;  %2518 = vst [vmem:[#allocation2 + $0xf4] sm:$0xf] %v2185_v53  ;;  %v4441_v33 = vrot.slane %v4439_v54, 4  ;;  %v3996_v45 = vsel %vm15171_vm11, %v3987_v56, %v3995_v26  ;;  %v16736_v43 = vor.u32 %v4004_v4, %v4001_v27  ;;  %v16745_v56 = vpop.f32.mrf.mxu1 }
 0x21a   :  { %20978 = vst [vmem:[#allocation28_spill] sm:$0xff] %v16715_v7  ;;  %9184 = vmatprep.mubr.bf16.mxu1 %v13649_v3  ;;  %v4442_v28 = vrot.slane %v16695_v23, 6  ;;  %v1912_v62 = vrot.slane %v1910_v17, 4  ;;  %v13650_v58 = vld [vmem:[#allocation2 + $0x5f8] ss:$36 sps:$4 sm:$0xff]   ;;  %v2195_v60 = vsel %vm16462_vm14, %v2186_v47, %v16699_v24  ;;  %v3997_v20 = vrot.slane %v3995_v26, 4  ;;  %v8852_v23 = vpop.f32.mrf.mxu0 }
 0x21b   :  { %9185 = vmatmul.mubr.bf16.gmra.mxu1 %v13647_v40  ;;  %v13652_v55 = vld [vmem:[#allocation2 + $0x5fc] ss:$36 sps:$4 sm:$0xff]   ;;  %4566 = vst [vmem:[#allocation2 + $0x644] sm:$0xf] %v4440_v5  ;;  %2519 = vst [vmem:[#allocation2 + $0x118] sm:$0xf] %v2195_v60 }
 0x21c   :  { %4311 = vst [vmem:[#allocation2 + $0x640] sm:$0xf] %v3996_v45  ;;  %v4443_v17 = vsel %vm15161_vm10, %v4441_v33, %v4442_v28  ;;  %v1913_v54 = vrot.slane %v1822_v50, 6  ;;  %v20886_v40 = vrot.slane %v16707_v41, 6  ;;  %v2196_v3 = vrot.slane %v16699_v24, 4  ;;  %9015 = vmatprep.mubr.bf16.mxu0 %v13652_v55  ;;  %v8854_v24 = vpop.f32.mrf.mxu0  ;;  %v8682_v55 = vpop.f32.mrf.mxu1 }
 0x21d   :  { %v12052_v47 = vld [vmem:[%s20879_s0 + $0xd8] sm:$0xf]  ;;  %v4006_v26 = vsel %vm15171_vm11, %v3997_v20, %v16736_v43  ;;  %4567 = vst [vmem:[#allocation2 + $0x668] sm:$0xf] %v4443_v17  ;;  %v2198_v4 = vshrl.u32 %v2077_v21, 16  ;;  %v2201_v27 = vshll.u32 %v2077_v21, 16  ;;  %9016 = vmatmul.mubr.bf16.gmra.mxu0 %v13650_v58 }
 0x21e   :  { %v2208_v29 = vshrl.u32 %v2078_v30, 16  ;;  %v12053_v50 = vld [vmem:[%s20879_s0 + $0xdc] sm:$0xf]  ;;  %4312 = vst [vmem:[#allocation2 + $0x664] sm:$0xf] %v4006_v26  ;;  %v1914_v53 = vsel %vm15161_vm10, %v1912_v62, %v1913_v54  ;;  %v1915_v42 = vrot.slane %v1913_v54, 4  ;;  %v16763_v26 = vpop.f32.mrf.mxu1 }
 0x21f   :  { %v2211_v5 = vshll.u32 %v2078_v30, 16  ;;  %v4007_v33 = vrot.slane %v16736_v43, 4  ;;  %2040 = vst [vmem:[#allocation2 + $0x138] sm:$0xf] %v1914_v53  ;;  %v2200_v60 = vrot.slane %v2198_v4, 6  ;;  %v2203_v45 = vrot.slane %v2201_v27, 7 }
 0x220   :  { %v2210_v21 = vrot.slane %v2208_v29, 6  ;;  %v4009_v20 = vshrl.u32 %v12052_v47, 16  ;;  %v12089_v17 = vld [vmem:[%s20879_s0 + $0xd8] sm:$0xf]  ;;  %v1917_v58 = vsel %vm15161_vm10, %v1915_v42, %v20886_v40  ;;  %v4012_v54 = vshll.u32 %v12052_v47, 16 }
 0x221   :  { %v2213_v62 = vrot.slane %v2211_v5, 7  ;;  %v4019_v30 = vshrl.u32 %v12053_v50, 16  ;;  %2041 = vst [vmem:[#allocation2 + $0x15c] sm:$0xf] %v1917_v58  ;;  %v2204_v43 = vor.u32 %v2203_v45, %v2200_v60  ;;  %v4022_v27 = vshll.u32 %v12053_v50, 16  ;;  %v8685_v50 = vpop.f32.mrf.mxu1  ;;  %v20980_v60 = vld [vmem:[#allocation29_spill] sm:$0xff] }
 0x222   :  { %v4011_v4 = vrot.slane %v4009_v20, 5  ;;  %v16768_v29 = vld [vmem:[%s20879_s0 + $0xdc] sm:$0xf]  ;;  %v4444_v24 = vrot.slane %v4442_v28, 4  ;;  %v4014_v55 = vrot.slane %v4012_v54, 6  ;;  %v4445_v42 = vrot.slane %v12089_v17, 6  ;;  %v8857_v54 = vpop.f32.mrf.mxu0 }
 0x223   :  { %v16770_v53 = vor.u32 %v2213_v62, %v2210_v21  ;;  %v4021_v11 = vrot.slane %v4019_v30, 5  ;;  %v1824_v47 = vld [vmem:[%s20879_s0 + $0x3c] sm:$0xf]  ;;  %v16778_v5 = vld [vmem:[%s20879_s0 + $0x40] sm:$0xf]  ;;  %v16782_v45 = vadd.f32 %v16380_v32, %v20980_v60  ;;  %v2205_v20 = vsel %vm16462_vm14, %v2196_v3, %v2204_v43 }
 0x224   :  { %v13653_v28 = vld [vmem:[#allocation2 + $0xf0] ss:$36 sps:$4 sm:$0xff]   ;;  %v2206_v17 = vrot.slane %v2204_v43, 4  ;;  %v2079_v58 = vld [vmem:[%s20879_s0 + $0x3c] sm:$0xf]  ;;  %v16790_v62 = vadd.f32 %v8852_v23, %v16159_v16  ;;  %v4015_v30 = vor.u32 %v4014_v55, %v4011_v4  ;;  %v4024_v50 = vrot.slane %v4022_v27, 6  ;;  %v16797_v43 = vpop.f32.mrf.mxu1  ;;  %v8859_v55 = vpop.f32.mrf.mxu0 }
 0x225   :  { %20981 = vst [vmem:[#allocation29_spill] sm:$0xff] %v16782_v45  ;;  %v13655_v21 = vld [vmem:[#allocation2 + $0xf4] ss:$36 sps:$4 sm:$0xff]   ;;  %2520 = vst [vmem:[#allocation2 + $0x13c] sm:$0xf] %v2205_v20  ;;  %v4446_v32 = vsel %vm15161_vm10, %v4444_v24, %v4445_v42  ;;  %v4447_v60 = vrot.slane %v4445_v42, 4  ;;  %v16808_v24 = vadd.f32 %v8857_v54, %v16226_v61 }
 0x226   :  { %20982 = vst [vmem:[#allocation57_spill] sm:$0xff] %v16790_v62  ;;  %v2080_v3 = vld [vmem:[%s20879_s0 + $0x40] sm:$0xf]  ;;  %v20983_v40 = vld [vmem:[#allocation30_spill] sm:$0xff]  ;;  %9192 = vmatprep.mubr.bf16.mxu1 %v13655_v21  ;;  %v13658_v23 = vld [vmem:[#allocation2 + $0x644] ss:$36 sps:$4 sm:$0xff]   ;;  %v2215_v4 = vsel %vm16462_vm14, %v2206_v17, %v16770_v53  ;;  %v16812_v42 = vor.u32 %v4024_v50, %v4021_v11  ;;  %v8690_v62 = vpop.f32.mrf.mxu1  ;;  %v8860_v11 = vpop.f32.mrf.mxu0 }
 0x227   :  { %v16801_v45 = vadd.f32 %v16411_v8, %v20983_v40  ;;  %v13656_v16 = vld [vmem:[#allocation2 + $0x640] ss:$36 sps:$4 sm:$0xff]   ;;  %v4448_v27 = vrot.slane %v16768_v29, 6  ;;  %4568 = vst [vmem:[#allocation2 + $0x68c] sm:$0xf] %v4446_v32  ;;  %20985 = vst [vmem:[#allocation58_spill] sm:$0xff] %v16808_v24  ;;  %9193 = vmatmul.mubr.bf16.gmra.mxu1 %v13653_v28  ;;  %v4016_v8 = vsel %vm15171_vm11, %v4007_v33, %v4015_v30  ;;  %9023 = vmatprep.mubr.bf16.mxu0 %v13658_v23 }
 0x228   :  { %2521 = vst [vmem:[#allocation2 + $0x160] sm:$0xf] %v2215_v4  ;;  %v4017_v40 = vrot.slane %v4015_v30, 4  ;;  %v20986_v21 = vrot.slane %v16707_v41, 6  ;;  %4313 = vst [vmem:[#allocation2 + $0x688] sm:$0xf] %v4016_v8  ;;  %9024 = vmatmul.mubr.bf16.gmra.mxu0 %v13656_v16  ;;  %v8862_v16 = vpop.f32.mrf.mxu0 }
 0x229   :  { %20984 = vst [vmem:[#allocation30_spill] sm:$0xff] %v16801_v45  ;;  %v4449_v29 = vsel %vm15161_vm10, %v4447_v60, %v4448_v27  ;;  %v1919_v61 = vrot.slane %v1824_v47, 6  ;;  %v1922_v17 = vrot.slane %v16778_v5, 6  ;;  %v2216_v28 = vrot.slane %v16770_v53, 4  ;;  %v12054_v33 = vld [vmem:[%s20879_s0 + $0xe0] sm:$0xf]  ;;  %v16829_v5 = vpop.f32.mrf.mxu1 }
 0x22a   :  { %v1918_v20 = vrot.slane %v20986_v21, 4  ;;  %v4026_v41 = vsel %vm15171_vm11, %v4017_v40, %v16812_v42  ;;  %4569 = vst [vmem:[#allocation2 + $0x6b0] sm:$0xf] %v4449_v29  ;;  %v2218_v62 = vshrl.u32 %v2079_v58, 16  ;;  %v2221_v54 = vshll.u32 %v2079_v58, 16 }
 0x22b   :  { %v2228_v30 = vshrl.u32 %v2080_v3, 16  ;;  %v12055_v47 = vld [vmem:[%s20879_s0 + $0xe4] sm:$0xf]  ;;  %4314 = vst [vmem:[#allocation2 + $0x6ac] sm:$0xf] %v4026_v41  ;;  %v1921_v50 = vrot.slane %v1919_v61, 4  ;;  %v8693_v40 = vpop.f32.mrf.mxu1  ;;  %v16856_v45 = vadd.f32 %v8860_v11, %v16242_v15 }
 0x22c   :  { %v1920_v53 = vsel %vm15161_vm10, %v1918_v20, %v1919_v61  ;;  %v2231_v32 = vshll.u32 %v2080_v3, 16  ;;  %v4027_v60 = vrot.slane %v16812_v42, 4  ;;  %v2220_v23 = vrot.slane %v2218_v62, 6  ;;  %v12091_v8 = vld [vmem:[%s20879_s0 + $0xe0] sm:$0xf]  ;;  %v16844_v42 = vpop.f32.mrf.mxu0 }
 0x22d   :  { %2042 = vst [vmem:[#allocation2 + $0x180] sm:$0xf] %v1920_v53  ;;  %v2223_v4 = vrot.slane %v2221_v54, 7  ;;  %v2230_v58 = vrot.slane %v2228_v30, 6  ;;  %v4029_v55 = vshrl.u32 %v12054_v33, 16  ;;  %v1923_v21 = vsel %vm15161_vm10, %v1921_v50, %v1922_v17  ;;  %v20987_v50 = vld [vmem:[#allocation31_spill] sm:$0xff] }
 0x22e   :  { %v2233_v29 = vrot.slane %v2231_v32, 7  ;;  %v4032_v20 = vshll.u32 %v12054_v33, 16  ;;  %v4039_v61 = vshrl.u32 %v12055_v47, 16  ;;  %v16842_v3 = vld [vmem:[%s20879_s0 + $0xe4] sm:$0xf]  ;;  %v4042_v54 = vshll.u32 %v12055_v47, 16 }
 0x22f   :  { %2043 = vst [vmem:[#allocation2 + $0x1a4] sm:$0xf] %v1923_v21  ;;  %v2224_v41 = vor.u32 %v2223_v4, %v2220_v23  ;;  %v4031_v62 = vrot.slane %v4029_v55, 5  ;;  %v4450_v30 = vrot.slane %v4448_v27, 4  ;;  %v1826_v53 = vld [vmem:[%s20879_s0 + $0x44] sm:$0xf]  ;;  %v16851_v33 = vadd.f32 %v16439_v35, %v20987_v50  ;;  %v8867_v23 = vpop.f32.mrf.mxu0  ;;  %v16858_v4 = vpop.f32.mrf.mxu1 }
 0x230   :  { %v13659_v32 = vld [vmem:[#allocation2 + $0x138] ss:$36 sps:$4 sm:$0xff]   ;;  %v16853_v40 = vor.u32 %v2233_v29, %v2230_v58  ;;  %v4034_v24 = vrot.slane %v4032_v20, 6  ;;  %20989 = vst [vmem:[#allocation59_spill] sm:$0xff] %v16856_v45  ;;  %v4041_v55 = vrot.slane %v4039_v61, 5  ;;  %v4044_v21 = vrot.slane %v4042_v54, 6 }
 0x231   :  { %20988 = vst [vmem:[#allocation31_spill] sm:$0xff] %v16851_v33  ;;  %v13661_v16 = vld [vmem:[#allocation2 + $0x13c] ss:$36 sps:$4 sm:$0xff]   ;;  %v2225_v27 = vsel %vm16462_vm14, %v2216_v28, %v2224_v41  ;;  %v2226_v47 = vrot.slane %v2224_v41, 4  ;;  %v16865_v35 = vld [vmem:[%s20879_s0 + $0x48] sm:$0xf]  ;;  %v16871_v28 = vpop.f32.mrf.mxu0  ;;  %v8698_v61 = vpop.f32.mrf.mxu1 }
 0x232   :  { %9200 = vmatprep.mubr.bf16.mxu1 %v13661_v16  ;;  %2522 = vst [vmem:[#allocation2 + $0x184] sm:$0xf] %v2225_v27  ;;  %v4035_v58 = vor.u32 %v4034_v24, %v4031_v62  ;;  %v4451_v29 = vrot.slane %v12091_v8, 6  ;;  %v4454_v15 = vrot.slane %v16842_v3, 6  ;;  %v1924_v11 = vrot.slane %v1922_v17, 4  ;;  %v20990_v41 = vld [vmem:[#allocation32_spill] sm:$0xff] }
 0x233   :  { %v2081_v20 = vld [vmem:[%s20879_s0 + $0x44] sm:$0xf]  ;;  %v16875_v54 = vadd.f32 %v16471_v48, %v20990_v41  ;;  %9201 = vmatmul.mubr.bf16.gmra.mxu1 %v13659_v32  ;;  %v13663_v50 = vld [vmem:[#allocation2 + $0x688] ss:$36 sps:$4 sm:$0xff]   ;;  %v2235_v24 = vsel %vm16462_vm14, %v2226_v47, %v16853_v40  ;;  %v16880_v8 = vor.u32 %v4044_v21, %v4041_v55  ;;  %v1925_v17 = vrot.slane %v1826_v53, 6  ;;  %v8870_v27 = vpop.f32.mrf.mxu0  ;;  %v16889_v61 = vpop.f32.mrf.mxu1  ;;  %v20992_v45 = vld [vmem:[#allocation33_spill] sm:$0xff] }
 0x234   :  { %v13665_v16 = vld [vmem:[#allocation2 + $0x68c] ss:$36 sps:$4 sm:$0xff]   ;;  %2523 = vst [vmem:[#allocation2 + $0x1a8] sm:$0xf] %v2235_v24  ;;  %v4036_v3 = vsel %vm15171_vm11, %v4027_v60, %v4035_v58  ;;  %v4037_v62 = vrot.slane %v4035_v58, 4  ;;  %v4452_v23 = vsel %vm15161_vm10, %v4450_v30, %v4451_v29  ;;  %v4453_v48 = vrot.slane %v4451_v29, 4 }
 0x235   :  { %20991 = vst [vmem:[#allocation32_spill] sm:$0xff] %v16875_v54  ;;  %v2082_v32 = vld [vmem:[%s20879_s0 + $0x48] sm:$0xf]  ;;  %9031 = vmatprep.mubr.bf16.mxu0 %v13665_v16  ;;  %4315 = vst [vmem:[#allocation2 + $0x6d0] sm:$0xf] %v4036_v3  ;;  %v1926_v53 = vsel %vm15161_vm10, %v1924_v11, %v1925_v17  ;;  %v1927_v47 = vrot.slane %v1925_v17, 4  ;;  %v16917_v27 = vpop.f32.mrf.mxu0  ;;  %v16926_v54 = vadd.f32 %v16509_v1, %v20992_v45 }
 0x236   :  { %4570 = vst [vmem:[#allocation2 + $0x6d4] sm:$0xf] %v4452_v23  ;;  %v1928_v60 = vrot.slane %v16865_v35, 6  ;;  %v2236_v55 = vrot.slane %v16853_v40, 4  ;;  %v12056_v30 = vld [vmem:[%s20879_s0 + $0xe8] sm:$0xf]  ;;  %9032 = vmatmul.mubr.bf16.gmra.mxu0 %v13663_v50  ;;  %v4046_v21 = vsel %vm15171_vm11, %v4037_v62, %v16880_v8  ;;  %v4455_v58 = vsel %vm15161_vm10, %v4453_v48, %v4454_v15  ;;  %v8701_v40 = vpop.f32.mrf.mxu1 }
 0x237   :  { %2044 = vst [vmem:[#allocation2 + $0x1c8] sm:$0xf] %v1926_v53  ;;  %v2238_v29 = vshrl.u32 %v2081_v20, 16  ;;  %v2241_v11 = vshll.u32 %v2081_v20, 16  ;;  %v12057_v35 = vld [vmem:[%s20879_s0 + $0xec] sm:$0xf] }
 0x238   :  { %4316 = vst [vmem:[#allocation2 + $0x6f4] sm:$0xf] %v4046_v21  ;;  %4571 = vst [vmem:[#allocation2 + $0x6f8] sm:$0xf] %v4455_v58  ;;  %v1929_v41 = vsel %vm15161_vm10, %v1927_v47, %v1928_v60  ;;  %v2248_v50 = vshrl.u32 %v2082_v32, 16  ;;  %v2251_v16 = vshll.u32 %v2082_v32, 16  ;;  %v16919_v21 = vpop.f32.mrf.mxu1 }
 0x239   :  { %v4047_v24 = vrot.slane %v16880_v8, 4  ;;  %2045 = vst [vmem:[#allocation2 + $0x1ec] sm:$0xf] %v1929_v41  ;;  %v2240_v17 = vrot.slane %v2238_v29, 6  ;;  %v2243_v3 = vrot.slane %v2241_v11, 7  ;;  %v4049_v62 = vshrl.u32 %v12056_v30, 16  ;;  %v8875_v41 = vpop.f32.mrf.mxu0 }
 0x23a   :  { %v4052_v23 = vshll.u32 %v12056_v30, 16  ;;  %v12093_v20 = vld [vmem:[%s20879_s0 + $0xe8] sm:$0xf]  ;;  %v16915_v48 = vld [vmem:[%s20879_s0 + $0xec] sm:$0xf]  ;;  %v2250_v53 = vrot.slane %v2248_v50, 6 }
 0x23b   :  { %v2253_v32 = vrot.slane %v2251_v16, 7  ;;  %v4059_v47 = vshrl.u32 %v12057_v35, 16  ;;  %v4062_v8 = vshll.u32 %v12057_v35, 16  ;;  %v2244_v58 = vor.u32 %v2243_v3, %v2240_v17  ;;  %v1828_v40 = vld [vmem:[%s20879_s0 + $0x4c] sm:$0xf]  ;;  %20993 = vst [vmem:[#allocation33_spill] sm:$0xff] %v16926_v54  ;;  %v8706_v3 = vpop.f32.mrf.mxu1 }
 0x23c   :  { %v4051_v29 = vrot.slane %v4049_v62, 5  ;;  %v4054_v30 = vrot.slane %v4052_v23, 6  ;;  %v4456_v11 = vrot.slane %v4454_v15, 4  ;;  %v13666_v33 = vld [vmem:[#allocation2 + $0x180] ss:$36 sps:$4 sm:$0xff]   ;;  %v16937_v15 = vadd.f32 %v16844_v42, %v16246_v57 }
 0x23d   :  { %v13668_v50 = vld [vmem:[#allocation2 + $0x184] ss:$36 sps:$4 sm:$0xff]   ;;  %v16928_v16 = vor.u32 %v2253_v32, %v2250_v53  ;;  %v4061_v35 = vrot.slane %v4059_v47, 5  ;;  %v16933_v17 = vld [vmem:[%s20879_s0 + $0x50] sm:$0xf]  ;;  %v2245_v62 = vsel %vm16462_vm14, %v2236_v55, %v2244_v58  ;;  %v2246_v1 = vrot.slane %v2244_v58, 4  ;;  %v16944_v32 = vpop.f32.mrf.mxu0  ;;  %v16950_v58 = vpop.f32.mrf.mxu1 }
 0x23e   :  { %20994 = vst [vmem:[#allocation60_spill] sm:$0xff] %v16937_v15  ;;  %v4055_v45 = vor.u32 %v4054_v30, %v4051_v29  ;;  %v4064_v23 = vrot.slane %v4062_v8, 6  ;;  %v2083_v53 = vld [vmem:[%s20879_s0 + $0x4c] sm:$0xf]  ;;  %9208 = vmatprep.mubr.bf16.mxu1 %v13668_v50  ;;  %2524 = vst [vmem:[#allocation2 + $0x1cc] sm:$0xf] %v2245_v62 }
 0x23f   :  { %v4457_v47 = vrot.slane %v12093_v20, 6  ;;  %v4460_v41 = vrot.slane %v16915_v48, 6  ;;  %v1930_v57 = vrot.slane %v1928_v60, 4  ;;  %v1931_v42 = vrot.slane %v1828_v40, 6  ;;  %v2084_v55 = vld [vmem:[%s20879_s0 + $0x50] sm:$0xf]  ;;  %9209 = vmatmul.mubr.bf16.gmra.mxu1 %v13666_v33  ;;  %v8878_v60 = vpop.f32.mrf.mxu0  ;;  %v8709_v15 = vpop.f32.mrf.mxu1 }
 0x240   :  { %v13669_v8 = vld [vmem:[#allocation2 + $0x6d0] ss:$36 sps:$4 sm:$0xff]   ;;  %v2255_v30 = vsel %vm16462_vm14, %v2246_v1, %v16928_v16  ;;  %v4056_v20 = vsel %vm15171_vm11, %v4047_v24, %v4055_v45  ;;  %v4057_v50 = vrot.slane %v4055_v45, 4  ;;  %v16957_v48 = vor.u32 %v4064_v23, %v4061_v35 }
 0x241   :  { %v13671_v29 = vld [vmem:[#allocation2 + $0x6d4] ss:$36 sps:$4 sm:$0xff]   ;;  %2525 = vst [vmem:[#allocation2 + $0x1f0] sm:$0xf] %v2255_v30  ;;  %4317 = vst [vmem:[#allocation2 + $0x718] sm:$0xf] %v4056_v20  ;;  %v4458_v40 = vsel %vm15161_vm10, %v4456_v11, %v4457_v47  ;;  %v1932_v33 = vsel %vm15161_vm10, %v1930_v57, %v1931_v42  ;;  %v16971_v23 = vpop.f32.mrf.mxu0 }
 0x242   :  { %v4459_v3 = vrot.slane %v4457_v47, 4  ;;  %v1933_v62 = vrot.slane %v1931_v42, 4  ;;  %v12058_v1 = vld [vmem:[%s20879_s0 + $0xf0] sm:$0xf]  ;;  %9039 = vmatprep.mubr.bf16.mxu0 %v13671_v29  ;;  %v4066_v24 = vsel %vm15171_vm11, %v4057_v50, %v16957_v48  ;;  %4572 = vst [vmem:[#allocation2 + $0x71c] sm:$0xf] %v4458_v40 }
 0x243   :  { %v1934_v35 = vrot.slane %v16933_v17, 6  ;;  %2046 = vst [vmem:[#allocation2 + $0x210] sm:$0xf] %v1932_v33  ;;  %v2256_v11 = vrot.slane %v16928_v16, 4  ;;  %v2258_v45 = vshrl.u32 %v2083_v53, 16  ;;  %9040 = vmatmul.mubr.bf16.gmra.mxu0 %v13669_v8  ;;  %v2261_v15 = vshll.u32 %v2083_v53, 16  ;;  %v8883_v50 = vpop.f32.mrf.mxu0  ;;  %v16984_v53 = vpop.f32.mrf.mxu1 }
 0x244   :  { %4318 = vst [vmem:[#allocation2 + $0x73c] sm:$0xf] %v4066_v24  ;;  %v4461_v47 = vsel %vm15161_vm10, %v4459_v3, %v4460_v41  ;;  %v2268_v57 = vshrl.u32 %v2084_v55, 16  ;;  %v2271_v42 = vshll.u32 %v2084_v55, 16  ;;  %v12059_v29 = vld [vmem:[%s20879_s0 + $0xf4] sm:$0xf] }
 0x245   :  { %4573 = vst [vmem:[#allocation2 + $0x740] sm:$0xf] %v4461_v47  ;;  %v1935_v17 = vsel %vm15161_vm10, %v1933_v62, %v1934_v35  ;;  %v2260_v16 = vrot.slane %v2258_v45, 6  ;;  %v4067_v30 = vrot.slane %v16957_v48, 4  ;;  %v4069_v20 = vshrl.u32 %v12058_v1, 16  ;;  %v16991_v47 = vpop.f32.mrf.mxu0  ;;  %v8714_v54 = vpop.f32.mrf.mxu1 }
 0x246   :  { %v12095_v8 = vld [vmem:[%s20879_s0 + $0xf0] sm:$0xf]  ;;  %2047 = vst [vmem:[#allocation2 + $0x234] sm:$0xf] %v1935_v17  ;;  %v2263_v55 = vrot.slane %v2261_v15, 7  ;;  %v2270_v60 = vrot.slane %v2268_v57, 6 }
 0x247   :  { %v2273_v40 = vrot.slane %v2271_v42, 7  ;;  %v4072_v3 = vshll.u32 %v12058_v1, 16  ;;  %v16989_v33 = vld [vmem:[%s20879_s0 + $0xf4] sm:$0xf]  ;;  %v4071_v62 = vrot.slane %v4069_v20, 5  ;;  %v4079_v48 = vshrl.u32 %v12059_v29, 16 }
 0x248   :  { %v4082_v24 = vshll.u32 %v12059_v29, 16  ;;  %v4462_v45 = vrot.slane %v4460_v41, 4  ;;  %v2264_v50 = vor.u32 %v2263_v55, %v2260_v16  ;;  %v4463_v15 = vrot.slane %v12095_v8, 6  ;;  %v1830_v1 = vld [vmem:[%s20879_s0 + $0x54] sm:$0xf]  ;;  %v20995_v42 = vld [vmem:[#allocation34_spill] sm:$0xff] }
 0x249   :  { %v16993_v7 = vor.u32 %v2273_v40, %v2270_v60  ;;  %v4074_v17 = vrot.slane %v4072_v3, 6  ;;  %v17001_v57 = vld [vmem:[%s20879_s0 + $0x58] sm:$0xf]  ;;  %v17005_v41 = vadd.f32 %v16535_v18, %v20995_v42  ;;  %v13672_v29 = vld [vmem:[#allocation2 + $0x1c8] ss:$36 sps:$4 sm:$0xff]   ;;  %v4081_v16 = vrot.slane %v4079_v48, 5  ;;  %v8886_v18 = vpop.f32.mrf.mxu0  ;;  %v17021_v40 = vpop.f32.mrf.mxu1 }
 0x24a   :  { %v13674_v54 = vld [vmem:[#allocation2 + $0x1cc] ss:$36 sps:$4 sm:$0xff]   ;;  %v2085_v20 = vld [vmem:[%s20879_s0 + $0x54] sm:$0xf]  ;;  %v2086_v8 = vld [vmem:[%s20879_s0 + $0x58] sm:$0xf]  ;;  %v17015_v55 = vadd.f32 %v16871_v28, %v16259_v22  ;;  %v17019_v60 = vadd.f32 %v16917_v27, %v16263_v9  ;;  %v2265_v3 = vsel %vm16462_vm14, %v2256_v11, %v2264_v50  ;;  %v4464_v31 = vsel %vm15161_vm10, %v4462_v45, %v4463_v15 }
 0x24b   :  { %20996 = vst [vmem:[#allocation34_spill] sm:$0xff] %v17005_v41  ;;  %v2266_v48 = vrot.slane %v2264_v50, 4  ;;  %v4075_v42 = vor.u32 %v4074_v17, %v4071_v62  ;;  %v4084_v41 = vrot.slane %v4082_v24, 6  ;;  %9216 = vmatprep.mubr.bf16.mxu1 %v13674_v54  ;;  %2526 = vst [vmem:[#allocation2 + $0x214] sm:$0xf] %v2265_v3  ;;  %v4465_v22 = vrot.slane %v4463_v15, 4  ;;  %v8717_v9 = vpop.f32.mrf.mxu1 }
 0x24c   :  { %20997 = vst [vmem:[#allocation61_spill] sm:$0xff] %v17015_v55  ;;  %20998 = vst [vmem:[#allocation62_spill] sm:$0xff] %v17019_v60  ;;  %v4466_v28 = vrot.slane %v16989_v33, 6  ;;  %v1936_v55 = vrot.slane %v1934_v35, 4  ;;  %9217 = vmatmul.mubr.bf16.gmra.mxu1 %v13672_v29  ;;  %v13675_v27 = vld [vmem:[#allocation2 + $0x718] ss:$36 sps:$4 sm:$0xff]   ;;  %v17042_v29 = vpop.f32.mrf.mxu0 }
 0x24d   :  { %v13677_v18 = vld [vmem:[#allocation2 + $0x71c] ss:$36 sps:$4 sm:$0xff]   ;;  %v2275_v11 = vsel %vm16462_vm14, %v2266_v48, %v16993_v7  ;;  %v4076_v62 = vsel %vm15171_vm11, %v4067_v30, %v4075_v42  ;;  %v4077_v24 = vrot.slane %v4075_v42, 4  ;;  %v17033_v50 = vor.u32 %v4084_v41, %v4081_v16  ;;  %4574 = vst [vmem:[#allocation2 + $0x764] sm:$0xf] %v4464_v31 }
 0x24e   :  { %2527 = vst [vmem:[#allocation2 + $0x238] sm:$0xf] %v2275_v11  ;;  %4319 = vst [vmem:[#allocation2 + $0x760] sm:$0xf] %v4076_v62  ;;  %v4467_v35 = vsel %vm15161_vm10, %v4465_v22, %v4466_v28  ;;  %v1937_v33 = vrot.slane %v1830_v1, 6  ;;  %v20887_v45 = vrot.slane %v17001_v57, 6  ;;  %9047 = vmatprep.mubr.bf16.mxu0 %v13677_v18  ;;  %v8891_v22 = vpop.f32.mrf.mxu0 }
 0x24f   :  { %v2276_v17 = vrot.slane %v16993_v7, 4  ;;  %v12060_v15 = vld [vmem:[%s20879_s0 + $0xf8] sm:$0xf]  ;;  %v4086_v31 = vsel %vm15171_vm11, %v4077_v24, %v17033_v50  ;;  %4575 = vst [vmem:[#allocation2 + $0x788] sm:$0xf] %v4467_v35  ;;  %v2278_v30 = vshrl.u32 %v2085_v20, 16  ;;  %v17050_v7 = vpop.f32.mrf.mxu1  ;;  %9048 = vmatmul.mubr.bf16.gmra.mxu0 %v13675_v27 }
 0x250   :  { %v2281_v41 = vshll.u32 %v2085_v20, 16  ;;  %v2288_v54 = vshrl.u32 %v2086_v8, 16  ;;  %v12061_v1 = vld [vmem:[%s20879_s0 + $0xfc] sm:$0xf]  ;;  %4320 = vst [vmem:[#allocation2 + $0x784] sm:$0xf] %v4086_v31  ;;  %v1938_v16 = vsel %vm15161_vm10, %v1936_v55, %v1937_v33 }
 0x251   :  { %v1939_v3 = vrot.slane %v1937_v33, 4  ;;  %v2291_v48 = vshll.u32 %v2086_v8, 16  ;;  %v4087_v42 = vrot.slane %v17033_v50, 4  ;;  %2048 = vst [vmem:[#allocation2 + $0x258] sm:$0xf] %v1938_v16  ;;  %v2280_v9 = vrot.slane %v2278_v30, 6  ;;  %v8722_v24 = vpop.f32.mrf.mxu1  ;;  %v17062_v50 = vpop.f32.mrf.mxu0 }
 0x252   :  { %v2283_v20 = vrot.slane %v2281_v41, 7  ;;  %v2290_v18 = vrot.slane %v2288_v54, 6  ;;  %v4089_v11 = vshrl.u32 %v12060_v15, 16  ;;  %v12097_v62 = vld [vmem:[%s20879_s0 + $0xf8] sm:$0xf]  ;;  %v4092_v8 = vshll.u32 %v12060_v15, 16 }
 0x253   :  { %v1941_v55 = vsel %vm15161_vm10, %v1939_v3, %v20887_v45  ;;  %v2293_v27 = vrot.slane %v2291_v48, 7  ;;  %v4099_v35 = vshrl.u32 %v12061_v1, 16  ;;  %v4102_v30 = vshll.u32 %v12061_v1, 16  ;;  %v17067_v41 = vld [vmem:[%s20879_s0 + $0xfc] sm:$0xf]  ;;  %v17069_v16 = vpop.f32.mrf.mxu1 }
 0x254   :  { %2049 = vst [vmem:[#allocation2 + $0x27c] sm:$0xf] %v1941_v55  ;;  %v2284_v33 = vor.u32 %v2283_v20, %v2280_v9  ;;  %v4091_v31 = vrot.slane %v4089_v11, 5  ;;  %v4468_v54 = vrot.slane %v4466_v28, 4  ;;  %v4094_v3 = vrot.slane %v4092_v8, 6  ;;  %v8894_v9 = vpop.f32.mrf.mxu0  ;;  %v20999_v20 = vld [vmem:[#allocation35_spill] sm:$0xff] }
 0x255   :  { %v17071_v22 = vor.u32 %v2293_v27, %v2290_v18  ;;  %v4101_v48 = vrot.slane %v4099_v35, 5  ;;  %v4469_v15 = vrot.slane %v12097_v62, 6  ;;  %v1832_v24 = vld [vmem:[%s20879_s0 + $0x5c] sm:$0xf]  ;;  %v17079_v1 = vld [vmem:[%s20879_s0 + $0x60] sm:$0xf]  ;;  %v17083_v28 = vadd.f32 %v16563_v59, %v20999_v20  ;;  %v8725_v35 = vpop.f32.mrf.mxu1 }
 0x256   :  { %v13678_v11 = vld [vmem:[#allocation2 + $0x210] ss:$36 sps:$4 sm:$0xff]   ;;  %v2285_v55 = vsel %vm16462_vm14, %v2276_v17, %v2284_v33  ;;  %v2286_v62 = vrot.slane %v2284_v33, 4  ;;  %v2087_v27 = vld [vmem:[%s20879_s0 + $0x5c] sm:$0xf]  ;;  %v17092_v8 = vadd.f32 %v16944_v32, %v16267_v44  ;;  %v4095_v9 = vor.u32 %v4094_v3, %v4091_v31  ;;  %v21002_v33 = vld [vmem:[#allocation36_spill] sm:$0xff] }
 0x257   :  { %21000 = vst [vmem:[#allocation35_spill] sm:$0xff] %v17083_v28  ;;  %v13680_v18 = vld [vmem:[#allocation2 + $0x214] ss:$36 sps:$4 sm:$0xff]   ;;  %2528 = vst [vmem:[#allocation2 + $0x25c] sm:$0xf] %v2285_v55  ;;  %v4104_v45 = vrot.slane %v4102_v30, 6  ;;  %v4470_v59 = vsel %vm15161_vm10, %v4468_v54, %v4469_v15  ;;  %v17101_v60 = vadd.f32 %v16594_v52, %v21002_v33  ;;  %v17109_v30 = vadd.f32 %v16971_v23, %v16308_v36  ;;  %v17111_v54 = vpop.f32.mrf.mxu0 }
 0x258   :  { %21001 = vst [vmem:[#allocation63_spill] sm:$0xff] %v17092_v8  ;;  %v4471_v20 = vrot.slane %v4469_v15, 4  ;;  %v2088_v17 = vld [vmem:[%s20879_s0 + $0x60] sm:$0xf]  ;;  %9224 = vmatprep.mubr.bf16.mxu1 %v13680_v18  ;;  %v13683_v44 = vld [vmem:[#allocation2 + $0x764] ss:$36 sps:$4 sm:$0xff]   ;;  %v2295_v32 = vsel %vm16462_vm14, %v2286_v62, %v17071_v22  ;;  %v4096_v52 = vsel %vm15171_vm11, %v4087_v42, %v4095_v9 }
 0x259   :  { %21003 = vst [vmem:[#allocation36_spill] sm:$0xff] %v17101_v60  ;;  %v13681_v28 = vld [vmem:[#allocation2 + $0x760] ss:$36 sps:$4 sm:$0xff]   ;;  %v4472_v31 = vrot.slane %v17067_v41, 6  ;;  %4576 = vst [vmem:[#allocation2 + $0x7ac] sm:$0xf] %v4470_v59  ;;  %9225 = vmatmul.mubr.bf16.gmra.mxu1 %v13678_v11  ;;  %v17115_v15 = vor.u32 %v4104_v45, %v4101_v48  ;;  %9055 = vmatprep.mubr.bf16.mxu0 %v13683_v44  ;;  %v8899_v62 = vpop.f32.mrf.mxu0  ;;  %v17126_v45 = vpop.f32.mrf.mxu1 }
 0x25a   :  { %21004 = vst [vmem:[#allocation64_spill] sm:$0xff] %v17109_v30  ;;  %2529 = vst [vmem:[#allocation2 + $0x280] sm:$0xf] %v2295_v32  ;;  %v4097_v3 = vrot.slane %v4095_v9, 4  ;;  %v21005_v18 = vrot.slane %v17001_v57, 6  ;;  %v1943_v36 = vrot.slane %v1832_v24, 6  ;;  %9056 = vmatmul.mubr.bf16.gmra.mxu0 %v13681_v28 }
 0x25b   :  { %4321 = vst [vmem:[#allocation2 + $0x7a8] sm:$0xf] %v4096_v52  ;;  %v4473_v41 = vsel %vm15161_vm10, %v4471_v20, %v4472_v31  ;;  %v1946_v23 = vrot.slane %v17079_v1, 6  ;;  %v2296_v11 = vrot.slane %v17071_v22, 4  ;;  %v12062_v42 = vld [vmem:[%s20879_s0 + $0x100] sm:$0xf]  ;;  %v17137_v20 = vpop.f32.mrf.mxu0  ;;  %v8730_v33 = vpop.f32.mrf.mxu1 }
 0x25c   :  { %v1942_v55 = vrot.slane %v21005_v18, 4  ;;  %v4106_v57 = vsel %vm15171_vm11, %v4097_v3, %v17115_v15  ;;  %4577 = vst [vmem:[#allocation2 + $0x7d0] sm:$0xf] %v4473_v41  ;;  %v2298_v48 = vshrl.u32 %v2087_v27, 16  ;;  %v2301_v35 = vshll.u32 %v2087_v27, 16 }
 0x25d   :  { %v2308_v24 = vshrl.u32 %v2088_v17, 16  ;;  %v12063_v22 = vld [vmem:[%s20879_s0 + $0x104] sm:$0xf]  ;;  %4322 = vst [vmem:[#allocation2 + $0x7cc] sm:$0xf] %v4106_v57  ;;  %v1945_v9 = vrot.slane %v1943_v36, 4  ;;  %v17149_v62 = vpop.f32.mrf.mxu1 }
 0x25e   :  { %v1944_v1 = vsel %vm15161_vm10, %v1942_v55, %v1943_v36  ;;  %v2311_v59 = vshll.u32 %v2088_v17, 16  ;;  %v4107_v28 = vrot.slane %v17115_v15, 4  ;;  %v2300_v44 = vrot.slane %v2298_v48, 6  ;;  %v12099_v3 = vld [vmem:[%s20879_s0 + $0x100] sm:$0xf]  ;;  %v8902_v36 = vpop.f32.mrf.mxu0 }
 0x25f   :  { %2050 = vst [vmem:[#allocation2 + $0x2a0] sm:$0xf] %v1944_v1  ;;  %v2303_v32 = vrot.slane %v2301_v35, 7  ;;  %v2310_v27 = vrot.slane %v2308_v24, 6  ;;  %v4109_v52 = vshrl.u32 %v12062_v42, 16  ;;  %v1947_v18 = vsel %vm15161_vm10, %v1945_v9, %v1946_v23  ;;  %v21006_v9 = vld [vmem:[#allocation37_spill] sm:$0xff] }
 0x260   :  { %v2313_v55 = vrot.slane %v2311_v59, 7  ;;  %v4112_v41 = vshll.u32 %v12062_v42, 16  ;;  %v4119_v17 = vshrl.u32 %v12063_v22, 16  ;;  %v17147_v15 = vld [vmem:[%s20879_s0 + $0x104] sm:$0xf]  ;;  %v4122_v35 = vshll.u32 %v12063_v22, 16 }
 0x261   :  { %2051 = vst [vmem:[#allocation2 + $0x2c4] sm:$0xf] %v1947_v18  ;;  %v2304_v57 = vor.u32 %v2303_v32, %v2300_v44  ;;  %v4111_v48 = vrot.slane %v4109_v52, 5  ;;  %v4474_v24 = vrot.slane %v4472_v31, 4  ;;  %v1834_v1 = vld [vmem:[%s20879_s0 + $0x64] sm:$0xf]  ;;  %v17156_v42 = vadd.f32 %v16622_v14, %v21006_v9  ;;  %v8733_v44 = vpop.f32.mrf.mxu1  ;;  %v17171_v9 = vpop.f32.mrf.mxu0 }
 0x262   :  { %v13684_v59 = vld [vmem:[#allocation2 + $0x258] ss:$36 sps:$4 sm:$0xff]   ;;  %v17158_v30 = vor.u32 %v2313_v55, %v2310_v27  ;;  %v4114_v36 = vrot.slane %v4112_v41, 6  ;;  %v17162_v18 = vadd.f32 %v16991_v47, %v16312_v37  ;;  %v4121_v32 = vrot.slane %v4119_v17, 5  ;;  %v17169_v14 = vld [vmem:[%s20879_s0 + $0x68] sm:$0xf] }
 0x263   :  { %21007 = vst [vmem:[#allocation37_spill] sm:$0xff] %v17156_v42  ;;  %v13686_v33 = vld [vmem:[#allocation2 + $0x25c] ss:$36 sps:$4 sm:$0xff]   ;;  %v2305_v31 = vsel %vm16462_vm14, %v2296_v11, %v2304_v57  ;;  %v2306_v22 = vrot.slane %v2304_v57, 4  ;;  %v4124_v52 = vrot.slane %v4122_v35, 6  ;;  %v4475_v55 = vrot.slane %v12099_v3, 6 }
 0x264   :  { %21008 = vst [vmem:[#allocation65_spill] sm:$0xff] %v17162_v18  ;;  %9232 = vmatprep.mubr.bf16.mxu1 %v13686_v33  ;;  %2530 = vst [vmem:[#allocation2 + $0x2a4] sm:$0xf] %v2305_v31  ;;  %v4115_v27 = vor.u32 %v4114_v36, %v4111_v48  ;;  %v4478_v37 = vrot.slane %v17147_v15, 6  ;;  %v1948_v47 = vrot.slane %v1946_v23, 4  ;;  %v21009_v41 = vld [vmem:[#allocation38_spill] sm:$0xff]  ;;  %v8907_v15 = vpop.f32.mrf.mxu0  ;;  %v17193_v31 = vpop.f32.mrf.mxu1 }
 0x265   :  { %v2089_v11 = vld [vmem:[%s20879_s0 + $0x64] sm:$0xf]  ;;  %v17179_v17 = vadd.f32 %v16649_v25, %v21009_v41  ;;  %9233 = vmatmul.mubr.bf16.gmra.mxu1 %v13684_v59  ;;  %v13687_v57 = vld [vmem:[#allocation2 + $0x7a8] ss:$36 sps:$4 sm:$0xff]   ;;  %v2315_v33 = vsel %vm16462_vm14, %v2306_v22, %v17158_v30  ;;  %v17184_v48 = vor.u32 %v4124_v52, %v4121_v32  ;;  %v1949_v3 = vrot.slane %v1834_v1, 6 }
 0x266   :  { %v13689_v35 = vld [vmem:[#allocation2 + $0x7ac] ss:$36 sps:$4 sm:$0xff]   ;;  %2531 = vst [vmem:[#allocation2 + $0x2c8] sm:$0xf] %v2315_v33  ;;  %v4116_v23 = vsel %vm15171_vm11, %v4107_v28, %v4115_v27  ;;  %v4117_v36 = vrot.slane %v4115_v27, 4  ;;  %v4476_v25 = vsel %vm15161_vm10, %v4474_v24, %v4475_v55  ;;  %v4477_v44 = vrot.slane %v4475_v55, 4  ;;  %v17202_v52 = vpop.f32.mrf.mxu0 }
 0x267   :  { %21010 = vst [vmem:[#allocation38_spill] sm:$0xff] %v17179_v17  ;;  %v2090_v59 = vld [vmem:[%s20879_s0 + $0x68] sm:$0xf]  ;;  %9063 = vmatprep.mubr.bf16.mxu0 %v13689_v35  ;;  %4323 = vst [vmem:[#allocation2 + $0x7f0] sm:$0xf] %v4116_v23  ;;  %v1950_v1 = vsel %vm15161_vm10, %v1948_v47, %v1949_v3  ;;  %v1951_v22 = vrot.slane %v1949_v3, 4 }
 0x268   :  { %4578 = vst [vmem:[#allocation2 + $0x7f4] sm:$0xf] %v4476_v25  ;;  %v1952_v28 = vrot.slane %v17169_v14, 6  ;;  %v2316_v32 = vrot.slane %v17158_v30, 4  ;;  %v12064_v24 = vld [vmem:[%s20879_s0 + $0x108] sm:$0xf]  ;;  %9064 = vmatmul.mubr.bf16.gmra.mxu0 %v13687_v57  ;;  %v4126_v27 = vsel %vm15171_vm11, %v4117_v36, %v17184_v48  ;;  %v4479_v55 = vsel %vm15161_vm10, %v4477_v44, %v4478_v37  ;;  %v8738_v14 = vpop.f32.mrf.mxu1  ;;  %v8910_v15 = vpop.f32.mrf.mxu0 }
 0x269   :  { %2052 = vst [vmem:[#allocation2 + $0x2e8] sm:$0xf] %v1950_v1  ;;  %v2318_v47 = vshrl.u32 %v2089_v11, 16  ;;  %v2321_v41 = vshll.u32 %v2089_v11, 16  ;;  %v12065_v30 = vld [vmem:[%s20879_s0 + $0x10c] sm:$0xf] }
 0x26a   :  { %4324 = vst [vmem:[#allocation2 + $0x814] sm:$0xf] %v4126_v27  ;;  %4579 = vst [vmem:[#allocation2 + $0x818] sm:$0xf] %v4479_v55  ;;  %v1953_v57 = vsel %vm15161_vm10, %v1951_v22, %v1952_v28  ;;  %v2328_v35 = vshrl.u32 %v2090_v59, 16  ;;  %v2331_v33 = vshll.u32 %v2090_v59, 16  ;;  %v17223_v22 = vpop.f32.mrf.mxu1 }
 0x26b   :  { %v4127_v3 = vrot.slane %v17184_v48, 4  ;;  %2053 = vst [vmem:[#allocation2 + $0x30c] sm:$0xf] %v1953_v57  ;;  %v2320_v23 = vrot.slane %v2318_v47, 6  ;;  %v2323_v36 = vrot.slane %v2321_v41, 7  ;;  %v4129_v25 = vshrl.u32 %v12064_v24, 16 }
 0x26c   :  { %v4132_v11 = vshll.u32 %v12064_v24, 16  ;;  %v12101_v44 = vld [vmem:[%s20879_s0 + $0x108] sm:$0xf]  ;;  %v17221_v1 = vld [vmem:[%s20879_s0 + $0x10c] sm:$0xf]  ;;  %v2330_v59 = vrot.slane %v2328_v35, 6  ;;  %v8741_v15 = vpop.f32.mrf.mxu1 }
 0x26d   :  { %v2333_v27 = vrot.slane %v2331_v33, 7  ;;  %v4139_v48 = vshrl.u32 %v12065_v30, 16  ;;  %v4142_v55 = vshll.u32 %v12065_v30, 16  ;;  %v2324_v14 = vor.u32 %v2323_v36, %v2320_v23  ;;  %v1836_v24 = vld [vmem:[%s20879_s0 + $0x6c] sm:$0xf]  ;;  %v17243_v33 = vpop.f32.mrf.mxu0 }
 0x26e   :  { %v4131_v47 = vrot.slane %v4129_v25, 5  ;;  %v4134_v41 = vrot.slane %v4132_v11, 6  ;;  %v4480_v57 = vrot.slane %v4478_v37, 4  ;;  %v21011_v18 = vld [vmem:[#allocation40_spill] sm:$0xff]  ;;  %v13690_v17 = vld [vmem:[#allocation2 + $0x2a0] ss:$36 sps:$4 sm:$0xff]   ;;  %v17241_v37 = vadd.f32 %v17042_v29, %v16319_v63 }
 0x26f   :  { %v17230_v8 = vadd.f32 %v16679_v0, %v21011_v18  ;;  %v13692_v42 = vld [vmem:[#allocation2 + $0x2a4] ss:$36 sps:$4 sm:$0xff]   ;;  %v17232_v60 = vor.u32 %v2333_v27, %v2330_v59  ;;  %v4141_v35 = vrot.slane %v4139_v48, 5  ;;  %v17237_v30 = vld [vmem:[%s20879_s0 + $0x70] sm:$0xf]  ;;  %v2325_v0 = vsel %vm16462_vm14, %v2316_v32, %v2324_v14  ;;  %v8915_v48 = vpop.f32.mrf.mxu0  ;;  %v17254_v32 = vpop.f32.mrf.mxu1 }
 0x270   :  { %21013 = vst [vmem:[#allocation66_spill] sm:$0xff] %v17241_v37  ;;  %v2326_v18 = vrot.slane %v2324_v14, 4  ;;  %v4135_v23 = vor.u32 %v4134_v41, %v4131_v47  ;;  %v4144_v36 = vrot.slane %v4142_v55, 6  ;;  %v2091_v25 = vld [vmem:[%s20879_s0 + $0x6c] sm:$0xf]  ;;  %9240 = vmatprep.mubr.bf16.mxu1 %v13692_v42  ;;  %v4481_v11 = vrot.slane %v12101_v44, 6 }
 0x271   :  { %21012 = vst [vmem:[#allocation40_spill] sm:$0xff] %v17230_v8  ;;  %2532 = vst [vmem:[#allocation2 + $0x2ec] sm:$0xf] %v2325_v0  ;;  %v4484_v59 = vrot.slane %v17221_v1, 6  ;;  %v1954_v27 = vrot.slane %v1952_v28, 4  ;;  %v1955_v63 = vrot.slane %v1836_v24, 6  ;;  %9241 = vmatmul.mubr.bf16.gmra.mxu1 %v13690_v17  ;;  %v17270_v0 = vpop.f32.mrf.mxu0 }
 0x272   :  { %v2092_v29 = vld [vmem:[%s20879_s0 + $0x70] sm:$0xf]  ;;  %v13696_v14 = vld [vmem:[#allocation2 + $0x7f4] ss:$36 sps:$4 sm:$0xff]   ;;  %v2335_v42 = vsel %vm16462_vm14, %v2326_v18, %v17232_v60  ;;  %v4136_v44 = vsel %vm15171_vm11, %v4127_v3, %v4135_v23  ;;  %v4137_v1 = vrot.slane %v4135_v23, 4  ;;  %v17261_v28 = vor.u32 %v4144_v36, %v4141_v35  ;;  %v8746_v3 = vpop.f32.mrf.mxu1 }
 0x273   :  { %v13694_v55 = vld [vmem:[#allocation2 + $0x7f0] ss:$36 sps:$4 sm:$0xff]   ;;  %2533 = vst [vmem:[#allocation2 + $0x310] sm:$0xf] %v2335_v42  ;;  %4325 = vst [vmem:[#allocation2 + $0x838] sm:$0xf] %v4136_v44  ;;  %v4482_v47 = vsel %vm15161_vm10, %v4480_v57, %v4481_v11  ;;  %v1956_v17 = vsel %vm15161_vm10, %v1954_v27, %v1955_v63  ;;  %9071 = vmatprep.mubr.bf16.mxu0 %v13696_v14  ;;  %v8918_v42 = vpop.f32.mrf.mxu0 }
 0x274   :  { %v4483_v41 = vrot.slane %v4481_v11, 4  ;;  %v1957_v24 = vrot.slane %v1955_v63, 4  ;;  %v12066_v15 = vld [vmem:[%s20879_s0 + $0x110] sm:$0xf]  ;;  %v4146_v35 = vsel %vm15171_vm11, %v4137_v1, %v17261_v28  ;;  %4580 = vst [vmem:[#allocation2 + $0x83c] sm:$0xf] %v4482_v47  ;;  %9072 = vmatmul.mubr.bf16.gmra.mxu0 %v13694_v55  ;;  %v17285_v44 = vpop.f32.mrf.mxu1  ;;  %v17293_v1 = vadd.f32 %v17062_v50, %v16370_v51 }
 0x275   :  { %v20888_v57 = vrot.slane %v17237_v30, 6  ;;  %2054 = vst [vmem:[#allocation2 + $0x330] sm:$0xf] %v1956_v17  ;;  %v2336_v18 = vrot.slane %v17232_v60, 4  ;;  %v2338_v23 = vshrl.u32 %v2091_v25, 16  ;;  %v2341_v27 = vshll.u32 %v2091_v25, 16  ;;  %v17296_v8 = vpop.f32.mrf.mxu0 }
 0x276   :  { %v12067_v36 = vld [vmem:[%s20879_s0 + $0x114] sm:$0xf]  ;;  %4326 = vst [vmem:[#allocation2 + $0x85c] sm:$0xf] %v4146_v35  ;;  %v4485_v11 = vsel %vm15161_vm10, %v4483_v41, %v4484_v59  ;;  %v2348_v63 = vshrl.u32 %v2092_v29, 16  ;;  %v2351_v48 = vshll.u32 %v2092_v29, 16  ;;  %v8749_v3 = vpop.f32.mrf.mxu1 }
 0x277   :  { %v12103_v14 = vld [vmem:[%s20879_s0 + $0x110] sm:$0xf]  ;;  %4581 = vst [vmem:[#allocation2 + $0x860] sm:$0xf] %v4485_v11  ;;  %v1959_v60 = vsel %vm15161_vm10, %v1957_v24, %v20888_v57  ;;  %v2340_v55 = vrot.slane %v2338_v23, 6  ;;  %v4147_v25 = vrot.slane %v17261_v28, 4 }
 0x278   :  { %2055 = vst [vmem:[#allocation2 + $0x354] sm:$0xf] %v1959_v60  ;;  %v2343_v29 = vrot.slane %v2341_v27, 7  ;;  %v2350_v47 = vrot.slane %v2348_v63, 6  ;;  %v2353_v41 = vrot.slane %v2351_v48, 7  ;;  %v4149_v17 = vshrl.u32 %v12066_v15, 16 }
 0x279   :  { %v4152_v35 = vshll.u32 %v12066_v15, 16  ;;  %v4159_v11 = vshrl.u32 %v12067_v36, 16  ;;  %v4162_v42 = vshll.u32 %v12067_v36, 16  ;;  %v4486_v37 = vrot.slane %v4484_v59, 4  ;;  %v17303_v51 = vld [vmem:[%s20879_s0 + $0x114] sm:$0xf] }
 0x27a   :  { %v2344_v24 = vor.u32 %v2343_v29, %v2340_v55  ;;  %v17298_v23 = vor.u32 %v2353_v41, %v2350_v47  ;;  %v4151_v57 = vrot.slane %v4149_v17, 5  ;;  %v4487_v50 = vrot.slane %v12103_v14, 6  ;;  %v1838_v28 = vld [vmem:[%s20879_s0 + $0x74] sm:$0xf]  ;;  %v21015_v59 = vld [vmem:[#allocation42_spill] sm:$0xff]  ;;  %v8923_v14 = vpop.f32.mrf.mxu0  ;;  %v17320_v29 = vpop.f32.mrf.mxu1 }
 0x27b   :  { %v21014_v15 = vld [vmem:[#allocation41_spill] sm:$0xff]  ;;  %v17314_v27 = vadd.f32 %v16745_v56, %v21015_v59  ;;  %v13697_v63 = vld [vmem:[#allocation2 + $0x2e8] ss:$36 sps:$4 sm:$0xff]   ;;  %v4154_v60 = vrot.slane %v4152_v35, 6  ;;  %v17318_v55 = vadd.f32 %v17111_v54, %v16374_v10  ;;  %v4164_v17 = vrot.slane %v4162_v42, 6 }
 0x27c   :  { %v17310_v36 = vadd.f32 %v16697_v13, %v21014_v15  ;;  %v13699_v48 = vld [vmem:[#allocation2 + $0x2ec] ss:$36 sps:$4 sm:$0xff]   ;;  %v2345_v47 = vsel %vm16462_vm14, %v2336_v18, %v2344_v24  ;;  %v2346_v41 = vrot.slane %v2344_v24, 4  ;;  %v4161_v13 = vrot.slane %v4159_v11, 5  ;;  %v17327_v56 = vld [vmem:[%s20879_s0 + $0x78] sm:$0xf]  ;;  %v17338_v42 = vpop.f32.mrf.mxu0  ;;  %v8754_v24 = vpop.f32.mrf.mxu1 }
 0x27d   :  { %21016 = vst [vmem:[#allocation41_spill] sm:$0xff] %v17318_v55  ;;  %9248 = vmatprep.mubr.bf16.mxu1 %v13699_v48  ;;  %2534 = vst [vmem:[#allocation2 + $0x334] sm:$0xf] %v2345_v47  ;;  %v4155_v3 = vor.u32 %v4154_v60, %v4151_v57  ;;  %v4488_v10 = vsel %vm15161_vm10, %v4486_v37, %v4487_v50  ;;  %v4489_v54 = vrot.slane %v4487_v50, 4  ;;  %v4490_v35 = vrot.slane %v17303_v51, 6 }
 0x27e   :  { %v2093_v18 = vld [vmem:[%s20879_s0 + $0x74] sm:$0xf]  ;;  %v2094_v11 = vld [vmem:[%s20879_s0 + $0x78] sm:$0xf]  ;;  %9249 = vmatmul.mubr.bf16.gmra.mxu1 %v13697_v63  ;;  %v13702_v57 = vld [vmem:[#allocation2 + $0x83c] ss:$36 sps:$4 sm:$0xff]   ;;  %v2355_v37 = vsel %vm16462_vm14, %v2346_v41, %v17298_v23  ;;  %v17343_v50 = vor.u32 %v4164_v17, %v4161_v13  ;;  %v17349_v48 = vadd.f32 %v17137_v20, %v16389_v2  ;;  %v8926_v41 = vpop.f32.mrf.mxu0  ;;  %v17355_v13 = vpop.f32.mrf.mxu1 }
 0x27f   :  { %v13700_v15 = vld [vmem:[#allocation2 + $0x838] ss:$36 sps:$4 sm:$0xff]   ;;  %4582 = vst [vmem:[#allocation2 + $0x884] sm:$0xf] %v4488_v10  ;;  %v21017_v51 = vrot.slane %v17237_v30, 6  ;;  %v4156_v63 = vsel %vm15171_vm11, %v4147_v25, %v4155_v3  ;;  %v4157_v60 = vrot.slane %v4155_v3, 4  ;;  %v4491_v14 = vsel %vm15161_vm10, %v4489_v54, %v4490_v35  ;;  %9079 = vmatprep.mubr.bf16.mxu0 %v13702_v57 }
 0x280   :  { %21018 = vst [vmem:[#allocation42_spill] sm:$0xff] %v17349_v48  ;;  %2535 = vst [vmem:[#allocation2 + $0x358] sm:$0xf] %v2355_v37  ;;  %v1961_v47 = vrot.slane %v1838_v28, 6  ;;  %v1964_v30 = vrot.slane %v17327_v56, 6  ;;  %v2356_v2 = vrot.slane %v17298_v23, 4  ;;  %9080 = vmatmul.mubr.bf16.gmra.mxu0 %v13700_v15  ;;  %v8757_v56 = vpop.f32.mrf.mxu1 }
 0x281   :  { %v1960_v59 = vrot.slane %v21017_v51, 4  ;;  %4327 = vst [vmem:[#allocation2 + $0x880] sm:$0xf] %v4156_v63  ;;  %4583 = vst [vmem:[#allocation2 + $0x8a8] sm:$0xf] %v4491_v14  ;;  %v2358_v20 = vshrl.u32 %v2093_v18, 16  ;;  %v4166_v28 = vsel %vm15171_vm11, %v4157_v60, %v17343_v50  ;;  %v17376_v14 = vpop.f32.mrf.mxu0 }
 0x282   :  { %v2361_v17 = vshll.u32 %v2093_v18, 16  ;;  %v12068_v25 = vld [vmem:[%s20879_s0 + $0x118] sm:$0xf]  ;;  %v1963_v10 = vrot.slane %v1961_v47, 4  ;;  %v2368_v54 = vshrl.u32 %v2094_v11, 16  ;;  %v2371_v57 = vshll.u32 %v2094_v11, 16 }
 0x283   :  { %v1962_v3 = vsel %vm15161_vm10, %v1960_v59, %v1961_v47  ;;  %v12069_v23 = vld [vmem:[%s20879_s0 + $0x11c] sm:$0xf]  ;;  %4328 = vst [vmem:[#allocation2 + $0x8a4] sm:$0xf] %v4166_v28  ;;  %v2360_v18 = vrot.slane %v2358_v20, 6  ;;  %v4167_v15 = vrot.slane %v17343_v50, 4 }
 0x284   :  { %2056 = vst [vmem:[#allocation2 + $0x378] sm:$0xf] %v1962_v3  ;;  %v2363_v24 = vrot.slane %v2361_v17, 7  ;;  %v12105_v37 = vld [vmem:[%s20879_s0 + $0x118] sm:$0xf]  ;;  %v1965_v51 = vsel %vm15161_vm10, %v1963_v10, %v1964_v30  ;;  %v2370_v59 = vrot.slane %v2368_v54, 6  ;;  %v8931_v54 = vpop.f32.mrf.mxu0 }
 0x285   :  { %v4169_v63 = vshrl.u32 %v12068_v25, 16  ;;  %v4172_v60 = vshll.u32 %v12068_v25, 16  ;;  %2057 = vst [vmem:[#allocation2 + $0x39c] sm:$0xf] %v1965_v51  ;;  %v2373_v41 = vrot.slane %v2371_v57, 7  ;;  %v4179_v20 = vshrl.u32 %v12069_v23, 16 }
 0x286   :  { %v2364_v47 = vor.u32 %v2363_v24, %v2360_v18  ;;  %v4182_v17 = vshll.u32 %v12069_v23, 16  ;;  %v17381_v11 = vld [vmem:[%s20879_s0 + $0x11c] sm:$0xf]  ;;  %v4492_v3 = vrot.slane %v4490_v35, 4  ;;  %v4493_v56 = vrot.slane %v12105_v37, 6  ;;  %v21019_v23 = vld [vmem:[#allocation43_spill] sm:$0xff] }
 0x287   :  { %v4171_v50 = vrot.slane %v4169_v63, 5  ;;  %v4174_v28 = vrot.slane %v4172_v60, 6  ;;  %v1840_v25 = vld [vmem:[%s20879_s0 + $0x7c] sm:$0xf]  ;;  %v17389_v10 = vld [vmem:[%s20879_s0 + $0x80] sm:$0xf]  ;;  %v17393_v18 = vadd.f32 %v16763_v26, %v21019_v23  ;;  %v17397_v51 = vor.u32 %v2373_v41, %v2370_v59  ;;  %v17399_v63 = vpop.f32.mrf.mxu1  ;;  %v17406_v23 = vpop.f32.mrf.mxu0 }
 0x288   :  { %v13703_v24 = vld [vmem:[#allocation2 + $0x330] ss:$36 sps:$4 sm:$0xff]   ;;  %v2365_v35 = vsel %vm16462_vm14, %v2356_v2, %v2364_v47  ;;  %v2366_v37 = vrot.slane %v2364_v47, 4  ;;  %v4181_v48 = vrot.slane %v4179_v20, 5  ;;  %v4184_v55 = vrot.slane %v4182_v17, 6 }
 0x289   :  { %v13705_v57 = vld [vmem:[#allocation2 + $0x334] ss:$36 sps:$4 sm:$0xff]   ;;  %2536 = vst [vmem:[#allocation2 + $0x37c] sm:$0xf] %v2365_v35  ;;  %v4175_v60 = vor.u32 %v4174_v28, %v4171_v50  ;;  %v4494_v54 = vsel %vm15161_vm10, %v4492_v3, %v4493_v56  ;;  %v2095_v26 = vld [vmem:[%s20879_s0 + $0x7c] sm:$0xf]  ;;  %v8762_v17 = vpop.f32.mrf.mxu1 }
 0x28a   :  { %9256 = vmatprep.mubr.bf16.mxu1 %v13705_v57  ;;  %v2375_v2 = vsel %vm16462_vm14, %v2366_v37, %v17397_v51  ;;  %v4495_v59 = vrot.slane %v4493_v56, 4  ;;  %v20890_v47 = vrot.slane %v17381_v11, 6  ;;  %4584 = vst [vmem:[#allocation2 + $0x8cc] sm:$0xf] %v4494_v54  ;;  %v1966_v41 = vrot.slane %v1964_v30, 4  ;;  %v8934_v30 = vpop.f32.mrf.mxu0  ;;  %v21021_v37 = vld [vmem:[#allocation44_spill] sm:$0xff] }
 0x28b   :  { %v2096_v20 = vld [vmem:[%s20879_s0 + $0x80] sm:$0xf]  ;;  %9257 = vmatmul.mubr.bf16.gmra.mxu1 %v13703_v24  ;;  %v13708_v28 = vld [vmem:[#allocation2 + $0x884] ss:$36 sps:$4 sm:$0xff]   ;;  %2537 = vst [vmem:[#allocation2 + $0x3a0] sm:$0xf] %v2375_v2  ;;  %v4176_v3 = vsel %vm15171_vm11, %v4167_v15, %v4175_v60  ;;  %v17417_v35 = vor.u32 %v4184_v55, %v4181_v48  ;;  %v17421_v56 = vadd.f32 %v17171_v9, %v16394_v34  ;;  %v17432_v55 = vpop.f32.mrf.mxu1 }
 0x28c   :  { %v13706_v50 = vld [vmem:[#allocation2 + $0x880] ss:$36 sps:$4 sm:$0xff]   ;;  %v4177_v57 = vrot.slane %v4175_v60, 4  ;;  %v17425_v54 = vadd.f32 %v16797_v43, %v21021_v37  ;;  %4329 = vst [vmem:[#allocation2 + $0x8c8] sm:$0xf] %v4176_v3  ;;  %v4497_v24 = vsel %vm15161_vm10, %v4495_v59, %v20890_v47  ;;  %v1967_v2 = vrot.slane %v1840_v25, 6  ;;  %9087 = vmatprep.mubr.bf16.mxu0 %v13708_v28 }
 0x28d   :  { %21020 = vst [vmem:[#allocation43_spill] sm:$0xff] %v17421_v56  ;;  %v20889_v15 = vrot.slane %v17389_v10, 6  ;;  %4585 = vst [vmem:[#allocation2 + $0x8f0] sm:$0xf] %v4497_v24  ;;  %v2378_v9 = vshrl.u32 %v2095_v26, 16  ;;  %v2381_v43 = vshll.u32 %v2095_v26, 16  ;;  %9088 = vmatmul.mubr.bf16.gmra.mxu0 %v13706_v50  ;;  %v8765_v26 = vpop.f32.mrf.mxu1  ;;  %v17450_v50 = vadd.f32 %v17202_v52, %v16443_v46 }
 0x28e   :  { %v4186_v34 = vsel %vm15171_vm11, %v4177_v57, %v17417_v35  ;;  %v2388_v48 = vshrl.u32 %v2096_v20, 16  ;;  %v12070_v60 = vld [vmem:[%s20879_s0 + $0x120] sm:$0xf]  ;;  %v1968_v25 = vsel %vm15161_vm10, %v1966_v41, %v1967_v2  ;;  %v1969_v59 = vrot.slane %v1967_v2, 4  ;;  %v12071_v3 = vld [vmem:[%s20879_s0 + $0x124] sm:$0xf]  ;;  %v17446_v57 = vpop.f32.mrf.mxu0 }
 0x28f   :  { %4330 = vst [vmem:[#allocation2 + $0x8ec] sm:$0xf] %v4186_v34  ;;  %v2376_v17 = vrot.slane %v17397_v51, 4  ;;  %v2391_v28 = vshll.u32 %v2096_v20, 16  ;;  %2058 = vst [vmem:[#allocation2 + $0x3c0] sm:$0xf] %v1968_v25  ;;  %v17465_v52 = vpop.f32.mrf.mxu1 }
 0x290   :  { %v2380_v30 = vrot.slane %v2378_v9, 6  ;;  %v2383_v37 = vrot.slane %v2381_v43, 7  ;;  %v2390_v24 = vrot.slane %v2388_v48, 6  ;;  %21022 = vst [vmem:[#allocation44_spill] sm:$0xff] %v17450_v50  ;;  %v12107_v51 = vld [vmem:[%s20879_s0 + $0x120] sm:$0xf]  ;;  %v1971_v41 = vsel %vm15161_vm10, %v1969_v59, %v20889_v15  ;;  %v8939_v46 = vpop.f32.mrf.mxu0 }
 0x291   :  { %v2393_v20 = vrot.slane %v2391_v28, 7  ;;  %v4187_v2 = vrot.slane %v17417_v35, 4  ;;  %v4189_v34 = vshrl.u32 %v12070_v60, 16  ;;  %v17463_v9 = vld [vmem:[%s20879_s0 + $0x124] sm:$0xf]  ;;  %v4192_v48 = vshll.u32 %v12070_v60, 16 }
 0x292   :  { %2059 = vst [vmem:[#allocation2 + $0x3e4] sm:$0xf] %v1971_v41  ;;  %v2384_v43 = vor.u32 %v2383_v37, %v2380_v30  ;;  %v4199_v25 = vshrl.u32 %v12071_v3, 16  ;;  %v4202_v26 = vshll.u32 %v12071_v3, 16  ;;  %v1842_v59 = vld [vmem:[%s20879_s0 + $0x84] sm:$0xf]  ;;  %v17472_v35 = vadd.f32 %v16829_v5, %v16288_v38  ;;  %v17480_v60 = vpop.f32.mrf.mxu0  ;;  %v8770_v3 = vpop.f32.mrf.mxu1 }
 0x293   :  { %v13709_v28 = vld [vmem:[#allocation2 + $0x378] ss:$36 sps:$4 sm:$0xff]   ;;  %v17474_v47 = vor.u32 %v2393_v20, %v2390_v24  ;;  %v4191_v46 = vrot.slane %v4189_v34, 5  ;;  %v17478_v41 = vadd.f32 %v17243_v33, %v16447_v49  ;;  %v4194_v50 = vrot.slane %v4192_v48, 6  ;;  %v17487_v38 = vld [vmem:[%s20879_s0 + $0x88] sm:$0xf] }
 0x294   :  { %v13711_v15 = vld [vmem:[#allocation2 + $0x37c] ss:$36 sps:$4 sm:$0xff]   ;;  %v2385_v30 = vsel %vm16462_vm14, %v2376_v17, %v2384_v43  ;;  %v2386_v37 = vrot.slane %v2384_v43, 4  ;;  %v4201_v56 = vrot.slane %v4199_v25, 5  ;;  %v4204_v5 = vrot.slane %v4202_v26, 6  ;;  %v8942_v34 = vpop.f32.mrf.mxu0  ;;  %v17495_v43 = vpop.f32.mrf.mxu1 }
 0x295   :  { %21023 = vst [vmem:[#allocation67_spill] sm:$0xff] %v17478_v41  ;;  %9264 = vmatprep.mubr.bf16.mxu1 %v13711_v15  ;;  %2538 = vst [vmem:[#allocation2 + $0x3c4] sm:$0xf] %v2385_v30  ;;  %v21024_v49 = vrot.slane %v17381_v11, 6  ;;  %v4499_v24 = vrot.slane %v12107_v51, 6  ;;  %v4502_v20 = vrot.slane %v17463_v9, 6  ;;  %v17499_v48 = vadd.f32 %v16858_v4, %v16325_v39 }
 0x296   :  { %v2097_v17 = vld [vmem:[%s20879_s0 + $0x84] sm:$0xf]  ;;  %21025 = vst [vmem:[#allocation68_spill] sm:$0xff] %v17495_v43  ;;  %9265 = vmatmul.mubr.bf16.gmra.mxu1 %v13709_v28  ;;  %v13712_v15 = vld [vmem:[#allocation2 + $0x8c8] ss:$36 sps:$4 sm:$0xff]   ;;  %v2395_v11 = vsel %vm16462_vm14, %v2386_v37, %v17474_v47  ;;  %v4195_v51 = vor.u32 %v4194_v50, %v4191_v46  ;;  %v21026_v9 = vrot.slane %v17389_v10, 6  ;;  %v17506_v3 = vor.u32 %v4204_v5, %v4201_v56  ;;  %v8773_v28 = vpop.f32.mrf.mxu1  ;;  %v17517_v37 = vpop.f32.mrf.mxu0 }
 0x297   :  { %v4498_v33 = vrot.slane %v21024_v49, 4  ;;  %v13714_v25 = vld [vmem:[#allocation2 + $0x8cc] ss:$36 sps:$4 sm:$0xff]   ;;  %2539 = vst [vmem:[#allocation2 + $0x3e8] sm:$0xf] %v2395_v11  ;;  %v4501_v49 = vrot.slane %v4499_v24, 4 }
 0x298   :  { %v1972_v26 = vrot.slane %v21026_v9, 4  ;;  %v1973_v39 = vrot.slane %v1842_v59, 6  ;;  %v2098_v4 = vld [vmem:[%s20879_s0 + $0x88] sm:$0xf]  ;;  %9095 = vmatprep.mubr.bf16.mxu0 %v13714_v25  ;;  %v4196_v50 = vsel %vm15171_vm11, %v4187_v2, %v4195_v51  ;;  %v4197_v46 = vrot.slane %v4195_v51, 4  ;;  %v8947_v11 = vpop.f32.mrf.mxu0  ;;  %v17532_v51 = vpop.f32.mrf.mxu1 }
 0x299   :  { %v4500_v30 = vsel %vm15161_vm10, %v4498_v33, %v4499_v24  ;;  %v1976_v10 = vrot.slane %v17487_v38, 6  ;;  %v2396_v56 = vrot.slane %v17474_v47, 4  ;;  %9096 = vmatmul.mubr.bf16.gmra.mxu0 %v13712_v15  ;;  %4331 = vst [vmem:[#allocation2 + $0x910] sm:$0xf] %v4196_v50  ;;  %v4503_v59 = vsel %vm15161_vm10, %v4501_v49, %v4502_v20  ;;  %v12072_v2 = vld [vmem:[%s20879_s0 + $0x128] sm:$0xf] }
 0x29a   :  { %4586 = vst [vmem:[#allocation2 + $0x914] sm:$0xf] %v4500_v30  ;;  %v1974_v5 = vsel %vm15161_vm10, %v1972_v26, %v1973_v39  ;;  %v1975_v33 = vrot.slane %v1973_v39, 4  ;;  %v2398_v24 = vshrl.u32 %v2097_v17, 16  ;;  %v4206_v47 = vsel %vm15171_vm11, %v4197_v46, %v17506_v3  ;;  %4587 = vst [vmem:[#allocation2 + $0x938] sm:$0xf] %v4503_v59  ;;  %v17544_v59 = vpop.f32.mrf.mxu0 }
 0x29b   :  { %2060 = vst [vmem:[#allocation2 + $0x408] sm:$0xf] %v1974_v5  ;;  %v2401_v38 = vshll.u32 %v2097_v17, 16  ;;  %v2408_v34 = vshrl.u32 %v2098_v4, 16  ;;  %v2411_v15 = vshll.u32 %v2098_v4, 16  ;;  %21027 = vst [vmem:[#allocation69_spill] sm:$0xff] %v17532_v51  ;;  %v8778_v5 = vpop.f32.mrf.mxu1 }
 0x29c   :  { %v12073_v25 = vld [vmem:[%s20879_s0 + $0x12c] sm:$0xf]  ;;  %4332 = vst [vmem:[#allocation2 + $0x934] sm:$0xf] %v4206_v47  ;;  %v1977_v9 = vsel %vm15161_vm10, %v1975_v33, %v1976_v10  ;;  %v2400_v26 = vrot.slane %v2398_v24, 6  ;;  %v21028_v30 = vld [vmem:[#allocation39_spill] sm:$0xff]  ;;  %v8950_v5 = vpop.f32.mrf.mxu0 }
 0x29d   :  { %v17538_v49 = vadd.f32 %v17270_v0, %v21028_v30  ;;  %v4207_v17 = vrot.slane %v17506_v3, 4  ;;  %v12109_v39 = vld [vmem:[%s20879_s0 + $0x128] sm:$0xf]  ;;  %2061 = vst [vmem:[#allocation2 + $0x42c] sm:$0xf] %v1977_v9  ;;  %v2403_v4 = vrot.slane %v2401_v38, 7 }
 0x29e   :  { %v2410_v28 = vrot.slane %v2408_v34, 6  ;;  %v2413_v50 = vrot.slane %v2411_v15, 7  ;;  %v4209_v46 = vshrl.u32 %v12072_v2, 16  ;;  %v4212_v33 = vshll.u32 %v12072_v2, 16  ;;  %v17549_v0 = vld [vmem:[%s20879_s0 + $0x12c] sm:$0xf]  ;;  %v17557_v2 = vpop.f32.mrf.mxu1 }
 0x29f   :  { %21029 = vst [vmem:[#allocation39_spill] sm:$0xff] %v17538_v49  ;;  %v4219_v24 = vshrl.u32 %v12073_v25, 16  ;;  %v4222_v47 = vshll.u32 %v12073_v25, 16  ;;  %v4504_v3 = vrot.slane %v4502_v20, 4  ;;  %v21030_v11 = vld [vmem:[#allocation45_spill] sm:$0xff]  ;;  %v2404_v15 = vor.u32 %v2403_v4, %v2400_v26 }
 0x2a0   :  { %v17553_v30 = vadd.f32 %v16889_v61, %v21030_v11  ;;  %v13715_v38 = vld [vmem:[#allocation2 + $0x3c0] ss:$36 sps:$4 sm:$0xff]   ;;  %v17555_v9 = vor.u32 %v2413_v50, %v2410_v28  ;;  %v4211_v51 = vrot.slane %v4209_v46, 5  ;;  %21031 = vst [vmem:[#allocation45_spill] sm:$0xff] %v17557_v2  ;;  %v4214_v25 = vrot.slane %v4212_v33, 6  ;;  %v8781_v50 = vpop.f32.mrf.mxu1 }
 0x2a1   :  { %v13717_v34 = vld [vmem:[#allocation2 + $0x3c4] ss:$36 sps:$4 sm:$0xff]   ;;  %v4221_v43 = vrot.slane %v4219_v24, 5  ;;  %v4224_v49 = vrot.slane %v4222_v47, 6  ;;  %v4505_v41 = vrot.slane %v12109_v39, 6  ;;  %v2405_v61 = vsel %vm16462_vm14, %v2396_v56, %v2404_v15 }
 0x2a2   :  { %v1844_v20 = vld [vmem:[%s20879_s0 + $0x8c] sm:$0xf]  ;;  %9272 = vmatprep.mubr.bf16.mxu1 %v13717_v34  ;;  %v2406_v11 = vrot.slane %v2404_v15, 4  ;;  %v4508_v26 = vrot.slane %v17549_v0, 6  ;;  %v17568_v4 = vld [vmem:[%s20879_s0 + $0x90] sm:$0xf]  ;;  %v4215_v39 = vor.u32 %v4214_v25, %v4211_v51  ;;  %v17591_v34 = vpop.f32.mrf.mxu0 }
 0x2a3   :  { %v1978_v28 = vrot.slane %v1976_v10, 4  ;;  %9273 = vmatmul.mubr.bf16.gmra.mxu1 %v13715_v38  ;;  %2540 = vst [vmem:[#allocation2 + $0x40c] sm:$0xf] %v2405_v61  ;;  %v17570_v46 = vor.u32 %v4224_v49, %v4221_v43  ;;  %v4506_v33 = vsel %vm15161_vm10, %v4504_v3, %v4505_v41  ;;  %v4507_v24 = vrot.slane %v4505_v41, 4  ;;  %v2099_v56 = vld [vmem:[%s20879_s0 + $0x8c] sm:$0xf]  ;;  %v17598_v61 = vpop.f32.mrf.mxu1 }
 0x2a4   :  { %v2100_v47 = vld [vmem:[%s20879_s0 + $0x90] sm:$0xf]  ;;  %v21032_v0 = vld [vmem:[#allocation46_spill] sm:$0xff]  ;;  %v2415_v43 = vsel %vm16462_vm14, %v2406_v11, %v17555_v9  ;;  %4588 = vst [vmem:[#allocation2 + $0x95c] sm:$0xf] %v4506_v33  ;;  %v1979_v41 = vrot.slane %v1844_v20, 6  ;;  %v4216_v15 = vsel %vm15171_vm11, %v4207_v17, %v4215_v39 }
 0x2a5   :  { %v17582_v10 = vadd.f32 %v16919_v21, %v21032_v0  ;;  %v13719_v38 = vld [vmem:[#allocation2 + $0x910] ss:$36 sps:$4 sm:$0xff]   ;;  %2541 = vst [vmem:[#allocation2 + $0x430] sm:$0xf] %v2415_v43  ;;  %v4217_v21 = vrot.slane %v4215_v39, 4  ;;  %v4509_v5 = vsel %vm15161_vm10, %v4507_v24, %v4508_v26  ;;  %v20891_v25 = vrot.slane %v17568_v4, 6  ;;  %v8955_v39 = vpop.f32.mrf.mxu0 }
 0x2a6   :  { %v13721_v51 = vld [vmem:[#allocation2 + $0x914] ss:$36 sps:$4 sm:$0xff]   ;;  %4333 = vst [vmem:[#allocation2 + $0x958] sm:$0xf] %v4216_v15  ;;  %4589 = vst [vmem:[#allocation2 + $0x980] sm:$0xf] %v4509_v5 }
 0x2a7   :  { %v21033_v49 = vld [vmem:[#allocation21_spill] sm:$0xff]  ;;  %9103 = vmatprep.mubr.bf16.mxu0 %v13721_v51  ;;  %v1981_v20 = vrot.slane %v1979_v41, 4  ;;  %v2416_v11 = vrot.slane %v17555_v9, 4  ;;  %v2418_v50 = vshrl.u32 %v2099_v56, 16  ;;  %v4226_v33 = vsel %vm15171_vm11, %v4217_v21, %v17570_v46  ;;  %v8786_v9 = vpop.f32.mrf.mxu1  ;;  %v17624_v15 = vpop.f32.mrf.mxu0 }
 0x2a8   :  { %v17589_v3 = vadd.f32 %v17296_v8, %v21033_v49  ;;  %21035 = vst [vmem:[#allocation21_spill] sm:$0xff] %v17598_v61  ;;  %v1980_v8 = vsel %vm15161_vm10, %v1978_v28, %v1979_v41  ;;  %v12074_v17 = vld [vmem:[%s20879_s0 + $0x130] sm:$0xf]  ;;  %9104 = vmatmul.mubr.bf16.gmra.mxu0 %v13719_v38  ;;  %v2421_v24 = vshll.u32 %v2099_v56, 16  ;;  %v2428_v0 = vshrl.u32 %v2100_v47, 16  ;;  %v21036_v41 = vld [vmem:[#allocation22_spill] sm:$0xff] }
 0x2a9   :  { %2062 = vst [vmem:[#allocation2 + $0x450] sm:$0xf] %v1980_v8  ;;  %v2431_v51 = vshll.u32 %v2100_v47, 16  ;;  %v12075_v28 = vld [vmem:[%s20879_s0 + $0x134] sm:$0xf]  ;;  %v1983_v43 = vsel %vm15161_vm10, %v1981_v20, %v20891_v25  ;;  %v2420_v38 = vrot.slane %v2418_v50, 6  ;;  %v17618_v49 = vadd.f32 %v17338_v42, %v21036_v41  ;;  %v8958_v41 = vpop.f32.mrf.mxu0 }
 0x2aa   :  { %21034 = vst [vmem:[#allocation46_spill] sm:$0xff] %v17589_v3  ;;  %4334 = vst [vmem:[#allocation2 + $0x97c] sm:$0xf] %v4226_v33  ;;  %v4227_v56 = vrot.slane %v17570_v46, 4  ;;  %v12111_v47 = vld [vmem:[%s20879_s0 + $0x130] sm:$0xf]  ;;  %v17626_v33 = vpop.f32.mrf.mxu1 }
 0x2ab   :  { %21037 = vst [vmem:[#allocation22_spill] sm:$0xff] %v17618_v49  ;;  %2063 = vst [vmem:[#allocation2 + $0x474] sm:$0xf] %v1983_v43  ;;  %v2423_v21 = vrot.slane %v2421_v24, 7  ;;  %v2430_v5 = vrot.slane %v2428_v0, 6  ;;  %v2433_v8 = vrot.slane %v2431_v51, 7 }
 0x2ac   :  { %v4229_v39 = vshrl.u32 %v12074_v17, 16  ;;  %21038 = vst [vmem:[#allocation70_spill] sm:$0xff] %v17626_v33  ;;  %v4232_v20 = vshll.u32 %v12074_v17, 16  ;;  %v4239_v50 = vshrl.u32 %v12075_v28, 16  ;;  %v4242_v9 = vshll.u32 %v12075_v28, 16  ;;  %v8789_v51 = vpop.f32.mrf.mxu1  ;;  %v21039_v17 = vld [vmem:[#allocation47_spill] sm:$0xff] }
 0x2ad   :  { %v4510_v42 = vrot.slane %v4508_v26, 4  ;;  %v2424_v25 = vor.u32 %v2423_v21, %v2420_v38  ;;  %v17628_v46 = vor.u32 %v2433_v8, %v2430_v5  ;;  %v17633_v2 = vld [vmem:[%s20879_s0 + $0x134] sm:$0xf]  ;;  %v4511_v24 = vrot.slane %v12111_v47, 6  ;;  %v21040_v26 = vld [vmem:[#allocation48_spill] sm:$0xff]  ;;  %v21041_v8 = vld [vmem:[#allocation23_spill] sm:$0xff] }
 0x2ae   :  { %v4231_v61 = vrot.slane %v4229_v39, 5  ;;  %v1846_v0 = vld [vmem:[%s20879_s0 + $0x94] sm:$0xf]  ;;  %v17640_v28 = vadd.f32 %v16950_v58, %v21039_v17  ;;  %v17644_v43 = vadd.f32 %v16984_v53, %v21040_v26  ;;  %v13722_v38 = vld [vmem:[#allocation2 + $0x408] ss:$36 sps:$4 sm:$0xff]   ;;  %v4234_v5 = vrot.slane %v4232_v20, 6  ;;  %v17657_v53 = vpop.f32.mrf.mxu0 }
 0x2af   :  { %v13724_v21 = vld [vmem:[#allocation2 + $0x40c] ss:$36 sps:$4 sm:$0xff]   ;;  %v17648_v39 = vadd.f32 %v17376_v14, %v21041_v8  ;;  %v2425_v47 = vsel %vm16462_vm14, %v2416_v11, %v2424_v25  ;;  %v2426_v41 = vrot.slane %v2424_v25, 4  ;;  %v4241_v51 = vrot.slane %v4239_v50, 5  ;;  %v17655_v58 = vld [vmem:[%s20879_s0 + $0x98] sm:$0xf] }
 0x2b0   :  { %v4244_v33 = vrot.slane %v4242_v9, 6  ;;  %9280 = vmatprep.mubr.bf16.mxu1 %v13724_v21  ;;  %2542 = vst [vmem:[#allocation2 + $0x454] sm:$0xf] %v2425_v47  ;;  %v4235_v20 = vor.u32 %v4234_v5, %v4231_v61  ;;  %v4512_v14 = vsel %vm15161_vm10, %v4510_v42, %v4511_v24  ;;  %v4513_v17 = vrot.slane %v4511_v24, 4  ;;  %v2101_v25 = vld [vmem:[%s20879_s0 + $0x94] sm:$0xf]  ;;  %v8963_v8 = vpop.f32.mrf.mxu0  ;;  %v17679_v47 = vpop.f32.mrf.mxu1 }
 0x2b1   :  { %21042 = vst [vmem:[#allocation47_spill] sm:$0xff] %v17648_v39  ;;  %v4514_v26 = vrot.slane %v17633_v2, 6  ;;  %v2102_v11 = vld [vmem:[%s20879_s0 + $0x98] sm:$0xf]  ;;  %9281 = vmatmul.mubr.bf16.gmra.mxu1 %v13722_v38  ;;  %v13727_v9 = vld [vmem:[#allocation2 + $0x95c] ss:$36 sps:$4 sm:$0xff]   ;;  %v2435_v61 = vsel %vm16462_vm14, %v2426_v41, %v17628_v46 }
 0x2b2   :  { %v13725_v50 = vld [vmem:[#allocation2 + $0x958] ss:$36 sps:$4 sm:$0xff]   ;;  %v17671_v21 = vor.u32 %v4244_v33, %v4241_v51  ;;  %4590 = vst [vmem:[#allocation2 + $0x9a4] sm:$0xf] %v4512_v14  ;;  %v21043_v2 = vrot.slane %v17568_v4, 6  ;;  %v21044_v24 = vld [vmem:[#allocation24_spill] sm:$0xff]  ;;  %v4236_v38 = vsel %vm15171_vm11, %v4227_v56, %v4235_v20  ;;  %9111 = vmatprep.mubr.bf16.mxu0 %v13727_v9  ;;  %v8794_v56 = vpop.f32.mrf.mxu1 }
 0x2b3   :  { %v17677_v5 = vadd.f32 %v17406_v23, %v21044_v24  ;;  %21046 = vst [vmem:[#allocation23_spill] sm:$0xff] %v17679_v47  ;;  %2543 = vst [vmem:[#allocation2 + $0x478] sm:$0xf] %v2435_v61  ;;  %v4237_v39 = vrot.slane %v4235_v20, 4  ;;  %v4515_v33 = vsel %vm15161_vm10, %v4513_v17, %v4514_v26  ;;  %v1985_v41 = vrot.slane %v1846_v0, 6  ;;  %9112 = vmatmul.mubr.bf16.gmra.mxu0 %v13725_v50 }
 0x2b4   :  { %v1984_v42 = vrot.slane %v21043_v2, 4  ;;  %4335 = vst [vmem:[#allocation2 + $0x9a0] sm:$0xf] %v4236_v38  ;;  %4591 = vst [vmem:[#allocation2 + $0x9c8] sm:$0xf] %v4515_v33  ;;  %v1988_v4 = vrot.slane %v17655_v58, 6  ;;  %v17690_v2 = vpop.f32.mrf.mxu0  ;;  %v17704_v38 = vpop.f32.mrf.mxu1 }
 0x2b5   :  { %21045 = vst [vmem:[#allocation48_spill] sm:$0xff] %v17677_v5  ;;  %v2436_v23 = vrot.slane %v17628_v46, 4  ;;  %v2438_v51 = vshrl.u32 %v2101_v25, 16  ;;  %v2441_v14 = vshll.u32 %v2101_v25, 16  ;;  %v12076_v61 = vld [vmem:[%s20879_s0 + $0x138] sm:$0xf]  ;;  %v4246_v0 = vsel %vm15171_vm11, %v4237_v39, %v17671_v21 }
 0x2b6   :  { %v1986_v20 = vsel %vm15161_vm10, %v1984_v42, %v1985_v41  ;;  %v1987_v58 = vrot.slane %v1985_v41, 4  ;;  %v2448_v17 = vshrl.u32 %v2102_v11, 16  ;;  %v12077_v46 = vld [vmem:[%s20879_s0 + $0x13c] sm:$0x3]  ;;  %4336 = vst [vmem:[#allocation2 + $0x9c4] sm:$0xf] %v4246_v0  ;;  %v8966_v8 = vpop.f32.mrf.mxu0 }
 0x2b7   :  { %2064 = vst [vmem:[#allocation2 + $0x498] sm:$0xf] %v1986_v20  ;;  %v2440_v25 = vrot.slane %v2438_v51, 6  ;;  %v2443_v9 = vrot.slane %v2441_v14, 7  ;;  %v2451_v24 = vshll.u32 %v2102_v11, 16  ;;  %v4247_v50 = vrot.slane %v17671_v21, 4  ;;  %v8797_v20 = vpop.f32.mrf.mxu1 }
 0x2b8   :  { %v12113_v39 = vld [vmem:[%s20879_s0 + $0x138] sm:$0xf]  ;;  %21047 = vst [vmem:[#allocation24_spill] sm:$0xff] %v17704_v38  ;;  %v1989_v42 = vsel %vm15161_vm10, %v1987_v58, %v1988_v4  ;;  %v2450_v33 = vrot.slane %v2448_v17, 6  ;;  %v4249_v41 = vshrl.u32 %v12076_v61, 16  ;;  %v4252_v56 = vshll.u32 %v12076_v61, 16  ;;  %v17719_v17 = vpop.f32.mrf.mxu0 }
 0x2b9   :  { %2065 = vst [vmem:[#allocation2 + $0x4bc] sm:$0xf] %v1989_v42  ;;  %v2444_v0 = vor.u32 %v2443_v9, %v2440_v25  ;;  %v2453_v51 = vrot.slane %v2451_v24, 7  ;;  %v4259_v14 = vshrl.u32 %v12077_v46, 16  ;;  %v4262_v11 = vshll.u32 %v12077_v46, 16  ;;  %v21048_v46 = vld [vmem:[#allocation49_spill] sm:$0xff] }
 0x2ba   :  { %v12114_v21 = vld [vmem:[%s20879_s0 + $0x13c] sm:$0x3]  ;;  %v4251_v47 = vrot.slane %v4249_v41, 5  ;;  %v4254_v8 = vrot.slane %v4252_v56, 6  ;;  %v4516_v5 = vrot.slane %v4514_v26, 4  ;;  %v4517_v38 = vrot.slane %v12113_v39, 6  ;;  %v17729_v41 = vpop.f32.mrf.mxu1 }
 0x2bb   :  { %v1848_v58 = vld [vmem:[%s20879_s0 + $0x9c] sm:$0xf]  ;;  %v17717_v61 = vld [vmem:[%s20879_s0 + $0xa0] sm:$0x3]  ;;  %v17723_v25 = vadd.f32 %v17021_v40, %v21048_v46  ;;  %v13728_v9 = vld [vmem:[#allocation2 + $0x450] ss:$36 sps:$4 sm:$0xff]   ;;  %v2445_v26 = vsel %vm16462_vm14, %v2436_v23, %v2444_v0  ;;  %v17727_v42 = vor.u32 %v2453_v51, %v2450_v33  ;;  %v8971_v46 = vpop.f32.mrf.mxu0 }
 0x2bc   :  { %v13730_v24 = vld [vmem:[#allocation2 + $0x454] ss:$36 sps:$4 sm:$0xff]   ;;  %v2446_v39 = vrot.slane %v2444_v0, 4  ;;  %21049 = vst [vmem:[#allocation49_spill] sm:$0xff] %v17729_v41  ;;  %2544 = vst [vmem:[#allocation2 + $0x49c] sm:$0xf] %v2445_v26  ;;  %v4255_v56 = vor.u32 %v4254_v8, %v4251_v47  ;;  %v4518_v3 = vsel %vm15161_vm10, %v4516_v5, %v4517_v38 }
 0x2bd   :  { %v4261_v20 = vrot.slane %v4259_v14, 5  ;;  %v4264_v49 = vrot.slane %v4262_v11, 6  ;;  %v2103_v40 = vld [vmem:[%s20879_s0 + $0x9c] sm:$0xf]  ;;  %9288 = vmatprep.mubr.bf16.mxu1 %v13730_v24  ;;  %v4519_v33 = vrot.slane %v4517_v38, 4  ;;  %v4520_v0 = vrot.slane %v12114_v21, 6  ;;  %v8802_v14 = vpop.f32.mrf.mxu1 }
 0x2be   :  { %v2455_v23 = vsel %vm16462_vm14, %v2446_v39, %v17727_v42  ;;  %4592 = vst [vmem:[#allocation2 + $0x9ec] sm:$0xf] %v4518_v3  ;;  %v1990_v51 = vrot.slane %v1988_v4, 4  ;;  %v2104_v47 = vld [vmem:[%s20879_s0 + $0xa0] sm:$0x7]  ;;  %9289 = vmatmul.mubr.bf16.gmra.mxu1 %v13728_v9  ;;  %v4256_v8 = vsel %vm15171_vm11, %v4247_v50, %v4255_v56  ;;  %v4257_v24 = vrot.slane %v4255_v56, 4  ;;  %v17748_v3 = vpop.f32.mrf.mxu0 }
 0x2bf   :  { %v13731_v5 = vld [vmem:[#allocation2 + $0x9a0] ss:$36 sps:$4 sm:$0xff]   ;;  %2545 = vst [vmem:[#allocation2 + $0x4c0] sm:$0xf] %v2455_v23  ;;  %v4265_v26 = vor.u32 %v4264_v49, %v4261_v20  ;;  %v21050_v46 = vld [vmem:[#allocation25_spill] sm:$0xff]  ;;  %v21052_v4 = vld [vmem:[#allocation50_spill] sm:$0xff]  ;;  %v4521_v9 = vsel %vm15161_vm10, %v4519_v33, %v4520_v0  ;;  %v17763_v50 = vpop.f32.mrf.mxu1 }
 0x2c0   :  { %v13733_v11 = vld [vmem:[#allocation2 + $0x9a4] ss:$36 sps:$4 sm:$0xff]   ;;  %v17746_v38 = vadd.f32 %v17446_v57, %v21050_v46  ;;  %v17752_v21 = vadd.f32 %v17050_v7, %v21052_v4  ;;  %4337 = vst [vmem:[#allocation2 + $0x9e8] sm:$0xf] %v4256_v8  ;;  %v1991_v39 = vrot.slane %v1848_v58, 6  ;;  %v1994_v23 = vrot.slane %v17717_v61, 6  ;;  %v8974_v33 = vpop.f32.mrf.mxu0 }
 0x2c1   :  { %v12116_v49 = vld [vmem:[%s20879_s0 + $0xb4] sm:$0xc]  ;;  %v12117_v57 = vld [vmem:[%s20879_s0 + $0xb8] sm:$0xf]  ;;  %21053 = vst [vmem:[#allocation50_spill] sm:$0xff] %v17763_v50  ;;  %9119 = vmatprep.mubr.bf16.mxu0 %v13733_v11  ;;  %v4266_v7 = vsel %vm15171_vm11, %v4257_v24, %v4265_v26  ;;  %v2458_v56 = vshrl.u32 %v2103_v40, 16  ;;  %v8805_v8 = vpop.f32.mrf.mxu1 }
 0x2c2   :  { %21051 = vst [vmem:[#allocation25_spill] sm:$0xff] %v17746_v38  ;;  %4593 = vst [vmem:[#allocation2 + $0xa10] sm:$0xf] %v4521_v9  ;;  %v2461_v20 = vshll.u32 %v2103_v40, 16  ;;  %v2468_v58 = vshrl.u32 %v2104_v47, 16  ;;  %9120 = vmatmul.mubr.bf16.gmra.mxu0 %v13731_v5  ;;  %v1992_v0 = vsel %vm15161_vm10, %v1990_v51, %v1991_v39  ;;  %v1993_v14 = vrot.slane %v1991_v39, 4  ;;  %v17782_v9 = vpop.f32.mrf.mxu0 }
 0x2c3   :  { %v17770_v61 = vld [vmem:[%s20879_s0 + $0xbc] sm:$0xf]  ;;  %4338 = vst [vmem:[#allocation2 + $0xa0c] sm:$0xf] %v4266_v7  ;;  %v2456_v11 = vrot.slane %v17727_v42, 4  ;;  %v2471_v19 = vshll.u32 %v2104_v47, 16 }
 0x2c4   :  { %v12154_v40 = vld [vmem:[%s20879_s0 + $0xb4] sm:$0xc]  ;;  %2066 = vst [vmem:[#allocation2 + $0x4e0] sm:$0xf] %v1992_v0  ;;  %v2460_v24 = vrot.slane %v2458_v56, 6  ;;  %v2463_v26 = vrot.slane %v2461_v20, 7  ;;  %v1995_v51 = vsel %vm15161_vm10, %v1993_v14, %v1994_v23  ;;  %v8979_v0 = vpop.f32.mrf.mxu0 }
 0x2c5   :  { %v2470_v46 = vrot.slane %v2468_v58, 6  ;;  %v21054_v4 = vld [vmem:[#allocation26_spill] sm:$0xff]  ;;  %v2473_v42 = vrot.slane %v2471_v19, 7  ;;  %v12153_v47 = vrot.slane %v12116_v49, 10  ;;  %v4670_v39 = vrot.slane %v12117_v57, 6  ;;  %v21056_v8 = vld [vmem:[#allocation51_spill] sm:$0xff] }
 0x2c6   :  { %v17780_v5 = vadd.f32 %v17480_v60, %v21054_v4  ;;  %v12155_v7 = vld [vmem:[%s20879_s0 + $0xb8] sm:$0xf]  ;;  %2067 = vst [vmem:[#allocation2 + $0x504] sm:$0xf] %v1995_v51  ;;  %v2464_v56 = vor.u32 %v2463_v26, %v2460_v24  ;;  %v20892_v20 = vrot.slane %v17770_v61, 6  ;;  %v4887_v58 = vshrl.u32 %v12154_v40, 16  ;;  %v17802_v4 = vpop.f32.mrf.mxu1 }
 0x2c7   :  { %v12156_v60 = vld [vmem:[%s20879_s0 + $0xbc] sm:$0xf]  ;;  %v4890_v33 = vshll.u32 %v12154_v40, 16  ;;  %v17795_v23 = vadd.f32 %v17069_v16, %v21056_v8  ;;  %v2474_v14 = vor.u32 %v2473_v42, %v2470_v46  ;;  %v4671_v19 = vsel %vm15161_vm10, %v12153_v47, %v4670_v39  ;;  %v2548_v26 = vld [vmem:[%s20879_s0 + $0x10] sm:$0x8]  ;;  %21057 = vst [vmem:[#allocation51_spill] sm:$0xff] %v17802_v4  ;;  %v17812_v47 = vpop.f32.mrf.mxu0 }
 0x2c8   :  { %21055 = vst [vmem:[#allocation26_spill] sm:$0xff] %v17780_v5  ;;  %v13734_v49 = vld [vmem:[#allocation2 + $0x498] ss:$36 sps:$4 sm:$0xff]   ;;  %v4672_v24 = vrot.slane %v4670_v39, 4  ;;  %v2465_v40 = vsel %vm16462_vm14, %v2456_v11, %v2464_v56  ;;  %v2466_v51 = vrot.slane %v2464_v56, 4  ;;  %v4889_v16 = vrot.slane %v4887_v58, 6  ;;  %v8810_v8 = vpop.f32.mrf.mxu1 }
 0x2c9   :  { %v13736_v57 = vld [vmem:[#allocation2 + $0x49c] ss:$36 sps:$4 sm:$0xff]   ;;  %4813 = vst [vmem:[#allocation2 + $0x528] sm:$0xf] %v4671_v19  ;;  %v4892_v0 = vrot.slane %v4890_v33, 7  ;;  %v4896_v39 = vshrl.u32 %v12155_v7, 16 }
 0x2ca   :  { %v2549_v46 = vld [vmem:[%s20879_s0 + $0x14] sm:$0xf]  ;;  %v2550_v42 = vld [vmem:[%s20879_s0 + $0x18] sm:$0xf]  ;;  %9296 = vmatprep.mubr.bf16.mxu1 %v13736_v57  ;;  %2546 = vst [vmem:[#allocation2 + $0x4e4] sm:$0xf] %v2465_v40  ;;  %v4674_v11 = vsel %vm15161_vm10, %v4672_v24, %v20892_v20  ;;  %v2475_v57 = vsel %vm16462_vm14, %v2466_v51, %v2474_v14  ;;  %v17830_v8 = vpop.f32.mrf.mxu1 }
 0x2cb   :  { %v4899_v56 = vshll.u32 %v12155_v7, 16  ;;  %v4906_v58 = vshrl.u32 %v12156_v60, 16  ;;  %v2551_v33 = vld [vmem:[%s20879_s0 + $0x1c] sm:$0xf]  ;;  %9297 = vmatmul.mubr.bf16.gmra.mxu1 %v13734_v49  ;;  %v13737_v19 = vld [vmem:[#allocation2 + $0x9e8] ss:$36 sps:$4 sm:$0xff]   ;;  %v4893_v40 = vor.u32 %v4892_v0, %v4889_v16  ;;  %v8982_v7 = vpop.f32.mrf.mxu0 }
 0x2cc   :  { %v13739_v4 = vld [vmem:[#allocation2 + $0x9ec] ss:$36 sps:$4 sm:$0xff]   ;;  %4814 = vst [vmem:[#allocation2 + $0x54c] sm:$0xf] %v4674_v11  ;;  %v4909_v50 = vshll.u32 %v12156_v60, 16  ;;  %v21058_v41 = vld [vmem:[#allocation27_spill] sm:$0xff] }
 0x2cd   :  { %v17825_v24 = vadd.f32 %v17517_v37, %v21058_v41  ;;  %2547 = vst [vmem:[#allocation2 + $0x508] sm:$0xf] %v2475_v57  ;;  %v4898_v20 = vrot.slane %v4896_v39, 6  ;;  %v4901_v5 = vrot.slane %v4899_v56, 7  ;;  %v4908_v38 = vrot.slane %v4906_v58, 6  ;;  %21060 = vst [vmem:[#allocation71_spill] sm:$0xff] %v17830_v8  ;;  %9127 = vmatprep.mubr.bf16.mxu0 %v13739_v4  ;;  %v8813_v56 = vpop.f32.mrf.mxu1 }
 0x2ce   :  { %v2552_v49 = vld [vmem:[%s20879_s0 + $0x20] sm:$0xf]  ;;  %v4894_v14 = vrot.slane %v4893_v40, 4  ;;  %v4911_v51 = vrot.slane %v4909_v50, 7  ;;  %v11891_v60 = vrot.slane %v2548_v26, 11  ;;  %9128 = vmatmul.mubr.bf16.gmra.mxu0 %v13737_v19  ;;  %v2627_v16 = vrot.slane %v2549_v46, 7 }
 0x2cf   :  { %21059 = vst [vmem:[#allocation27_spill] sm:$0xff] %v17825_v24  ;;  %v4902_v37 = vor.u32 %v4901_v5, %v4898_v20  ;;  %v2630_v0 = vrot.slane %v2550_v42, 7  ;;  %v2633_v11 = vrot.slane %v2551_v33, 7  ;;  %v12119_v39 = vld [vmem:[%s20879_s0 + $0xc0] sm:$0xf]  ;;  %v21063_v58 = vld [vmem:[#allocation52_spill] sm:$0xff]  ;;  %v17854_v42 = vpop.f32.mrf.mxu0 }
 0x2d0   :  { %v17841_v4 = vadd.f32 %v17126_v45, %v21063_v58  ;;  %v17843_v50 = vor.u32 %v4911_v51, %v4908_v38  ;;  %v2636_v26 = vrot.slane %v2552_v49, 7  ;;  %v21064_v5 = vld [vmem:[#allocation28_spill] sm:$0xff]  ;;  %v17852_v46 = vld [vmem:[%s20879_s0 + $0xc4] sm:$0xf]  ;;  %v2628_v45 = vsel %vm17832_vm1, %v11891_v60, %v2627_v16 }
 0x2d1   :  { %v17847_v20 = vadd.f32 %v17544_v59, %v21064_v5  ;;  %v4903_v33 = vsel %vm16462_vm14, %v4894_v14, %v4902_v37  ;;  %v4904_v19 = vrot.slane %v4902_v37, 4  ;;  %v2629_v38 = vrot.slane %v2627_v16, 4  ;;  %v12157_v59 = vld [vmem:[%s20879_s0 + $0xc0] sm:$0xf]  ;;  %v12158_v57 = vld [vmem:[%s20879_s0 + $0xc4] sm:$0xf]  ;;  %v8987_v37 = vpop.f32.mrf.mxu0 }
 0x2d2   :  { %5290 = vst [vmem:[#allocation2 + $0x52c] sm:$0xf] %v4903_v33  ;;  %v2632_v40 = vrot.slane %v2630_v0, 4  ;;  %v2635_v7 = vrot.slane %v2633_v11, 4  ;;  %2770 = vst [vmem:[#allocation2 + $0x20] sm:$0xf] %v2628_v45 }
 0x2d3   :  { %21065 = vst [vmem:[#allocation52_spill] sm:$0xff] %v17847_v20  ;;  %v21066_v49 = vrot.slane %v17770_v61, 6  ;;  %v4676_v51 = vrot.slane %v12119_v39, 6  ;;  %v4913_v60 = vsel %vm16462_vm14, %v4904_v19, %v17843_v50  ;;  %v2631_v16 = vsel %vm17832_vm1, %v2629_v38, %v2630_v0  ;;  %v2553_v5 = vld [vmem:[%s20879_s0 + $0x24] sm:$0xf]  ;;  %v17887_v38 = vpop.f32.mrf.mxu0 }
 0x2d4   :  { %v4914_v58 = vrot.slane %v17843_v50, 4  ;;  %v2554_v61 = vld [vmem:[%s20879_s0 + $0x28] sm:$0xf]  ;;  %v13740_v39 = vld [vmem:[#allocation2 + $0x4e0] ss:$36 sps:$4 sm:$0xff]   ;;  %v2634_v19 = vsel %vm17832_vm1, %v2632_v40, %v2633_v11  ;;  %v2637_v0 = vsel %vm17832_vm1, %v2635_v7, %v2636_v26  ;;  %v4919_v37 = vshll.u32 %v12157_v59, 16 }
 0x2d5   :  { %v4675_v14 = vrot.slane %v21066_v49, 4  ;;  %v13742_v33 = vld [vmem:[#allocation2 + $0x4e4] ss:$36 sps:$4 sm:$0xff]   ;;  %5291 = vst [vmem:[#allocation2 + $0x550] sm:$0xf] %v4913_v60  ;;  %v4678_v45 = vrot.slane %v4676_v51, 4 }
 0x2d6   :  { %2771 = vst [vmem:[#allocation2 + $0x44] sm:$0xf] %v2631_v16  ;;  %2772 = vst [vmem:[#allocation2 + $0x68] sm:$0xf] %v2634_v19  ;;  %v4916_v49 = vshrl.u32 %v12157_v59, 16  ;;  %v4926_v56 = vshrl.u32 %v12158_v57, 16  ;;  %9304 = vmatprep.mubr.bf16.mxu1 %v13742_v33 }
 0x2d7   :  { %v4677_v50 = vsel %vm15161_vm10, %v4675_v14, %v4676_v51  ;;  %2773 = vst [vmem:[#allocation2 + $0x8c] sm:$0xf] %v2637_v0  ;;  %v4929_v60 = vshll.u32 %v12158_v57, 16  ;;  %v21067_v11 = vrot.slane %v17852_v46, 6  ;;  %v2638_v7 = vrot.slane %v2636_v26, 4  ;;  %v8990_v51 = vpop.f32.mrf.mxu0  ;;  %9305 = vmatmul.mubr.bf16.gmra.mxu1 %v13740_v39  ;;  %v21088_v24 = vld [vmem:[#allocation35_spill] sm:$0xff] }
 0x2d8   :  { %4815 = vst [vmem:[#allocation2 + $0x570] sm:$0xf] %v4677_v50  ;;  %v2639_v16 = vrot.slane %v2553_v5, 7  ;;  %v2642_v8 = vrot.slane %v2554_v61, 7  ;;  %v2555_v14 = vld [vmem:[%s20879_s0 + $0x2c] sm:$0xf] }
 0x2d9   :  { %v4680_v40 = vsel %vm15161_vm10, %v4678_v45, %v21067_v11  ;;  %v4918_v19 = vrot.slane %v4916_v49, 6  ;;  %v4921_v59 = vrot.slane %v4919_v37, 7  ;;  %v4928_v0 = vrot.slane %v4926_v56, 6  ;;  %v17899_v33 = vld [vmem:[%s20879_s0 + $0x30] sm:$0xf]  ;;  %v17907_v39 = vpop.f32.mrf.mxu0 }
 0x2da   :  { %4816 = vst [vmem:[#allocation2 + $0x594] sm:$0xf] %v4680_v40  ;;  %v4931_v57 = vrot.slane %v4929_v60, 7  ;;  %v21068_v50 = vld [vmem:[#allocation53_spill] sm:$0xff]  ;;  %v2640_v5 = vsel %vm17832_vm1, %v2638_v7, %v2639_v16  ;;  %v2641_v61 = vrot.slane %v2639_v16, 4  ;;  %v2644_v45 = vrot.slane %v2642_v8, 4 }
 0x2db   :  { %v17903_v26 = vadd.f32 %v17149_v62, %v21068_v50  ;;  %v4922_v49 = vor.u32 %v4921_v59, %v4918_v19  ;;  %2774 = vst [vmem:[#allocation2 + $0xb0] sm:$0xf] %v2640_v5  ;;  %v21069_v56 = vld [vmem:[#allocation29_spill] sm:$0xff]  ;;  %v2645_v11 = vrot.slane %v2555_v14, 7  ;;  %v12121_v62 = vld [vmem:[%s20879_s0 + $0xc8] sm:$0xf] }
 0x2dc   :  { %v17909_v37 = vor.u32 %v4931_v57, %v4928_v0  ;;  %v17913_v60 = vadd.f32 %v17591_v34, %v21069_v56  ;;  %v17921_v40 = vld [vmem:[%s20879_s0 + $0xcc] sm:$0xf]  ;;  %v21071_v7 = vld [vmem:[#allocation54_spill] sm:$0xff]  ;;  %v2643_v51 = vsel %vm17832_vm1, %v2641_v61, %v2642_v8  ;;  %v2648_v34 = vrot.slane %v17899_v33, 7  ;;  %v12159_v59 = vld [vmem:[%s20879_s0 + $0xc8] sm:$0xf]  ;;  %v8995_v57 = vpop.f32.mrf.mxu0 }
 0x2dd   :  { %v17925_v16 = vadd.f32 %v17193_v31, %v21071_v7  ;;  %v21072_v19 = vld [vmem:[#allocation30_spill] sm:$0xff]  ;;  %v12160_v0 = vld [vmem:[%s20879_s0 + $0xcc] sm:$0xf]  ;;  %v21074_v31 = vld [vmem:[#allocation55_spill] sm:$0xff]  ;;  %v4923_v33 = vsel %vm16462_vm14, %v4914_v58, %v4922_v49  ;;  %2775 = vst [vmem:[#allocation2 + $0xd4] sm:$0xf] %v2643_v51  ;;  %v2646_v61 = vsel %vm17832_vm1, %v2644_v45, %v2645_v11 }
 0x2de   :  { %21070 = vst [vmem:[#allocation28_spill] sm:$0xff] %v17913_v60  ;;  %v17932_v14 = vadd.f32 %v17624_v15, %v21072_v19  ;;  %v17942_v50 = vadd.f32 %v17223_v22, %v21074_v31  ;;  %v13743_v8 = vld [vmem:[#allocation2 + $0x528] ss:$36 sps:$4 sm:$0xff]   ;;  %v4924_v15 = vrot.slane %v4922_v49, 4  ;;  %v21075_v56 = vld [vmem:[#allocation3_spill] sm:$0xff]  ;;  %v21085_v60 = vld [vmem:[#allocation34_spill] sm:$0xff] }
 0x2df   :  { %v13745_v5 = vld [vmem:[#allocation2 + $0x52c] ss:$36 sps:$4 sm:$0xff]   ;;  %v17950_v7 = vadd.f32 %v17254_v32, %v21075_v56  ;;  %v13746_v22 = vld [vmem:[#allocation2 + $0x20] ss:$36 sps:$4 sm:$0xff]   ;;  %5292 = vst [vmem:[#allocation2 + $0x574] sm:$0xf] %v4923_v33  ;;  %v17967_v32 = vpop.f32.mrf.mxu0 }
 0x2e0   :  { %21073 = vst [vmem:[#allocation53_spill] sm:$0xff] %v17932_v14  ;;  %v21076_v19 = vld [vmem:[#allocation4_spill] sm:$0xff]  ;;  %2776 = vst [vmem:[#allocation2 + $0xf8] sm:$0xf] %v2646_v61  ;;  %v2557_v58 = vld [vmem:[%s20879_s0 + $0x34] sm:$0xf]  ;;  %9312 = vmatprep.mubr.bf16.mxu1 %v13745_v5  ;;  %v4933_v33 = vsel %vm16462_vm14, %v4924_v15, %v17909_v37  ;;  %13044 = vmatprep.mubr.bf16.mxu0 %v13746_v22 }
 0x2e1   :  { %v17954_v57 = vadd.f32 %v17285_v44, %v21076_v19  ;;  %v21077_v49 = vld [vmem:[#allocation31_spill] sm:$0xff]  ;;  %v21079_v45 = vld [vmem:[#allocation32_spill] sm:$0xff]  ;;  %v2647_v61 = vrot.slane %v2645_v11, 4  ;;  %v21081_v56 = vrot.slane %v17852_v46, 6  ;;  %5293 = vst [vmem:[#allocation2 + $0x598] sm:$0xf] %v4933_v33  ;;  %v8998_v11 = vpop.f32.mrf.mxu0  ;;  %9313 = vmatmul.mubr.bf16.gmra.mxu1 %v13743_v8 }
 0x2e2   :  { %v17961_v51 = vadd.f32 %v17657_v53, %v21077_v49  ;;  %v17965_v31 = vadd.f32 %v17690_v2, %v21079_v45  ;;  %v13747_v44 = vld [vmem:[#allocation2 + $0x68] ss:$36 sps:$4 sm:$0xff]   ;;  %v2558_v53 = vld [vmem:[%s20879_s0 + $0x38] sm:$0xf]  ;;  %v21082_v49 = vld [vmem:[#allocation33_spill] sm:$0xff]  ;;  %v4682_v5 = vrot.slane %v12121_v62, 6 }
 0x2e3   :  { %v4681_v19 = vrot.slane %v21081_v56, 4  ;;  %v17979_v2 = vadd.f32 %v17719_v17, %v21082_v49  ;;  %v4685_v45 = vrot.slane %v17921_v40, 6  ;;  %v4936_v15 = vshrl.u32 %v12159_v59, 16  ;;  %v2559_v46 = vld [vmem:[%s20879_s0 + $0x3c] sm:$0xf]  ;;  %13045 = vmatmul.mubr.bf16.vlgmr.msra.gmra.mxu0 %v13747_v44  ;;  %v21084_v14 = vld [vmem:[#allocation5_spill] sm:$0xff] }
 0x2e4   :  { %21078 = vst [vmem:[#allocation29_spill] sm:$0xff] %v17961_v51  ;;  %21080 = vst [vmem:[#allocation54_spill] sm:$0xff] %v17965_v31  ;;  %v4934_v31 = vrot.slane %v17909_v37, 4  ;;  %v2649_v56 = vsel %vm17832_vm1, %v2647_v61, %v2648_v34  ;;  %v4939_v17 = vshll.u32 %v12159_v59, 16  ;;  %v4946_v49 = vshrl.u32 %v12160_v0, 16  ;;  %v17993_v37 = vpop.f32.mrf.mxu1 }
 0x2e5   :  { %21083 = vst [vmem:[#allocation30_spill] sm:$0xff] %v17979_v2  ;;  %v4949_v22 = vshll.u32 %v12160_v0, 16  ;;  %v17991_v62 = vld [vmem:[%s20879_s0 + $0x40] sm:$0xf]  ;;  %2777 = vst [vmem:[#allocation2 + $0x11c] sm:$0xf] %v2649_v56  ;;  %v4683_v40 = vsel %vm15161_vm10, %v4681_v19, %v4682_v5  ;;  %v18007_v19 = vadd.f32 %v17320_v29, %v21084_v14 }
 0x2e6   :  { %v4684_v33 = vrot.slane %v4682_v5, 4  ;;  %v4938_v8 = vrot.slane %v4936_v15, 6  ;;  %v2650_v44 = vrot.slane %v2648_v34, 4  ;;  %4817 = vst [vmem:[#allocation2 + $0x5b8] sm:$0xf] %v4683_v40  ;;  %v4941_v11 = vrot.slane %v4939_v17, 7  ;;  %v9172_v56 = vpop.f32.mrf.mxu1  ;;  %v18011_v17 = vpop.f32.mrf.mxu0 }
 0x2e7   :  { %v4948_v61 = vrot.slane %v4946_v49, 6  ;;  %v4951_v59 = vrot.slane %v4949_v22, 7  ;;  %v2651_v2 = vrot.slane %v2557_v58, 7  ;;  %v12123_v0 = vld [vmem:[%s20879_s0 + $0xd0] sm:$0xf]  ;;  %v2654_v15 = vrot.slane %v2558_v53, 7 }
 0x2e8   :  { %v18003_v51 = vld [vmem:[%s20879_s0 + $0xd4] sm:$0xf]  ;;  %v4686_v5 = vsel %vm15161_vm10, %v4684_v33, %v4685_v45  ;;  %v2657_v58 = vrot.slane %v2559_v46, 7  ;;  %v4942_v49 = vor.u32 %v4941_v11, %v4938_v8  ;;  %v12161_v29 = vld [vmem:[%s20879_s0 + $0xd0] sm:$0xf]  ;;  %v18020_v14 = vpop.f32.mrf.mxu1  ;;  %v2660_v46 = vrot.slane %v17991_v62, 7  ;;  %v9003_v11 = vpop.f32.mrf.mxu0 }
 0x2e9   :  { %v13751_v34 = vld [vmem:[#allocation2 + $0xb0] ss:$36 sps:$4 sm:$0xff]   ;;  %4818 = vst [vmem:[#allocation2 + $0x5dc] sm:$0xf] %v4686_v5  ;;  %v18013_v22 = vor.u32 %v4951_v59, %v4948_v61  ;;  %v2652_v40 = vsel %vm17832_vm1, %v2650_v44, %v2651_v2  ;;  %v2653_v56 = vrot.slane %v2651_v2, 4  ;;  %v2656_v33 = vrot.slane %v2654_v15, 4 }
 0x2ea   :  { %13048 = vmatprep.mubr.bf16.mxu0 %v13751_v34  ;;  %2778 = vst [vmem:[#allocation2 + $0x140] sm:$0xf] %v2652_v40  ;;  %v2659_v53 = vrot.slane %v2657_v58, 4  ;;  %v4687_v5 = vrot.slane %v4685_v45, 4  ;;  %v12162_v8 = vld [vmem:[%s20879_s0 + $0xd4] sm:$0xf]  ;;  %v4943_v61 = vsel %vm16462_vm14, %v4934_v31, %v4942_v49  ;;  %v18032_v40 = vadd.f32 %v17748_v3, %v21085_v60  ;;  %v9175_v62 = vpop.f32.mrf.mxu1  ;;  %v18045_v60 = vpop.f32.mrf.mxu0 }
 0x2eb   :  { %v13748_v44 = vld [vmem:[#allocation2 + $0x570] ss:$36 sps:$4 sm:$0xff]   ;;  %v4944_v59 = vrot.slane %v4942_v49, 4  ;;  %v2655_v34 = vsel %vm17832_vm1, %v2653_v56, %v2654_v15  ;;  %5294 = vst [vmem:[#allocation2 + $0x5bc] sm:$0xf] %v4943_v61  ;;  %v2658_v45 = vsel %vm17832_vm1, %v2656_v33, %v2657_v58  ;;  %v4688_v20 = vrot.slane %v12123_v0, 6 }
 0x2ec   :  { %v13750_v2 = vld [vmem:[#allocation2 + $0x574] ss:$36 sps:$4 sm:$0xff]   ;;  %21086 = vst [vmem:[#allocation55_spill] sm:$0xff] %v18032_v40  ;;  %2779 = vst [vmem:[#allocation2 + $0x164] sm:$0xf] %v2655_v34  ;;  %v2661_v11 = vsel %vm17832_vm1, %v2659_v53, %v2660_v46  ;;  %v4691_v31 = vrot.slane %v18003_v51, 6  ;;  %v9006_v62 = vpop.f32.mrf.mxu0 }
 0x2ed   :  { %v2561_v15 = vld [vmem:[%s20879_s0 + $0x44] sm:$0xf]  ;;  %v2562_v3 = vld [vmem:[%s20879_s0 + $0x48] sm:$0xf]  ;;  %v21087_v49 = vld [vmem:[#allocation6_spill] sm:$0xff]  ;;  %9320 = vmatprep.mubr.bf16.mxu1 %v13750_v2  ;;  %v4953_v51 = vsel %vm16462_vm14, %v4944_v59, %v18013_v22  ;;  %v4954_v0 = vrot.slane %v18013_v22, 4  ;;  %v4689_v53 = vsel %vm15161_vm10, %v4687_v5, %v4688_v20 }
 0x2ee   :  { %v18049_v56 = vadd.f32 %v17355_v13, %v21087_v49  ;;  %v13752_v58 = vld [vmem:[#allocation2 + $0xf8] ss:$36 sps:$4 sm:$0xff]   ;;  %2780 = vst [vmem:[#allocation2 + $0x188] sm:$0xf] %v2658_v45  ;;  %2781 = vst [vmem:[#allocation2 + $0x1ac] sm:$0xf] %v2661_v11  ;;  %9321 = vmatmul.mubr.bf16.gmra.mxu1 %v13748_v44 }
 0x2ef   :  { %v4956_v33 = vshrl.u32 %v12161_v29, 16  ;;  %5295 = vst [vmem:[#allocation2 + $0x5e0] sm:$0xf] %v4953_v51  ;;  %v4690_v61 = vrot.slane %v4688_v20, 4  ;;  %v4959_v34 = vshll.u32 %v12161_v29, 16  ;;  %v4966_v13 = vshrl.u32 %v12162_v8, 16  ;;  %13049 = vmatmul.mubr.bf16.gmra.mxu0 %v13752_v58  ;;  %v18067_v51 = vpop.f32.mrf.mxu1 }
 0x2f0   :  { %v2563_v2 = vld [vmem:[%s20879_s0 + $0x4c] sm:$0xf]  ;;  %4819 = vst [vmem:[#allocation2 + $0x600] sm:$0xf] %v4689_v53  ;;  %v4969_v45 = vshll.u32 %v12162_v8, 16  ;;  %v2662_v11 = vrot.slane %v2660_v46, 4 }
 0x2f1   :  { %v4958_v59 = vrot.slane %v4956_v33, 6  ;;  %v2663_v22 = vrot.slane %v2561_v15, 7  ;;  %v18063_v44 = vld [vmem:[%s20879_s0 + $0x50] sm:$0xf]  ;;  %v4692_v20 = vsel %vm15161_vm10, %v4690_v61, %v4691_v31  ;;  %v4961_v29 = vrot.slane %v4959_v34, 7 }
 0x2f2   :  { %v4968_v5 = vrot.slane %v4966_v13, 6  ;;  %v2666_v49 = vrot.slane %v2562_v3, 7  ;;  %4820 = vst [vmem:[#allocation2 + $0x624] sm:$0xf] %v4692_v20  ;;  %v4971_v58 = vrot.slane %v4969_v45, 7  ;;  %v2669_v15 = vrot.slane %v2563_v2, 7  ;;  %v9180_v45 = vpop.f32.mrf.mxu1 }
 0x2f3   :  { %v2664_v8 = vsel %vm17832_vm1, %v2662_v11, %v2663_v22  ;;  %v2665_v46 = vrot.slane %v2663_v22, 4  ;;  %v12125_v33 = vld [vmem:[%s20879_s0 + $0xd8] sm:$0xf]  ;;  %v18077_v53 = vld [vmem:[%s20879_s0 + $0xdc] sm:$0xf]  ;;  %v4962_v61 = vor.u32 %v4961_v29, %v4958_v59  ;;  %v2672_v13 = vrot.slane %v18063_v44, 7  ;;  %v18094_v29 = vpop.f32.mrf.mxu0 }
 0x2f4   :  { %v12163_v3 = vld [vmem:[%s20879_s0 + $0xd8] sm:$0xf]  ;;  %v2668_v34 = vrot.slane %v2666_v49, 4  ;;  %2782 = vst [vmem:[#allocation2 + $0x1d0] sm:$0xf] %v2664_v8  ;;  %v4693_v62 = vrot.slane %v4691_v31, 4  ;;  %v18086_v22 = vor.u32 %v4971_v58, %v4968_v5  ;;  %v18092_v59 = vadd.f32 %v17782_v9, %v21088_v24  ;;  %v18111_v58 = vpop.f32.mrf.mxu1 }
 0x2f5   :  { %v12164_v2 = vld [vmem:[%s20879_s0 + $0xdc] sm:$0xf]  ;;  %v13756_v11 = vld [vmem:[#allocation2 + $0x140] ss:$36 sps:$4 sm:$0xff]   ;;  %v2667_v20 = vsel %vm17832_vm1, %v2665_v46, %v2666_v49  ;;  %v2671_v40 = vrot.slane %v2669_v15, 4  ;;  %v4963_v45 = vsel %vm16462_vm14, %v4954_v0, %v4962_v61  ;;  %v21091_v9 = vld [vmem:[#allocation36_spill] sm:$0xff] }
 0x2f6   :  { %21089 = vst [vmem:[#allocation3_spill] sm:$0xff] %v18092_v59  ;;  %v21090_v44 = vld [vmem:[#allocation7_spill] sm:$0xff]  ;;  %v13757_v8 = vld [vmem:[#allocation2 + $0x188] ss:$36 sps:$4 sm:$0xff]   ;;  %2783 = vst [vmem:[#allocation2 + $0x1f4] sm:$0xf] %v2667_v20  ;;  %v2670_v5 = vsel %vm17832_vm1, %v2668_v34, %v2669_v15  ;;  %v18109_v24 = vadd.f32 %v17812_v47, %v21091_v9  ;;  %13052 = vmatprep.mubr.bf16.mxu0 %v13756_v11 }
 0x2f7   :  { %v18098_v31 = vadd.f32 %v17399_v63, %v21090_v44  ;;  %v2565_v49 = vld [vmem:[%s20879_s0 + $0x54] sm:$0xf]  ;;  %v21093_v63 = vld [vmem:[#allocation8_spill] sm:$0xff]  ;;  %v13753_v44 = vld [vmem:[#allocation2 + $0x5b8] ss:$36 sps:$4 sm:$0xff]   ;;  %v4964_v20 = vrot.slane %v4962_v61, 4  ;;  %v2673_v15 = vsel %vm17832_vm1, %v2671_v40, %v2672_v13  ;;  %13053 = vmatmul.mubr.bf16.gmra.mxu0 %v13757_v8 }
 0x2f8   :  { %21092 = vst [vmem:[#allocation4_spill] sm:$0xff] %v18109_v24  ;;  %v18115_v46 = vadd.f32 %v17432_v55, %v21093_v63  ;;  %v13755_v0 = vld [vmem:[#allocation2 + $0x5bc] ss:$36 sps:$4 sm:$0xff]   ;;  %5296 = vst [vmem:[#allocation2 + $0x604] sm:$0xf] %v4963_v45  ;;  %v21095_v34 = vld [vmem:[#allocation37_spill] sm:$0xff]  ;;  %v9011_v24 = vpop.f32.mrf.mxu0  ;;  %v9183_v45 = vpop.f32.mrf.mxu1 }
 0x2f9   :  { %2784 = vst [vmem:[#allocation2 + $0x218] sm:$0xf] %v2670_v5  ;;  %v2566_v47 = vld [vmem:[%s20879_s0 + $0x58] sm:$0xf]  ;;  %v18124_v9 = vadd.f32 %v17854_v42, %v21095_v34  ;;  %2785 = vst [vmem:[#allocation2 + $0x23c] sm:$0xf] %v2673_v15  ;;  %9328 = vmatprep.mubr.bf16.mxu1 %v13755_v0  ;;  %v4973_v42 = vsel %vm16462_vm14, %v4964_v20, %v18086_v22 }
 0x2fa   :  { %21094 = vst [vmem:[#allocation31_spill] sm:$0xff] %v18115_v46  ;;  %v4694_v55 = vrot.slane %v12125_v33, 6  ;;  %v4697_v63 = vrot.slane %v18077_v53, 6  ;;  %v4974_v61 = vrot.slane %v18086_v22, 4  ;;  %v4976_v11 = vshrl.u32 %v12163_v3, 16  ;;  %v18139_v53 = vpop.f32.mrf.mxu0  ;;  %9329 = vmatmul.mubr.bf16.gmra.mxu1 %v13753_v44 }
 0x2fb   :  { %21096 = vst [vmem:[#allocation32_spill] sm:$0xff] %v18124_v9  ;;  %v2567_v40 = vld [vmem:[%s20879_s0 + $0x5c] sm:$0xf]  ;;  %v4979_v5 = vshll.u32 %v12163_v3, 16  ;;  %v4986_v24 = vshrl.u32 %v12164_v2, 16  ;;  %v4989_v15 = vshll.u32 %v12164_v2, 16 }
 0x2fc   :  { %v18137_v33 = vld [vmem:[%s20879_s0 + $0x60] sm:$0xf]  ;;  %5297 = vst [vmem:[#allocation2 + $0x628] sm:$0xf] %v4973_v42  ;;  %v4695_v0 = vsel %vm15161_vm10, %v4693_v62, %v4694_v55  ;;  %v4696_v8 = vrot.slane %v4694_v55, 4  ;;  %v4978_v34 = vrot.slane %v4976_v11, 6  ;;  %v9014_v59 = vpop.f32.mrf.mxu0 }
 0x2fd   :  { %v2674_v45 = vrot.slane %v2672_v13, 4  ;;  %v12127_v3 = vld [vmem:[%s20879_s0 + $0xe0] sm:$0xf]  ;;  %4821 = vst [vmem:[#allocation2 + $0x648] sm:$0xf] %v4695_v0  ;;  %v4981_v2 = vrot.slane %v4979_v5, 7 }
 0x2fe   :  { %v4988_v22 = vrot.slane %v4986_v24, 6  ;;  %v4991_v20 = vrot.slane %v4989_v15, 7  ;;  %v2675_v9 = vrot.slane %v2565_v49, 7  ;;  %v4698_v44 = vsel %vm15161_vm10, %v4696_v8, %v4697_v63  ;;  %v18152_v13 = vld [vmem:[%s20879_s0 + $0xe4] sm:$0xf]  ;;  %v18164_v24 = vpop.f32.mrf.mxu1  ;;  %v21097_v15 = vld [vmem:[#allocation9_spill] sm:$0xff] }
 0x2ff   :  { %v2678_v42 = vrot.slane %v2566_v47, 7  ;;  %v2681_v46 = vrot.slane %v2567_v40, 7  ;;  %v2684_v62 = vrot.slane %v18137_v33, 7  ;;  %v13761_v55 = vld [vmem:[#allocation2 + $0x1d0] ss:$36 sps:$4 sm:$0xff]   ;;  %v4982_v11 = vor.u32 %v4981_v2, %v4978_v34 }
 0x300   :  { %4822 = vst [vmem:[#allocation2 + $0x66c] sm:$0xf] %v4698_v44  ;;  %v18154_v5 = vor.u32 %v4991_v20, %v4988_v22  ;;  %v2676_v59 = vsel %vm17832_vm1, %v2674_v45, %v2675_v9  ;;  %v2677_v49 = vrot.slane %v2675_v9, 4  ;;  %v12165_v47 = vld [vmem:[%s20879_s0 + $0xe0] sm:$0xf]  ;;  %v18168_v33 = vadd.f32 %v17465_v52, %v21097_v15  ;;  %13056 = vmatprep.mubr.bf16.mxu0 %v13761_v55  ;;  %v9188_v44 = vpop.f32.mrf.mxu1 }
 0x301   :  { %v12166_v40 = vld [vmem:[%s20879_s0 + $0xe4] sm:$0xf]  ;;  %v2680_v0 = vrot.slane %v2678_v42, 4  ;;  %2786 = vst [vmem:[#allocation2 + $0x260] sm:$0xf] %v2676_v59  ;;  %v2683_v8 = vrot.slane %v2681_v46, 4  ;;  %v4983_v45 = vsel %vm16462_vm14, %v4974_v61, %v4982_v11 }
 0x302   :  { %21098 = vst [vmem:[#allocation33_spill] sm:$0xff] %v18168_v33  ;;  %v4699_v34 = vrot.slane %v4697_v63, 4  ;;  %v13762_v9 = vld [vmem:[#allocation2 + $0x218] ss:$36 sps:$4 sm:$0xff]   ;;  %v4984_v2 = vrot.slane %v4982_v11, 4  ;;  %v2679_v22 = vsel %vm17832_vm1, %v2677_v49, %v2678_v42  ;;  %v4700_v20 = vrot.slane %v12127_v3, 6  ;;  %v18186_v42 = vpop.f32.mrf.mxu0 }
 0x303   :  { %5298 = vst [vmem:[#allocation2 + $0x64c] sm:$0xf] %v4983_v45  ;;  %2787 = vst [vmem:[#allocation2 + $0x284] sm:$0xf] %v2679_v22  ;;  %v2682_v52 = vsel %vm17832_vm1, %v2680_v0, %v2681_v46  ;;  %v2685_v59 = vsel %vm17832_vm1, %v2683_v8, %v2684_v62  ;;  %v4703_v63 = vrot.slane %v18152_v13, 6  ;;  %v4994_v55 = vrot.slane %v18154_v5, 4  ;;  %13057 = vmatmul.mubr.bf16.gmra.mxu0 %v13762_v9  ;;  %v18197_v45 = vpop.f32.mrf.mxu1 }
 0x304   :  { %v2569_v61 = vld [vmem:[%s20879_s0 + $0x64] sm:$0xf]  ;;  %v2570_v3 = vld [vmem:[%s20879_s0 + $0x68] sm:$0xf]  ;;  %v4993_v46 = vsel %vm16462_vm14, %v4984_v2, %v18154_v5  ;;  %2788 = vst [vmem:[#allocation2 + $0x2a8] sm:$0xf] %v2682_v52  ;;  %v4701_v13 = vsel %vm15161_vm10, %v4699_v34, %v4700_v20  ;;  %v9019_v2 = vpop.f32.mrf.mxu0 }
 0x305   :  { %v13758_v11 = vld [vmem:[#allocation2 + $0x600] ss:$36 sps:$4 sm:$0xff]   ;;  %2789 = vst [vmem:[#allocation2 + $0x2cc] sm:$0xf] %v2685_v59  ;;  %v4702_v15 = vrot.slane %v4700_v20, 4  ;;  %v21099_v0 = vld [vmem:[#allocation38_spill] sm:$0xff] }
 0x306   :  { %v13760_v49 = vld [vmem:[#allocation2 + $0x604] ss:$36 sps:$4 sm:$0xff]   ;;  %v18195_v8 = vadd.f32 %v17887_v38, %v21099_v0  ;;  %5299 = vst [vmem:[#allocation2 + $0x670] sm:$0xf] %v4993_v46  ;;  %4823 = vst [vmem:[#allocation2 + $0x690] sm:$0xf] %v4701_v13  ;;  %v18209_v2 = vpop.f32.mrf.mxu0 }
 0x307   :  { %v4996_v22 = vshrl.u32 %v12165_v47, 16  ;;  %v4999_v9 = vshll.u32 %v12165_v47, 16  ;;  %v5006_v44 = vshrl.u32 %v12166_v40, 16  ;;  %v5009_v33 = vshll.u32 %v12166_v40, 16  ;;  %v2571_v5 = vld [vmem:[%s20879_s0 + $0x6c] sm:$0xf]  ;;  %9336 = vmatprep.mubr.bf16.mxu1 %v13760_v49  ;;  %v9191_v47 = vpop.f32.mrf.mxu1 }
 0x308   :  { %v4704_v34 = vsel %vm15161_vm10, %v4702_v15, %v4703_v63  ;;  %v2686_v20 = vrot.slane %v2684_v62, 4  ;;  %v2687_v38 = vrot.slane %v2569_v61, 7  ;;  %v2690_v52 = vrot.slane %v2570_v3, 7  ;;  %v18207_v59 = vld [vmem:[%s20879_s0 + $0x70] sm:$0xf]  ;;  %9337 = vmatmul.mubr.bf16.gmra.mxu1 %v13758_v11 }
 0x309   :  { %4824 = vst [vmem:[#allocation2 + $0x6b4] sm:$0xf] %v4704_v34  ;;  %v4998_v40 = vrot.slane %v4996_v22, 6  ;;  %v5001_v46 = vrot.slane %v4999_v9, 7  ;;  %v5008_v13 = vrot.slane %v5006_v44, 6  ;;  %v5011_v0 = vrot.slane %v5009_v33, 7 }
 0x30a   :  { %v2688_v49 = vsel %vm17832_vm1, %v2686_v20, %v2687_v38  ;;  %v2689_v62 = vrot.slane %v2687_v38, 4  ;;  %v2692_v61 = vrot.slane %v2690_v52, 4  ;;  %v2693_v3 = vrot.slane %v2571_v5, 7  ;;  %v12129_v15 = vld [vmem:[%s20879_s0 + $0xe8] sm:$0xf]  ;;  %v9022_v20 = vpop.f32.mrf.mxu0 }
 0x30b   :  { %v18219_v11 = vld [vmem:[%s20879_s0 + $0xec] sm:$0xf]  ;;  %v5002_v22 = vor.u32 %v5001_v46, %v4998_v40  ;;  %v18221_v9 = vor.u32 %v5011_v0, %v5008_v13  ;;  %2790 = vst [vmem:[#allocation2 + $0x2f0] sm:$0xf] %v2688_v49  ;;  %v2696_v33 = vrot.slane %v18207_v59, 7  ;;  %v4705_v44 = vrot.slane %v4703_v63, 4 }
 0x30c   :  { %v12167_v5 = vld [vmem:[%s20879_s0 + $0xe8] sm:$0xf]  ;;  %v12168_v34 = vld [vmem:[%s20879_s0 + $0xec] sm:$0xf]  ;;  %v13766_v38 = vld [vmem:[#allocation2 + $0x260] ss:$36 sps:$4 sm:$0xff]   ;;  %v2691_v47 = vsel %vm17832_vm1, %v2689_v62, %v2690_v52  ;;  %v2694_v40 = vsel %vm17832_vm1, %v2692_v61, %v2693_v3  ;;  %v18249_v62 = vadd.f32 %v17967_v32, %v17310_v36  ;;  %v18264_v36 = vadd.f32 %v18011_v17, %v17314_v27 }
 0x30d   :  { %v2695_v46 = vrot.slane %v2693_v3, 4  ;;  %v21100_v13 = vld [vmem:[#allocation40_spill] sm:$0xff]  ;;  %v5003_v0 = vsel %vm16462_vm14, %v4994_v55, %v5002_v22  ;;  %2791 = vst [vmem:[#allocation2 + $0x314] sm:$0xf] %v2691_v47  ;;  %2792 = vst [vmem:[#allocation2 + $0x338] sm:$0xf] %v2694_v40  ;;  %v18255_v3 = vpop.f32.mrf.mxu1  ;;  %13060 = vmatprep.mubr.bf16.mxu0 %v13766_v38 }
 0x30e   :  { %v18236_v63 = vadd.f32 %v17907_v39, %v21100_v13  ;;  %v13767_v59 = vld [vmem:[#allocation2 + $0x2a8] ss:$36 sps:$4 sm:$0xff]   ;;  %v2573_v49 = vld [vmem:[%s20879_s0 + $0x74] sm:$0xf]  ;;  %21103 = vst [vmem:[#allocation34_spill] sm:$0xff] %v18249_v62  ;;  %v5004_v40 = vrot.slane %v5002_v22, 4 }
 0x30f   :  { %v21101_v20 = vld [vmem:[#allocation56_spill] sm:$0xff]  ;;  %v21104_v39 = vld [vmem:[#allocation57_spill] sm:$0xff]  ;;  %5300 = vst [vmem:[#allocation2 + $0x694] sm:$0xf] %v5003_v0  ;;  %v2697_v13 = vsel %vm17832_vm1, %v2695_v46, %v2696_v33  ;;  %21106 = vst [vmem:[#allocation35_spill] sm:$0xff] %v18264_v36  ;;  %13061 = vmatmul.mubr.bf16.gmra.mxu0 %v13767_v59  ;;  %v4706_v38 = vrot.slane %v12129_v15, 6 }
 0x310   :  { %v18245_v52 = vadd.f32 %v17993_v37, %v21101_v20  ;;  %v18253_v61 = vadd.f32 %v18020_v14, %v21104_v39  ;;  %v13763_v55 = vld [vmem:[#allocation2 + $0x648] ss:$36 sps:$4 sm:$0xff]   ;;  %v2574_v37 = vld [vmem:[%s20879_s0 + $0x78] sm:$0xf]  ;;  %2793 = vst [vmem:[#allocation2 + $0x35c] sm:$0xf] %v2697_v13  ;;  %v9196_v39 = vpop.f32.mrf.mxu1  ;;  %v5013_v27 = vsel %vm16462_vm14, %v5004_v40, %v18221_v9 }
 0x311   :  { %v13765_v47 = vld [vmem:[#allocation2 + $0x64c] ss:$36 sps:$4 sm:$0xff]   ;;  %v21107_v32 = vld [vmem:[#allocation58_spill] sm:$0xff]  ;;  %v4709_v22 = vrot.slane %v18219_v11, 6  ;;  %v5014_v0 = vrot.slane %v18221_v9, 4  ;;  %v5016_v46 = vshrl.u32 %v12167_v5, 16  ;;  %v4707_v59 = vsel %vm15161_vm10, %v4705_v44, %v4706_v38 }
 0x312   :  { %21102 = vst [vmem:[#allocation5_spill] sm:$0xff] %v18245_v52  ;;  %21105 = vst [vmem:[#allocation6_spill] sm:$0xff] %v18253_v61  ;;  %v18268_v14 = vadd.f32 %v18067_v51, %v21107_v32  ;;  %v2575_v20 = vld [vmem:[%s20879_s0 + $0x7c] sm:$0xf]  ;;  %v18275_v61 = vpop.f32.mrf.mxu0  ;;  %9344 = vmatprep.mubr.bf16.mxu1 %v13765_v47  ;;  %v5019_v17 = vshll.u32 %v12167_v5, 16  ;;  %v5026_v51 = vshrl.u32 %v12168_v34, 16  ;;  %v18290_v5 = vpop.f32.mrf.mxu1 }
 0x313   :  { %v5029_v15 = vshll.u32 %v12168_v34, 16  ;;  %v18283_v11 = vld [vmem:[%s20879_s0 + $0x80] sm:$0xf]  ;;  %9345 = vmatmul.mubr.bf16.gmra.mxu1 %v13763_v55  ;;  %5301 = vst [vmem:[#allocation2 + $0x6b8] sm:$0xf] %v5013_v27  ;;  %v4708_v13 = vrot.slane %v4706_v38, 4 }
 0x314   :  { %21108 = vst [vmem:[#allocation7_spill] sm:$0xff] %v18268_v14  ;;  %v5018_v32 = vrot.slane %v5016_v46, 6  ;;  %v2698_v47 = vrot.slane %v2696_v33, 4  ;;  %v12131_v9 = vld [vmem:[%s20879_s0 + $0xf0] sm:$0xf]  ;;  %v9027_v34 = vpop.f32.mrf.mxu0  ;;  %v5021_v40 = vrot.slane %v5019_v17, 7  ;;  %v9199_v46 = vpop.f32.mrf.mxu1 }
 0x315   :  { %4825 = vst [vmem:[#allocation2 + $0x6d8] sm:$0xf] %v4707_v59  ;;  %v5028_v39 = vrot.slane %v5026_v51, 6  ;;  %v5031_v36 = vrot.slane %v5029_v15, 7  ;;  %v2699_v62 = vrot.slane %v2573_v49, 7  ;;  %v4710_v55 = vsel %vm15161_vm10, %v4708_v13, %v4709_v22  ;;  %v21109_v46 = vld [vmem:[#allocation59_spill] sm:$0xff] }
 0x316   :  { %v2702_v27 = vrot.slane %v2574_v37, 7  ;;  %v2705_v44 = vrot.slane %v2575_v20, 7  ;;  %v2708_v38 = vrot.slane %v18283_v11, 7  ;;  %v18298_v33 = vld [vmem:[%s20879_s0 + $0xf4] sm:$0xf]  ;;  %v18300_v52 = vpop.f32.mrf.mxu0  ;;  %v5022_v17 = vor.u32 %v5021_v40, %v5018_v32 }
 0x317   :  { %v13771_v59 = vld [vmem:[#allocation2 + $0x2f0] ss:$36 sps:$4 sm:$0xff]   ;;  %4826 = vst [vmem:[#allocation2 + $0x6fc] sm:$0xf] %v4710_v55  ;;  %v18302_v51 = vor.u32 %v5031_v36, %v5028_v39  ;;  %v2700_v49 = vsel %vm17832_vm1, %v2698_v47, %v2699_v62  ;;  %v18314_v15 = vadd.f32 %v18045_v60, %v17393_v18  ;;  %v2701_v11 = vrot.slane %v2699_v62, 4 }
 0x318   :  { %v12169_v37 = vld [vmem:[%s20879_s0 + $0xf0] sm:$0xf]  ;;  %v12170_v20 = vld [vmem:[%s20879_s0 + $0xf4] sm:$0xf]  ;;  %v2704_v13 = vrot.slane %v2702_v27, 4  ;;  %v2707_v36 = vrot.slane %v2705_v44, 4  ;;  %v9030_v34 = vpop.f32.mrf.mxu0  ;;  %13064 = vmatprep.mubr.bf16.mxu0 %v13771_v59  ;;  %v5023_v40 = vsel %vm16462_vm14, %v5014_v0, %v5022_v17  ;;  %v18320_v14 = vadd.f32 %v18111_v58, %v21109_v46 }
 0x319   :  { %2794 = vst [vmem:[#allocation2 + $0x380] sm:$0xf] %v2700_v49  ;;  %v4711_v32 = vrot.slane %v4709_v22, 4  ;;  %v13772_v47 = vld [vmem:[#allocation2 + $0x338] ss:$36 sps:$4 sm:$0xff]   ;;  %v5024_v39 = vrot.slane %v5022_v17, 4  ;;  %v2703_v18 = vsel %vm17832_vm1, %v2701_v11, %v2702_v27  ;;  %v18344_v49 = vadd.f32 %v18094_v29, %v17425_v54 }
 0x31a   :  { %v4712_v55 = vrot.slane %v12131_v9, 6  ;;  %5302 = vst [vmem:[#allocation2 + $0x6dc] sm:$0xf] %v5023_v40  ;;  %v2706_v60 = vsel %vm17832_vm1, %v2704_v13, %v2705_v44  ;;  %v2709_v62 = vsel %vm17832_vm1, %v2707_v36, %v2708_v38  ;;  %v4715_v22 = vrot.slane %v18298_v33, 6  ;;  %v2577_v0 = vld [vmem:[%s20879_s0 + $0x84] sm:$0xf]  ;;  %v18335_v9 = vpop.f32.mrf.mxu1  ;;  %13065 = vmatmul.mubr.bf16.gmra.mxu0 %v13772_v47 }
 0x31b   :  { %v2578_v58 = vld [vmem:[%s20879_s0 + $0x88] sm:$0xf]  ;;  %v13768_v59 = vld [vmem:[#allocation2 + $0x690] ss:$36 sps:$4 sm:$0xff]   ;;  %v5033_v44 = vsel %vm16462_vm14, %v5024_v39, %v18302_v51  ;;  %2795 = vst [vmem:[#allocation2 + $0x3a4] sm:$0xf] %v2703_v18 }
 0x31c   :  { %v13770_v27 = vld [vmem:[#allocation2 + $0x694] ss:$36 sps:$4 sm:$0xff]   ;;  %2796 = vst [vmem:[#allocation2 + $0x3c8] sm:$0xf] %v2706_v60  ;;  %2797 = vst [vmem:[#allocation2 + $0x3ec] sm:$0xf] %v2709_v62  ;;  %v4713_v33 = vsel %vm15161_vm10, %v4711_v32, %v4712_v55  ;;  %v9204_v40 = vpop.f32.mrf.mxu1 }
 0x31d   :  { %v4714_v17 = vrot.slane %v4712_v55, 4  ;;  %5303 = vst [vmem:[#allocation2 + $0x700] sm:$0xf] %v5033_v44  ;;  %4827 = vst [vmem:[#allocation2 + $0x720] sm:$0xf] %v4713_v33  ;;  %v5034_v11 = vrot.slane %v18302_v51, 4  ;;  %9352 = vmatprep.mubr.bf16.mxu1 %v13770_v27  ;;  %v18357_v51 = vpop.f32.mrf.mxu0 }
 0x31e   :  { %v5036_v13 = vshrl.u32 %v12169_v37, 16  ;;  %v5039_v36 = vshll.u32 %v12169_v37, 16  ;;  %v5046_v34 = vshrl.u32 %v12170_v20, 16  ;;  %v2579_v47 = vld [vmem:[%s20879_s0 + $0x8c] sm:$0xf]  ;;  %v5049_v39 = vshll.u32 %v12170_v20, 16  ;;  %9353 = vmatmul.mubr.bf16.gmra.mxu1 %v13768_v59  ;;  %v18362_v20 = vpop.f32.mrf.mxu1 }
 0x31f   :  { %v4716_v32 = vsel %vm15161_vm10, %v4714_v17, %v4715_v22  ;;  %v2710_v55 = vrot.slane %v2708_v38, 4  ;;  %v2711_v54 = vrot.slane %v2577_v0, 7  ;;  %v18355_v29 = vld [vmem:[%s20879_s0 + $0x90] sm:$0xf]  ;;  %v2714_v60 = vrot.slane %v2578_v58, 7  ;;  %v9035_v33 = vpop.f32.mrf.mxu0 }
 0x320   :  { %4828 = vst [vmem:[#allocation2 + $0x744] sm:$0xf] %v4716_v32  ;;  %v5038_v37 = vrot.slane %v5036_v13, 6  ;;  %v5041_v46 = vrot.slane %v5039_v36, 7  ;;  %v5048_v18 = vrot.slane %v5046_v34, 6  ;;  %v5051_v38 = vrot.slane %v5049_v39, 7  ;;  %v9207_v40 = vpop.f32.mrf.mxu1 }
 0x321   :  { %v12133_v62 = vld [vmem:[%s20879_s0 + $0xf8] sm:$0xf]  ;;  %v2712_v0 = vsel %vm17832_vm1, %v2710_v55, %v2711_v54  ;;  %v2713_v27 = vrot.slane %v2711_v54, 4  ;;  %v2717_v44 = vrot.slane %v2579_v47, 7  ;;  %v18369_v59 = vld [vmem:[%s20879_s0 + $0xfc] sm:$0xf] }
 0x322   :  { %v5042_v17 = vor.u32 %v5041_v46, %v5038_v37  ;;  %v2716_v58 = vrot.slane %v2714_v60, 4  ;;  %2798 = vst [vmem:[#allocation2 + $0x410] sm:$0xf] %v2712_v0  ;;  %v2720_v13 = vrot.slane %v18355_v29, 7  ;;  %v4717_v36 = vrot.slane %v4715_v22, 4  ;;  %v18382_v37 = vpop.f32.mrf.mxu0  ;;  %v21112_v40 = vld [vmem:[#allocation61_spill] sm:$0xff] }
 0x323   :  { %v12171_v34 = vld [vmem:[%s20879_s0 + $0xf8] sm:$0xf]  ;;  %v18375_v32 = vor.u32 %v5051_v38, %v5048_v18  ;;  %v2715_v47 = vsel %vm17832_vm1, %v2713_v27, %v2714_v60  ;;  %v2719_v39 = vrot.slane %v2717_v44, 4  ;;  %v4718_v55 = vrot.slane %v12133_v62, 6  ;;  %v12172_v54 = vld [vmem:[%s20879_s0 + $0xfc] sm:$0xf] }
 0x324   :  { %v13776_v29 = vld [vmem:[#allocation2 + $0x380] ss:$36 sps:$4 sm:$0xff]   ;;  %v5043_v22 = vsel %vm16462_vm14, %v5034_v11, %v5042_v17  ;;  %2799 = vst [vmem:[#allocation2 + $0x434] sm:$0xf] %v2715_v47  ;;  %v2718_v46 = vsel %vm17832_vm1, %v2716_v58, %v2717_v44  ;;  %v2581_v18 = vld [vmem:[%s20879_s0 + $0x94] sm:$0xf]  ;;  %v18402_v11 = vadd.f32 %v18139_v53, %v17472_v35  ;;  %v18413_v47 = vadd.f32 %v18197_v45, %v21112_v40  ;;  %v9038_v35 = vpop.f32.mrf.mxu0 }
 0x325   :  { %v18394_v60 = vld [vmem:[%s20879_s0 + $0x98] sm:$0xf]  ;;  %v21110_v62 = vld [vmem:[#allocation60_spill] sm:$0xff]  ;;  %v13775_v27 = vld [vmem:[#allocation2 + $0x6dc] ss:$36 sps:$4 sm:$0xff]   ;;  %v5044_v44 = vrot.slane %v5042_v17, 4  ;;  %v2721_v33 = vsel %vm17832_vm1, %v2719_v39, %v2720_v13  ;;  %v4719_v58 = vsel %vm15161_vm10, %v4717_v36, %v4718_v55  ;;  %13068 = vmatprep.mubr.bf16.mxu0 %v13776_v29  ;;  %v18418_v39 = vadd.f32 %v18186_v42, %v17499_v48 }
 0x326   :  { %v18398_v38 = vadd.f32 %v18164_v24, %v21110_v62  ;;  %21111 = vst [vmem:[#allocation36_spill] sm:$0xff] %v18402_v11  ;;  %v13773_v0 = vld [vmem:[#allocation2 + $0x6d8] ss:$36 sps:$4 sm:$0xff]   ;;  %5304 = vst [vmem:[#allocation2 + $0x724] sm:$0xf] %v5043_v22  ;;  %v4720_v17 = vrot.slane %v4718_v55, 4  ;;  %9360 = vmatprep.mubr.bf16.mxu1 %v13775_v27 }
 0x327   :  { %2800 = vst [vmem:[#allocation2 + $0x458] sm:$0xf] %v2718_v46  ;;  %v2583_v24 = vld [vmem:[%s20879_s0 + $0x9c] sm:$0xf]  ;;  %v13777_v53 = vld [vmem:[#allocation2 + $0x3c8] ss:$36 sps:$4 sm:$0xff]   ;;  %v5053_v45 = vsel %vm16462_vm14, %v5044_v44, %v18375_v32  ;;  %9361 = vmatmul.mubr.bf16.gmra.mxu1 %v13773_v0 }
 0x328   :  { %2801 = vst [vmem:[#allocation2 + $0x47c] sm:$0xf] %v2721_v33  ;;  %v4721_v22 = vrot.slane %v18369_v59, 6  ;;  %4829 = vst [vmem:[#allocation2 + $0x768] sm:$0xf] %v4719_v58  ;;  %v21114_v36 = vld [vmem:[#allocation62_spill] sm:$0xff]  ;;  %v18431_v33 = vpop.f32.mrf.mxu1  ;;  %13069 = vmatmul.mubr.bf16.gmra.mxu0 %v13777_v53 }
 0x329   :  { %21113 = vst [vmem:[#allocation8_spill] sm:$0xff] %v18418_v39  ;;  %v18422_v46 = vadd.f32 %v18255_v3, %v21114_v36  ;;  %v5054_v29 = vrot.slane %v18375_v32, 4  ;;  %v5056_v62 = vshrl.u32 %v12171_v34, 16  ;;  %v5059_v55 = vshll.u32 %v12171_v34, 16  ;;  %v2584_v59 = vld [vmem:[%s20879_s0 + $0xa0] sm:$0x7] }
 0x32a   :  { %5305 = vst [vmem:[#allocation2 + $0x748] sm:$0xf] %v5053_v45  ;;  %v4722_v48 = vsel %vm15161_vm10, %v4720_v17, %v4721_v22  ;;  %v5066_v42 = vshrl.u32 %v12172_v54, 16  ;;  %v5069_v3 = vshll.u32 %v12172_v54, 16  ;;  %v2722_v27 = vrot.slane %v2720_v13, 4  ;;  %v9212_v35 = vpop.f32.mrf.mxu1  ;;  %v18444_v13 = vpop.f32.mrf.mxu0 }
 0x32b   :  { %v12135_v32 = vld [vmem:[%s20879_s0 + $0x100] sm:$0xf]  ;;  %4830 = vst [vmem:[#allocation2 + $0x78c] sm:$0xf] %v4722_v48  ;;  %v5058_v34 = vrot.slane %v5056_v62, 6  ;;  %v5061_v44 = vrot.slane %v5059_v55, 7 }
 0x32c   :  { %v2723_v58 = vrot.slane %v2581_v18, 7  ;;  %v2726_v40 = vrot.slane %v18394_v60, 7  ;;  %v5068_v0 = vrot.slane %v5066_v42, 6  ;;  %v5071_v53 = vrot.slane %v5069_v3, 7  ;;  %v18442_v54 = vld [vmem:[%s20879_s0 + $0x104] sm:$0xf] }
 0x32d   :  { %v2729_v36 = vrot.slane %v2583_v24, 7  ;;  %v2732_v45 = vrot.slane %v2584_v59, 7  ;;  %v13781_v17 = vld [vmem:[#allocation2 + $0x410] ss:$36 sps:$4 sm:$0xff]   ;;  %v5062_v39 = vor.u32 %v5061_v44, %v5058_v34  ;;  %v12173_v60 = vld [vmem:[%s20879_s0 + $0x100] sm:$0xf]  ;;  %v18454_v59 = vpop.f32.mrf.mxu1 }
 0x32e   :  { %v2724_v62 = vsel %vm17832_vm1, %v2722_v27, %v2723_v58  ;;  %v2725_v18 = vrot.slane %v2723_v58, 4  ;;  %v2728_v55 = vrot.slane %v2726_v40, 4  ;;  %v12174_v24 = vld [vmem:[%s20879_s0 + $0x104] sm:$0xf]  ;;  %v18456_v48 = vor.u32 %v5071_v53, %v5068_v0  ;;  %v12191_v27 = vld [vmem:[%s20879_s0 + $0xb4] sm:$0x8]  ;;  %v9043_v58 = vpop.f32.mrf.mxu0  ;;  %13072 = vmatprep.mubr.bf16.mxu0 %v13781_v17 }
 0x32f   :  { %2802 = vst [vmem:[#allocation2 + $0x4a0] sm:$0xf] %v2724_v62  ;;  %v2731_v42 = vrot.slane %v2729_v36, 4  ;;  %v4723_v3 = vrot.slane %v4721_v22, 4  ;;  %v4724_v34 = vrot.slane %v12135_v32, 6  ;;  %v5063_v11 = vsel %vm16462_vm14, %v5054_v29, %v5062_v39  ;;  %v9215_v32 = vpop.f32.mrf.mxu1 }
 0x330   :  { %v12192_v44 = vld [vmem:[%s20879_s0 + $0xb8] sm:$0xf]  ;;  %v5064_v0 = vrot.slane %v5062_v39, 4  ;;  %v2727_v53 = vsel %vm17832_vm1, %v2725_v18, %v2726_v40  ;;  %v2730_v22 = vsel %vm17832_vm1, %v2728_v55, %v2729_v36  ;;  %5306 = vst [vmem:[#allocation2 + $0x76c] sm:$0xf] %v5063_v11  ;;  %v4727_v29 = vrot.slane %v18442_v54, 6  ;;  %v18481_v11 = vpop.f32.mrf.mxu0 }
 0x331   :  { %v13782_v35 = vld [vmem:[#allocation2 + $0x458] ss:$36 sps:$4 sm:$0xff]   ;;  %2803 = vst [vmem:[#allocation2 + $0x4c4] sm:$0xf] %v2727_v53  ;;  %v2733_v62 = vsel %vm17832_vm1, %v2731_v42, %v2732_v45  ;;  %2804 = vst [vmem:[#allocation2 + $0x4e8] sm:$0xf] %v2730_v22  ;;  %v4725_v17 = vsel %vm15161_vm10, %v4723_v3, %v4724_v34  ;;  %v18489_v55 = vadd.f32 %v18209_v2, %v17553_v30 }
 0x332   :  { %v4726_v58 = vrot.slane %v4724_v34, 4  ;;  %v12193_v39 = vld [vmem:[%s20879_s0 + $0xbc] sm:$0xf]  ;;  %v12194_v40 = vld [vmem:[%s20879_s0 + $0xc0] sm:$0xf]  ;;  %v5073_v45 = vsel %vm16462_vm14, %v5064_v0, %v18456_v48  ;;  %v5074_v54 = vrot.slane %v18456_v48, 4  ;;  %13073 = vmatmul.mubr.bf16.gmra.mxu0 %v13782_v35  ;;  %v9046_v32 = vpop.f32.mrf.mxu0 }
 0x333   :  { %v13778_v36 = vld [vmem:[#allocation2 + $0x720] ss:$36 sps:$4 sm:$0xff]   ;;  %2805 = vst [vmem:[#allocation2 + $0x50c] sm:$0xf] %v2733_v62  ;;  %4831 = vst [vmem:[#allocation2 + $0x7b0] sm:$0xf] %v4725_v17 }
 0x334   :  { %v13780_v18 = vld [vmem:[#allocation2 + $0x724] ss:$36 sps:$4 sm:$0xff]   ;;  %21115 = vst [vmem:[#allocation37_spill] sm:$0xff] %v18489_v55  ;;  %5307 = vst [vmem:[#allocation2 + $0x790] sm:$0xf] %v5073_v45  ;;  %v4728_v34 = vsel %vm15161_vm10, %v4726_v58, %v4727_v29  ;;  %v5076_v53 = vshrl.u32 %v12173_v60, 16 }
 0x335   :  { %v21116_v42 = vld [vmem:[#allocation63_spill] sm:$0xff]  ;;  %v5079_v22 = vshll.u32 %v12173_v60, 16  ;;  %v5086_v0 = vshrl.u32 %v12174_v24, 16  ;;  %9368 = vmatprep.mubr.bf16.mxu1 %v13780_v18  ;;  %4832 = vst [vmem:[#allocation2 + $0x7d4] sm:$0xf] %v4728_v34  ;;  %v5089_v48 = vshll.u32 %v12174_v24, 16  ;;  %v18505_v18 = vpop.f32.mrf.mxu1 }
 0x336   :  { %v18493_v3 = vadd.f32 %v18290_v5, %v21116_v42  ;;  %v12228_v62 = vrot.slane %v12191_v27, 11  ;;  %v5402_v17 = vrot.slane %v12192_v44, 7  ;;  %v5405_v30 = vrot.slane %v12193_v39, 7  ;;  %v18500_v2 = vld [vmem:[%s20879_s0 + $0xc4] sm:$0xf]  ;;  %9369 = vmatmul.mubr.bf16.gmra.mxu1 %v13778_v36 }
 0x337   :  { %v5078_v5 = vrot.slane %v5076_v53, 6  ;;  %v5081_v35 = vrot.slane %v5079_v22, 7  ;;  %v5088_v45 = vrot.slane %v5086_v0, 6  ;;  %v5408_v58 = vrot.slane %v12194_v40, 7  ;;  %v12137_v60 = vld [vmem:[%s20879_s0 + $0x108] sm:$0xf]  ;;  %v9220_v32 = vpop.f32.mrf.mxu1 }
 0x338   :  { %v5091_v24 = vrot.slane %v5089_v48, 7  ;;  %v5403_v27 = vsel %vm17832_vm1, %v12228_v62, %v5402_v17  ;;  %v5404_v44 = vrot.slane %v5402_v17, 4  ;;  %v5407_v39 = vrot.slane %v5405_v30, 4  ;;  %v18512_v36 = vld [vmem:[%s20879_s0 + $0x10c] sm:$0xf] }
 0x339   :  { %v12175_v40 = vld [vmem:[%s20879_s0 + $0x108] sm:$0xf]  ;;  %v5082_v42 = vor.u32 %v5081_v35, %v5078_v5  ;;  %5545 = vst [vmem:[#allocation2 + $0x530] sm:$0xf] %v5403_v27  ;;  %v5410_v34 = vrot.slane %v5408_v58, 4  ;;  %v5411_v53 = vrot.slane %v18500_v2, 7 }
 0x33a   :  { %v4729_v22 = vrot.slane %v4727_v29, 4  ;;  %v12176_v0 = vld [vmem:[%s20879_s0 + $0x10c] sm:$0xf]  ;;  %v13786_v48 = vld [vmem:[#allocation2 + $0x4a0] ss:$36 sps:$4 sm:$0xff]   ;;  %v18521_v62 = vor.u32 %v5091_v24, %v5088_v45  ;;  %v5406_v17 = vsel %vm17832_vm1, %v5404_v44, %v5405_v30  ;;  %v5409_v55 = vsel %vm17832_vm1, %v5407_v39, %v5408_v58  ;;  %v18530_v29 = vpop.f32.mrf.mxu0  ;;  %v18547_v44 = vpop.f32.mrf.mxu1 }
 0x33b   :  { %v4730_v5 = vrot.slane %v12137_v60, 6  ;;  %v12196_v2 = vld [vmem:[%s20879_s0 + $0xc8] sm:$0xf]  ;;  %v5083_v27 = vsel %vm16462_vm14, %v5074_v54, %v5082_v42  ;;  %5546 = vst [vmem:[#allocation2 + $0x554] sm:$0xf] %v5406_v17  ;;  %v5412_v45 = vsel %vm17832_vm1, %v5410_v34, %v5411_v53  ;;  %v18541_v58 = vadd.f32 %v18275_v61, %v17582_v10  ;;  %13076 = vmatprep.mubr.bf16.mxu0 %v13786_v48  ;;  %v21120_v10 = vld [vmem:[#allocation65_spill] sm:$0xff] }
 0x33c   :  { %v13787_v35 = vld [vmem:[#allocation2 + $0x4e8] ss:$36 sps:$4 sm:$0xff]   ;;  %5547 = vst [vmem:[#allocation2 + $0x578] sm:$0xf] %v5409_v55  ;;  %v5084_v32 = vrot.slane %v5082_v42, 4  ;;  %v18553_v34 = vadd.f32 %v18300_v52, %v17640_v28  ;;  %v18557_v61 = vadd.f32 %v18362_v20, %v21120_v10  ;;  %v5094_v42 = vrot.slane %v18521_v62, 4 }
 0x33d   :  { %v12197_v30 = vld [vmem:[%s20879_s0 + $0xcc] sm:$0xf]  ;;  %21117 = vst [vmem:[#allocation9_spill] sm:$0xff] %v18541_v58  ;;  %5308 = vst [vmem:[#allocation2 + $0x7b4] sm:$0xf] %v5083_v27  ;;  %v4731_v55 = vsel %vm15161_vm10, %v4729_v22, %v4730_v5  ;;  %13077 = vmatmul.mubr.bf16.gmra.mxu0 %v13787_v35  ;;  %v4732_v17 = vrot.slane %v4730_v5, 4  ;;  %v9223_v27 = vpop.f32.mrf.mxu1 }
 0x33e   :  { %v21118_v60 = vld [vmem:[#allocation64_spill] sm:$0xff]  ;;  %5548 = vst [vmem:[#allocation2 + $0x59c] sm:$0xf] %v5412_v45  ;;  %21119 = vst [vmem:[#allocation38_spill] sm:$0xff] %v18553_v34  ;;  %v5096_v48 = vshrl.u32 %v12175_v40, 16  ;;  %v5093_v28 = vsel %vm16462_vm14, %v5084_v32, %v18521_v62  ;;  %v5099_v52 = vshll.u32 %v12175_v40, 16 }
 0x33f   :  { %v18545_v24 = vadd.f32 %v18335_v9, %v21118_v60  ;;  %v13783_v54 = vld [vmem:[#allocation2 + $0x768] ss:$36 sps:$4 sm:$0xff]   ;;  %v9051_v9 = vpop.f32.mrf.mxu0  ;;  %v4733_v60 = vrot.slane %v18512_v36, 6  ;;  %4833 = vst [vmem:[#allocation2 + $0x7f8] sm:$0xf] %v4731_v55  ;;  %v5106_v20 = vshrl.u32 %v12176_v0, 16 }
 0x340   :  { %v13785_v39 = vld [vmem:[#allocation2 + $0x76c] ss:$36 sps:$4 sm:$0xff]   ;;  %v5109_v35 = vshll.u32 %v12176_v0, 16  ;;  %v18570_v36 = vld [vmem:[%s20879_s0 + $0xd4] sm:$0xf]  ;;  %v5413_v55 = vrot.slane %v5411_v53, 4 }
 0x341   :  { %v12198_v22 = vld [vmem:[%s20879_s0 + $0xd0] sm:$0xf]  ;;  %9376 = vmatprep.mubr.bf16.mxu1 %v13785_v39  ;;  %v18572_v5 = vpop.f32.mrf.mxu0  ;;  %5309 = vst [vmem:[#allocation2 + $0x7d8] sm:$0xf] %v5093_v28  ;;  %v4734_v45 = vsel %vm15161_vm10, %v4732_v17, %v4733_v60  ;;  %v5098_v39 = vrot.slane %v5096_v48, 6  ;;  %v5414_v10 = vrot.slane %v12196_v2, 7 }
 0x342   :  { %9377 = vmatmul.mubr.bf16.gmra.mxu1 %v13783_v54  ;;  %4834 = vst [vmem:[#allocation2 + $0x81c] sm:$0xf] %v4734_v45  ;;  %v5101_v62 = vrot.slane %v5099_v52, 7  ;;  %v5108_v40 = vrot.slane %v5106_v20, 6  ;;  %v5111_v32 = vrot.slane %v5109_v35, 7  ;;  %v5417_v0 = vrot.slane %v12197_v30, 7 }
 0x343   :  { %v12139_v9 = vld [vmem:[%s20879_s0 + $0x110] sm:$0xf]  ;;  %v18582_v54 = vld [vmem:[%s20879_s0 + $0x114] sm:$0xf]  ;;  %v9054_v27 = vpop.f32.mrf.mxu0  ;;  %v5415_v17 = vsel %vm17832_vm1, %v5413_v55, %v5414_v10  ;;  %v5416_v53 = vrot.slane %v5414_v10, 4  ;;  %v5420_v2 = vrot.slane %v12198_v22, 7  ;;  %v18597_v45 = vadd.f32 %v18357_v51, %v17644_v43  ;;  %v18603_v55 = vpop.f32.mrf.mxu1 }
 0x344   :  { %v5423_v48 = vrot.slane %v18570_v36, 7  ;;  %v12177_v30 = vld [vmem:[%s20879_s0 + $0x110] sm:$0xf]  ;;  %v5102_v52 = vor.u32 %v5101_v62, %v5098_v39  ;;  %v18590_v20 = vor.u32 %v5111_v32, %v5108_v40  ;;  %5549 = vst [vmem:[#allocation2 + $0x5c0] sm:$0xf] %v5415_v17  ;;  %v21122_v22 = vld [vmem:[#allocation66_spill] sm:$0xff]  ;;  %v18612_v32 = vadd.f32 %v18382_v37, %v17723_v25 }
 0x345   :  { %v13791_v28 = vld [vmem:[#allocation2 + $0x530] ss:$36 sps:$4 sm:$0xff]   ;;  %21121 = vst [vmem:[#allocation40_spill] sm:$0xff] %v18597_v45  ;;  %v18601_v36 = vadd.f32 %v18431_v33, %v21122_v22  ;;  %v13792_v10 = vld [vmem:[#allocation2 + $0x578] ss:$36 sps:$4 sm:$0xff]   ;;  %v5418_v39 = vsel %vm17832_vm1, %v5416_v53, %v5417_v0  ;;  %v5419_v62 = vrot.slane %v5417_v0, 4  ;;  %v18616_v43 = vadd.f32 %v18454_v59, %v17293_v1  ;;  %v9228_v53 = vpop.f32.mrf.mxu1  ;;  %v18623_v22 = vpop.f32.mrf.mxu0 }
 0x346   :  { %v12178_v35 = vld [vmem:[%s20879_s0 + $0x114] sm:$0xf]  ;;  %v12200_v40 = vld [vmem:[%s20879_s0 + $0xd8] sm:$0xf]  ;;  %21123 = vst [vmem:[#allocation56_spill] sm:$0xff] %v18612_v32  ;;  %13080 = vmatprep.mubr.bf16.mxu0 %v13791_v28  ;;  %v5103_v51 = vsel %vm16462_vm14, %v5094_v42, %v5102_v52  ;;  %v5104_v33 = vrot.slane %v5102_v52, 4 }
 0x347   :  { %5550 = vst [vmem:[#allocation2 + $0x5e4] sm:$0xf] %v5418_v39  ;;  %v5422_v27 = vrot.slane %v5420_v2, 4  ;;  %v4735_v0 = vrot.slane %v4733_v60, 4  ;;  %v12201_v17 = vld [vmem:[%s20879_s0 + $0xdc] sm:$0xf]  ;;  %13081 = vmatmul.mubr.bf16.gmra.mxu0 %v13792_v10  ;;  %v5421_v1 = vsel %vm17832_vm1, %v5419_v62, %v5420_v2  ;;  %v9059_v39 = vpop.f32.mrf.mxu0 }
 0x348   :  { %5310 = vst [vmem:[#allocation2 + $0x7fc] sm:$0xf] %v5103_v51  ;;  %v4736_v25 = vrot.slane %v12139_v9, 6  ;;  %v4739_v37 = vrot.slane %v18582_v54, 6  ;;  %v5114_v59 = vrot.slane %v18590_v20, 4  ;;  %v5113_v52 = vsel %vm16462_vm14, %v5104_v33, %v18590_v20  ;;  %v18641_v54 = vpop.f32.mrf.mxu1 }
 0x349   :  { %v12202_v60 = vld [vmem:[%s20879_s0 + $0xe0] sm:$0xf]  ;;  %v13788_v42 = vld [vmem:[#allocation2 + $0x7b0] ss:$36 sps:$4 sm:$0xff]   ;;  %v5424_v10 = vsel %vm17832_vm1, %v5422_v27, %v5423_v48  ;;  %5551 = vst [vmem:[#allocation2 + $0x608] sm:$0xf] %v5421_v1  ;;  %v18639_v9 = vadd.f32 %v18444_v13, %v17752_v21 }
 0x34a   :  { %v13790_v28 = vld [vmem:[#allocation2 + $0x7b4] ss:$36 sps:$4 sm:$0xff]   ;;  %v5116_v2 = vshrl.u32 %v12177_v30, 16  ;;  %5311 = vst [vmem:[#allocation2 + $0x820] sm:$0xf] %v5113_v52  ;;  %v4737_v62 = vsel %vm15161_vm10, %v4735_v0, %v4736_v25  ;;  %v4738_v51 = vrot.slane %v4736_v25, 4  ;;  %v18653_v0 = vpop.f32.mrf.mxu0 }
 0x34b   :  { %21124 = vst [vmem:[#allocation57_spill] sm:$0xff] %v18639_v9  ;;  %5552 = vst [vmem:[#allocation2 + $0x62c] sm:$0xf] %v5424_v10  ;;  %v5119_v53 = vshll.u32 %v12177_v30, 16  ;;  %v5126_v20 = vshrl.u32 %v12178_v35, 16  ;;  %9384 = vmatprep.mubr.bf16.mxu1 %v13790_v28  ;;  %v5129_v13 = vshll.u32 %v12178_v35, 16  ;;  %v9231_v10 = vpop.f32.mrf.mxu1 }
 0x34c   :  { %v18648_v33 = vld [vmem:[%s20879_s0 + $0xe4] sm:$0xf]  ;;  %4835 = vst [vmem:[#allocation2 + $0x840] sm:$0xf] %v4737_v62  ;;  %v5118_v21 = vrot.slane %v5116_v2, 6  ;;  %v5425_v27 = vrot.slane %v5423_v48, 4  ;;  %9385 = vmatmul.mubr.bf16.gmra.mxu1 %v13788_v42  ;;  %v4740_v30 = vsel %vm15161_vm10, %v4738_v51, %v4739_v37  ;;  %v9062_v62 = vpop.f32.mrf.mxu0 }
 0x34d   :  { %v5426_v1 = vrot.slane %v12200_v40, 7  ;;  %v12141_v52 = vld [vmem:[%s20879_s0 + $0x118] sm:$0xf]  ;;  %v5121_v25 = vrot.slane %v5119_v53, 7  ;;  %v5128_v39 = vrot.slane %v5126_v20, 6  ;;  %v5429_v9 = vrot.slane %v12201_v17, 7 }
 0x34e   :  { %4836 = vst [vmem:[#allocation2 + $0x864] sm:$0xf] %v4740_v30  ;;  %v5131_v28 = vrot.slane %v5129_v13, 7  ;;  %v5432_v40 = vrot.slane %v12202_v60, 7  ;;  %v18662_v2 = vld [vmem:[%s20879_s0 + $0x11c] sm:$0xf]  ;;  %v18682_v30 = vpop.f32.mrf.mxu1 }
 0x34f   :  { %v5427_v48 = vsel %vm17832_vm1, %v5425_v27, %v5426_v1  ;;  %v5428_v35 = vrot.slane %v5426_v1, 4  ;;  %v13796_v42 = vld [vmem:[#allocation2 + $0x5c0] ss:$36 sps:$4 sm:$0xff]   ;;  %v5122_v10 = vor.u32 %v5121_v25, %v5118_v21  ;;  %v5431_v32 = vrot.slane %v5429_v9, 4  ;;  %v12179_v17 = vld [vmem:[%s20879_s0 + $0x118] sm:$0xf] }
 0x350   :  { %5553 = vst [vmem:[#allocation2 + $0x650] sm:$0xf] %v5427_v48  ;;  %v5435_v51 = vrot.slane %v18648_v33, 7  ;;  %v12180_v60 = vld [vmem:[%s20879_s0 + $0x11c] sm:$0xf]  ;;  %v21125_v53 = vld [vmem:[#allocation41_spill] sm:$0xff]  ;;  %v18675_v13 = vor.u32 %v5131_v28, %v5128_v39  ;;  %13084 = vmatprep.mubr.bf16.mxu0 %v13796_v42  ;;  %v9236_v42 = vpop.f32.mrf.mxu1 }
 0x351   :  { %v18673_v20 = vadd.f32 %v18505_v18, %v21125_v53  ;;  %v5430_v21 = vsel %vm17832_vm1, %v5428_v35, %v5429_v9  ;;  %v5434_v27 = vrot.slane %v5432_v40, 4  ;;  %v4741_v1 = vrot.slane %v4739_v37, 4  ;;  %v12204_v33 = vld [vmem:[%s20879_s0 + $0xe8] sm:$0xf]  ;;  %v12205_v37 = vld [vmem:[%s20879_s0 + $0xec] sm:$0xf] }
 0x352   :  { %v5123_v25 = vsel %vm16462_vm14, %v5114_v59, %v5122_v10  ;;  %v5124_v48 = vrot.slane %v5122_v10, 4  ;;  %5554 = vst [vmem:[#allocation2 + $0x674] sm:$0xf] %v5430_v21  ;;  %v5433_v18 = vsel %vm17832_vm1, %v5431_v32, %v5432_v40  ;;  %v4742_v39 = vrot.slane %v12141_v52, 6  ;;  %v13793_v9 = vld [vmem:[#allocation2 + $0x7f8] ss:$36 sps:$4 sm:$0xff]  }
 0x353   :  { %v13795_v28 = vld [vmem:[#allocation2 + $0x7fc] ss:$36 sps:$4 sm:$0xff]   ;;  %5312 = vst [vmem:[#allocation2 + $0x844] sm:$0xf] %v5123_v25  ;;  %v5436_v35 = vsel %vm17832_vm1, %v5434_v27, %v5435_v51  ;;  %5555 = vst [vmem:[#allocation2 + $0x698] sm:$0xf] %v5433_v18  ;;  %v18699_v32 = vadd.f32 %v18481_v11, %v17795_v23  ;;  %v18716_v11 = vpop.f32.mrf.mxu0 }
 0x354   :  { %v4745_v62 = vrot.slane %v18662_v2, 6  ;;  %v12206_v59 = vld [vmem:[%s20879_s0 + $0xf0] sm:$0xf]  ;;  %v21127_v52 = vld [vmem:[#allocation42_spill] sm:$0xff]  ;;  %v13797_v10 = vld [vmem:[#allocation2 + $0x608] ss:$36 sps:$4 sm:$0xff]   ;;  %v5133_v53 = vsel %vm16462_vm14, %v5124_v48, %v18675_v13  ;;  %v4743_v2 = vsel %vm15161_vm10, %v4741_v1, %v4742_v39  ;;  %9392 = vmatprep.mubr.bf16.mxu1 %v13795_v28 }
 0x355   :  { %21126 = vst [vmem:[#allocation58_spill] sm:$0xff] %v18699_v32  ;;  %v18703_v40 = vadd.f32 %v18547_v44, %v21127_v52  ;;  %5556 = vst [vmem:[#allocation2 + $0x6bc] sm:$0xf] %v5436_v35  ;;  %v4744_v21 = vrot.slane %v4742_v39, 4  ;;  %v5134_v27 = vrot.slane %v18675_v13, 4  ;;  %v5136_v44 = vshrl.u32 %v12179_v17, 16  ;;  %v18721_v39 = vpop.f32.mrf.mxu1  ;;  %9393 = vmatmul.mubr.bf16.gmra.mxu1 %v13793_v9  ;;  %13085 = vmatmul.mubr.bf16.gmra.mxu0 %v13797_v10 }
 0x356   :  { %v18714_v23 = vld [vmem:[%s20879_s0 + $0xf4] sm:$0xf]  ;;  %5313 = vst [vmem:[#allocation2 + $0x868] sm:$0xf] %v5133_v53  ;;  %4837 = vst [vmem:[#allocation2 + $0x888] sm:$0xf] %v4743_v2 }
 0x357   :  { %v5139_v25 = vshll.u32 %v12179_v17, 16  ;;  %v5146_v48 = vshrl.u32 %v12180_v60, 16  ;;  %v5149_v18 = vshll.u32 %v12180_v60, 16  ;;  %v12143_v1 = vld [vmem:[%s20879_s0 + $0x120] sm:$0xf]  ;;  %v4746_v13 = vsel %vm15161_vm10, %v4744_v21, %v4745_v62  ;;  %v9067_v60 = vpop.f32.mrf.mxu0  ;;  %v9239_v45 = vpop.f32.mrf.mxu1 }
 0x358   :  { %v5437_v35 = vrot.slane %v5435_v51, 4  ;;  %v5438_v52 = vrot.slane %v12204_v33, 7  ;;  %v5441_v28 = vrot.slane %v12205_v37, 7  ;;  %v18728_v17 = vld [vmem:[%s20879_s0 + $0x124] sm:$0xf]  ;;  %v5138_v42 = vrot.slane %v5136_v44, 6 }
 0x359   :  { %4838 = vst [vmem:[#allocation2 + $0x8ac] sm:$0xf] %v4746_v13  ;;  %v5141_v53 = vrot.slane %v5139_v25, 7  ;;  %v5148_v2 = vrot.slane %v5146_v48, 6  ;;  %v5151_v32 = vrot.slane %v5149_v18, 7  ;;  %v5444_v51 = vrot.slane %v12206_v59, 7  ;;  %v18735_v37 = vpop.f32.mrf.mxu0 }
 0x35a   :  { %v5439_v9 = vsel %vm17832_vm1, %v5437_v35, %v5438_v52  ;;  %v5440_v10 = vrot.slane %v5438_v52, 4  ;;  %v5443_v21 = vrot.slane %v5441_v28, 4  ;;  %v12181_v33 = vld [vmem:[%s20879_s0 + $0x120] sm:$0xf]  ;;  %v13801_v34 = vld [vmem:[#allocation2 + $0x650] ss:$36 sps:$4 sm:$0xff]  }
 0x35b   :  { %v5142_v60 = vor.u32 %v5141_v53, %v5138_v42  ;;  %v18737_v13 = vor.u32 %v5151_v32, %v5148_v2  ;;  %5557 = vst [vmem:[#allocation2 + $0x6e0] sm:$0xf] %v5439_v9  ;;  %v5447_v44 = vrot.slane %v18714_v23, 7  ;;  %v4747_v45 = vrot.slane %v4745_v62, 4  ;;  %v12182_v25 = vld [vmem:[%s20879_s0 + $0x124] sm:$0xf]  ;;  %v9070_v52 = vpop.f32.mrf.mxu0  ;;  %13088 = vmatprep.mubr.bf16.mxu0 %v13801_v34 }
 0x35c   :  { %v5442_v59 = vsel %vm17832_vm1, %v5440_v10, %v5441_v28  ;;  %v5445_v48 = vsel %vm17832_vm1, %v5443_v21, %v5444_v51  ;;  %v5446_v18 = vrot.slane %v5444_v51, 4  ;;  %v4748_v35 = vrot.slane %v12143_v1, 6  ;;  %v13802_v32 = vld [vmem:[#allocation2 + $0x698] ss:$36 sps:$4 sm:$0xff]   ;;  %v13798_v28 = vld [vmem:[#allocation2 + $0x840] ss:$36 sps:$4 sm:$0xff]   ;;  %v18762_v21 = vpop.f32.mrf.mxu1 }
 0x35d   :  { %v5143_v42 = vsel %vm16462_vm14, %v5134_v27, %v5142_v60  ;;  %v5144_v23 = vrot.slane %v5142_v60, 4  ;;  %5558 = vst [vmem:[#allocation2 + $0x704] sm:$0xf] %v5442_v59  ;;  %5559 = vst [vmem:[#allocation2 + $0x728] sm:$0xf] %v5445_v48  ;;  %v4751_v62 = vrot.slane %v18728_v17, 6  ;;  %v18752_v53 = vadd.f32 %v18530_v29, %v17841_v4  ;;  %13089 = vmatmul.mubr.bf16.gmra.mxu0 %v13802_v32 }
 0x35e   :  { %v13800_v2 = vld [vmem:[#allocation2 + $0x844] ss:$36 sps:$4 sm:$0xff]   ;;  %5314 = vst [vmem:[#allocation2 + $0x88c] sm:$0xf] %v5143_v42  ;;  %v5448_v1 = vsel %vm17832_vm1, %v5446_v18, %v5447_v44  ;;  %v4749_v34 = vsel %vm15161_vm10, %v4747_v45, %v4748_v35  ;;  %v4750_v9 = vrot.slane %v4748_v35, 4  ;;  %v5154_v29 = vrot.slane %v18737_v13, 4 }
 0x35f   :  { %21128 = vst [vmem:[#allocation59_spill] sm:$0xff] %v18752_v53  ;;  %v21129_v27 = vld [vmem:[#allocation43_spill] sm:$0xff]  ;;  %v5153_v4 = vsel %vm16462_vm14, %v5144_v23, %v18737_v13  ;;  %5560 = vst [vmem:[#allocation2 + $0x74c] sm:$0xf] %v5448_v1  ;;  %v5156_v51 = vshrl.u32 %v12181_v33, 16  ;;  %v5159_v60 = vshll.u32 %v12181_v33, 16  ;;  %9400 = vmatprep.mubr.bf16.mxu1 %v13800_v2  ;;  %v9244_v33 = vpop.f32.mrf.mxu1  ;;  %v18781_v2 = vpop.f32.mrf.mxu0 }
 0x360   :  { %v18760_v10 = vadd.f32 %v18603_v55, %v21129_v27  ;;  %4839 = vst [vmem:[#allocation2 + $0x8d0] sm:$0xf] %v4749_v34  ;;  %v12208_v45 = vld [vmem:[%s20879_s0 + $0xf8] sm:$0xf]  ;;  %5315 = vst [vmem:[#allocation2 + $0x8b0] sm:$0xf] %v5153_v4  ;;  %v4752_v55 = vsel %vm15161_vm10, %v4750_v9, %v4751_v62  ;;  %9401 = vmatmul.mubr.bf16.gmra.mxu1 %v13798_v28  ;;  %v18816_v33 = vadd.f32 %v18653_v0, %v17942_v50 }
 0x361   :  { %v5166_v59 = vshrl.u32 %v12182_v25, 16  ;;  %v5169_v48 = vshll.u32 %v12182_v25, 16  ;;  %v12209_v13 = vld [vmem:[%s20879_s0 + $0xfc] sm:$0xf]  ;;  %v5449_v18 = vrot.slane %v5447_v44, 4  ;;  %v5158_v35 = vrot.slane %v5156_v51, 6  ;;  %v18794_v27 = vpop.f32.mrf.mxu1 }
 0x362   :  { %4840 = vst [vmem:[#allocation2 + $0x8f4] sm:$0xf] %v4752_v55  ;;  %v5161_v52 = vrot.slane %v5159_v60, 7  ;;  %v5450_v42 = vrot.slane %v12208_v45, 7  ;;  %v5453_v32 = vrot.slane %v12209_v13, 7  ;;  %v18788_v44 = vadd.f32 %v18572_v5, %v17903_v26  ;;  %v21131_v28 = vld [vmem:[#allocation44_spill] sm:$0xff]  ;;  %v9075_v5 = vpop.f32.mrf.mxu0 }
 0x363   :  { %v12210_v23 = vld [vmem:[%s20879_s0 + $0x100] sm:$0xf]  ;;  %v5168_v1 = vrot.slane %v5166_v59, 6  ;;  %v5171_v25 = vrot.slane %v5169_v48, 7  ;;  %v12211_v34 = vld [vmem:[%s20879_s0 + $0x104] sm:$0xf]  ;;  %v18792_v9 = vadd.f32 %v18641_v54, %v21131_v28  ;;  %v18808_v48 = vadd.f32 %v18623_v22, %v17925_v16 }
 0x364   :  { %21130 = vst [vmem:[#allocation60_spill] sm:$0xff] %v18788_v44  ;;  %v5162_v4 = vor.u32 %v5161_v52, %v5158_v35  ;;  %v5451_v51 = vsel %vm17832_vm1, %v5449_v18, %v5450_v42  ;;  %v5452_v60 = vrot.slane %v5450_v42, 4  ;;  %v5455_v45 = vrot.slane %v5453_v32, 4  ;;  %v12145_v55 = vld [vmem:[%s20879_s0 + $0x128] sm:$0xf]  ;;  %v21133_v13 = vld [vmem:[#allocation67_spill] sm:$0xff]  ;;  %v9247_v35 = vpop.f32.mrf.mxu1  ;;  %v18825_v22 = vpop.f32.mrf.mxu0 }
 0x365   :  { %v12146_v26 = vld [vmem:[%s20879_s0 + $0x12c] sm:$0xf]  ;;  %v13806_v59 = vld [vmem:[#allocation2 + $0x6e0] ss:$36 sps:$4 sm:$0xff]   ;;  %v18804_v54 = vor.u32 %v5171_v25, %v5168_v1  ;;  %5561 = vst [vmem:[#allocation2 + $0x770] sm:$0xf] %v5451_v51  ;;  %v18812_v18 = vadd.f32 %v18682_v30, %v21133_v13 }
 0x366   :  { %21132 = vst [vmem:[#allocation61_spill] sm:$0xff] %v18808_v48  ;;  %21135 = vst [vmem:[#allocation63_spill] sm:$0xff] %v18816_v33  ;;  %v5163_v52 = vsel %vm16462_vm14, %v5154_v29, %v5162_v4  ;;  %v5164_v42 = vrot.slane %v5162_v4, 4  ;;  %v5454_v1 = vsel %vm17832_vm1, %v5452_v60, %v5453_v32  ;;  %v5456_v25 = vrot.slane %v12210_v23, 7  ;;  %v12183_v16 = vld [vmem:[%s20879_s0 + $0x128] sm:$0xf]  ;;  %13092 = vmatprep.mubr.bf16.mxu0 %v13806_v59 }
 0x367   :  { %21134 = vst [vmem:[#allocation62_spill] sm:$0xff] %v18812_v18  ;;  %v13807_v30 = vld [vmem:[#allocation2 + $0x728] ss:$36 sps:$4 sm:$0xff]   ;;  %5316 = vst [vmem:[#allocation2 + $0x8d4] sm:$0xf] %v5163_v52  ;;  %v5459_v50 = vrot.slane %v12211_v34, 7  ;;  %v18835_v32 = vadd.f32 %v18716_v11, %v17950_v7 }
 0x368   :  { %5562 = vst [vmem:[#allocation2 + $0x794] sm:$0xf] %v5454_v1  ;;  %v4753_v0 = vrot.slane %v4751_v62, 4  ;;  %v21136_v29 = vld [vmem:[#allocation39_spill] sm:$0xff]  ;;  %v13803_v23 = vld [vmem:[#allocation2 + $0x888] ss:$36 sps:$4 sm:$0xff]   ;;  %v5173_v51 = vsel %vm16462_vm14, %v5164_v42, %v18804_v54  ;;  %v5457_v34 = vsel %vm17832_vm1, %v5455_v45, %v5456_v25  ;;  %13093 = vmatmul.mubr.bf16.gmra.mxu0 %v13807_v30 }
 0x369   :  { %v18831_v28 = vadd.f32 %v18721_v39, %v21136_v29  ;;  %21138 = vst [vmem:[#allocation65_spill] sm:$0xff] %v18835_v32  ;;  %v13805_v4 = vld [vmem:[#allocation2 + $0x88c] ss:$36 sps:$4 sm:$0xff]   ;;  %v5458_v60 = vrot.slane %v5456_v25, 4  ;;  %v21139_v17 = vld [vmem:[#allocation46_spill] sm:$0xff]  ;;  %v9078_v39 = vpop.f32.mrf.mxu0  ;;  %v4754_v7 = vrot.slane %v12145_v55, 6  ;;  %v9250_v55 = vpop.f32.mrf.mxu1 }
 0x36a   :  { %v18844_v62 = vadd.f32 %v18762_v21, %v21139_v17  ;;  %5317 = vst [vmem:[#allocation2 + $0x8f8] sm:$0xf] %v5173_v51  ;;  %5563 = vst [vmem:[#allocation2 + $0x7b8] sm:$0xf] %v5457_v34  ;;  %v4757_v11 = vrot.slane %v12146_v26, 6  ;;  %v5174_v59 = vrot.slane %v18804_v54, 4  ;;  %9408 = vmatprep.mubr.bf16.mxu1 %v13805_v4 }
 0x36b   :  { %21137 = vst [vmem:[#allocation64_spill] sm:$0xff] %v18831_v28  ;;  %v12184_v5 = vld [vmem:[%s20879_s0 + $0x12c] sm:$0xf]  ;;  %v5176_v13 = vshrl.u32 %v12183_v16, 16  ;;  %v5460_v45 = vsel %vm17832_vm1, %v5458_v60, %v5459_v50  ;;  %v5179_v35 = vshll.u32 %v12183_v16, 16  ;;  %9409 = vmatmul.mubr.bf16.gmra.mxu1 %v13803_v23  ;;  %v4755_v26 = vsel %vm15161_vm10, %v4753_v0, %v4754_v7  ;;  %v9252_v34 = vpop.f32.mrf.mxu1  ;;  %v21251_v18 = vld [vmem:[#allocation7_spill] sm:$0xff] }
 0x36c   :  { %21140 = vst [vmem:[#allocation66_spill] sm:$0xff] %v18844_v62  ;;  %v5186_v21 = vshrl.u32 %v12184_v5, 16  ;;  %v5189_v52 = vshll.u32 %v12184_v5, 16  ;;  %v12212_v42 = vld [vmem:[%s20879_s0 + $0x108] sm:$0xf]  ;;  %v4756_v1 = vrot.slane %v4754_v7, 4  ;;  %v18872_v7 = vpop.f32.mrf.mxu0 }
 0x36d   :  { %5564 = vst [vmem:[#allocation2 + $0x7dc] sm:$0xf] %v5460_v45  ;;  %v5178_v54 = vrot.slane %v5176_v13, 6  ;;  %v12213_v25 = vld [vmem:[%s20879_s0 + $0x10c] sm:$0xf]  ;;  %v5461_v30 = vrot.slane %v5459_v50, 4  ;;  %v18870_v50 = vadd.f32 %v18735_v37, %v17954_v57 }
 0x36e   :  { %4841 = vst [vmem:[#allocation2 + $0x918] sm:$0xf] %v4755_v26  ;;  %v5181_v16 = vrot.slane %v5179_v35, 7  ;;  %v5188_v29 = vrot.slane %v5186_v21, 6  ;;  %v5191_v4 = vrot.slane %v5189_v52, 7  ;;  %v5462_v51 = vrot.slane %v12212_v42, 7  ;;  %v9253_v52 = vpop.f32.mrf.mxu1 }
 0x36f   :  { %v4758_v23 = vsel %vm15161_vm10, %v4756_v1, %v4757_v11  ;;  %v5465_v60 = vrot.slane %v12213_v25, 7  ;;  %v12214_v0 = vld [vmem:[%s20879_s0 + $0x110] sm:$0xf]  ;;  %v12215_v17 = vld [vmem:[%s20879_s0 + $0x114] sm:$0xf]  ;;  %v4759_v39 = vrot.slane %v4757_v11, 4 }
 0x370   :  { %21141 = vst [vmem:[#allocation41_spill] sm:$0xff] %v18870_v50  ;;  %v13811_v5 = vld [vmem:[#allocation2 + $0x770] ss:$36 sps:$4 sm:$0xff]   ;;  %4842 = vst [vmem:[#allocation2 + $0x93c] sm:$0xf] %v4758_v23  ;;  %v5182_v13 = vor.u32 %v5181_v16, %v5178_v54  ;;  %v18874_v45 = vor.u32 %v5191_v4, %v5188_v29  ;;  %v5463_v35 = vsel %vm17832_vm1, %v5461_v30, %v5462_v51  ;;  %v5464_v21 = vrot.slane %v5462_v51, 4  ;;  %v9083_v54 = vpop.f32.mrf.mxu0  ;;  %v9255_v34 = vpop.f32.mrf.mxu1 }
 0x371   :  { %v5467_v42 = vrot.slane %v5465_v60, 4  ;;  %5565 = vst [vmem:[#allocation2 + $0x800] sm:$0xf] %v5463_v35  ;;  %v5468_v26 = vrot.slane %v12214_v0, 7  ;;  %v5471_v11 = vrot.slane %v12215_v17, 7  ;;  %v21142_v37 = vld [vmem:[#allocation22_spill] sm:$0xff]  ;;  %13096 = vmatprep.mubr.bf16.mxu0 %v13811_v5  ;;  %v18891_v51 = vadd.f32 %v18781_v2, %v18007_v19 }
 0x372   :  { %v12147_v57 = vld [vmem:[%s20879_s0 + $0x130] sm:$0xf]  ;;  %v18883_v1 = vadd.f32 %v18794_v27, %v21142_v37  ;;  %v13810_v16 = vld [vmem:[#allocation2 + $0x8d4] ss:$36 sps:$4 sm:$0xff]   ;;  %v5183_v30 = vsel %vm16462_vm14, %v5174_v59, %v5182_v13  ;;  %v5184_v29 = vrot.slane %v5182_v13, 4  ;;  %v5466_v4 = vsel %vm17832_vm1, %v5464_v21, %v5465_v60  ;;  %v21145_v17 = vld [vmem:[#allocation47_spill] sm:$0xff]  ;;  %v9084_v60 = vpop.f32.mrf.mxu0 }
 0x373   :  { %v13808_v25 = vld [vmem:[#allocation2 + $0x8d0] ss:$36 sps:$4 sm:$0xff]   ;;  %21144 = vst [vmem:[#allocation43_spill] sm:$0xff] %v18891_v51  ;;  %5318 = vst [vmem:[#allocation2 + $0x91c] sm:$0xf] %v5183_v30  ;;  %v5469_v27 = vsel %vm17832_vm1, %v5467_v42, %v5468_v26  ;;  %v5470_v23 = vrot.slane %v5468_v26, 4  ;;  %v18899_v5 = vadd.f32 %v9250_v55, %v21145_v17  ;;  %9416 = vmatprep.mubr.bf16.mxu1 %v13810_v16 }
 0x374   :  { %21143 = vst [vmem:[#allocation42_spill] sm:$0xff] %v18883_v1  ;;  %5566 = vst [vmem:[#allocation2 + $0x824] sm:$0xf] %v5466_v4  ;;  %v12148_v0 = vld [vmem:[%s20879_s0 + $0x134] sm:$0xf]  ;;  %v4760_v59 = vrot.slane %v12147_v57, 6  ;;  %v5193_v19 = vsel %vm16462_vm14, %v5184_v29, %v18874_v45  ;;  %v18907_v21 = vadd.f32 %v18825_v22, %v18049_v56  ;;  %9417 = vmatmul.mubr.bf16.gmra.mxu1 %v13808_v25  ;;  %v9086_v56 = vpop.f32.mrf.mxu0 }
 0x375   :  { %21146 = vst [vmem:[#allocation44_spill] sm:$0xff] %v18899_v5  ;;  %v13812_v13 = vld [vmem:[#allocation2 + $0x7b8] ss:$36 sps:$4 sm:$0xff]   ;;  %5567 = vst [vmem:[#allocation2 + $0x848] sm:$0xf] %v5469_v27  ;;  %v4763_v2 = vrot.slane %v12148_v0, 6  ;;  %v5472_v55 = vsel %vm17832_vm1, %v5470_v23, %v5471_v11  ;;  %v9258_v0 = vpop.f32.mrf.mxu1 }
 0x376   :  { %v5194_v35 = vrot.slane %v18874_v45, 4  ;;  %21147 = vst [vmem:[#allocation67_spill] sm:$0xff] %v18907_v21  ;;  %5319 = vst [vmem:[#allocation2 + $0x940] sm:$0xf] %v5193_v19  ;;  %v4761_v42 = vsel %vm15161_vm10, %v4759_v39, %v4760_v59  ;;  %v4762_v26 = vrot.slane %v4760_v59, 4  ;;  %v5473_v37 = vrot.slane %v5471_v11, 4  ;;  %13097 = vmatmul.mubr.bf16.gmra.mxu0 %v13812_v13 }
 0x377   :  { %v12185_v57 = vld [vmem:[%s20879_s0 + $0x130] sm:$0xf]  ;;  %v12186_v45 = vld [vmem:[%s20879_s0 + $0x134] sm:$0xf]  ;;  %5568 = vst [vmem:[#allocation2 + $0x86c] sm:$0xf] %v5472_v55 }
 0x378   :  { %4843 = vst [vmem:[#allocation2 + $0x960] sm:$0xf] %v4761_v42  ;;  %v5196_v22 = vshrl.u32 %v12185_v57, 16  ;;  %v5199_v54 = vshll.u32 %v12185_v57, 16  ;;  %v5206_v25 = vshrl.u32 %v12186_v45, 16  ;;  %v5209_v16 = vshll.u32 %v12186_v45, 16  ;;  %v9260_v45 = vpop.f32.mrf.mxu1 }
 0x379   :  { %v12216_v39 = vld [vmem:[%s20879_s0 + $0x118] sm:$0xf]  ;;  %v4764_v30 = vsel %vm15161_vm10, %v4762_v26, %v4763_v2  ;;  %v12217_v29 = vld [vmem:[%s20879_s0 + $0x11c] sm:$0xf]  ;;  %v12218_v4 = vld [vmem:[%s20879_s0 + $0x120] sm:$0xf] }
 0x37a   :  { %v5474_v11 = vrot.slane %v12216_v39, 7  ;;  %v18930_v34 = vrot.slane %v4763_v2, 4  ;;  %v21148_v27 = vld [vmem:[#allocation48_spill] sm:$0xff]  ;;  %4844 = vst [vmem:[#allocation2 + $0x984] sm:$0xf] %v4764_v30  ;;  %v5198_v59 = vrot.slane %v5196_v22, 6 }
 0x37b   :  { %v18933_v23 = vadd.f32 %v9253_v52, %v21148_v27  ;;  %v5201_v17 = vrot.slane %v5199_v54, 7  ;;  %v5208_v13 = vrot.slane %v5206_v25, 6  ;;  %v5211_v19 = vrot.slane %v5209_v16, 7  ;;  %v12219_v57 = vld [vmem:[%s20879_s0 + $0x124] sm:$0xf]  ;;  %v9089_v25 = vpop.f32.mrf.mxu0  ;;  %v9261_v27 = vpop.f32.mrf.mxu1  ;;  %v21158_v45 = vld [vmem:[#allocation68_spill] sm:$0xff] }
 0x37c   :  { %v5475_v55 = vsel %vm17832_vm1, %v5473_v37, %v5474_v11  ;;  %v5476_v42 = vrot.slane %v5474_v11, 4  ;;  %v5477_v26 = vrot.slane %v12217_v29, 7  ;;  %v5480_v2 = vrot.slane %v12218_v4, 7  ;;  %v13816_v56 = vld [vmem:[#allocation2 + $0x800] ss:$36 sps:$4 sm:$0xff]   ;;  %v21151_v11 = vld [vmem:[#allocation25_spill] sm:$0xff] }
 0x37d   :  { %21149 = vst [vmem:[#allocation39_spill] sm:$0xff] %v18933_v23  ;;  %v5202_v52 = vor.u32 %v5201_v17, %v5198_v59  ;;  %v18940_v39 = vor.u32 %v5211_v19, %v5208_v13  ;;  %5569 = vst [vmem:[#allocation2 + $0x890] sm:$0xf] %v5475_v55  ;;  %v5483_v22 = vrot.slane %v12219_v57, 7  ;;  %v18944_v54 = vadd.f32 %v18872_v7, %v18098_v31  ;;  %v12149_v29 = vld [vmem:[%s20879_s0 + $0x138] sm:$0xf] }
 0x37e   :  { %v5478_v37 = vsel %vm17832_vm1, %v5476_v42, %v5477_v26  ;;  %v5479_v16 = vrot.slane %v5477_v26, 4  ;;  %v5482_v30 = vrot.slane %v5480_v2, 4  ;;  %v18952_v4 = vadd.f32 %v9258_v0, %v21151_v11  ;;  %v13813_v59 = vld [vmem:[#allocation2 + $0x918] ss:$36 sps:$4 sm:$0xff]   ;;  %13100 = vmatprep.mubr.bf16.mxu0 %v13816_v56  ;;  %v21153_v13 = vld [vmem:[#allocation31_spill] sm:$0xff]  ;;  %v9091_v26 = vpop.f32.mrf.mxu0 }
 0x37f   :  { %21150 = vst [vmem:[#allocation46_spill] sm:$0xff] %v18944_v54  ;;  %v13815_v17 = vld [vmem:[#allocation2 + $0x91c] ss:$36 sps:$4 sm:$0xff]   ;;  %v5203_v31 = vsel %vm16462_vm14, %v5194_v35, %v5202_v52  ;;  %v5204_v7 = vrot.slane %v5202_v52, 4  ;;  %5570 = vst [vmem:[#allocation2 + $0x8b4] sm:$0xf] %v5478_v37  ;;  %v18957_v19 = vadd.f32 %v9084_v60, %v21153_v13  ;;  %v9263_v52 = vpop.f32.mrf.mxu1 }
 0x380   :  { %21152 = vst [vmem:[#allocation22_spill] sm:$0xff] %v18952_v4  ;;  %v21155_v55 = vld [vmem:[#allocation26_spill] sm:$0xff]  ;;  %v13817_v11 = vld [vmem:[#allocation2 + $0x848] ss:$36 sps:$4 sm:$0xff]   ;;  %5320 = vst [vmem:[#allocation2 + $0x964] sm:$0xf] %v5203_v31  ;;  %v5481_v56 = vsel %vm17832_vm1, %v5479_v16, %v5480_v2  ;;  %v5484_v35 = vsel %vm17832_vm1, %v5482_v30, %v5483_v22  ;;  %9424 = vmatprep.mubr.bf16.mxu1 %v13815_v17 }
 0x381   :  { %21154 = vst [vmem:[#allocation47_spill] sm:$0xff] %v18957_v19  ;;  %v18960_v42 = vadd.f32 %v9261_v27, %v21155_v55  ;;  %v21157_v57 = vld [vmem:[#allocation10_spill] sm:$0xff]  ;;  %v21159_v37 = vld [vmem:[#allocation33_spill] sm:$0xff]  ;;  %v21161_v13 = vld [vmem:[#allocation11_spill] sm:$0xff]  ;;  %v5213_v31 = vsel %vm16462_vm14, %v5204_v7, %v18940_v39  ;;  %v4766_v2 = vrot.slane %v12149_v29, 6  ;;  %9425 = vmatmul.mubr.bf16.gmra.mxu1 %v13813_v59  ;;  %13101 = vmatmul.mubr.bf16.gmra.mxu0 %v13817_v11  ;;  %v5214_v17 = vrot.slane %v18940_v39, 4 }
 0x382   :  { %v18964_v0 = vadd.f32 %v21158_v45, %v21157_v57  ;;  %v12150_v60 = vld [vmem:[%s20879_s0 + $0x13c] sm:$0xf]  ;;  %v18974_v27 = vadd.f32 %v9089_v25, %v21159_v37  ;;  %v21162_v55 = vld [vmem:[#allocation69_spill] sm:$0xff]  ;;  %5571 = vst [vmem:[#allocation2 + $0x8d8] sm:$0xf] %v5481_v56  ;;  %v9092_v57 = vpop.f32.mrf.mxu0  ;;  %v5485_v11 = vrot.slane %v5483_v22, 4 }
 0x383   :  { %21156 = vst [vmem:[#allocation48_spill] sm:$0xff] %v18960_v42  ;;  %v8777_v26 = vadd.f32 %v21162_v55, %v21161_v13  ;;  %5572 = vst [vmem:[#allocation2 + $0x8fc] sm:$0xf] %v5484_v35  ;;  %v4769_v16 = vrot.slane %v12150_v60, 6  ;;  %v12187_v30 = vld [vmem:[%s20879_s0 + $0x138] sm:$0xf]  ;;  %v4767_v35 = vsel %vm15161_vm10, %v18930_v34, %v4766_v2 }
 0x384   :  { %21160 = vst [vmem:[#allocation25_spill] sm:$0xff] %v18974_v27  ;;  %v12188_v25 = vld [vmem:[%s20879_s0 + $0x13c] sm:$0xf]  ;;  %5321 = vst [vmem:[#allocation2 + $0x988] sm:$0xf] %v5213_v31  ;;  %v5216_v45 = vshrl.u32 %v12187_v30, 16  ;;  %v9094_v37 = vpop.f32.mrf.mxu0 }
 0x385   :  { %v5219_v7 = vshll.u32 %v12187_v30, 16  ;;  %v5226_v56 = vshrl.u32 %v12188_v25, 16  ;;  %v12220_v29 = vld [vmem:[%s20879_s0 + $0x128] sm:$0xf]  ;;  %v4768_v60 = vrot.slane %v4766_v2, 4  ;;  %v5229_v52 = vshll.u32 %v12188_v25, 16  ;;  %v9266_v30 = vpop.f32.mrf.mxu1 }
 0x386   :  { %v12221_v59 = vld [vmem:[%s20879_s0 + $0x12c] sm:$0xf]  ;;  %4845 = vst [vmem:[#allocation2 + $0x9a8] sm:$0xf] %v4767_v35  ;;  %v5218_v39 = vrot.slane %v5216_v45, 6  ;;  %v5486_v31 = vrot.slane %v12220_v29, 7 }
 0x387   :  { %v5221_v13 = vrot.slane %v5219_v7, 7  ;;  %v5228_v55 = vrot.slane %v5226_v56, 6  ;;  %v4770_v27 = vsel %vm15161_vm10, %v4768_v60, %v4769_v16  ;;  %v5231_v19 = vrot.slane %v5229_v52, 7  ;;  %v12222_v34 = vld [vmem:[%s20879_s0 + $0x130] sm:$0xf]  ;;  %v21163_v2 = vld [vmem:[#allocation27_spill] sm:$0xff]  ;;  %v9268_v60 = vpop.f32.mrf.mxu1 }
 0x388   :  { %v5489_v54 = vrot.slane %v12221_v59, 7  ;;  %v12223_v22 = vld [vmem:[%s20879_s0 + $0x134] sm:$0xf]  ;;  %v19006_v25 = vadd.f32 %v9266_v30, %v21163_v2  ;;  %4846 = vst [vmem:[#allocation2 + $0x9cc] sm:$0xf] %v4770_v27  ;;  %v5487_v56 = vsel %vm17832_vm1, %v5485_v11, %v5486_v31  ;;  %v5488_v29 = vrot.slane %v5486_v31, 4  ;;  %v9097_v2 = vpop.f32.mrf.mxu0 }
 0x389   :  { %v13821_v45 = vld [vmem:[#allocation2 + $0x890] ss:$36 sps:$4 sm:$0xff]   ;;  %v5222_v7 = vor.u32 %v5221_v13, %v5218_v39  ;;  %v5492_v35 = vrot.slane %v12222_v34, 7  ;;  %v19010_v52 = vor.u32 %v5231_v19, %v5228_v55  ;;  %5573 = vst [vmem:[#allocation2 + $0x920] sm:$0xf] %v5487_v56  ;;  %v5495_v37 = vrot.slane %v12223_v22, 7  ;;  %v9269_v13 = vpop.f32.mrf.mxu1 }
 0x38a   :  { %21164 = vst [vmem:[#allocation31_spill] sm:$0xff] %v19006_v25  ;;  %v5491_v59 = vrot.slane %v5489_v54, 4  ;;  %v12151_v21 = vld [vmem:[%s20879_s0 + $0x140] sm:$0xf]  ;;  %v4771_v30 = vrot.slane %v4769_v16, 4  ;;  %13104 = vmatprep.mubr.bf16.mxu0 %v13821_v45  ;;  %v5490_v11 = vsel %vm17832_vm1, %v5488_v29, %v5489_v54  ;;  %v19020_v19 = vadd.f32 %v9092_v57, %v18964_v0  ;;  %v21167_v31 = vld [vmem:[#allocation12_spill] sm:$0xff]  ;;  %v9099_v54 = vpop.f32.mrf.mxu0 }
 0x38b   :  { %v13822_v27 = vld [vmem:[#allocation2 + $0x8d8] ss:$36 sps:$4 sm:$0xff]   ;;  %v5223_v39 = vsel %vm16462_vm14, %v5214_v17, %v5222_v7  ;;  %v19022_v55 = vadd.f32 %v9097_v2, %v8777_v26  ;;  %v21168_v34 = vld [vmem:[#allocation45_spill] sm:$0xff]  ;;  %v13818_v56 = vld [vmem:[#allocation2 + $0x960] ss:$36 sps:$4 sm:$0xff]   ;;  %v5224_v60 = vrot.slane %v5222_v7, 4 }
 0x38c   :  { %21165 = vst [vmem:[#allocation26_spill] sm:$0xff] %v19020_v19  ;;  %v8780_v22 = vadd.f32 %v21168_v34, %v21167_v31  ;;  %v13820_v16 = vld [vmem:[#allocation2 + $0x964] ss:$36 sps:$4 sm:$0xff]   ;;  %5322 = vst [vmem:[#allocation2 + $0x9ac] sm:$0xf] %v5223_v39  ;;  %v5493_v17 = vsel %vm17832_vm1, %v5491_v59, %v5492_v35  ;;  %v21171_v0 = vld [vmem:[#allocation13_spill] sm:$0xff]  ;;  %13105 = vmatmul.mubr.bf16.gmra.mxu0 %v13822_v27  ;;  %v9271_v39 = vpop.f32.mrf.mxu1 }
 0x38d   :  { %21166 = vst [vmem:[#allocation10_spill] sm:$0xff] %v19022_v55  ;;  %5574 = vst [vmem:[#allocation2 + $0x944] sm:$0xf] %v5490_v11  ;;  %v21169_v45 = vld [vmem:[#allocation52_spill] sm:$0xff]  ;;  %v21172_v57 = vld [vmem:[#allocation21_spill] sm:$0xff]  ;;  %v5494_v26 = vrot.slane %v5492_v35, 4  ;;  %v10138_v11 = vlaneseq  ;;  %9432 = vmatprep.mubr.bf16.mxu1 %v13820_v16 }
 0x38e   :  { %v19029_v51 = vadd.f32 %v9269_v13, %v21169_v45  ;;  %v19033_v29 = vadd.f32 %v21172_v57, %v21171_v0  ;;  %5575 = vst [vmem:[#allocation2 + $0x968] sm:$0xf] %v5493_v17  ;;  %v12152_v7 = vld [vmem:[%s20879_s0 + $0x144] sm:$0x3]  ;;  %v4772_v2 = vrot.slane %v12151_v21, 6  ;;  %v5233_v13 = vsel %vm16462_vm14, %v5224_v60, %v19010_v52  ;;  %v9100_v21 = vpop.f32.mrf.mxu0  ;;  %9433 = vmatmul.mubr.bf16.gmra.mxu1 %v13818_v56 }
 0x38f   :  { %v12189_v59 = vld [vmem:[%s20879_s0 + $0x140] sm:$0xf]  ;;  %v4775_v31 = vrot.slane %v12152_v7, 6  ;;  %v12190_v35 = vld [vmem:[%s20879_s0 + $0x144] sm:$0x7]  ;;  %v5234_v27 = vrot.slane %v19010_v52, 4  ;;  %v5496_v17 = vsel %vm17832_vm1, %v5494_v26, %v5495_v37 }
 0x390   :  { %21170 = vst [vmem:[#allocation68_spill] sm:$0xff] %v19029_v51  ;;  %v5236_v34 = vshrl.u32 %v12189_v59, 16  ;;  %5323 = vst [vmem:[#allocation2 + $0x9d0] sm:$0xf] %v5233_v13  ;;  %v4773_v16 = vsel %vm15161_vm10, %v4771_v30, %v4772_v2  ;;  %v4774_v45 = vrot.slane %v4772_v2, 4  ;;  %v5239_v54 = vshll.u32 %v12189_v59, 16  ;;  %v9102_v26 = vpop.f32.mrf.mxu0 }
 0x391   :  { %v12224_v60 = vld [vmem:[%s20879_s0 + $0x138] sm:$0xf]  ;;  %v12225_v52 = vld [vmem:[%s20879_s0 + $0x13c] sm:$0xf]  ;;  %5576 = vst [vmem:[#allocation2 + $0x98c] sm:$0xf] %v5496_v17  ;;  %v19066_v17 = vadd.f32 %v9100_v21, %v8780_v22 }
 0x392   :  { %4847 = vst [vmem:[#allocation2 + $0x9f0] sm:$0xf] %v4773_v16  ;;  %v5238_v56 = vrot.slane %v5236_v34, 6  ;;  %v5246_v0 = vshrl.u32 %v12190_v35, 16  ;;  %v5249_v57 = vshll.u32 %v12190_v35, 16  ;;  %v5497_v7 = vrot.slane %v5495_v37, 4  ;;  %v9274_v37 = vpop.f32.mrf.mxu1 }
 0x393   :  { %v12226_v30 = vld [vmem:[%s20879_s0 + $0x140] sm:$0xf]  ;;  %v4776_v2 = vsel %vm15161_vm10, %v4774_v45, %v4775_v31  ;;  %v5241_v59 = vrot.slane %v5239_v54, 7  ;;  %v5498_v39 = vrot.slane %v12224_v60, 7  ;;  %v5501_v13 = vrot.slane %v12225_v52, 7  ;;  %21173 = vst [vmem:[#allocation33_spill] sm:$0xff] %v19066_v17 }
 0x394   :  { %4848 = vst [vmem:[#allocation2 + $0xa14] sm:$0xf] %v4776_v2  ;;  %v5248_v55 = vrot.slane %v5246_v0, 6  ;;  %v5251_v19 = vrot.slane %v5249_v57, 7  ;;  %v12227_v34 = vld [vmem:[%s20879_s0 + $0x144] sm:$0x7]  ;;  %v9276_v26 = vpop.f32.mrf.mxu1 }
 0x395   :  { %v5504_v35 = vrot.slane %v12226_v30, 7  ;;  %v13826_v16 = vld [vmem:[#allocation2 + $0x920] ss:$36 sps:$4 sm:$0xff]   ;;  %v5242_v50 = vor.u32 %v5241_v59, %v5238_v56  ;;  %v5499_v12 = vsel %vm17832_vm1, %v5497_v7, %v5498_v39  ;;  %v5500_v31 = vrot.slane %v5498_v39, 4  ;;  %v21174_v45 = vld [vmem:[#allocation28_spill] sm:$0xff]  ;;  %v21176_v7 = vld [vmem:[#allocation14_spill] sm:$0xff] }
 0x396   :  { %v19071_v54 = vadd.f32 %v9274_v37, %v21174_v45  ;;  %v5252_v60 = vor.u32 %v5251_v19, %v5248_v55  ;;  %v5503_v52 = vrot.slane %v5501_v13, 4  ;;  %5577 = vst [vmem:[#allocation2 + $0x9b0] sm:$0xf] %v5499_v12  ;;  %v5507_v57 = vrot.slane %v12227_v34, 7  ;;  %13108 = vmatprep.mubr.bf16.mxu0 %v13826_v16  ;;  %v21177_v2 = vld [vmem:[#allocation70_spill] sm:$0xff] }
 0x397   :  { %v5506_v0 = vrot.slane %v5504_v35, 4  ;;  %v5243_v22 = vsel %vm16462_vm14, %v5234_v27, %v5242_v50  ;;  %v5244_v21 = vrot.slane %v5242_v50, 4  ;;  %v5502_v56 = vsel %vm17832_vm1, %v5500_v31, %v5501_v13  ;;  %v13823_v39 = vld [vmem:[#allocation2 + $0x9a8] ss:$36 sps:$4 sm:$0xff]   ;;  %v9277_v27 = vpop.f32.mrf.mxu1  ;;  %v9105_v50 = vpop.f32.mrf.mxu0  ;;  %v21178_v13 = vld [vmem:[#allocation53_spill] sm:$0xff] }
 0x398   :  { %21175 = vst [vmem:[#allocation11_spill] sm:$0xff] %v19071_v54  ;;  %v19077_v30 = vshrl.u32 %v10138_v11, 7  ;;  %v8788_v59 = vadd.f32 %v21177_v2, %v21176_v7  ;;  %v13825_v19 = vld [vmem:[#allocation2 + $0x9ac] ss:$36 sps:$4 sm:$0xff]   ;;  %5324 = vst [vmem:[#allocation2 + $0x9f4] sm:$0xf] %v5243_v22  ;;  %v5505_v55 = vsel %vm17832_vm1, %v5503_v52, %v5504_v35  ;;  %v19088_v16 = vadd.f32 %v9277_v27, %v21178_v13 }
 0x399   :  { %5578 = vst [vmem:[#allocation2 + $0x9d4] sm:$0xf] %v5502_v56  ;;  %v5508_v34 = vsel %vm17832_vm1, %v5506_v0, %v5507_v57  ;;  %v13827_v37 = vld [vmem:[#allocation2 + $0x968] ss:$36 sps:$4 sm:$0xff]   ;;  %v5253_v11 = vsel %vm16462_vm14, %v5244_v21, %v5252_v60  ;;  %5579 = vst [vmem:[#allocation2 + $0x9f8] sm:$0xf] %v5505_v55  ;;  %v19091_v12 = vadd.f32 %v9105_v50, %v19033_v29  ;;  %9440 = vmatprep.mubr.bf16.mxu1 %v13825_v19  ;;  %v9279_v41 = vpop.f32.mrf.mxu1  ;;  %v9107_v35 = vpop.f32.mrf.mxu0 }
 0x39a   :  { %5580 = vst [vmem:[#allocation2 + $0xa1c] sm:$0xf] %v5508_v34  ;;  %21179 = vst [vmem:[#allocation69_spill] sm:$0xff] %v19088_v16  ;;  %v10141_v31 = vadd.s32 16, %v19077_v30  ;;  %v19095_v45 = vmul.u32.u64.low 3817748708, %v19077_v30  ;;  %v19096_v52 = vmul.u32.u64.high 3817748708, %v19077_v30, %v19095_v45  ;;  %9441 = vmatmul.mubr.bf16.gmra.mxu1 %v13823_v39  ;;  %13109 = vmatmul.mubr.bf16.gmra.mxu0 %v13827_v37 }
 0x39b   :  { %21180 = vst [vmem:[#allocation27_spill] sm:$0xff] %v19091_v12  ;;  %5325 = vst [vmem:[#allocation2 + $0xa18] sm:$0xf] %v5253_v11  ;;  %v10142_v6 = vadd.s32 24, %v19077_v30  ;;  %v19100_v60 = vadd.s32 8, %v19077_v30  ;;  %v19106_v57 = vadd.s32 48, %v19077_v30  ;;  %v9108_v22 = vpop.f32.mrf.mxu0  ;;  %v9282_v35 = vpop.f32.mrf.mxu1 }
 0x39c   :  { %v19102_v0 = vmul.u32.u64.low 3817748708, %v10141_v31  ;;  %v19103_v29 = vmul.u32.u64.high 3817748708, %v10141_v31, %v19102_v0  ;;  %v19109_v26 = vadd.s32 32, %v19077_v30  ;;  %v19118_v19 = vadd.f32 %v9108_v22, %v8788_v59  ;;  %v13828_v45 = vld [vmem:[#allocation2 + $0x9f0] ss:$36 sps:$4 sm:$0xff]  }
 0x39d   :  { %v19111_v21 = vmul.u32.u64.low 3817748708, %v10142_v6  ;;  %v19112_v56 = vmul.u32.u64.high 3817748708, %v10142_v6, %v19111_v21  ;;  %v19115_v7 = vmul.u32.u64.low 3817748708, %v19100_v60  ;;  %v19116_v2 = vmul.u32.u64.high 3817748708, %v19100_v60, %v19115_v7  ;;  %v9110_v34 = vpop.f32.mrf.mxu0  ;;  %v21182_v0 = vld [vmem:[#allocation29_spill] sm:$0xff] }
 0x39e   :  { %21181 = vst [vmem:[#allocation12_spill] sm:$0xff] %v19118_v19  ;;  %v19121_v39 = vmul.u32.u64.low 3817748708, %v19106_v57  ;;  %v19122_v55 = vmul.u32.u64.high 3817748708, %v19106_v57, %v19121_v39  ;;  %v19125_v27 = vmul.u32.u64.low 3817748708, %v19109_v26  ;;  %v19126_v50 = vmul.u32.u64.high 3817748708, %v19109_v26, %v19125_v27  ;;  %v21184_v7 = vld [vmem:[#allocation15_spill] sm:$0xff] }
 0x39f   :  { %v19129_v37 = vadd.s32 56, %v19077_v30  ;;  %v10239_v13 = vshrl.u32 %v19103_v29, 4  ;;  %v19133_v22 = vadd.f32 %v9282_v35, %v21182_v0  ;;  %v10217_v21 = vshrl.u32 %v19096_v52, 4  ;;  %v21185_v39 = vld [vmem:[#allocation23_spill] sm:$0xff]  ;;  %v9284_v27 = vpop.f32.mrf.mxu1  ;;  %v9113_v12 = vpop.f32.mrf.mxu0  ;;  %v21187_v0 = vld [vmem:[#allocation54_spill] sm:$0xff] }
 0x3a0   :  { %v13831_v11 = vld [vmem:[#allocation2 + $0x9b0] ss:$36 sps:$4 sm:$0xff]   ;;  %v8793_v34 = vadd.f32 %v21185_v39, %v21184_v7  ;;  %v10250_v19 = vshrl.u32 %v19112_v56, 4  ;;  %v10228_v52 = vshrl.u32 %v19116_v2, 4  ;;  %v21189_v56 = vld [vmem:[#allocation16_spill] sm:$0xff]  ;;  %v10283_v48 = vshrl.u32 %v19122_v55, 4 }
 0x3a1   :  { %v13832_v41 = vld [vmem:[#allocation2 + $0x9f8] ss:$36 sps:$4 sm:$0xff]   ;;  %13112 = vmatprep.mubr.bf16.mxu0 %v13831_v11  ;;  %21183 = vst [vmem:[#allocation45_spill] sm:$0xff] %v19133_v22  ;;  %v10240_v29 = vmul.u32 18, %v10239_v13  ;;  %v19140_v17 = vmul.u32.u64.low 3817748708, %v19129_v37  ;;  %v19141_v32 = vmul.u32.u64.high 3817748708, %v19129_v37, %v19140_v17  ;;  %v9285_v11 = vpop.f32.mrf.mxu1  ;;  %v9115_v7 = vpop.f32.mrf.mxu0 }
 0x3a2   :  { %v13830_v59 = vld [vmem:[#allocation2 + $0x9f4] ss:$36 sps:$4 sm:$0xff]   ;;  %13113 = vmatmul.mubr.bf16.gmra.mxu0 %v13832_v41  ;;  %v19143_v35 = vadd.f32 %v9113_v12, %v8793_v34  ;;  %v19147_v33 = vadd.f32 %v9285_v11, %v21187_v0  ;;  %v10218_v39 = vmul.u32 18, %v10217_v21  ;;  %v10251_v13 = vmul.u32 18, %v10250_v19 }
 0x3a3   :  { %9448 = vmatprep.mubr.bf16.mxu1 %v13830_v59  ;;  %v21190_v59 = vld [vmem:[#allocation24_spill] sm:$0xff]  ;;  %v9287_v27 = vpop.f32.mrf.mxu1  ;;  %v9116_v44 = vpop.f32.mrf.mxu0  ;;  %v19152_v17 = vsub.s32 %v10141_v31, %v10240_v29  ;;  %v19155_v12 = vadd.s32 40, %v19077_v30  ;;  %v10229_v2 = vmul.u32 18, %v10228_v52  ;;  %v21192_v34 = vld [vmem:[#allocation17_spill] sm:$0xff]  ;;  %v21194_v21 = vld [vmem:[#allocation18_spill] sm:$0xff]  ;;  %v10261_v55 = vshrl.u32 %v19126_v50, 4 }
 0x3a4   :  { %9449 = vmatmul.mubr.bf16.gmra.mxu1 %v13828_v45  ;;  %21186 = vst [vmem:[#allocation52_spill] sm:$0xff] %v19143_v35  ;;  %21188 = vst [vmem:[#allocation13_spill] sm:$0xff] %v19147_v33  ;;  %v8796_v41 = vadd.f32 %v21190_v59, %v21189_v56  ;;  %v21193_v11 = vld [vmem:[#allocation49_spill] sm:$0xff]  ;;  %v21195_v7 = vld [vmem:[#allocation50_spill] sm:$0xff]  ;;  %v19164_v19 = vsub.s32 %v19077_v30, %v10218_v39  ;;  %v19175_v52 = vsub.s32 %v10142_v6, %v10251_v13 }
 0x3a5   :  { %v8801_v0 = vadd.f32 %v21193_v11, %v21192_v34  ;;  %v8804_v35 = vadd.f32 %v21195_v7, %v21194_v21  ;;  %v9118_v56 = vpop.f32.mrf.mxu0  ;;  %v21196_v31 = vld [vmem:[#allocation19_spill] sm:$0xff]  ;;  %v21198_v27 = vld [vmem:[#allocation20_spill] sm:$0xff]  ;;  %v10284_v34 = vmul.u32 18, %v10283_v48  ;;  %v9290_v11 = vpop.f32.mrf.mxu1  ;;  %vm11005_vm2 = vcmp.ne.s32.totalorder %v19152_v17, 0  ;;  %v21200_v50 = vld [vmem:[#allocation30_spill] sm:$0xff] }
 0x3a6   :  { %v19157_v45 = vadd.f32 %v9116_v44, %v8796_v41  ;;  %v21197_v29 = vld [vmem:[#allocation51_spill] sm:$0xff]  ;;  %v10294_v21 = vshrl.u32 %v19141_v32, 4  ;;  %v19180_v39 = vmul.u32.u64.low 3817748708, %v19155_v12  ;;  %v19181_v7 = vmul.u32.u64.high 3817748708, %v19155_v12, %v19180_v39 }
 0x3a7   :  { %v19169_v59 = vadd.f32 %v21197_v29, %v21196_v31  ;;  %v21199_v44 = vld [vmem:[#allocation71_spill] sm:$0xff]  ;;  %v19184_v56 = vadd.f32 %v9290_v11, %v21200_v50  ;;  %vm11077_vm3 = vcmp.lt.s32.totalorder %v19152_v17, 0  ;;  %v19188_v31 = vadd.s32 18, %v19152_v17  ;;  %v9292_v48 = vpop.f32.mrf.mxu1  ;;  %v9121_v29 = vpop.f32.mrf.mxu0 }
 0x3a8   :  { %21191 = vst [vmem:[#allocation21_spill] sm:$0xff] %v19157_v45  ;;  %v19173_v41 = vadd.f32 %v21199_v44, %v21198_v27  ;;  %v19191_v6 = vsub.s32 %v19100_v60, %v10229_v2  ;;  %vm11003_vm4 = vcmp.ne.s32.totalorder %v19164_v19, 0  ;;  %vm11075_vm5 = vcmp.lt.s32.totalorder %v19164_v19, 0  ;;  %v21203_v50 = vld [vmem:[#allocation55_spill] sm:$0xff]  ;;  %vm19251_vm12 = vmand %vm11077_vm3, %vm11005_vm2 }
 0x3a9   :  { %21201 = vst [vmem:[#allocation28_spill] sm:$0xff] %v19184_v56  ;;  %v19196_v32 = vadd.s32 18, %v19164_v19  ;;  %v10262_v13 = vmul.u32 18, %v10261_v55  ;;  %vm11006_vm6 = vcmp.ne.s32.totalorder %v19175_v52, 0  ;;  %v19200_v27 = vsub.s32 %v19106_v57, %v10284_v34  ;;  %v9293_v60 = vpop.f32.mrf.mxu1  ;;  %v9123_v57 = vpop.f32.mrf.mxu0  ;;  %vm19266_vm13 = vmand %vm11075_vm5, %vm11003_vm4 }
 0x3aa   :  { %v10295_v44 = vmul.u32 18, %v10294_v21  ;;  %v19203_v11 = vadd.s32 80, %v19077_v30  ;;  %v19205_v2 = vadd.f32 %v9121_v29, %v8801_v0  ;;  %vm11078_vm7 = vcmp.lt.s32.totalorder %v19175_v52, 0 }
 0x3ab   :  { %v19209_v39 = vadd.s32 18, %v19175_v52  ;;  %v19212_v55 = vadd.s32 64, %v19077_v30  ;;  %v19215_v48 = vadd.f32 %v9293_v60, %v21203_v50  ;;  %vm11004_vm8 = vcmp.ne.s32.totalorder %v19191_v6, 0  ;;  %v9295_v0 = vpop.f32.mrf.mxu1  ;;  %v9124_v60 = vpop.f32.mrf.mxu0  ;;  %vm19283_vm1 = vmand %vm11078_vm7, %vm11006_vm6 }
 0x3ac   :  { %21202 = vst [vmem:[#allocation14_spill] sm:$0xff] %v19205_v2  ;;  %vm11076_vm9 = vcmp.lt.s32.totalorder %v19191_v6, 0  ;;  %v10272_v34 = vshrl.u32 %v19181_v7, 4  ;;  %v19221_v21 = vsub.s32 %v19109_v26, %v10262_v13  ;;  %v19224_v29 = vsub.s32 %v19129_v37, %v10295_v44 }
 0x3ad   :  { %21204 = vst [vmem:[#allocation70_spill] sm:$0xff] %v19215_v48  ;;  %v19227_v2 = vmul.u32.u64.low 3817748708, %v19203_v11  ;;  %v19228_v45 = vmul.u32.u64.high 3817748708, %v19203_v11, %v19227_v2  ;;  %v19231_v50 = vadd.s32 18, %v19191_v6  ;;  %vm11009_vm10 = vcmp.ne.s32.totalorder %v19200_v27, 0  ;;  %v9298_v33 = vpop.f32.mrf.mxu1  ;;  %vm19296_vm2 = vmand %vm11076_vm9, %vm11004_vm8 }
 0x3ae   :  { %vm11081_vm11 = vcmp.lt.s32.totalorder %v19200_v27, 0  ;;  %v19236_v7 = vadd.s32 88, %v19077_v30  ;;  %v19238_v26 = vadd.f32 %v9124_v60, %v8804_v35  ;;  %v19241_v37 = vadd.s32 18, %v19200_v27  ;;  %v9126_v2 = vpop.f32.mrf.mxu0 }
 0x3af   :  { %v19244_v13 = vmul.u32.u64.low 3817748708, %v19212_v55  ;;  %v19245_v44 = vmul.u32.u64.high 3817748708, %v19212_v55, %v19244_v13  ;;  %v10273_v0 = vmul.u32 18, %v10272_v34  ;;  %vm11007_vm14 = vcmp.ne.s32.totalorder %v19221_v21, 0  ;;  %v21210_v2 = vld [vmem:[#allocation3_spill] sm:$0xff]  ;;  %v9300_v51 = vpop.f32.mrf.mxu1  ;;  %vm19310_vm4 = vmand %vm11081_vm11, %vm11009_vm10 }
 0x3b0   :  { %21205 = vst [vmem:[#allocation53_spill] sm:$0xff] %v19238_v26  ;;  %v19256_v35 = vmul.u32.u64.low 3817748708, %v19236_v7  ;;  %v19257_v60 = vmul.u32.u64.high 3817748708, %v19236_v7, %v19256_v35  ;;  %v19260_v26 = vadd.s32 72, %v19077_v30  ;;  %vm11079_vm15 = vcmp.lt.s32.totalorder %v19221_v21, 0  ;;  %v9129_v16 = vpop.f32.mrf.mxu0 }
 0x3b1   :  { %v19273_v34 = vadd.s32 18, %v19221_v21  ;;  %vm11010_vm0 = vcmp.ne.s32.totalorder %v19224_v29, 0  ;;  %v19277_v35 = vadd.f32 %v9298_v33, %v21210_v2  ;;  %v10327_v22 = vshrl.u32 %v19228_v45, 4  ;;  %v9301_v23 = vpop.f32.mrf.mxu1  ;;  %vm19328_vm5 = vmand %vm11079_vm15, %vm11007_vm14 }
 0x3b2   :  { %v19289_v53 = vmul.u32.u64.low 3817748708, %v19260_v26  ;;  %v19290_v56 = vmul.u32.u64.high 3817748708, %v19260_v26, %v19289_v53  ;;  %vm11082_vm3 = vcmp.lt.s32.totalorder %v19224_v29, 0  ;;  %v10305_v2 = vshrl.u32 %v19245_v44, 4 }
 0x3b3   :  { %21211 = vst [vmem:[#allocation29_spill] sm:$0xff] %v19277_v35  ;;  %v10153_v35 = vadd.s32 112, %v19077_v30  ;;  %v19304_v45 = vadd.s32 96, %v19077_v30  ;;  %v19315_v51 = vadd.s32 18, %v19224_v29  ;;  %v19318_v25 = vsub.s32 %v19155_v12, %v10273_v0  ;;  %v21221_v12 = vld [vmem:[#allocation4_spill] sm:$0xff]  ;;  %v9131_v0 = vpop.f32.mrf.mxu0  ;;  %vm19350_vm6 = vmand %vm11082_vm3, %vm11010_vm0 }
 0x3b4   :  { %v10328_v44 = vmul.u32 18, %v10327_v22  ;;  %v10338_v54 = vshrl.u32 %v19257_v60, 4  ;;  %v19322_v42 = vadd.f32 %v9129_v16, %v19169_v59  ;;  %v10306_v4 = vmul.u32 18, %v10305_v2  ;;  %v9303_v60 = vpop.f32.mrf.mxu1 }
 0x3b5   :  { %v19332_v28 = vmul.u32.u64.low 3817748708, %v10153_v35  ;;  %v19333_v1 = vmul.u32.u64.high 3817748708, %v10153_v35, %v19332_v28  ;;  %v19336_v22 = vadd.f32 %v9301_v23, %v21221_v12  ;;  %v11293_v16 = vsel %vm19251_vm12, %v19188_v31, %v19152_v17  ;;  %v21226_v60 = vld [vmem:[#allocation32_spill] sm:$0xff] }
 0x3b6   :  { %21218 = vst [vmem:[#allocation15_spill] sm:$0xff] %v19322_v42  ;;  %v11291_v59 = vsel %vm19266_vm13, %v19196_v32, %v19164_v19  ;;  %v19355_v23 = vsub.s32 %v19203_v11, %v10328_v44  ;;  %v10339_v2 = vmul.u32 18, %v10338_v54  ;;  %v10316_v17 = vshrl.u32 %v19290_v56, 4  ;;  %v9132_v19 = vpop.f32.mrf.mxu0  ;;  %v9306_v44 = vpop.f32.mrf.mxu1 }
 0x3b7   :  { %21222 = vst [vmem:[#allocation23_spill] sm:$0xff] %v19336_v22  ;;  %v19359_v31 = vmul.u32.u64.low 3817748708, %v19304_v45  ;;  %v19360_v57 = vmul.u32.u64.high 3817748708, %v19304_v45, %v19359_v31  ;;  %v11294_v32 = vsel %vm19283_vm1, %v19209_v39, %v19175_v52  ;;  %v11292_v11 = vsel %vm19296_vm2, %v19231_v50, %v19191_v6 }
 0x3b8   :  { %v19375_v56 = vsub.s32 %v19212_v55, %v10306_v4  ;;  %v19378_v13 = vadd.f32 %v9132_v19, %v19173_v41  ;;  %vm11008_vm7 = vcmp.ne.s32.totalorder %v19318_v25, 0  ;;  %v9134_v39 = vpop.f32.mrf.mxu0  ;;  %vm11080_vm8 = vcmp.lt.s32.totalorder %v19318_v25, 0 }
 0x3b9   :  { %v19391_v4 = vadd.s32 18, %v19318_v25  ;;  %v19394_v41 = vadd.s32 120, %v19077_v30  ;;  %v19397_v55 = vadd.s32 104, %v19077_v30  ;;  %vm11013_vm9 = vcmp.ne.s32.totalorder %v19355_v23, 0  ;;  %vm19443_vm1 = vmand %vm11080_vm8, %vm11008_vm7 }
 0x3ba   :  { %21225 = vst [vmem:[#allocation54_spill] sm:$0xff] %v19378_v13  ;;  %v19401_v48 = vsub.s32 %v19236_v7, %v10339_v2  ;;  %v10317_v50 = vmul.u32 18, %v10316_v17  ;;  %v10371_v33 = vshrl.u32 %v19333_v1, 4  ;;  %vm11085_vm10 = vcmp.lt.s32.totalorder %v19355_v23, 0  ;;  %v9308_v1 = vpop.f32.mrf.mxu1  ;;  %v13046_v13 = vpop.f32.mrf.mxu0 }
 0x3bb   :  { %v19406_v12 = vadd.s32 18, %v19355_v23  ;;  %vm11011_vm11 = vcmp.ne.s32.totalorder %v19375_v56, 0  ;;  %v10349_v0 = vshrl.u32 %v19360_v57, 4  ;;  %v19411_v31 = vadd.f32 %v9306_v44, %v21226_v60  ;;  %vm19468_vm3 = vmand %vm11085_vm10, %vm11013_vm9 }
 0x3bc   :  { %vm11083_vm12 = vcmp.lt.s32.totalorder %v19375_v56, 0  ;;  %v19415_v7 = vsub.s32 %v19260_v26, %v10317_v50  ;;  %v10372_v2 = vmul.u32 18, %v10371_v33  ;;  %vm19417_vm13 = vcmp.lt.s32.totalorder %v11293_v16, 16  ;;  %v9309_v50 = vpop.f32.mrf.mxu1 }
 0x3bd   :  { %21227 = vst [vmem:[#allocation16_spill] sm:$0xff] %v19411_v31  ;;  %v19422_v19 = vadd.s32 18, %v19375_v56  ;;  %v10350_v39 = vmul.u32 18, %v10349_v0  ;;  %v19425_v57 = vmul.u32.u64.low 3817748708, %v19394_v41  ;;  %v19426_v6 = vmul.u32.u64.high 3817748708, %v19394_v41, %v19425_v57  ;;  %vm19485_vm9 = vmand %vm11083_vm12, %vm11011_vm11 }
 0x3be   :  { %vm19428_vm14 = vcmp.lt.s32.totalorder %v11291_v59, 16  ;;  %vm11014_vm15 = vcmp.ne.s32.totalorder %v19401_v48, 0  ;;  %v19434_v26 = vsub.s32 %v10153_v35, %v10372_v2  ;;  %v19437_v16 = vadd.s32 144, %v19077_v30 }
 0x3bf   :  { %v19448_v59 = vsub.s32 %v19304_v45, %v10350_v39  ;;  %v19451_v0 = vmul.u32.u64.low 3817748708, %v19397_v55  ;;  %v19452_v60 = vmul.u32.u64.high 3817748708, %v19397_v55, %v19451_v0  ;;  %v19455_v35 = vadd.s32 128, %v19077_v30 }
 0x3c0   :  { %v19458_v2 = vadd.f32 %v9309_v50, %v18195_v8  ;;  %vm19460_vm2 = vcmp.lt.s32.totalorder %v11294_v32, 16  ;;  %v21235_v1 = vmov 0  ;;  %v19473_v39 = vadd.s32 18, %v19401_v48  ;;  %v9311_v8 = vpop.f32.mrf.mxu1 }
 0x3c1   :  { %v21236_v1 = vsel %vm19460_vm2, 4294967295, %v21235_v1  ;;  %vm19477_vm0 = vcmp.lt.s32.totalorder %v11292_v11, 16  ;;  %v21239_v32 = vmov 0  ;;  %v19490_v50 = vadd.s32 18, %v19415_v7 }
 0x3c2   :  { %21234 = vst [vmem:[#allocation24_spill] sm:$0xff] %v19458_v2  ;;  %v21240_v32 = vsel %vm19477_vm0, 4294967295, %v21239_v32  ;;  %vm11017_vm10 = vcmp.ne.s32.totalorder %v19434_v26, 0  ;;  %vm21243_vm0 = vcmp.lt.s32.totalorder %v19401_v48, 0  ;;  %vm11087_vm11 = vcmp.lt.s32.totalorder %v19448_v59, 0  ;;  %v9314_v52 = vpop.f32.mrf.mxu1 }
 0x3c3   :  { %vm19499_vm2 = vmand %vm21243_vm0, %vm11014_vm15  ;;  %v10382_v0 = vshrl.u32 %v19426_v6, 4  ;;  %v19506_v8 = vmul.u32.u64.low 3817748708, %v19437_v16  ;;  %v19507_v54 = vmul.u32.u64.high 3817748708, %v19437_v16, %v19506_v8  ;;  %vm21246_vm12 = vcmp.ne.s32.totalorder %v19415_v7, 0 }
 0x3c4   :  { %vm21247_vm7 = vcmp.lt.s32.totalorder %v19415_v7, 0  ;;  %v19518_v22 = vadd.s32 18, %v19434_v26  ;;  %v10360_v2 = vshrl.u32 %v19452_v60, 4  ;;  %v19526_v8 = vadd.f32 %v9314_v52, %v18236_v63  ;;  %v9316_v63 = vpop.f32.mrf.mxu1  ;;  %v9491_v52 = vpop.f32.mrf.mxu0 }
 0x3c5   :  { %vm19513_vm8 = vmand %vm21247_vm7, %vm21246_vm12  ;;  %v19522_v6 = vmul.u32.u64.low 3817748708, %v19455_v35  ;;  %v19523_v31 = vmul.u32.u64.high 3817748708, %v19455_v35, %v19522_v6  ;;  %v9500_v58 = vadd.f32 %v13046_v13, %v21251_v18  ;;  %v11296_v62 = vsel %vm19443_vm1, %v19391_v4, %v19318_v25  ;;  %v21258_v63 = vld [vmem:[#allocation5_spill] sm:$0xff] }
 0x3c6   :  { %21250 = vst [vmem:[#allocation17_spill] sm:$0xff] %v19526_v8  ;;  %vm21252_vm15 = vcmp.lt.s32.totalorder %v19434_v26, 0  ;;  %v19542_v6 = vadd.s32 18, %v19448_v59  ;;  %v11301_v18 = vsel %vm19468_vm3, %v19406_v12, %v19355_v23  ;;  %v11299_v25 = vsel %vm19485_vm9, %v19422_v19, %v19375_v56  ;;  %v9317_v19 = vpop.f32.mrf.mxu1  ;;  %v13047_v45 = vpop.f32.mrf.mxu0 }
 0x3c7   :  { %vm19537_vm0 = vmand %vm21252_vm15, %vm11017_vm10  ;;  %vm21255_vm1 = vcmp.ne.s32.totalorder %v19448_v59, 0  ;;  %v10383_v4 = vmul.u32 18, %v10382_v0  ;;  %v10361_v33 = vmul.u32 18, %v10360_v2  ;;  %v9492_v8 = vadd.f32 %v9491_v52, %v21258_v63 }
 0x3c8   :  { %vm19556_vm7 = vmand %vm11087_vm11, %vm21255_vm1  ;;  %v10415_v12 = vshrl.u32 %v19507_v54, 4  ;;  %v19567_v56 = vadd.s32 152, %v19077_v30  ;;  %v21259_v57 = vsel %vm19328_vm5, %v19273_v34, %v19221_v21  ;;  %v11581_v21 = vsel %vm19417_vm13, %v9500_v58, 0.0  ;;  %v21262_v34 = vld [vmem:[#allocation34_spill] sm:$0xff]  ;;  %v9494_v54 = vpop.f32.mrf.mxu0 }
 0x3c9   :  { %vm19574_vm3 = vcmp.lt.s32.totalorder %v21259_v57, 16  ;;  %v19587_v52 = vsub.s32 %v19394_v41, %v10383_v4  ;;  %v19590_v5 = vsub.s32 %v19397_v55, %v10361_v33  ;;  %v19595_v63 = vadd.f32 %v9317_v19, %v21262_v34  ;;  %v9319_v4 = vpop.f32.mrf.mxu1  ;;  %v21267_v19 = vld [vmem:[#allocation6_spill] sm:$0xff] }
 0x3ca   :  { %v9503_v57 = vadd.f32 %v13047_v45, %v18320_v14  ;;  %v11579_v41 = vsel %vm19428_vm14, %v9492_v8, 0.0  ;;  %v21264_v55 = vsel %vm19310_vm4, %v19241_v37, %v19200_v27  ;;  %v10416_v14 = vmul.u32 18, %v10415_v12  ;;  %v13050_v23 = vpop.f32.mrf.mxu0 }
 0x3cb   :  { %21263 = vst [vmem:[#allocation49_spill] sm:$0xff] %v19595_v63  ;;  %vm19609_vm5 = vcmp.lt.s32.totalorder %v21264_v55, 16  ;;  %vm11018_vm13 = vcmp.ne.s32.totalorder %v19587_v52, 0  ;;  %vm11090_vm9 = vcmp.lt.s32.totalorder %v19587_v52, 0  ;;  %v9495_v44 = vadd.f32 %v9494_v54, %v21267_v19  ;;  %v9322_v34 = vpop.f32.mrf.mxu1 }
 0x3cc   :  { %v12777_v33 = vpack.c.bf16 %v9503_v57, %v9500_v58  ;;  %v21268_v53 = vsel %vm19350_vm6, %v19315_v51, %v19224_v29  ;;  %v19626_v27 = vadd.s32 18, %v19587_v52  ;;  %vm11016_vm4 = vcmp.ne.s32.totalorder %v19590_v5, 0  ;;  %vm19635_vm12 = vmand %vm11090_vm9, %vm11018_vm13 }
 0x3cd   :  { %vm19621_vm14 = vcmp.lt.s32.totalorder %v21268_v53, 16  ;;  %vm21271_vm10 = vnez %v21236_v1  ;;  %vm19631_vm11 = vcmp.lt.s32.totalorder %v11296_v62, 16  ;;  %vm11088_vm6 = vcmp.lt.s32.totalorder %v19590_v5, 0 }
 0x3ce   :  { %v11582_v37 = vsel %vm21271_vm10, %v9503_v57, 0.0  ;;  %v19641_v29 = vadd.s32 18, %v19590_v5  ;;  %v10393_v51 = vshrl.u32 %v19523_v31, 4  ;;  %v11729_v54 = vmul.f32 %v11579_v41, %v9492_v8  ;;  %12949 = vst [vmem:[%s20880_s2 + $0x8] sm:$0xff] %v12777_v33   ;;  %vm19649_vm1 = vmand %vm11088_vm6, %vm11016_vm4  ;;  %v21280_v31 = vld [vmem:[#allocation35_spill] sm:$0xff] }
 0x3cf   :  { %v12772_v62 = vpack.c.bf16 %v9495_v44, %v9492_v8  ;;  %vm21276_vm15 = vnez %v21240_v32  ;;  %v19654_v55 = vadd.s32 136, %v19077_v30  ;;  %v19657_v0 = vadd.f32 %v9322_v34, %v21280_v31  ;;  %v9507_v34 = vpop.f32.mrf.mxu0 }
 0x3d0   :  { %v11580_v1 = vsel %vm21276_vm15, %v9495_v44, 0.0  ;;  %vm19659_vm13 = vcmp.lt.s32.totalorder %v11301_v18, 16  ;;  %v19664_v32 = vsub.s32 %v19437_v16, %v10416_v14  ;;  %v11731_v8 = vmul.f32 %v11581_v21, %v9500_v58 }
 0x3d1   :  { %21279 = vst [vmem:[#allocation18_spill] sm:$0xff] %v19654_v55  ;;  %v11651_v19 = vadd.f32 %v11580_v1, %v11579_v41  ;;  %v11730_v53 = vmul.f32 %v11580_v1, %v9495_v44  ;;  %v11732_v63 = vmul.f32 %v11582_v37, %v9503_v57  ;;  %12773 = vst [vmem:[%s20880_s2] sm:$0xff] %v12772_v62   ;;  %v9324_v55 = vpop.f32.mrf.mxu1  ;;  %v19674_v18 = vadd.s32 176, %v19077_v30 }
 0x3d2   :  { %v11306_v41 = vsel %vm19635_vm12, %v19626_v27, %v19587_v52  ;;  %vm19676_vm9 = vcmp.lt.s32.totalorder %v11299_v25, 16  ;;  %v11304_v58 = vsel %vm19649_vm1, %v19641_v29, %v19590_v5  ;;  %v10394_v57 = vmul.u32 18, %v10393_v51  ;;  %v21303_v27 = vld [vmem:[#allocation36_spill] sm:$0xff] }
 0x3d3   :  { %v11652_v44 = vadd.f32 %v11651_v19, %v11581_v21  ;;  %v11801_v1 = vadd.f32 %v11730_v53, %v11729_v54  ;;  %v9516_v14 = vadd.f32 %v13050_v23, %v18422_v46  ;;  %v9508_v62 = vadd.f32 %v9507_v34, %v18398_v38  ;;  %v9325_v55 = vpop.f32.mrf.mxu1  ;;  %v13051_v53 = vpop.f32.mrf.mxu0 }
 0x3d4   :  { %v19687_v31 = vmul.u32.u64.low 3817748708, %v19567_v56  ;;  %v19688_v21 = vmul.u32.u64.high 3817748708, %v19567_v56, %v19687_v31  ;;  %v19691_v19 = vadd.f32 %v9325_v55, %v18314_v15  ;;  %vm11021_vm4 = vcmp.ne.s32.totalorder %v19664_v32, 0 }
 0x3d5   :  { %v11653_v54 = vadd.f32 %v11652_v44, %v11582_v37  ;;  %v11802_v25 = vadd.f32 %v11801_v1, %v11731_v8  ;;  %v11583_v51 = vsel %vm19574_vm3, %v9508_v62, 0.0  ;;  %v9519_v46 = vadd.f32 %v13051_v53, %v18493_v3  ;;  %v9327_v23 = vpop.f32.mrf.mxu1  ;;  %v9510_v1 = vpop.f32.mrf.mxu0 }
 0x3d6   :  { %v21285_v38 = vsel %vm19499_vm2, %v19473_v39, %v19401_v48  ;;  %vm11093_vm6 = vcmp.lt.s32.totalorder %v19664_v32, 0  ;;  %v19708_v15 = vsub.s32 %v19455_v35, %v10394_v57  ;;  %v11733_v44 = vmul.f32 %v11583_v51, %v9508_v62 }
 0x3d7   :  { %vm19702_vm10 = vcmp.lt.s32.totalorder %v21285_v38, 16  ;;  %v11803_v8 = vadd.f32 %v11802_v25, %v11732_v63  ;;  %v11654_v2 = vadd.f32 %v11653_v54, %v11583_v51  ;;  %v21288_v3 = vsel %vm19513_vm8, %v19490_v50, %v19415_v7  ;;  %v13054_v57 = vpop.f32.mrf.mxu0  ;;  %v9330_v60 = vpop.f32.mrf.mxu1 }
 0x3d8   :  { %vm19715_vm3 = vcmp.lt.s32.totalorder %v21288_v3, 16  ;;  %v11237_v39 = vadd.s32 18, %v19664_v32  ;;  %v11585_v11 = vsel %vm19609_vm5, %v9516_v14, 0.0  ;;  %v12787_v35 = vpack.c.bf16 %v9519_v46, %v9516_v14  ;;  %vm19739_vm5 = vmand %vm11093_vm6, %vm11021_vm4 }
 0x3d9   :  { %v9511_v63 = vadd.f32 %v9510_v1, %v18413_v47  ;;  %vm11019_vm2 = vcmp.ne.s32.totalorder %v19708_v15, 0  ;;  %v11804_v34 = vadd.f32 %v11803_v8, %v11733_v44  ;;  %v11586_v42 = vsel %vm19621_vm14, %v9519_v46, 0.0  ;;  %v9523_v23 = vpop.f32.mrf.mxu0 }
 0x3da   :  { %v21291_v7 = vsel %vm19537_vm0, %v19518_v22, %v19434_v26  ;;  %vm11091_vm14 = vcmp.lt.s32.totalorder %v19708_v15, 0  ;;  %v19745_v17 = vadd.s32 18, %v19708_v15  ;;  %12951 = vst [vmem:[%s20880_s2 + $0x18] sm:$0xff] %v12787_v35   ;;  %v9532_v45 = vadd.f32 %v13054_v57, %v18601_v36 }
 0x3db   :  { %vm19731_vm8 = vcmp.lt.s32.totalorder %v21291_v7, 16  ;;  %v12782_v22 = vpack.c.bf16 %v9511_v63, %v9508_v62  ;;  %v11584_v26 = vsel %vm19631_vm11, %v9511_v63, 0.0  ;;  %vm19753_vm0 = vmand %vm11091_vm14, %vm11019_vm2  ;;  %v10426_v31 = vshrl.u32 %v19688_v21, 4  ;;  %v9332_v62 = vpop.f32.mrf.mxu1  ;;  %v13055_v8 = vpop.f32.mrf.mxu0 }
 0x3dc   :  { %v11735_v54 = vmul.f32 %v11585_v11, %v9516_v14  ;;  %v11655_v25 = vadd.f32 %v11654_v2, %v11584_v26  ;;  %v11734_v53 = vmul.f32 %v11584_v26, %v9511_v63  ;;  %v19759_v51 = vadd.f32 %v9330_v60, %v18344_v49 }
 0x3dd   :  { %v21298_v12 = vsel %vm19556_vm7, %v19542_v6, %v19448_v59  ;;  %12950 = vst [vmem:[%s20880_s2 + $0x10] sm:$0xff] %v12782_v22   ;;  %v11589_v14 = vsel %vm19659_vm13, %v9532_v45, 0.0  ;;  %v9524_v49 = vadd.f32 %v9523_v23, %v18545_v24  ;;  %v11309_v13 = vsel %vm19739_vm5, %v11237_v39, %v19664_v32  ;;  %v9333_v2 = vpop.f32.mrf.mxu1  ;;  %v9526_v3 = vpop.f32.mrf.mxu0  ;;  %v21322_v23 = vld [vmem:[#allocation64_spill] sm:$0xff] }
 0x3de   :  { %vm19766_vm11 = vcmp.lt.s32.totalorder %v21298_v12, 16  ;;  %v10427_v21 = vmul.u32 18, %v10426_v31  ;;  %v11736_v59 = vmul.f32 %v11586_v42, %v9519_v46  ;;  %v11656_v6 = vadd.f32 %v11655_v25, %v11585_v11 }
 0x3df   :  { %v11805_v38 = vadd.f32 %v11804_v34, %v11734_v53  ;;  %vm19784_vm7 = vcmp.lt.s32.totalorder %v11306_v41, 16  ;;  %v11307_v24 = vsel %vm19753_vm0, %v19745_v17, %v19708_v15  ;;  %v11739_v32 = vmul.f32 %v11589_v14, %v9532_v45  ;;  %v9335_v39 = vpop.f32.mrf.mxu1  ;;  %v13058_v34 = vpop.f32.mrf.mxu0 }
 0x3e0   :  { %v11587_v46 = vsel %vm19676_vm9, %v9524_v49, 0.0  ;;  %v9535_v44 = vadd.f32 %v13055_v8, %v18616_v43  ;;  %v10428_v28 = vsub.s32 %v19567_v56, %v10427_v21  ;;  %v11657_v1 = vadd.f32 %v11656_v6, %v11586_v42 }
 0x3e1   :  { %v11806_v52 = vadd.f32 %v11805_v38, %v11735_v54  ;;  %v19797_v41 = vadd.f32 %v9333_v2, %v21303_v27  ;;  %vm19804_vm12 = vcmp.lt.s32.totalorder %v11304_v58, 16  ;;  %v19809_v16 = vadd.s32 160, %v19077_v30  ;;  %v9539_v17 = vpop.f32.mrf.mxu0  ;;  %v21310_v54 = vld [vmem:[#allocation8_spill] sm:$0xff] }
 0x3e2   :  { %v11737_v43 = vmul.f32 %v11587_v46, %v9524_v49  ;;  %v12797_v56 = vpack.c.bf16 %v9535_v44, %v9532_v45  ;;  %v9527_v11 = vadd.f32 %v9526_v3, %v18557_v61  ;;  %vm11022_vm15 = vcmp.ne.s32.totalorder %v10428_v28, 0 }
 0x3e3   :  { %v11807_v35 = vadd.f32 %v11806_v52, %v11736_v59  ;;  %v11658_v63 = vadd.f32 %v11657_v1, %v11587_v46  ;;  %v11590_v4 = vsel %vm19702_vm10, %v9535_v44, 0.0  ;;  %vm11094_vm1 = vcmp.lt.s32.totalorder %v10428_v28, 0  ;;  %v13059_v53 = vpop.f32.mrf.mxu0 }
 0x3e4   :  { %12953 = vst [vmem:[%s20880_s2 + $0x28] sm:$0xff] %v12797_v56   ;;  %v12792_v5 = vpack.c.bf16 %v9527_v11, %v9524_v49  ;;  %v11588_v29 = vsel %vm19715_vm3, %v9527_v11, 0.0  ;;  %v9548_v58 = vadd.f32 %v13058_v34, %v18760_v10  ;;  %vm19820_vm13 = vcmp.lt.s32.totalorder %v11309_v13, 16  ;;  %vm19824_vm9 = vmand %vm11094_vm1, %vm11022_vm15  ;;  %v9338_v10 = vpop.f32.mrf.mxu1 }
 0x3e5   :  { %v11238_v37 = vadd.s32 18, %v10428_v28  ;;  %v11808_v57 = vadd.f32 %v11807_v35, %v11737_v43  ;;  %v11659_v7 = vadd.f32 %v11658_v63, %v11588_v29  ;;  %v11738_v47 = vmul.f32 %v11588_v29, %v9527_v11  ;;  %v9542_v6 = vpop.f32.mrf.mxu0  ;;  %v21316_v43 = vld [vmem:[#allocation18_spill] sm:$0xff] }
 0x3e6   :  { %v19829_v22 = vadd.s32 184, %v19077_v30  ;;  %v11740_v48 = vmul.f32 %v11590_v4, %v9535_v44  ;;  %12952 = vst [vmem:[%s20880_s2 + $0x20] sm:$0xff] %v12792_v5   ;;  %v11593_v26 = vsel %vm19731_vm8, %v9548_v58, 0.0  ;;  %v9540_v60 = vadd.f32 %v9539_v17, %v18673_v20  ;;  %v9340_v62 = vpop.f32.mrf.mxu1 }
 0x3e7   :  { %v11310_v45 = vsel %vm19824_vm9, %v11238_v37, %v10428_v28  ;;  %v11660_v55 = vadd.f32 %v11659_v7, %v11589_v14  ;;  %v11809_v31 = vadd.f32 %v11808_v57, %v11738_v47  ;;  %v19840_v25 = vadd.f32 %v9338_v10, %v21310_v54  ;;  %v21315_v28 = vld [vmem:[#allocation37_spill] sm:$0xff]  ;;  %v13062_v3 = vpop.f32.mrf.mxu0 }
 0x3e8   :  { %vm19842_vm4 = vcmp.lt.s32.totalorder %v11307_v24, 16  ;;  %v19847_v12 = vadd.s32 168, %v19077_v30  ;;  %v11743_v50 = vmul.f32 %v11593_v26, %v9548_v58  ;;  %v11591_v20 = vsel %vm19766_vm11, %v9540_v60, 0.0  ;;  %v9341_v24 = vpop.f32.mrf.mxu1  ;;  %v21318_v47 = vld [vmem:[#allocation9_spill] sm:$0xff] }
 0x3e9   :  { %v9551_v49 = vadd.f32 %v13059_v53, %v18792_v9  ;;  %v19853_v14 = vadd.s32 208, %v19077_v30  ;;  %v11810_v13 = vadd.f32 %v11809_v31, %v11739_v32  ;;  %v11661_v21 = vadd.f32 %v11660_v55, %v11590_v4  ;;  %v21317_v4 = vld [vmem:[#allocation66_spill] sm:$0xff]  ;;  %v9555_v29 = vpop.f32.mrf.mxu0 }
 0x3ea   :  { %v11741_v59 = vmul.f32 %v11591_v20, %v9540_v60  ;;  %vm19855_vm10 = vcmp.lt.s32.totalorder %v11310_v45, 16  ;;  %v19860_v8 = vadd.s32 192, %v19077_v30  ;;  %v9543_v9 = vadd.f32 %v9542_v6, %v18703_v40  ;;  %v9343_v27 = vpop.f32.mrf.mxu1  ;;  %v21319_v55 = vld [vmem:[#allocation62_spill] sm:$0xff] }
 0x3eb   :  { %v12807_v46 = vpack.c.bf16 %v9551_v49, %v9548_v58  ;;  %v11594_v36 = vsel %vm19784_vm7, %v9551_v49, 0.0  ;;  %v19866_v2 = vadd.s32 216, %v19077_v30  ;;  %v11662_v32 = vadd.f32 %v11661_v21, %v11591_v20  ;;  %v13063_v54 = vpop.f32.mrf.mxu0  ;;  %v21320_v20 = vld [vmem:[#allocation42_spill] sm:$0xff] }
 0x3ec   :  { %v11811_v44 = vadd.f32 %v11810_v13, %v11740_v48  ;;  %v19869_v1 = vadd.f32 %v9341_v24, %v21315_v28  ;;  %v19872_v52 = vadd.s32 200, %v19077_v30  ;;  %v12802_v33 = vpack.c.bf16 %v9543_v9, %v9540_v60  ;;  %v9346_v5 = vpop.f32.mrf.mxu1 }
 0x3ed   :  { %12955 = vst [vmem:[%s20880_s2 + $0x38] sm:$0xff] %v12807_v46   ;;  %v11592_v40 = vsel %vm19804_vm12, %v9543_v9, 0.0  ;;  %v19880_v56 = vmul.u32.u64.low 3817748708, %v21316_v43  ;;  %v19881_v39 = vmul.u32.u64.high 3817748708, %v21316_v43, %v19880_v56  ;;  %v9564_v34 = vadd.f32 %v13062_v3, %v21317_v4 }
 0x3ee   :  { %v11812_v11 = vadd.f32 %v11811_v44, %v11741_v59  ;;  %v11663_v35 = vadd.f32 %v11662_v32, %v11592_v40  ;;  %v11742_v63 = vmul.f32 %v11592_v40, %v9543_v9  ;;  %12954 = vst [vmem:[%s20880_s2 + $0x30] sm:$0xff] %v12802_v33   ;;  %v19896_v17 = vadd.f32 %v9346_v5, %v21318_v47  ;;  %v9348_v45 = vpop.f32.mrf.mxu1  ;;  %v9558_v59 = vpop.f32.mrf.mxu0  ;;  %v21323_v5 = vld [vmem:[#allocation22_spill] sm:$0xff] }
 0x3ef   :  { %v19888_v58 = vmul.u32.u64.low 3817748708, %v19674_v18  ;;  %v19889_v15 = vmul.u32.u64.high 3817748708, %v19674_v18, %v19888_v58  ;;  %v19892_v42 = vmul.u32.u64.low 3817748708, %v19809_v16  ;;  %v19893_v37 = vmul.u32.u64.high 3817748708, %v19809_v16, %v19892_v42  ;;  %v21325_v45 = vld [vmem:[#allocation40_spill] sm:$0xff] }
 0x3f0   :  { %v11664_v57 = vadd.f32 %v11663_v35, %v11593_v26  ;;  %v11813_v7 = vadd.f32 %v11812_v11, %v11742_v63  ;;  %v19900_v48 = vsel %vm19820_vm13, %v9564_v34, 0.0  ;;  %v11744_v10 = vmul.f32 %v11594_v36, %v9551_v49  ;;  %v9349_v49 = vpop.f32.mrf.mxu1 }
 0x3f1   :  { %v19903_v60 = vmul.f32 %v19900_v48, %v9564_v34  ;;  %v9556_v31 = vadd.f32 %v9555_v29, %v21319_v55  ;;  %v10404_v53 = vshrl.u32 %v19881_v39, 4  ;;  %v9567_v13 = vadd.f32 %v13063_v54, %v21320_v20  ;;  %v13066_v39 = vpop.f32.mrf.mxu0 }
 0x3f2   :  { %v11814_v62 = vadd.f32 %v11813_v7, %v11743_v50  ;;  %v11665_v26 = vadd.f32 %v11664_v57, %v11594_v36  ;;  %v19909_v21 = vadd.s32 240, %v19077_v30  ;;  %v10459_v24 = vshrl.u32 %v19889_v15, 4  ;;  %v21321_v50 = vld [vmem:[#allocation38_spill] sm:$0xff]  ;;  %v9351_v33 = vpop.f32.mrf.mxu1  ;;  %v21324_v57 = vld [vmem:[#allocation44_spill] sm:$0xff] }
 0x3f3   :  { %v11595_v61 = vsel %vm19842_vm4, %v9556_v31, 0.0  ;;  %v10405_v6 = vmul.u32 18, %v10404_v53  ;;  %v10437_v46 = vshrl.u32 %v19893_v37, 4  ;;  %v19916_v36 = vadd.f32 %v9349_v49, %v21321_v50  ;;  %v9571_v58 = vpop.f32.mrf.mxu0 }
 0x3f4   :  { %v11666_v9 = vadd.f32 %v11665_v26, %v11595_v61  ;;  %v11745_v32 = vmul.f32 %v11595_v61, %v9556_v31  ;;  %v11815_v44 = vadd.f32 %v11814_v62, %v11744_v10  ;;  %v12817_v28 = vpack.c.bf16 %v9567_v13, %v9564_v34  ;;  %v9354_v37 = vpop.f32.mrf.mxu1 }
 0x3f5   :  { %v11598_v27 = vsel %vm19855_vm10, %v9567_v13, 0.0  ;;  %v9559_v40 = vadd.f32 %v9558_v59, %v21322_v23  ;;  %v10406_v3 = vsub.s32 %v21316_v43, %v10405_v6  ;;  %v10460_v11 = vmul.u32 18, %v10459_v24  ;;  %v21330_v23 = vld [vmem:[#allocation56_spill] sm:$0xff] }
 0x3f6   :  { %v11816_v56 = vadd.f32 %v11815_v44, %v11745_v32  ;;  %v10438_v35 = vmul.u32 18, %v10437_v46  ;;  %v19923_v63 = vadd.s32 224, %v19077_v30  ;;  %12957 = vst [vmem:[%s20880_s2 + $0x48] sm:$0xff] %v12817_v28   ;;  %v11748_v34 = vmul.f32 %v11598_v27, %v9567_v13  ;;  %v9356_v53 = vpop.f32.mrf.mxu1  ;;  %v21328_v13 = vld [vmem:[#allocation48_spill] sm:$0xff]  ;;  %v21329_v46 = vld [vmem:[#allocation39_spill] sm:$0xff] }
 0x3f7   :  { %v12812_v4 = vpack.c.bf16 %v9559_v40, %v9556_v31  ;;  %vm11020_vm6 = vcmp.ne.s32.totalorder %v10406_v3, 0  ;;  %vm11092_vm3 = vcmp.lt.s32.totalorder %v10406_v3, 0  ;;  %v11236_v38 = vadd.s32 18, %v10406_v3 }
 0x3f8   :  { %vm11164_vm2 = vmand %vm11092_vm3, %vm11020_vm6  ;;  %v9580_v29 = vadd.f32 %v13066_v39, %v21323_v5  ;;  %v10461_v43 = vsub.s32 %v19674_v18, %v10460_v11  ;;  %v10439_v15 = vsub.s32 %v19809_v16, %v10438_v35  ;;  %v9572_v7 = vadd.f32 %v9571_v58, %v21324_v57  ;;  %v13067_v18 = vpop.f32.mrf.mxu0  ;;  %v9357_v6 = vpop.f32.mrf.mxu1  ;;  %v21331_v57 = vld [vmem:[#allocation57_spill] sm:$0xff] }
 0x3f9   :  { %12956 = vst [vmem:[%s20880_s2 + $0x40] sm:$0xff] %v12812_v4   ;;  %v11308_v42 = vsel %vm11164_vm2, %v11236_v38, %v10406_v3  ;;  %v19936_v47 = vmul.u32.u64.low 3817748708, %v19829_v22  ;;  %v19937_v10 = vmul.u32.u64.high 3817748708, %v19829_v22, %v19936_v47  ;;  %v19940_v55 = vadd.f32 %v9354_v37, %v21325_v45 }
 0x3fa   :  { %vm11380_vm8 = vcmp.lt.s32.totalorder %v11308_v42, 16  ;;  %vm11025_vm5 = vcmp.ne.s32.totalorder %v10461_v43, 0  ;;  %vm11097_vm14 = vcmp.lt.s32.totalorder %v10461_v43, 0  ;;  %v11241_v54 = vadd.s32 18, %v10461_v43  ;;  %v9574_v49 = vpop.f32.mrf.mxu0  ;;  %v9359_v39 = vpop.f32.mrf.mxu1 }
 0x3fb   :  { %v11596_v16 = vsel %vm11380_vm8, %v9559_v40, 0.0  ;;  %vm19942_vm0 = vmand %vm11097_vm14, %vm11025_vm5  ;;  %vm11023_vm11 = vcmp.ne.s32.totalorder %v10439_v15, 0  ;;  %vm11095_vm7 = vcmp.lt.s32.totalorder %v10439_v15, 0  ;;  %v11239_v20 = vadd.s32 18, %v10439_v15 }
 0x3fc   :  { %v11667_v62 = vadd.f32 %v11666_v9, %v11596_v16  ;;  %v11746_v26 = vmul.f32 %v11596_v16, %v9559_v40  ;;  %vm11167_vm12 = vmand %vm11095_vm7, %vm11023_vm11  ;;  %v19947_v61 = vadd.f32 %v13067_v18, %v21328_v13  ;;  %v11313_v59 = vsel %vm19942_vm0, %v11241_v54, %v10461_v43  ;;  %v9362_v58 = vpop.f32.mrf.mxu1 }
 0x3fd   :  { %v10470_v24 = vshrl.u32 %v19937_v10, 4  ;;  %v19953_v32 = vadd.f32 %v9574_v49, %v21329_v46  ;;  %v19956_v44 = vadd.s32 248, %v19077_v30  ;;  %vm11385_vm15 = vcmp.lt.s32.totalorder %v11313_v59, 16  ;;  %v21332_v10 = vld [vmem:[#allocation11_spill] sm:$0xff] }
 0x3fe   :  { %v11668_v9 = vadd.f32 %v11667_v62, %v19900_v48  ;;  %v11817_v50 = vadd.f32 %v11816_v56, %v11746_v26  ;;  %v11311_v28 = vsel %vm11167_vm12, %v11239_v20, %v10439_v15  ;;  %v19959_v33 = vsel %vm11385_vm15, %v9580_v29, 0.0  ;;  %v13070_v15 = vpop.f32.mrf.mxu0  ;;  %v9364_v45 = vpop.f32.mrf.mxu1  ;;  %v21333_v62 = vld [vmem:[#allocation31_spill] sm:$0xff] }
 0x3ff   :  { %vm11383_vm1 = vcmp.lt.s32.totalorder %v11311_v28, 16  ;;  %v19962_v40 = vadd.f32 %v9357_v6, %v21330_v23  ;;  %v12827_v3 = vpack.c.bf16 %v19947_v61, %v9580_v29  ;;  %v19967_v38 = vadd.s32 232, %v19077_v30 }
 0x400   :  { %v11818_v11 = vadd.f32 %v11817_v50, %v19903_v60  ;;  %v11599_v35 = vsel %vm11383_vm1, %v9572_v7, 0.0  ;;  %v11669_v4 = vadd.f32 %v11668_v9, %v11598_v27  ;;  %v19970_v48 = vmul.f32 %v19959_v33, %v9580_v29  ;;  %v9587_v18 = vpop.f32.mrf.mxu0  ;;  %v9365_v20 = vpop.f32.mrf.mxu1  ;;  %v21335_v50 = vld [vmem:[#allocation69_spill] sm:$0xff] }
 0x401   :  { %v11749_v56 = vmul.f32 %v11599_v35, %v9572_v7  ;;  %12959 = vst [vmem:[%s20880_s2 + $0x58] sm:$0xff] %v12827_v3   ;;  %v10471_v5 = vmul.u32 18, %v10470_v24  ;;  %v12822_v43 = vpack.c.bf16 %v19953_v32, %v9572_v7  ;;  %v19987_v47 = vadd.f32 %v9362_v58, %v21331_v57  ;;  %v21334_v24 = vld [vmem:[#allocation58_spill] sm:$0xff] }
 0x402   :  { %v19976_v42 = vadd.f32 %v11669_v4, %v11599_v35  ;;  %v11819_v60 = vadd.f32 %v11818_v11, %v11748_v34  ;;  %v19979_v27 = vmul.u32.u64.low 3817748708, %v19847_v12  ;;  %v19980_v37 = vmul.u32.u64.high 3817748708, %v19847_v12, %v19979_v27  ;;  %v13071_v13 = vpop.f32.mrf.mxu0  ;;  %v9367_v39 = vpop.f32.mrf.mxu1 }
 0x403   :  { %v10472_v29 = vsub.s32 %v19829_v22, %v10471_v5  ;;  %12958 = vst [vmem:[%s20880_s2 + $0x50] sm:$0xff] %v12822_v43   ;;  %v19990_v7 = vadd.f32 %v13070_v15, %v21332_v10  ;;  %v19993_v34 = vadd.s32 272, %v19077_v30  ;;  %v20002_v54 = vadd.s32 256, %v19077_v30 }
 0x404   :  { %v19995_v16 = vadd.f32 %v11819_v60, %v11749_v56  ;;  %v19998_v31 = vmul.u32.u64.low 3817748708, %v19853_v14  ;;  %v19999_v22 = vmul.u32.u64.high 3817748708, %v19853_v14, %v19998_v31  ;;  %v20005_v26 = vadd.f32 %v9587_v18, %v21333_v62  ;;  %v9590_v11 = vpop.f32.mrf.mxu0  ;;  %v21336_v56 = vld [vmem:[#allocation68_spill] sm:$0xff] }
 0x405   :  { %vm11026_vm13 = vcmp.ne.s32.totalorder %v10472_v29, 0  ;;  %vm11098_vm9 = vcmp.lt.s32.totalorder %v10472_v29, 0  ;;  %v11242_v53 = vadd.s32 18, %v10472_v29  ;;  %v10448_v49 = vshrl.u32 %v19980_v37, 4 }
 0x406   :  { %vm11170_vm4 = vmand %vm11098_vm9, %vm11026_vm13  ;;  %v20009_v59 = vmul.u32.u64.low 3817748708, %v19860_v8  ;;  %v20010_v6 = vmul.u32.u64.high 3817748708, %v19860_v8, %v20009_v59  ;;  %v20013_v46 = vadd.f32 %v9365_v20, %v21334_v24  ;;  %v20016_v28 = vadd.f32 %v13071_v13, %v21335_v50  ;;  %v13074_v27 = vpop.f32.mrf.mxu0 }
 0x407   :  { %v11314_v9 = vsel %vm11170_vm4, %v11242_v53, %v10472_v29  ;;  %v20019_v23 = vmul.u32.u64.low 3817748708, %v19866_v2  ;;  %v20020_v3 = vmul.u32.u64.high 3817748708, %v19866_v2, %v20019_v23  ;;  %v10449_v35 = vmul.u32 18, %v10448_v49 }
 0x408   :  { %vm11386_vm10 = vcmp.lt.s32.totalorder %v11314_v9, 16  ;;  %v10503_v4 = vshrl.u32 %v19999_v22, 4  ;;  %v20024_v5 = vadd.f32 %v9590_v11, %v21336_v56  ;;  %v12837_v58 = vpack.c.bf16 %v20016_v28, %v19990_v7  ;;  %v21337_v22 = vld [vmem:[#allocation28_spill] sm:$0xff]  ;;  %v20053_v62 = vpop.f32.mrf.mxu0 }
 0x409   :  { %v20027_v43 = vsel %vm11386_vm10, %v19947_v61, 0.0  ;;  %v20032_v15 = vmul.u32.u64.low 3817748708, %v19872_v52  ;;  %v20033_v60 = vmul.u32.u64.high 3817748708, %v19872_v52, %v20032_v15  ;;  %v10450_v37 = vsub.s32 %v19847_v12, %v10449_v35  ;;  %v9370_v12 = vpop.f32.mrf.mxu1 }
 0x40a   :  { %v10504_v29 = vmul.u32 18, %v10503_v4  ;;  %v10481_v57 = vshrl.u32 %v20010_v6, 4  ;;  %v20038_v10 = vadd.s32 280, %v19077_v30  ;;  %v20042_v45 = vmul.f32 %v20027_v43, %v19947_v61  ;;  %12961 = vst [vmem:[%s20880_s2 + $0x68] sm:$0xff] %v12837_v58   ;;  %v21338_v6 = vld [vmem:[#allocation59_spill] sm:$0xff] }
 0x40b   :  { %v10514_v18 = vshrl.u32 %v20020_v3, 4  ;;  %v12832_v31 = vpack.c.bf16 %v20024_v5, %v20005_v26  ;;  %v20051_v53 = vadd.f32 %v13074_v27, %v21337_v22  ;;  %vm11024_vm6 = vcmp.ne.s32.totalorder %v10450_v37, 0  ;;  %v9372_v9 = vpop.f32.mrf.mxu1  ;;  %v13075_v3 = vpop.f32.mrf.mxu0 }
 0x40c   :  { %vm11096_vm3 = vcmp.lt.s32.totalorder %v10450_v37, 0  ;;  %v11240_v20 = vadd.s32 18, %v10450_v37  ;;  %v10505_v61 = vsub.s32 %v19853_v14, %v10504_v29  ;;  %v10482_v13 = vmul.u32 18, %v10481_v57 }
 0x40d   :  { %vm11168_vm2 = vmand %vm11096_vm3, %vm11024_vm6  ;;  %v10515_v49 = vmul.u32 18, %v10514_v18  ;;  %12960 = vst [vmem:[%s20880_s2 + $0x60] sm:$0xff] %v12832_v31   ;;  %v10492_v59 = vshrl.u32 %v20033_v60, 4  ;;  %v20061_v24 = vadd.f32 %v9370_v12, %v21338_v6  ;;  %v9373_v35 = vpop.f32.mrf.mxu1  ;;  %v9606_v29 = vpop.f32.mrf.mxu0  ;;  %v21345_v12 = vld [vmem:[#allocation61_spill] sm:$0xff] }
 0x40e   :  { %v11312_v50 = vsel %vm11168_vm2, %v11240_v20, %v10450_v37  ;;  %vm11029_vm8 = vcmp.ne.s32.totalorder %v10505_v61, 0  ;;  %vm11101_vm5 = vcmp.lt.s32.totalorder %v10505_v61, 0  ;;  %v11245_v23 = vadd.s32 18, %v10505_v61 }
 0x40f   :  { %vm11384_vm14 = vcmp.lt.s32.totalorder %v11312_v50, 16  ;;  %vm11173_vm0 = vmand %vm11101_vm5, %vm11029_vm8  ;;  %v10483_v14 = vsub.s32 %v19860_v8, %v10482_v13  ;;  %v10516_v39 = vsub.s32 %v19866_v2, %v10515_v49  ;;  %v10493_v11 = vmul.u32 18, %v10492_v59  ;;  %v9375_v37 = vpop.f32.mrf.mxu1  ;;  %v13078_v9 = vpop.f32.mrf.mxu0 }
 0x410   :  { %v11600_v4 = vsel %vm11384_vm14, %v19953_v32, 0.0  ;;  %v11317_v56 = vsel %vm11173_vm0, %v11245_v23, %v10505_v61  ;;  %v20067_v58 = vmul.u32.u64.low 3817748708, %v19909_v21  ;;  %v20068_v15 = vmul.u32.u64.high 3817748708, %v19909_v21, %v20067_v58  ;;  %v21343_v37 = vld [vmem:[#allocation70_spill] sm:$0xff] }
 0x411   :  { %v11671_v60 = vadd.f32 %v19976_v42, %v11600_v4  ;;  %v11750_v27 = vmul.f32 %v11600_v4, %v19953_v32  ;;  %vm11389_vm11 = vcmp.lt.s32.totalorder %v11317_v56, 16  ;;  %vm11027_vm7 = vcmp.ne.s32.totalorder %v10483_v14, 0  ;;  %v9378_v31 = vpop.f32.mrf.mxu1  ;;  %v21342_v4 = vld [vmem:[#allocation60_spill] sm:$0xff] }
 0x412   :  { %v20073_v8 = vsel %vm11389_vm11, %v19990_v7, 0.0  ;;  %vm11099_vm12 = vcmp.lt.s32.totalorder %v10483_v14, 0  ;;  %v11243_v2 = vadd.s32 18, %v10483_v14  ;;  %vm11030_vm15 = vcmp.ne.s32.totalorder %v10516_v39, 0 }
 0x413   :  { %v11672_v57 = vadd.f32 %v11671_v60, %v19959_v33  ;;  %v11821_v18 = vadd.f32 %v19995_v16, %v11750_v27  ;;  %vm11171_vm1 = vmand %vm11099_vm12, %vm11027_vm7  ;;  %vm11102_vm13 = vcmp.lt.s32.totalorder %v10516_v39, 0  ;;  %v20078_v42 = vadd.s32 264, %v19077_v30  ;;  %v9380_v49 = vpop.f32.mrf.mxu1 }
 0x414   :  { %v11315_v32 = vsel %vm11171_vm1, %v11243_v2, %v10483_v14  ;;  %vm20080_vm9 = vmand %vm11102_vm13, %vm11030_vm15  ;;  %v11246_v22 = vadd.s32 18, %v10516_v39  ;;  %v10494_v20 = vsub.s32 %v19872_v52, %v10493_v11  ;;  %v10547_v61 = vshrl.u32 %v20068_v15, 4  ;;  %v21341_v14 = vld [vmem:[#allocation45_spill] sm:$0xff] }
 0x415   :  { %v11822_v33 = vadd.f32 %v11821_v18, %v19970_v48  ;;  %v11755_v16 = vmul.f32 %v20073_v8, %v19990_v7  ;;  %vm11387_vm4 = vcmp.lt.s32.totalorder %v11315_v32, 16  ;;  %v11673_v13 = vadd.f32 %v11672_v57, %v20027_v43  ;;  %v20095_v7 = vpop.f32.mrf.mxu1  ;;  %v21344_v57 = vld [vmem:[#allocation13_spill] sm:$0xff]  ;;  %v9619_v18 = vpop.f32.mrf.mxu0 }
 0x416   :  { %v11603_v59 = vsel %vm11387_vm4, %v20005_v26, 0.0  ;;  %v11318_v6 = vsel %vm20080_vm9, %v11246_v22, %v10516_v39  ;;  %vm11028_vm10 = vcmp.ne.s32.totalorder %v10494_v20, 0  ;;  %vm11100_vm6 = vcmp.lt.s32.totalorder %v10494_v20, 0 }
 0x417   :  { %v11674_v52 = vadd.f32 %v11673_v13, %v11603_v59  ;;  %v11753_v50 = vmul.f32 %v11603_v59, %v20005_v26  ;;  %v11823_v48 = vadd.f32 %v11822_v33, %v20042_v45  ;;  %vm11390_vm3 = vcmp.lt.s32.totalorder %v11318_v6, 16  ;;  %vm11172_vm2 = vmand %vm11100_vm6, %vm11028_vm10  ;;  %v9383_v45 = vpop.f32.mrf.mxu1 }
 0x418   :  { %v11244_v23 = vadd.s32 18, %v10494_v20  ;;  %v10548_v43 = vmul.u32 18, %v10547_v61  ;;  %v20099_v11 = vadd.f32 %v20053_v62, %v21341_v14  ;;  %v20102_v39 = vadd.f32 %v9373_v35, %v21342_v4 }
 0x419   :  { %v11824_v56 = vadd.f32 %v11823_v48, %v11753_v50  ;;  %v11606_v58 = vsel %vm11390_vm3, %v20016_v28, 0.0  ;;  %v20106_v26 = vmul.u32.u64.low 3817748708, %v19923_v63  ;;  %v20107_v15 = vmul.u32.u64.high 3817748708, %v19923_v63, %v20106_v26  ;;  %v20128_v13 = vpop.f32.mrf.mxu1  ;;  %v13079_v50 = vpop.f32.mrf.mxu0 }
 0x41a   :  { %v11316_v60 = vsel %vm11172_vm2, %v11244_v23, %v10494_v20  ;;  %v10549_v27 = vsub.s32 %v19909_v21, %v10548_v43  ;;  %v20111_v2 = vadd.f32 %v13075_v3, %v21343_v37  ;;  %v20114_v62 = vadd.f32 %v9606_v29, %v21344_v57 }
 0x41b   :  { %vm11388_vm8 = vcmp.lt.s32.totalorder %v11316_v60, 16  ;;  %v20117_v35 = vmul.u32.u64.low 3817748708, %v19956_v44  ;;  %v20118_v32 = vmul.u32.u64.high 3817748708, %v19956_v44, %v20117_v35  ;;  %v20121_v22 = vadd.f32 %v9378_v31, %v21345_v12  ;;  %v9388_v23 = vpop.f32.mrf.mxu1  ;;  %v21347_v60 = vld [vmem:[#allocation29_spill] sm:$0xff]  ;;  %v9622_v12 = vpop.f32.mrf.mxu0 }
 0x41c   :  { %v11604_v61 = vsel %vm11388_vm8, %v20024_v5, 0.0  ;;  %vm11033_vm5 = vcmp.ne.s32.totalorder %v10549_v27, 0  ;;  %vm11105_vm14 = vcmp.lt.s32.totalorder %v10549_v27, 0  ;;  %v11249_v21 = vadd.s32 18, %v10549_v27 }
 0x41d   :  { %v11675_v20 = vadd.f32 %v11674_v52, %v11604_v61  ;;  %v11754_v3 = vmul.f32 %v11604_v61, %v20024_v5  ;;  %vm11177_vm0 = vmand %vm11105_vm14, %vm11033_vm5  ;;  %v10525_v29 = vshrl.u32 %v20107_v15, 4  ;;  %v12847_v33 = vpack.c.bf16 %v20111_v2, %v20051_v53 }
 0x41e   :  { %v11321_v49 = vsel %vm11177_vm0, %v11249_v21, %v10549_v27  ;;  %v12842_v31 = vpack.c.bf16 %v20114_v62, %v20099_v11  ;;  %v20133_v59 = vmul.u32.u64.low 3817748708, %v19967_v38  ;;  %v20134_v6 = vmul.u32.u64.high 3817748708, %v19967_v38, %v20133_v59 }
 0x41f   :  { %v11676_v52 = vadd.f32 %v11675_v20, %v20073_v8  ;;  %v11825_v5 = vadd.f32 %v11824_v56, %v11754_v3  ;;  %vm11393_vm11 = vcmp.lt.s32.totalorder %v11321_v49, 16  ;;  %v10526_v48 = vmul.u32 18, %v10525_v29  ;;  %12963 = vst [vmem:[%s20880_s2 + $0x78] sm:$0xff] %v12847_v33   ;;  %v21346_v8 = vld [vmem:[#allocation16_spill] sm:$0xff]  ;;  %v21348_v3 = vld [vmem:[#allocation63_spill] sm:$0xff] }
 0x420   :  { %v11756_v43 = vmul.f32 %v11606_v58, %v20016_v28  ;;  %v20142_v14 = vsel %vm11393_vm11, %v20051_v53, 0.0  ;;  %v10558_v4 = vshrl.u32 %v20118_v32, 4  ;;  %12962 = vst [vmem:[%s20880_s2 + $0x70] sm:$0xff] %v12842_v31   ;;  %v20149_v56 = vadd.f32 %v13078_v9, %v21346_v8  ;;  %v20155_v28 = vpop.f32.mrf.mxu1  ;;  %v21349_v33 = vld [vmem:[#allocation24_spill] sm:$0xff]  ;;  %v21350_v31 = vld [vmem:[#allocation23_spill] sm:$0xff] }
 0x421   :  { %v11826_v26 = vadd.f32 %v11825_v5, %v11755_v16  ;;  %v10527_v15 = vsub.s32 %v19923_v63, %v10526_v48  ;;  %v11677_v45 = vadd.f32 %v11676_v52, %v11606_v58  ;;  %v20153_v27 = vadd.f32 %v9619_v18, %v21347_v60 }
 0x422   :  { %v10559_v37 = vmul.u32 18, %v10558_v4  ;;  %v10536_v57 = vshrl.u32 %v20134_v6, 4  ;;  %v20159_v35 = vmul.u32.u64.low 3817748708, %v19993_v34  ;;  %v20160_v32 = vmul.u32.u64.high 3817748708, %v19993_v34, %v20159_v35  ;;  %v9391_v61 = vpop.f32.mrf.mxu1 }
 0x423   :  { %vm11031_vm7 = vcmp.ne.s32.totalorder %v10527_v15, 0  ;;  %vm11103_vm12 = vcmp.lt.s32.totalorder %v10527_v15, 0  ;;  %v11247_v9 = vadd.s32 18, %v10527_v15  ;;  %v11827_v16 = vadd.f32 %v11826_v26, %v11756_v43 }
 0x424   :  { %vm11175_vm15 = vmand %vm11103_vm12, %vm11031_vm7  ;;  %v10560_v63 = vsub.s32 %v19956_v44, %v10559_v37  ;;  %v10537_v58 = vmul.u32 18, %v10536_v57  ;;  %v20164_v18 = vmul.u32.u64.low 3817748708, %v20002_v54  ;;  %v20165_v21 = vmul.u32.u64.high 3817748708, %v20002_v54, %v20164_v18  ;;  %v20177_v6 = vpop.f32.mrf.mxu1  ;;  %v13082_v37 = vpop.f32.mrf.mxu0 }
 0x425   :  { %v11319_v20 = vsel %vm11175_vm15, %v11247_v9, %v10527_v15  ;;  %v20169_v29 = vadd.f32 %v20095_v7, %v21348_v3  ;;  %v20172_v49 = vadd.f32 %v13079_v50, %v21349_v33  ;;  %v20175_v59 = vadd.f32 %v9622_v12, %v21350_v31 }
 0x426   :  { %vm11391_vm1 = vcmp.lt.s32.totalorder %v11319_v20, 16  ;;  %vm11034_vm13 = vcmp.ne.s32.totalorder %v10560_v63, 0  ;;  %vm11106_vm9 = vcmp.lt.s32.totalorder %v10560_v63, 0  ;;  %v11250_v44 = vadd.s32 18, %v10560_v63  ;;  %v9396_v48 = vpop.f32.mrf.mxu1 }
 0x427   :  { %v11607_v52 = vsel %vm11391_vm1, %v20099_v11, 0.0  ;;  %vm11178_vm4 = vmand %vm11106_vm9, %vm11034_vm13  ;;  %v10538_v5 = vsub.s32 %v19967_v38, %v10537_v58  ;;  %v10591_v7 = vshrl.u32 %v20160_v32, 4  ;;  %v12857_v50 = vpack.c.bf16 %v20172_v49, %v20149_v56 }
 0x428   :  { %v11678_v23 = vadd.f32 %v11677_v45, %v11607_v52  ;;  %v11757_v43 = vmul.f32 %v11607_v52, %v20099_v11  ;;  %v11322_v4 = vsel %vm11178_vm4, %v11250_v44, %v10560_v63  ;;  %v10569_v8 = vshrl.u32 %v20165_v21, 4  ;;  %v20189_v38 = vpop.f32.mrf.mxu1  ;;  %v21351_v21 = vld [vmem:[#allocation65_spill] sm:$0xff] }
 0x429   :  { %vm11394_vm10 = vcmp.lt.s32.totalorder %v11322_v4, 16  ;;  %vm11032_vm6 = vcmp.ne.s32.totalorder %v10538_v5, 0  ;;  %vm11104_vm3 = vcmp.lt.s32.totalorder %v10538_v5, 0  ;;  %v11248_v26 = vadd.s32 18, %v10538_v5  ;;  %12965 = vst [vmem:[%s20880_s2 + $0x88] sm:$0xff] %v12857_v50  }
 0x42a   :  { %v11759_v15 = vmul.f32 %v20142_v14, %v20051_v53  ;;  %v11828_v60 = vadd.f32 %v11827_v16, %v11757_v43  ;;  %vm11176_vm2 = vmand %vm11104_vm3, %vm11032_vm6  ;;  %v10592_v45 = vmul.u32 18, %v10591_v7  ;;  %v10570_v11 = vmul.u32 18, %v10569_v8  ;;  %v9399_v9 = vpop.f32.mrf.mxu1 }
 0x42b   :  { %v11610_v57 = vsel %vm11394_vm10, %v20111_v2, 0.0  ;;  %v11320_v35 = vsel %vm11176_vm2, %v11248_v26, %v10538_v5  ;;  %v20195_v32 = vmul.u32.u64.low 3817748708, %v20038_v10  ;;  %v20196_v12 = vmul.u32.u64.high 3817748708, %v20038_v10, %v20195_v32 }
 0x42c   :  { %vm11392_vm8 = vcmp.lt.s32.totalorder %v11320_v35, 16  ;;  %v10593_v61 = vsub.s32 %v19993_v34, %v10592_v45  ;;  %v10571_v63 = vsub.s32 %v20002_v54, %v10570_v11  ;;  %v12852_v53 = vpack.c.bf16 %v20175_v59, %v20153_v27  ;;  %v9635_v34 = vpop.f32.mrf.mxu0  ;;  %v20215_v54 = vpop.f32.mrf.mxu1 }
 0x42d   :  { %v11608_v16 = vsel %vm11392_vm8, %v20114_v62, 0.0  ;;  %v20204_v58 = vmul.u32.u64.low 3817748708, %v20078_v42  ;;  %v20205_v18 = vmul.u32.u64.high 3817748708, %v20078_v42, %v20204_v58  ;;  %v20209_v20 = vadd.f32 %v20128_v13, %v21351_v21 }
 0x42e   :  { %v11679_v3 = vadd.f32 %v11678_v23, %v11608_v16  ;;  %v11758_v33 = vmul.f32 %v11608_v16, %v20114_v62  ;;  %vm11037_vm5 = vcmp.ne.s32.totalorder %v10593_v61, 0  ;;  %vm11109_vm14 = vcmp.lt.s32.totalorder %v10593_v61, 0  ;;  %12964 = vst [vmem:[%s20880_s2 + $0x80] sm:$0xff] %v12852_v53   ;;  %v9404_v50 = vpop.f32.mrf.mxu1 }
 0x42f   :  { %vm20217_vm0 = vmand %vm11109_vm14, %vm11037_vm5  ;;  %v11253_v44 = vadd.s32 18, %v10593_v61  ;;  %vm11035_vm11 = vcmp.ne.s32.totalorder %v10571_v63, 0  ;;  %vm11107_vm7 = vcmp.lt.s32.totalorder %v10571_v63, 0  ;;  %v11251_v13 = vadd.s32 18, %v10571_v63  ;;  %v21356_v50 = vld [vmem:[#allocation49_spill] sm:$0xff] }
 0x430   :  { %v11760_v52 = vmul.f32 %v11610_v57, %v20111_v2  ;;  %v11680_v62 = vadd.f32 %v11679_v3, %v20142_v14  ;;  %v11829_v5 = vadd.f32 %v11828_v60, %v11758_v33  ;;  %vm11179_vm12 = vmand %vm11107_vm7, %vm11035_vm11  ;;  %v10602_v7 = vshrl.u32 %v20196_v12, 4  ;;  %v13083_v2 = vpop.f32.mrf.mxu0  ;;  %v20228_v45 = vpop.f32.mrf.mxu1  ;;  %v21354_v3 = vld [vmem:[#allocation41_spill] sm:$0xff] }
 0x431   :  { %v11325_v48 = vsel %vm20217_vm0, %v11253_v44, %v10593_v61  ;;  %v11323_v23 = vsel %vm11179_vm12, %v11251_v13, %v10571_v63  ;;  %v10580_v43 = vshrl.u32 %v20205_v18, 4  ;;  %v10177_v4 = vadd.s32 304, %v19077_v30  ;;  %v21355_v13 = vld [vmem:[#allocation17_spill] sm:$0xff] }
 0x432   :  { %v11830_v8 = vadd.f32 %v11829_v5, %v11759_v15  ;;  %vm11397_vm15 = vcmp.lt.s32.totalorder %v11325_v48, 16  ;;  %vm11395_vm1 = vcmp.lt.s32.totalorder %v11323_v23, 16  ;;  %v11681_v26 = vadd.f32 %v11680_v62, %v11610_v57  ;;  %v9407_v15 = vpop.f32.mrf.mxu1  ;;  %v9638_v33 = vpop.f32.mrf.mxu0 }
 0x433   :  { %v11613_v14 = vsel %vm11397_vm15, %v20149_v56, 0.0  ;;  %v11611_v60 = vsel %vm11395_vm1, %v20153_v27, 0.0  ;;  %v10603_v11 = vmul.u32 18, %v10602_v7  ;;  %v10581_v35 = vmul.u32 18, %v10580_v43  ;;  %v21357_v15 = vld [vmem:[#allocation43_spill] sm:$0xff] }
 0x434   :  { %v11682_v32 = vadd.f32 %v11681_v26, %v11611_v60  ;;  %v11761_v12 = vmul.f32 %v11611_v60, %v20153_v27  ;;  %v11831_v9 = vadd.f32 %v11830_v8, %v11760_v52  ;;  %v20234_v61 = vadd.f32 %v13082_v37, %v19657_v0  ;;  %v13086_v23 = vpop.f32.mrf.mxu0 }
 0x435   :  { %v10604_v63 = vsub.s32 %v20038_v10, %v10603_v11  ;;  %v10582_v57 = vsub.s32 %v20078_v42, %v10581_v35  ;;  %v20238_v53 = vmul.u32.u64.low 3817748708, %v10177_v4  ;;  %v20239_v16 = vmul.u32.u64.high 3817748708, %v10177_v4, %v20238_v53  ;;  %v20247_v10 = vpop.f32.mrf.mxu1 }
 0x436   :  { %v11763_v58 = vmul.f32 %v11613_v14, %v20149_v56  ;;  %v11832_v18 = vadd.f32 %v11831_v9, %v11761_v12  ;;  %v10175_v21 = vadd.s32 288, %v19077_v30  ;;  %v20245_v27 = vadd.f32 %v20155_v28, %v21354_v3 }
 0x437   :  { %vm11038_vm13 = vcmp.ne.s32.totalorder %v10604_v63, 0  ;;  %vm11110_vm9 = vcmp.lt.s32.totalorder %v10604_v63, 0  ;;  %v11254_v0 = vadd.s32 18, %v10604_v63  ;;  %vm11036_vm4 = vcmp.ne.s32.totalorder %v10582_v57, 0  ;;  %v9412_v62 = vpop.f32.mrf.mxu1 }
 0x438   :  { %vm11182_vm10 = vmand %vm11110_vm9, %vm11038_vm13  ;;  %vm11108_vm6 = vcmp.lt.s32.totalorder %v10582_v57, 0  ;;  %v11252_v42 = vadd.s32 18, %v10582_v57  ;;  %v20249_v37 = vmul.u32.u64.low 3817748708, %v10175_v21  ;;  %v20250_v31 = vmul.u32.u64.high 3817748708, %v10175_v21, %v20249_v37 }
 0x439   :  { %v11326_v56 = vsel %vm11182_vm10, %v11254_v0, %v10604_v63  ;;  %vm11180_vm3 = vmand %vm11108_vm6, %vm11036_vm4  ;;  %v10635_v44 = vshrl.u32 %v20239_v16, 4  ;;  %v20254_v28 = vadd.f32 %v9635_v34, %v21355_v13  ;;  %v20257_v52 = vadd.f32 %v13083_v2, %v19691_v19  ;;  %v20268_v26 = vpop.f32.mrf.mxu1 }
 0x43a   :  { %vm11398_vm2 = vcmp.lt.s32.totalorder %v11326_v56, 16  ;;  %v11324_v5 = vsel %vm11180_vm3, %v11252_v42, %v10582_v57  ;;  %v20260_v7 = vadd.s32 312, %v19077_v30  ;;  %v20263_v48 = vadd.f32 %v9638_v33, %v21356_v50 }
 0x43b   :  { %v11614_v43 = vsel %vm11398_vm2, %v20172_v49, 0.0  ;;  %vm11396_vm8 = vcmp.lt.s32.totalorder %v11324_v5, 16  ;;  %v10636_v8 = vmul.u32 18, %v10635_v44  ;;  %v12867_v34 = vpack.c.bf16 %v20257_v52, %v20234_v61  ;;  %v9415_v57 = vpop.f32.mrf.mxu1 }
 0x43c   :  { %v11612_v19 = vsel %vm11396_vm8, %v20175_v59, 0.0  ;;  %v10613_v2 = vshrl.u32 %v20250_v31, 4  ;;  %v12862_v60 = vpack.c.bf16 %v20263_v48, %v20254_v28  ;;  %v10176_v11 = vadd.s32 296, %v19077_v30 }
 0x43d   :  { %v11683_v35 = vadd.f32 %v11682_v32, %v11612_v19  ;;  %v11762_v12 = vmul.f32 %v11612_v19, %v20175_v59  ;;  %v10637_v9 = vsub.s32 %v10177_v4, %v10636_v8  ;;  %12967 = vst [vmem:[%s20880_s2 + $0x98] sm:$0xff] %v12867_v34   ;;  %v20281_v63 = vadd.f32 %v20177_v6, %v21357_v15  ;;  %v9651_v59 = vpop.f32.mrf.mxu0  ;;  %v20291_v0 = vpop.f32.mrf.mxu1  ;;  %v21360_v19 = vld [vmem:[#allocation67_spill] sm:$0xff] }
 0x43e   :  { %v11764_v53 = vmul.f32 %v11614_v43, %v20172_v49  ;;  %v10614_v16 = vmul.u32 18, %v10613_v2  ;;  %v20285_v3 = vmul.u32.u64.low 3817748708, %v20260_v7  ;;  %v20286_v33 = vmul.u32.u64.high 3817748708, %v20260_v7, %v20285_v3  ;;  %12966 = vst [vmem:[%s20880_s2 + $0x90] sm:$0xff] %v12862_v60  }
 0x43f   :  { %v11684_v4 = vadd.f32 %v11683_v35, %v11613_v14  ;;  %v11833_v32 = vadd.f32 %v11832_v18, %v11762_v12  ;;  %vm11041_vm5 = vcmp.ne.s32.totalorder %v10637_v9, 0  ;;  %vm11113_vm14 = vcmp.lt.s32.totalorder %v10637_v9, 0  ;;  %v9420_v18 = vpop.f32.mrf.mxu1  ;;  %v13087_v50 = vpop.f32.mrf.mxu0 }
 0x440   :  { %vm20293_vm0 = vmand %vm11113_vm14, %vm11041_vm5  ;;  %v11257_v49 = vadd.s32 18, %v10637_v9  ;;  %v10615_v42 = vsub.s32 %v10175_v21, %v10614_v16  ;;  %v20297_v37 = vmul.u32.u64.low 3817748708, %v10176_v11  ;;  %v20298_v31 = vmul.u32.u64.high 3817748708, %v10176_v11, %v20297_v37 }
 0x441   :  { %v11834_v56 = vadd.f32 %v11833_v32, %v11763_v58  ;;  %v11685_v44 = vadd.f32 %v11684_v4, %v11614_v43  ;;  %v20301_v13 = vadd.f32 %v13086_v23, %v19840_v25  ;;  %v20304_v14 = vadd.s32 336, %v19077_v30  ;;  %v20312_v25 = vpop.f32.mrf.mxu1  ;;  %v9654_v16 = vpop.f32.mrf.mxu0 }
 0x442   :  { %v11329_v62 = vsel %vm20293_vm0, %v11257_v49, %v10637_v9  ;;  %vm11039_vm11 = vcmp.ne.s32.totalorder %v10615_v42, 0  ;;  %vm11111_vm7 = vcmp.lt.s32.totalorder %v10615_v42, 0  ;;  %v11255_v5 = vadd.s32 18, %v10615_v42 }
 0x443   :  { %vm11401_vm12 = vcmp.lt.s32.totalorder %v11329_v62, 16  ;;  %vm11183_vm15 = vmand %vm11111_vm7, %vm11039_vm11  ;;  %v11835_v21 = vadd.f32 %v11834_v56, %v11764_v53  ;;  %v10646_v58 = vshrl.u32 %v20286_v33, 4  ;;  %v20310_v43 = vadd.f32 %v9651_v59, %v19759_v51  ;;  %v9423_v51 = vpop.f32.mrf.mxu1  ;;  %v13090_v37 = vpop.f32.mrf.mxu0 }
 0x444   :  { %v11327_v23 = vsel %vm11183_vm15, %v11255_v5, %v10615_v42  ;;  %v10624_v8 = vshrl.u32 %v20298_v31, 4  ;;  %v10179_v34 = vadd.s32 320, %v19077_v30  ;;  %v20318_v2 = vadd.f32 %v20189_v38, %v21360_v19 }
 0x445   :  { %v11617_v60 = vsel %vm11401_vm12, %v20234_v61, 0.0  ;;  %vm11399_vm1 = vcmp.lt.s32.totalorder %v11327_v23, 16  ;;  %v10647_v35 = vmul.u32 18, %v10646_v58  ;;  %v20322_v12 = vadd.f32 %v13087_v50, %v19869_v1 }
 0x446   :  { %v11615_v9 = vsel %vm11399_vm1, %v20254_v28, 0.0  ;;  %v10625_v15 = vmul.u32 18, %v10624_v8  ;;  %v20326_v57 = vmul.u32.u64.low 3817748708, %v20304_v14  ;;  %v20327_v53 = vmul.u32.u64.high 3817748708, %v20304_v14, %v20326_v57 }
 0x447   :  { %v11686_v3 = vadd.f32 %v11685_v44, %v11615_v9  ;;  %v11765_v38 = vmul.f32 %v11615_v9, %v20254_v28  ;;  %v10648_v33 = vsub.s32 %v20260_v7, %v10647_v35  ;;  %v12877_v59 = vpack.c.bf16 %v20322_v12, %v20301_v13  ;;  %v20340_v28 = vpop.f32.mrf.mxu1 }
 0x448   :  { %v10626_v4 = vsub.s32 %v10176_v11, %v10625_v15  ;;  %v20333_v1 = vmul.u32.u64.low 3817748708, %v10179_v34  ;;  %v20334_v32 = vmul.u32.u64.high 3817748708, %v10179_v34, %v20333_v1  ;;  %v10182_v6 = vadd.s32 344, %v19077_v30  ;;  %v9667_v15 = vpop.f32.mrf.mxu0 }
 0x449   :  { %v11836_v49 = vadd.f32 %v11835_v21, %v11765_v38  ;;  %vm11042_vm13 = vcmp.ne.s32.totalorder %v10648_v33, 0  ;;  %vm11114_vm9 = vcmp.lt.s32.totalorder %v10648_v33, 0  ;;  %v11258_v42 = vadd.s32 18, %v10648_v33  ;;  %12969 = vst [vmem:[%s20880_s2 + $0xa8] sm:$0xff] %v12877_v59   ;;  %v9428_v62 = vpop.f32.mrf.mxu1 }
 0x44a   :  { %vm11186_vm4 = vmand %vm11114_vm9, %vm11042_vm13  ;;  %vm11040_vm10 = vcmp.ne.s32.totalorder %v10626_v4, 0  ;;  %vm11112_vm6 = vcmp.lt.s32.totalorder %v10626_v4, 0  ;;  %v11256_v7 = vadd.s32 18, %v10626_v4  ;;  %v10679_v11 = vshrl.u32 %v20327_v53, 4 }
 0x44b   :  { %v11330_v31 = vsel %vm11186_vm4, %v11258_v42, %v10648_v33  ;;  %vm11184_vm3 = vmand %vm11112_vm6, %vm11040_vm10  ;;  %v20343_v56 = vmul.u32.u64.low 3817748708, %v10182_v6  ;;  %v20344_v44 = vmul.u32.u64.high 3817748708, %v10182_v6, %v20343_v56  ;;  %v20347_v18 = vadd.f32 %v9654_v16, %v19797_v41  ;;  %v20354_v19 = vpop.f32.mrf.mxu1  ;;  %v21361_v16 = vld [vmem:[#allocation46_spill] sm:$0xff] }
 0x44c   :  { %vm11402_vm2 = vcmp.lt.s32.totalorder %v11330_v31, 16  ;;  %v11328_v5 = vsel %vm11184_vm3, %v11256_v7, %v10626_v4  ;;  %v10680_v50 = vmul.u32 18, %v10679_v11  ;;  %v10657_v21 = vshrl.u32 %v20334_v32, 4  ;;  %v13091_v7 = vpop.f32.mrf.mxu0 }
 0x44d   :  { %v11767_v58 = vmul.f32 %v11617_v60, %v20234_v61  ;;  %v11618_v23 = vsel %vm11402_vm2, %v20257_v52, 0.0  ;;  %vm11400_vm8 = vcmp.lt.s32.totalorder %v11328_v5, 16  ;;  %v12872_v8 = vpack.c.bf16 %v20347_v18, %v20310_v43  ;;  %v9431_v33 = vpop.f32.mrf.mxu1 }
 0x44e   :  { %v11616_v35 = vsel %vm11400_vm8, %v20263_v48, 0.0  ;;  %v10681_v41 = vsub.s32 %v20304_v14, %v10680_v50  ;;  %v10658_v51 = vmul.u32 18, %v10657_v21  ;;  %v20359_v9 = vadd.s32 328, %v19077_v30 }
 0x44f   :  { %v11687_v57 = vadd.f32 %v11686_v3, %v11616_v35  ;;  %v11766_v61 = vmul.f32 %v11616_v35, %v20263_v48  ;;  %v10690_v53 = vshrl.u32 %v20344_v44, 4  ;;  %12968 = vst [vmem:[%s20880_s2 + $0xa0] sm:$0xff] %v12872_v8   ;;  %v20368_v38 = vadd.f32 %v20215_v54, %v21361_v16  ;;  %v20371_v56 = vpop.f32.mrf.mxu1 }
 0x450   :  { %vm11045_vm5 = vcmp.ne.s32.totalorder %v10681_v41, 0  ;;  %vm11117_vm14 = vcmp.lt.s32.totalorder %v10681_v41, 0  ;;  %v11261_v14 = vadd.s32 18, %v10681_v41  ;;  %v10659_v59 = vsub.s32 %v10179_v34, %v10658_v51 }
 0x451   :  { %v11768_v4 = vmul.f32 %v11618_v23, %v20257_v52  ;;  %v11688_v3 = vadd.f32 %v11687_v57, %v11617_v60  ;;  %v11837_v1 = vadd.f32 %v11836_v49, %v11766_v61  ;;  %vm11189_vm0 = vmand %vm11117_vm14, %vm11045_vm5  ;;  %v10691_v48 = vmul.u32 18, %v10690_v53  ;;  %v9436_v5 = vpop.f32.mrf.mxu1 }
 0x452   :  { %v11333_v32 = vsel %vm11189_vm0, %v11261_v14, %v10681_v41  ;;  %vm11043_vm11 = vcmp.ne.s32.totalorder %v10659_v59, 0  ;;  %vm11115_vm7 = vcmp.lt.s32.totalorder %v10659_v59, 0  ;;  %v11259_v42 = vadd.s32 18, %v10659_v59 }
 0x453   :  { %v11838_v11 = vadd.f32 %v11837_v1, %v11767_v58  ;;  %vm11405_vm12 = vcmp.lt.s32.totalorder %v11333_v32, 16  ;;  %vm11187_vm15 = vmand %vm11115_vm7, %vm11043_vm11  ;;  %v11689_v54 = vadd.f32 %v11688_v3, %v11618_v23  ;;  %v10692_v31 = vsub.s32 %v10182_v6, %v10691_v48  ;;  %v9670_v58 = vpop.f32.mrf.mxu0 }
 0x454   :  { %v20374_v34 = vsel %vm11405_vm12, %v20301_v13, 0.0  ;;  %v11331_v52 = vsel %vm11187_vm15, %v11259_v42, %v10659_v59  ;;  %v20377_v60 = vmul.u32.u64.low 3817748708, %v20359_v9  ;;  %v20378_v49 = vmul.u32.u64.high 3817748708, %v20359_v9, %v20377_v60  ;;  %v21362_v59 = vld [vmem:[#allocation47_spill] sm:$0xff] }
 0x455   :  { %vm11403_vm1 = vcmp.lt.s32.totalorder %v11331_v52, 16  ;;  %v11839_v44 = vadd.f32 %v11838_v11, %v11768_v4  ;;  %vm11046_vm13 = vcmp.ne.s32.totalorder %v10692_v31, 0  ;;  %v20381_v62 = vadd.f32 %v13090_v37, %v19940_v55  ;;  %v20391_v55 = vpop.f32.mrf.mxu1  ;;  %v13094_v1 = vpop.f32.mrf.mxu0 }
 0x456   :  { %v11619_v50 = vsel %vm11403_vm1, %v20310_v43, 0.0  ;;  %vm11118_vm9 = vcmp.lt.s32.totalorder %v10692_v31, 0  ;;  %v11262_v6 = vadd.s32 18, %v10692_v31  ;;  %v10185_v21 = vadd.s32 368, %v19077_v30 }
 0x457   :  { %v20387_v23 = vmul.f32 %v20374_v34, %v20301_v13  ;;  %v11690_v8 = vadd.f32 %v11689_v54, %v11619_v50  ;;  %v11769_v35 = vmul.f32 %v11619_v50, %v20310_v43  ;;  %vm11190_vm4 = vmand %vm11118_vm9, %vm11046_vm13  ;;  %v10183_v41 = vadd.s32 352, %v19077_v30  ;;  %v9439_v13 = vpop.f32.mrf.mxu1 }
 0x458   :  { %v11334_v37 = vsel %vm11190_vm4, %v11262_v6, %v10692_v31  ;;  %v10668_v51 = vshrl.u32 %v20378_v49, 4  ;;  %v20394_v57 = vmul.u32.u64.low 3817748708, %v10185_v21  ;;  %v20395_v61 = vmul.u32.u64.high 3817748708, %v10185_v21, %v20394_v57 }
 0x459   :  { %v11840_v53 = vadd.f32 %v11839_v44, %v11769_v35  ;;  %vm11406_vm10 = vcmp.lt.s32.totalorder %v11334_v37, 16  ;;  %v20397_v16 = vmul.u32.u64.low 3817748708, %v10183_v41  ;;  %v20398_v33 = vmul.u32.u64.high 3817748708, %v10183_v41, %v20397_v16 }
 0x45a   :  { %v10669_v14 = vmul.u32 18, %v10668_v51  ;;  %v20401_v43 = vadd.f32 %v9667_v15, %v19896_v17  ;;  %v20405_v4 = vadd.f32 %v20228_v45, %v21362_v59  ;;  %v20408_v3 = vadd.f32 %v13091_v7, %v19962_v40  ;;  %v21363_v15 = vld [vmem:[#allocation25_spill] sm:$0xff]  ;;  %v20434_v60 = vpop.f32.mrf.mxu1 }
 0x45b   :  { %v20411_v48 = vsel %vm11406_vm10, %v20322_v12, 0.0  ;;  %v10186_v32 = vadd.s32 376, %v19077_v30  ;;  %v20415_v42 = vadd.f32 %v9670_v58, %v19916_v36  ;;  %v20418_v11 = vadd.s32 360, %v19077_v30 }
 0x45c   :  { %v10670_v17 = vsub.s32 %v20359_v9, %v10669_v14  ;;  %v10723_v45 = vshrl.u32 %v20395_v61, 4  ;;  %v12887_v40 = vpack.c.bf16 %v20408_v3, %v20381_v62  ;;  %v20426_v7 = vadd.f32 %v20247_v10, %v21363_v15  ;;  %v9683_v10 = vpop.f32.mrf.mxu0  ;;  %v9444_v58 = vpop.f32.mrf.mxu1 }
 0x45d   :  { %v10701_v54 = vshrl.u32 %v20398_v33, 4  ;;  %v20429_v31 = vmul.u32.u64.low 3817748708, %v10186_v32  ;;  %v20430_v52 = vmul.u32.u64.high 3817748708, %v10186_v32, %v20429_v31  ;;  %v12882_v36 = vpack.c.bf16 %v20415_v42, %v20401_v43 }
 0x45e   :  { %vm11044_vm6 = vcmp.ne.s32.totalorder %v10670_v17, 0  ;;  %vm11116_vm3 = vcmp.lt.s32.totalorder %v10670_v17, 0  ;;  %v11260_v9 = vadd.s32 18, %v10670_v17  ;;  %v10724_v49 = vmul.u32 18, %v10723_v45  ;;  %12971 = vst [vmem:[%s20880_s2 + $0xb8] sm:$0xff] %v12887_v40   ;;  %v20458_v33 = vpop.f32.mrf.mxu1 }
 0x45f   :  { %v11772_v44 = vmul.f32 %v20411_v48, %v20322_v12  ;;  %vm11188_vm2 = vmand %vm11116_vm3, %vm11044_vm6  ;;  %v10702_v5 = vmul.u32 18, %v10701_v54  ;;  %12970 = vst [vmem:[%s20880_s2 + $0xb0] sm:$0xff] %v12882_v36   ;;  %v20445_v50 = vmul.u32.u64.low 3817748708, %v20418_v11  ;;  %v20446_v6 = vmul.u32.u64.high 3817748708, %v20418_v11, %v20445_v50 }
 0x460   :  { %v11332_v35 = vsel %vm11188_vm2, %v11260_v9, %v10670_v17  ;;  %v10725_v37 = vsub.s32 %v10185_v21, %v10724_v49  ;;  %v20449_v51 = vadd.f32 %v13094_v1, %v20061_v24  ;;  %v20452_v57 = vadd.s32 400, %v19077_v30  ;;  %v9447_v59 = vpop.f32.mrf.mxu1  ;;  %v13095_v9 = vpop.f32.mrf.mxu0 }
 0x461   :  { %vm11404_vm8 = vcmp.lt.s32.totalorder %v11332_v35, 16  ;;  %v10703_v12 = vsub.s32 %v10183_v41, %v10702_v5  ;;  %v10734_v61 = vshrl.u32 %v20430_v52, 4  ;;  %v20456_v16 = vadd.f32 %v9683_v10, %v19987_v47 }
 0x462   :  { %v11620_v13 = vsel %vm11404_vm8, %v20347_v18, 0.0  ;;  %vm11049_vm5 = vcmp.ne.s32.totalorder %v10725_v37, 0  ;;  %vm11121_vm14 = vcmp.lt.s32.totalorder %v10725_v37, 0  ;;  %v11265_v21 = vadd.s32 18, %v10725_v37 }
 0x463   :  { %v11691_v14 = vadd.f32 %v11690_v8, %v11620_v13  ;;  %v11770_v24 = vmul.f32 %v11620_v13, %v20347_v18  ;;  %vm11193_vm0 = vmand %vm11121_vm14, %vm11049_vm5  ;;  %vm11047_vm11 = vcmp.ne.s32.totalorder %v10703_v12, 0  ;;  %vm11119_vm7 = vcmp.lt.s32.totalorder %v10703_v12, 0  ;;  %v21366_v8 = vld [vmem:[#allocation26_spill] sm:$0xff] }
 0x464   :  { %v11337_v41 = vsel %vm11193_vm0, %v11265_v21, %v10725_v37  ;;  %vm20462_vm12 = vmand %vm11119_vm7, %vm11047_vm11  ;;  %v11263_v47 = vadd.s32 18, %v10703_v12  ;;  %v10735_v17 = vmul.u32 18, %v10734_v61  ;;  %v10712_v45 = vshrl.u32 %v20446_v6, 4  ;;  %v20477_v49 = vpop.f32.mrf.mxu1  ;;  %v9686_v61 = vpop.f32.mrf.mxu0 }
 0x465   :  { %v11692_v40 = vadd.f32 %v11691_v14, %v20374_v34  ;;  %v11841_v15 = vadd.f32 %v11840_v53, %v11770_v24  ;;  %vm11409_vm15 = vcmp.lt.s32.totalorder %v11337_v41, 16  ;;  %v20470_v18 = vadd.f32 %v20268_v26, %v21366_v8 }
 0x466   :  { %v11335_v54 = vsel %vm20462_vm12, %v11263_v47, %v10703_v12  ;;  %v10736_v31 = vsub.s32 %v10186_v32, %v10735_v17  ;;  %v10713_v52 = vmul.u32 18, %v10712_v45  ;;  %v20475_v36 = vadd.s32 384, %v19077_v30  ;;  %v9452_v32 = vpop.f32.mrf.mxu1  ;;  %v21367_v45 = vld [vmem:[#allocation10_spill] sm:$0xff] }
 0x467   :  { %v11842_v10 = vadd.f32 %v11841_v15, %v20387_v23  ;;  %v11625_v34 = vsel %vm11409_vm15, %v20381_v62, 0.0  ;;  %vm11407_vm1 = vcmp.lt.s32.totalorder %v11335_v54, 16  ;;  %v11693_v53 = vadd.f32 %v11692_v40, %v20411_v48  ;;  %v13098_v54 = vpop.f32.mrf.mxu0 }
 0x468   :  { %v11623_v26 = vsel %vm11407_vm1, %v20401_v43, 0.0  ;;  %vm11050_vm13 = vcmp.ne.s32.totalorder %v10736_v31, 0  ;;  %vm11122_vm9 = vcmp.lt.s32.totalorder %v10736_v31, 0  ;;  %v11266_v5 = vadd.s32 18, %v10736_v31  ;;  %v20492_v13 = vpop.f32.mrf.mxu1 }
 0x469   :  { %v11694_v50 = vadd.f32 %v11693_v53, %v11623_v26  ;;  %v11773_v6 = vmul.f32 %v11623_v26, %v20401_v43  ;;  %v11843_v58 = vadd.f32 %v11842_v10, %v11772_v44  ;;  %vm11194_vm4 = vmand %vm11122_vm9, %vm11050_vm13  ;;  %v10714_v35 = vsub.s32 %v20418_v11, %v10713_v52 }
 0x46a   :  { %v11338_v37 = vsel %vm11194_vm4, %v11266_v5, %v10736_v31  ;;  %v20486_v23 = vmul.u32.u64.low 3817748708, %v20452_v57  ;;  %v20487_v12 = vmul.u32.u64.high 3817748708, %v20452_v57, %v20486_v23  ;;  %v20490_v48 = vadd.f32 %v13095_v9, %v20102_v39  ;;  %v9455_v24 = vpop.f32.mrf.mxu1 }
 0x46b   :  { %v11844_v21 = vadd.f32 %v11843_v58, %v11773_v6  ;;  %vm11410_vm10 = vcmp.lt.s32.totalorder %v11338_v37, 16  ;;  %vm11048_vm6 = vcmp.ne.s32.totalorder %v10714_v35, 0  ;;  %vm11120_vm3 = vcmp.lt.s32.totalorder %v10714_v35, 0  ;;  %v9699_v37 = vpop.f32.mrf.mxu0 }
 0x46c   :  { %v11775_v43 = vmul.f32 %v11625_v34, %v20381_v62  ;;  %vm11192_vm2 = vmand %vm11120_vm3, %vm11048_vm6  ;;  %v11264_v44 = vadd.s32 18, %v10714_v35  ;;  %v20496_v11 = vmul.u32.u64.low 3817748708, %v20475_v36  ;;  %v20497_v14 = vmul.u32.u64.high 3817748708, %v20475_v36, %v20496_v11 }
 0x46d   :  { %v11626_v59 = vsel %vm11410_vm10, %v20408_v3, 0.0  ;;  %v12897_v39 = vpack.c.bf16 %v20490_v48, %v20449_v51  ;;  %v10190_v41 = vadd.s32 408, %v19077_v30  ;;  %v20504_v1 = vadd.f32 %v9686_v61, %v20013_v46 }
 0x46e   :  { %v11336_v47 = vsel %vm11192_vm2, %v11264_v44, %v10714_v35  ;;  %v10767_v62 = vshrl.u32 %v20487_v12, 4  ;;  %v10188_v17 = vadd.s32 392, %v19077_v30  ;;  %v20510_v40 = vadd.f32 %v20291_v0, %v21367_v45 }
 0x46f   :  { %vm11408_vm8 = vcmp.lt.s32.totalorder %v11336_v47, 16  ;;  %12973 = vst [vmem:[%s20880_s2 + $0xc8] sm:$0xff] %v12897_v39   ;;  %v20515_v15 = vmul.u32.u64.low 3817748708, %v10190_v41  ;;  %v20516_v8 = vmul.u32.u64.high 3817748708, %v10190_v41, %v20515_v15  ;;  %v12892_v46 = vpack.c.bf16 %v20504_v1, %v20456_v16  ;;  %v13099_v47 = vpop.f32.mrf.mxu0 }
 0x470   :  { %v11776_v31 = vmul.f32 %v11626_v59, %v20408_v3  ;;  %v11624_v52 = vsel %vm11408_vm8, %v20415_v42, 0.0  ;;  %v10768_v9 = vmul.u32 18, %v10767_v62  ;;  %v10745_v0 = vshrl.u32 %v20497_v14, 4 }
 0x471   :  { %v11695_v10 = vadd.f32 %v11694_v50, %v11624_v52  ;;  %v11774_v53 = vmul.f32 %v11624_v52, %v20415_v42  ;;  %12972 = vst [vmem:[%s20880_s2 + $0xc0] sm:$0xff] %v12892_v46   ;;  %v20527_v26 = vmul.u32.u64.low 3817748708, %v10188_v17  ;;  %v20528_v5 = vmul.u32.u64.high 3817748708, %v10188_v17, %v20527_v26  ;;  %v21368_v46 = vld [vmem:[#allocation33_spill] sm:$0xff] }
 0x472   :  { %v10769_v32 = vsub.s32 %v20452_v57, %v10768_v9  ;;  %v10746_v6 = vmul.u32 18, %v10745_v0  ;;  %v20532_v3 = vadd.f32 %v13098_v54, %v20209_v20  ;;  %v20535_v58 = vadd.s32 432, %v19077_v30  ;;  %v9702_v0 = vpop.f32.mrf.mxu0 }
 0x473   :  { %v11696_v35 = vadd.f32 %v11695_v10, %v11625_v34  ;;  %v11845_v50 = vadd.f32 %v11844_v21, %v11774_v53  ;;  %v10778_v42 = vshrl.u32 %v20516_v8, 4  ;;  %v20539_v23 = vadd.s32 416, %v19077_v30 }
 0x474   :  { %vm11053_vm5 = vcmp.ne.s32.totalorder %v10769_v32, 0  ;;  %vm11125_vm14 = vcmp.lt.s32.totalorder %v10769_v32, 0  ;;  %v11269_v12 = vadd.s32 18, %v10769_v32  ;;  %v10747_v57 = vsub.s32 %v20475_v36, %v10746_v6 }
 0x475   :  { %v11846_v61 = vadd.f32 %v11845_v50, %v11775_v43  ;;  %vm11197_vm0 = vmand %vm11125_vm14, %vm11053_vm5  ;;  %v11697_v20 = vadd.f32 %v11696_v35, %v11626_v59  ;;  %v10779_v44 = vmul.u32 18, %v10778_v42  ;;  %v10756_v11 = vshrl.u32 %v20528_v5, 4 }
 0x476   :  { %v11341_v14 = vsel %vm11197_vm0, %v11269_v12, %v10769_v32  ;;  %vm11051_vm11 = vcmp.ne.s32.totalorder %v10747_v57, 0  ;;  %vm11123_vm7 = vcmp.lt.s32.totalorder %v10747_v57, 0  ;;  %v11267_v34 = vadd.s32 18, %v10747_v57 }
 0x477   :  { %vm11413_vm12 = vcmp.lt.s32.totalorder %v11341_v14, 16  ;;  %vm11195_vm15 = vmand %vm11123_vm7, %vm11051_vm11  ;;  %v11847_v21 = vadd.f32 %v11846_v61, %v11776_v31  ;;  %v10780_v24 = vsub.s32 %v10190_v41, %v10779_v44  ;;  %v10757_v39 = vmul.u32 18, %v10756_v11 }
 0x478   :  { %v11339_v62 = vsel %vm11195_vm15, %v11267_v34, %v10747_v57  ;;  %v20544_v45 = vmul.u32.u64.low 3817748708, %v20535_v58  ;;  %v20545_v36 = vmul.u32.u64.high 3817748708, %v20535_v58, %v20544_v45  ;;  %v20548_v43 = vadd.f32 %v9699_v37, %v20121_v22  ;;  %v13102_v37 = vpop.f32.mrf.mxu0 }
 0x479   :  { %v11629_v59 = vsel %vm11413_vm12, %v20449_v51, 0.0  ;;  %vm11411_vm1 = vcmp.lt.s32.totalorder %v11339_v62, 16  ;;  %vm11054_vm13 = vcmp.ne.s32.totalorder %v10780_v24, 0  ;;  %vm11126_vm9 = vcmp.lt.s32.totalorder %v10780_v24, 0 }
 0x47a   :  { %v11627_v15 = vsel %vm11411_vm1, %v20456_v16, 0.0  ;;  %vm11198_vm4 = vmand %vm11126_vm9, %vm11054_vm13  ;;  %v11270_v8 = vadd.s32 18, %v10780_v24  ;;  %v10758_v41 = vsub.s32 %v10188_v17, %v10757_v39  ;;  %v20554_v54 = vadd.f32 %v20312_v25, %v21368_v46 }
 0x47b   :  { %v11698_v31 = vadd.f32 %v11697_v20, %v11627_v15  ;;  %v11777_v52 = vmul.f32 %v11627_v15, %v20456_v16  ;;  %v20558_v22 = vmul.u32.u64.low 3817748708, %v20539_v23  ;;  %v20559_v9 = vmul.u32.u64.high 3817748708, %v20539_v23, %v20558_v22 }
 0x47c   :  { %v11342_v10 = vsel %vm11198_vm4, %v11270_v8, %v10780_v24  ;;  %vm11052_vm10 = vcmp.ne.s32.totalorder %v10758_v41, 0  ;;  %vm11124_vm6 = vcmp.lt.s32.totalorder %v10758_v41, 0  ;;  %v11268_v53 = vadd.s32 18, %v10758_v41 }
 0x47d   :  { %v11848_v26 = vadd.f32 %v11847_v21, %v11777_v52  ;;  %vm11414_vm3 = vcmp.lt.s32.totalorder %v11342_v10, 16  ;;  %vm11196_vm2 = vmand %vm11124_vm6, %vm11052_vm10  ;;  %v10811_v17 = vshrl.u32 %v20545_v36, 4  ;;  %v20563_v25 = vadd.f32 %v13099_v47, %v20245_v27  ;;  %v21369_v21 = vld [vmem:[#allocation27_spill] sm:$0xff] }
 0x47e   :  { %v11779_v5 = vmul.f32 %v11629_v59, %v20449_v51  ;;  %v11340_v16 = vsel %vm11196_vm2, %v11268_v53, %v10758_v41  ;;  %v10194_v32 = vadd.s32 440, %v19077_v30  ;;  %v20568_v6 = vadd.f32 %v9702_v0, %v20169_v29 }
 0x47f   :  { %v11630_v35 = vsel %vm11414_vm3, %v20490_v48, 0.0  ;;  %vm11412_vm8 = vcmp.lt.s32.totalorder %v11340_v16, 16  ;;  %v10812_v50 = vmul.u32 18, %v10811_v17  ;;  %v10789_v42 = vshrl.u32 %v20559_v9, 4 }
 0x480   :  { %v11628_v12 = vsel %vm11412_vm8, %v20504_v1, 0.0  ;;  %v12907_v27 = vpack.c.bf16 %v20563_v25, %v20532_v3  ;;  %v20575_v57 = vmul.u32.u64.low 3817748708, %v10194_v32  ;;  %v20576_v51 = vmul.u32.u64.high 3817748708, %v10194_v32, %v20575_v57 }
 0x481   :  { %v11699_v61 = vadd.f32 %v11698_v31, %v11628_v12  ;;  %v11778_v20 = vmul.f32 %v11628_v12, %v20504_v1  ;;  %v10813_v29 = vsub.s32 %v20535_v58, %v10812_v50  ;;  %v10790_v44 = vmul.u32 18, %v10789_v42  ;;  %v9715_v58 = vpop.f32.mrf.mxu0 }
 0x482   :  { %v11780_v11 = vmul.f32 %v11630_v35, %v20490_v48  ;;  %12975 = vst [vmem:[%s20880_s2 + $0xd8] sm:$0xff] %v12907_v27   ;;  %v12902_v14 = vpack.c.bf16 %v20568_v6, %v20548_v43  ;;  %v10192_v34 = vadd.s32 424, %v19077_v30  ;;  %v20589_v24 = vadd.f32 %v20340_v28, %v21369_v21 }
 0x483   :  { %v11700_v39 = vadd.f32 %v11699_v61, %v11629_v59  ;;  %v11849_v1 = vadd.f32 %v11848_v26, %v11778_v20  ;;  %vm11057_vm5 = vcmp.ne.s32.totalorder %v10813_v29, 0  ;;  %vm11129_vm14 = vcmp.lt.s32.totalorder %v10813_v29, 0  ;;  %v13103_v52 = vpop.f32.mrf.mxu0 }
 0x484   :  { %vm20591_vm0 = vmand %vm11129_vm14, %vm11057_vm5  ;;  %v11273_v47 = vadd.s32 18, %v10813_v29  ;;  %v10791_v62 = vsub.s32 %v20539_v23, %v10790_v44  ;;  %v10822_v45 = vshrl.u32 %v20576_v51, 4  ;;  %12974 = vst [vmem:[%s20880_s2 + $0xd0] sm:$0xff] %v12902_v14   ;;  %v10197_v28 = vadd.s32 464, %v19077_v30 }
 0x485   :  { %v11850_v36 = vadd.f32 %v11849_v1, %v11779_v5  ;;  %v11701_v59 = vadd.f32 %v11700_v39, %v11630_v35  ;;  %v20601_v15 = vmul.u32.u64.low 3817748708, %v10192_v34  ;;  %v20602_v8 = vmul.u32.u64.high 3817748708, %v10192_v34, %v20601_v15  ;;  %v21374_v35 = vld [vmem:[#allocation12_spill] sm:$0xff]  ;;  %v9718_v12 = vpop.f32.mrf.mxu0 }
 0x486   :  { %v11345_v41 = vsel %vm20591_vm0, %v11273_v47, %v10813_v29  ;;  %vm11055_vm11 = vcmp.ne.s32.totalorder %v10791_v62, 0  ;;  %vm11127_vm7 = vcmp.lt.s32.totalorder %v10791_v62, 0  ;;  %v11271_v46 = vadd.s32 18, %v10791_v62  ;;  %v21377_v15 = vld [vmem:[#allocation52_spill] sm:$0xff] }
 0x487   :  { %vm11199_vm12 = vmand %vm11127_vm7, %vm11055_vm11  ;;  %v11851_v23 = vadd.f32 %v11850_v36, %v11780_v11  ;;  %v10823_v31 = vmul.u32 18, %v10822_v45  ;;  %v20607_v9 = vadd.f32 %v13102_v37, %v20368_v38  ;;  %vm20612_vm15 = vcmp.lt.s32.totalorder %v11345_v41, 16 }
 0x488   :  { %v11343_v22 = vsel %vm11199_vm12, %v11271_v46, %v10791_v62  ;;  %v20609_v0 = vmul.u32.u64.low 3817748708, %v10197_v28  ;;  %v20610_v10 = vmul.u32.u64.high 3817748708, %v10197_v28, %v20609_v0  ;;  %v10800_v17 = vshrl.u32 %v20602_v8, 4 }
 0x489   :  { %vm11415_vm1 = vcmp.lt.s32.totalorder %v11343_v22, 16  ;;  %v10824_v26 = vsub.s32 %v10194_v32, %v10823_v31  ;;  %v10195_v16 = vadd.s32 448, %v19077_v30  ;;  %v20621_v50 = vadd.f32 %v20354_v19, %v21374_v35 }
 0x48a   :  { %v11631_v5 = vsel %vm11415_vm1, %v20548_v43, 0.0  ;;  %v20624_v38 = vadd.f32 %v13103_v52, %v20405_v4  ;;  %v10801_v57 = vmul.u32 18, %v10800_v17  ;;  %v10855_v51 = vshrl.u32 %v20610_v10, 4 }
 0x48b   :  { %v11702_v42 = vadd.f32 %v11701_v59, %v11631_v5  ;;  %v11781_v37 = vmul.f32 %v11631_v5, %v20548_v43  ;;  %vm11058_vm13 = vcmp.ne.s32.totalorder %v10824_v26, 0  ;;  %vm11130_vm9 = vcmp.lt.s32.totalorder %v10824_v26, 0 }
 0x48c   :  { %vm20627_vm4 = vmand %vm11130_vm9, %vm11058_vm13  ;;  %v11274_v27 = vadd.s32 18, %v10824_v26  ;;  %v12917_v19 = vpack.c.bf16 %v20624_v38, %v20607_v9  ;;  %v20634_v4 = vmul.u32.u64.low 3817748708, %v10195_v16  ;;  %v20635_v20 = vmul.u32.u64.high 3817748708, %v10195_v16, %v20634_v4 }
 0x48d   :  { %v11852_v61 = vadd.f32 %v11851_v23, %v11781_v37  ;;  %v10198_v43 = vadd.s32 472, %v19077_v30  ;;  %v10802_v44 = vsub.s32 %v10192_v34, %v10801_v57  ;;  %v10856_v11 = vmul.u32 18, %v10855_v51 }
 0x48e   :  { %v11346_v29 = vsel %vm20627_vm4, %v11274_v27, %v10824_v26  ;;  %12977 = vst [vmem:[%s20880_s2 + $0xe8] sm:$0xff] %v12917_v19   ;;  %v20644_v14 = vadd.f32 %v9718_v12, %v20318_v2  ;;  %v20647_v21 = vadd.f32 %v9715_v58, %v20281_v63  ;;  %v10196_v48 = vadd.s32 456, %v19077_v30  ;;  %v13106_v58 = vpop.f32.mrf.mxu0 }
 0x48f   :  { %v20649_v39 = vmul.u32.u64.low 3817748708, %v10198_v43  ;;  %v20650_v1 = vmul.u32.u64.high 3817748708, %v10198_v43, %v20649_v39  ;;  %v11633_v34 = vsel %vm20612_vm15, %v20532_v3, 0.0  ;;  %vm11056_vm10 = vcmp.ne.s32.totalorder %v10802_v44, 0 }
 0x490   :  { %vm11128_vm6 = vcmp.lt.s32.totalorder %v10802_v44, 0  ;;  %v11272_v47 = vadd.s32 18, %v10802_v44  ;;  %vm11418_vm3 = vcmp.lt.s32.totalorder %v11346_v29, 16  ;;  %v10857_v62 = vsub.s32 %v10197_v28, %v10856_v11  ;;  %v9731_v53 = vpop.f32.mrf.mxu0 }
 0x491   :  { %vm11200_vm2 = vmand %vm11128_vm6, %vm11056_vm10  ;;  %v10833_v2 = vshrl.u32 %v20635_v20, 4  ;;  %v12912_v63 = vpack.c.bf16 %v20644_v14, %v20647_v21  ;;  %v20659_v36 = vmul.u32.u64.low 3817748708, %v10196_v48  ;;  %v20660_v59 = vmul.u32.u64.high 3817748708, %v10196_v48, %v20659_v36 }
 0x492   :  { %v11344_v45 = vsel %vm11200_vm2, %v11272_v47, %v10802_v44  ;;  %v20664_v8 = vadd.f32 %v20371_v56, %v21377_v15  ;;  %vm11061_vm5 = vcmp.ne.s32.totalorder %v10857_v62, 0  ;;  %vm11133_vm14 = vcmp.lt.s32.totalorder %v10857_v62, 0  ;;  %v13107_v19 = vpop.f32.mrf.mxu0 }
 0x493   :  { %vm11416_vm8 = vcmp.lt.s32.totalorder %v11344_v45, 16  ;;  %v11277_v41 = vadd.s32 18, %v10857_v62  ;;  %12976 = vst [vmem:[%s20880_s2 + $0xe0] sm:$0xff] %v12912_v63   ;;  %v11634_v28 = vsel %vm11418_vm3, %v20563_v25, 0.0  ;;  %vm20671_vm0 = vmand %vm11133_vm14, %vm11061_vm5  ;;  %v10834_v31 = vmul.u32 18, %v10833_v2 }
 0x494   :  { %v11632_v46 = vsel %vm11416_vm8, %v20568_v6, 0.0  ;;  %v10866_v56 = vshrl.u32 %v20650_v1, 4  ;;  %v11783_v52 = vmul.f32 %v11633_v34, %v20532_v3  ;;  %v10844_v5 = vshrl.u32 %v20660_v59, 4 }
 0x495   :  { %v11703_v22 = vadd.f32 %v11702_v42, %v11632_v46  ;;  %v11782_v0 = vmul.f32 %v11632_v46, %v20568_v6  ;;  %v11349_v10 = vsel %vm20671_vm0, %v11277_v41, %v10857_v62  ;;  %v10835_v26 = vsub.s32 %v10195_v16, %v10834_v31  ;;  %v9734_v62 = vpop.f32.mrf.mxu0 }
 0x496   :  { %v10867_v17 = vmul.u32 18, %v10866_v56  ;;  %v10201_v35 = vadd.s32 496, %v19077_v30  ;;  %v11784_v37 = vmul.f32 %v11634_v28, %v20563_v25  ;;  %v20684_v27 = vadd.f32 %v13106_v58, %v20510_v40 }
 0x497   :  { %v11704_v12 = vadd.f32 %v11703_v22, %v11633_v34  ;;  %v11853_v32 = vadd.f32 %v11852_v61, %v11782_v0  ;;  %vm20686_vm11 = vcmp.lt.s32.totalorder %v11349_v10, 16  ;;  %vm11059_vm7 = vcmp.ne.s32.totalorder %v10835_v26, 0  ;;  %v13110_v23 = vpop.f32.mrf.mxu0 }
 0x498   :  { %vm11131_vm12 = vcmp.lt.s32.totalorder %v10835_v26, 0  ;;  %v11275_v6 = vadd.s32 18, %v10835_v26  ;;  %v10868_v57 = vsub.s32 %v10198_v43, %v10867_v17  ;;  %v10845_v51 = vmul.u32 18, %v10844_v5 }
 0x499   :  { %v11854_v16 = vadd.f32 %v11853_v32, %v11783_v52  ;;  %vm11203_vm15 = vmand %vm11131_vm12, %vm11059_vm7  ;;  %v11705_v42 = vadd.f32 %v11704_v12, %v11634_v28  ;;  %v20690_v25 = vmul.u32.u64.low 3817748708, %v10201_v35  ;;  %v20691_v20 = vmul.u32.u64.high 3817748708, %v10201_v35, %v20690_v25  ;;  %v9747_v12 = vpop.f32.mrf.mxu0 }
 0x49a   :  { %v11347_v4 = vsel %vm11203_vm15, %v11275_v6, %v10835_v26  ;;  %v10199_v40 = vadd.s32 480, %v19077_v30  ;;  %vm11062_vm13 = vcmp.ne.s32.totalorder %v10868_v57, 0  ;;  %vm11134_vm9 = vcmp.lt.s32.totalorder %v10868_v57, 0 }
 0x49b   :  { %vm11419_vm1 = vcmp.lt.s32.totalorder %v11347_v4, 16  ;;  %v11855_v61 = vadd.f32 %v11854_v16, %v11784_v37  ;;  %v11637_v29 = vsel %vm20686_vm11, %v20607_v9, 0.0  ;;  %vm11206_vm4 = vmand %vm11134_vm9, %vm11062_vm13  ;;  %v11278_v43 = vadd.s32 18, %v10868_v57 }
 0x49c   :  { %v11635_v44 = vsel %vm11419_vm1, %v20647_v21, 0.0  ;;  %v10846_v11 = vsub.s32 %v10196_v48, %v10845_v51  ;;  %v20699_v34 = vmul.u32.u64.low 3817748708, %v10199_v40  ;;  %v20700_v47 = vmul.u32.u64.high 3817748708, %v10199_v40, %v20699_v34 }
 0x49d   :  { %v11706_v39 = vadd.f32 %v11705_v42, %v11635_v44  ;;  %v11785_v1 = vmul.f32 %v11635_v44, %v20647_v21  ;;  %v11350_v2 = vsel %vm11206_vm4, %v11278_v43, %v10868_v57  ;;  %v10899_v45 = vshrl.u32 %v20691_v20, 4  ;;  %v13111_v20 = vpop.f32.mrf.mxu0 }
 0x49e   :  { %vm11060_vm10 = vcmp.ne.s32.totalorder %v10846_v11, 0  ;;  %vm11132_vm6 = vcmp.lt.s32.totalorder %v10846_v11, 0  ;;  %v11276_v63 = vadd.s32 18, %v10846_v11  ;;  %vm11422_vm3 = vcmp.lt.s32.totalorder %v11350_v2, 16 }
 0x49f   :  { %v11856_v58 = vadd.f32 %v11855_v61, %v11785_v1  ;;  %vm11204_vm2 = vmand %vm11132_vm6, %vm11060_vm10  ;;  %v20704_v36 = vadd.f32 %v13107_v19, %v20554_v54  ;;  %v9732_v59 = vadd.f32 %v9731_v53, %v20426_v7  ;;  %v10202_v21 = vadd.s32 504, %v19077_v30  ;;  %v21382_v19 = vld [vmem:[#allocation21_spill] sm:$0xff]  ;;  %v21383_v61 = vld [vmem:[#allocation14_spill] sm:$0xff] }
 0x4a0   :  { %v11348_v48 = vsel %vm11204_vm2, %v11276_v63, %v10846_v11  ;;  %v20709_v15 = vadd.f32 %v9734_v62, %v20470_v18  ;;  %v11638_v41 = vsel %vm11422_vm3, %v20624_v38, 0.0  ;;  %v10900_v28 = vmul.u32 18, %v10899_v45  ;;  %v9750_v63 = vpop.f32.mrf.mxu0 }
 0x4a1   :  { %vm11420_vm8 = vcmp.lt.s32.totalorder %v11348_v48, 16  ;;  %v10877_v46 = vshrl.u32 %v20700_v47, 4  ;;  %v12927_v54 = vpack.c.bf16 %v20704_v36, %v20684_v27  ;;  %v11787_v10 = vmul.f32 %v11637_v29, %v20607_v9 }
 0x4a2   :  { %v11636_v31 = vsel %vm11420_vm8, %v20644_v14, 0.0  ;;  %v20716_v56 = vmul.u32.u64.low 3817748708, %v10202_v21  ;;  %v20717_v52 = vmul.u32.u64.high 3817748708, %v10202_v21, %v20716_v56  ;;  %v10901_v18 = vsub.s32 %v10201_v35, %v10900_v28 }
 0x4a3   :  { %v11707_v7 = vadd.f32 %v11706_v39, %v11636_v31  ;;  %v11786_v22 = vmul.f32 %v11636_v31, %v20644_v14  ;;  %v10878_v0 = vmul.u32 18, %v10877_v46  ;;  %v11788_v53 = vmul.f32 %v11638_v41, %v20624_v38  ;;  %12979 = vst [vmem:[%s20880_s2 + $0xf8] sm:$0xff] %v12927_v54  }
 0x4a4   :  { %v12922_v26 = vpack.c.bf16 %v20709_v15, %v9732_v59  ;;  %v10200_v17 = vadd.s32 488, %v19077_v30  ;;  %vm11065_vm5 = vcmp.ne.s32.totalorder %v10901_v18, 0  ;;  %vm11137_vm14 = vcmp.lt.s32.totalorder %v10901_v18, 0 }
 0x4a5   :  { %v11708_v5 = vadd.f32 %v11707_v7, %v11637_v29  ;;  %v11857_v37 = vadd.f32 %v11856_v58, %v11786_v22  ;;  %vm11209_vm0 = vmand %vm11137_vm14, %vm11065_vm5  ;;  %v11281_v14 = vadd.s32 18, %v10901_v18  ;;  %v10879_v35 = vsub.s32 %v10199_v40, %v10878_v0 }
 0x4a6   :  { %v10910_v9 = vshrl.u32 %v20717_v52, 4  ;;  %12978 = vst [vmem:[%s20880_s2 + $0xf0] sm:$0xff] %v12922_v26   ;;  %v10205_v38 = vadd.s32 528, %v19077_v30  ;;  %v20732_v6 = vmul.u32.u64.low 3817748708, %v10200_v17  ;;  %v20733_v16 = vmul.u32.u64.high 3817748708, %v10200_v17, %v20732_v6 }
 0x4a7   :  { %v11858_v32 = vadd.f32 %v11857_v37, %v11787_v10  ;;  %v11709_v3 = vadd.f32 %v11708_v5, %v11638_v41  ;;  %v11353_v42 = vsel %vm11209_vm0, %v11281_v14, %v10901_v18  ;;  %vm11063_vm11 = vcmp.ne.s32.totalorder %v10879_v35, 0 }
 0x4a8   :  { %vm11135_vm7 = vcmp.lt.s32.totalorder %v10879_v35, 0  ;;  %v11279_v57 = vadd.s32 18, %v10879_v35  ;;  %vm11425_vm12 = vcmp.lt.s32.totalorder %v11353_v42, 16  ;;  %v9438_v4 = vadd.f32 %v20391_v55, %v21382_v19  ;;  %v21389_v42 = vld [vmem:[#allocation53_spill] sm:$0xff] }
 0x4a9   :  { %vm11207_vm15 = vmand %vm11135_vm7, %vm11063_vm11  ;;  %v11859_v51 = vadd.f32 %v11858_v32, %v11788_v53  ;;  %v10911_v25 = vmul.u32 18, %v10910_v9  ;;  %v20739_v29 = vadd.f32 %v20434_v60, %v21383_v61  ;;  %v10888_v39 = vshrl.u32 %v20733_v16, 4 }
 0x4aa   :  { %v11351_v40 = vsel %vm11207_vm15, %v11279_v57, %v10879_v35  ;;  %v20741_v44 = vmul.u32.u64.low 3817748708, %v10205_v38  ;;  %v20742_v43 = vmul.u32.u64.high 3817748708, %v10205_v38, %v20741_v44  ;;  %v20746_v1 = vadd.f32 %v13110_v23, %v20664_v8 }
 0x4ab   :  { %vm11423_vm1 = vcmp.lt.s32.totalorder %v11351_v40, 16  ;;  %v10912_v11 = vsub.s32 %v10202_v21, %v10911_v25  ;;  %v11641_v34 = vsel %vm11425_vm12, %v20684_v27, 0.0  ;;  %v10203_v47 = vadd.s32 512, %v19077_v30 }
 0x4ac   :  { %v11639_v55 = vsel %vm11423_vm1, %v9732_v59, 0.0  ;;  %v20750_v62 = vadd.f32 %v13111_v20, %v9438_v4  ;;  %v10889_v48 = vmul.u32 18, %v10888_v39  ;;  %v10943_v8 = vshrl.u32 %v20742_v43, 4 }
 0x4ad   :  { %v11710_v2 = vadd.f32 %v11709_v3, %v11639_v55  ;;  %v11789_v60 = vmul.f32 %v11639_v55, %v9732_v59  ;;  %vm11066_vm13 = vcmp.ne.s32.totalorder %v10912_v11, 0  ;;  %vm11138_vm9 = vcmp.lt.s32.totalorder %v10912_v11, 0 }
 0x4ae   :  { %vm20752_vm4 = vmand %vm11138_vm9, %vm11066_vm13  ;;  %v11282_v45 = vadd.s32 18, %v10912_v11  ;;  %v12937_v21 = vpack.c.bf16 %v20750_v62, %v20746_v1  ;;  %v20759_v28 = vmul.u32.u64.low 3817748708, %v10203_v47  ;;  %v20760_v46 = vmul.u32.u64.high 3817748708, %v10203_v47, %v20759_v28 }
 0x4af   :  { %v11860_v41 = vadd.f32 %v11859_v51, %v11789_v60  ;;  %v10206_v59 = vadd.s32 536, %v19077_v30  ;;  %v10890_v31 = vsub.s32 %v10200_v17, %v10889_v48  ;;  %v10944_v54 = vmul.u32 18, %v10943_v8 }
 0x4b0   :  { %v11354_v23 = vsel %vm20752_vm4, %v11282_v45, %v10912_v11  ;;  %12981 = vst [vmem:[%s20880_s2 + $0x108] sm:$0xff] %v12937_v21   ;;  %v20769_v56 = vadd.f32 %v9750_v63, %v20621_v50  ;;  %v20772_v52 = vadd.f32 %v9747_v12, %v20589_v24  ;;  %v10204_v18 = vadd.s32 520, %v19077_v30  ;;  %v13114_v24 = vpop.f32.mrf.mxu0  ;;  %v21386_v12 = vld [vmem:[#allocation15_spill] sm:$0xff] }
 0x4b1   :  { %v20774_v7 = vmul.u32.u64.low 3817748708, %v10206_v59  ;;  %v20775_v22 = vmul.u32.u64.high 3817748708, %v10206_v59, %v20774_v7  ;;  %v11791_v0 = vmul.f32 %v11641_v34, %v20684_v27  ;;  %vm11064_vm10 = vcmp.ne.s32.totalorder %v10890_v31, 0 }
 0x4b2   :  { %vm11136_vm6 = vcmp.lt.s32.totalorder %v10890_v31, 0  ;;  %v11280_v10 = vadd.s32 18, %v10890_v31  ;;  %vm11426_vm3 = vcmp.lt.s32.totalorder %v11354_v23, 16  ;;  %v10945_v53 = vsub.s32 %v10205_v38, %v10944_v54  ;;  %v9763_v51 = vpop.f32.mrf.mxu0 }
 0x4b3   :  { %vm11208_vm2 = vmand %vm11136_vm6, %vm11064_vm10  ;;  %v10921_v26 = vshrl.u32 %v20760_v46, 4  ;;  %v12932_v50 = vpack.c.bf16 %v20769_v56, %v20772_v52  ;;  %v20782_v5 = vmul.u32.u64.low 3817748708, %v10204_v18  ;;  %v20783_v37 = vmul.u32.u64.high 3817748708, %v10204_v18, %v20782_v5 }
 0x4b4   :  { %v11352_v17 = vsel %vm11208_vm2, %v11280_v10, %v10890_v31  ;;  %v9451_v14 = vadd.f32 %v20477_v49, %v21386_v12  ;;  %vm11069_vm5 = vcmp.ne.s32.totalorder %v10945_v53, 0  ;;  %vm11141_vm14 = vcmp.lt.s32.totalorder %v10945_v53, 0 }
 0x4b5   :  { %vm11424_vm8 = vcmp.lt.s32.totalorder %v11352_v17, 16  ;;  %v11285_v27 = vadd.s32 18, %v10945_v53  ;;  %12980 = vst [vmem:[%s20880_s2 + $0x100] sm:$0xff] %v12932_v50   ;;  %v11642_v35 = vsel %vm11426_vm3, %v20704_v36, 0.0  ;;  %vm20792_vm0 = vmand %vm11141_vm14, %vm11069_vm5  ;;  %v10922_v32 = vmul.u32 18, %v10921_v26 }
 0x4b6   :  { %v11640_v9 = vsel %vm11424_vm8, %v20709_v15, 0.0  ;;  %v10954_v3 = vshrl.u32 %v20775_v22, 4  ;;  %v9446_v57 = vadd.f32 %v20458_v33, %v21389_v42  ;;  %v10932_v25 = vshrl.u32 %v20783_v37, 4 }
 0x4b7   :  { %v11711_v49 = vadd.f32 %v11710_v2, %v11640_v9  ;;  %v11790_v6 = vmul.f32 %v11640_v9, %v20709_v15  ;;  %v11357_v16 = vsel %vm20792_vm0, %v11285_v27, %v10945_v53  ;;  %v10923_v19 = vsub.s32 %v10203_v47, %v10922_v32  ;;  %v13115_v2 = vpop.f32.mrf.mxu0 }
 0x4b8   :  { %v10955_v4 = vmul.u32 18, %v10954_v3  ;;  %v20804_v20 = vadd.s32 560, %v19077_v30  ;;  %v11792_v40 = vmul.f32 %v11642_v35, %v20704_v36  ;;  %v20807_v43 = vadd.f32 %v13114_v24, %v9451_v14 }
 0x4b9   :  { %v11712_v61 = vadd.f32 %v11711_v49, %v11641_v34  ;;  %v11861_v44 = vadd.f32 %v11860_v41, %v11790_v6  ;;  %vm20809_vm11 = vcmp.lt.s32.totalorder %v11357_v16, 16  ;;  %vm11067_vm7 = vcmp.ne.s32.totalorder %v10923_v19, 0  ;;  %v21394_v41 = vld [vmem:[#allocation54_spill] sm:$0xff]  ;;  %v9766_v54 = vpop.f32.mrf.mxu0 }
 0x4ba   :  { %vm11139_vm12 = vcmp.lt.s32.totalorder %v10923_v19, 0  ;;  %v11283_v33 = vadd.s32 18, %v10923_v19  ;;  %v10956_v55 = vsub.s32 %v10206_v59, %v10955_v4  ;;  %v10933_v47 = vmul.u32 18, %v10932_v25 }
 0x4bb   :  { %v11862_v11 = vadd.f32 %v11861_v44, %v11791_v0  ;;  %vm11211_vm15 = vmand %vm11139_vm12, %vm11067_vm7  ;;  %v11713_v39 = vadd.f32 %v11712_v61, %v11642_v35  ;;  %v20814_v36 = vmul.u32.u64.low 3817748708, %v20804_v20  ;;  %v20815_v34 = vmul.u32.u64.high 3817748708, %v20804_v20, %v20814_v36 }
 0x4bc   :  { %v11355_v60 = vsel %vm11211_vm15, %v11283_v33, %v10923_v19  ;;  %v10207_v63 = vadd.s32 544, %v19077_v30  ;;  %vm11070_vm13 = vcmp.ne.s32.totalorder %v10956_v55, 0  ;;  %vm11142_vm9 = vcmp.lt.s32.totalorder %v10956_v55, 0 }
 0x4bd   :  { %vm11427_vm1 = vcmp.lt.s32.totalorder %v11355_v60, 16  ;;  %v11863_v58 = vadd.f32 %v11862_v11, %v11792_v40  ;;  %vm20819_vm4 = vmand %vm11142_vm9, %vm11070_vm13  ;;  %v11286_v8 = vadd.s32 18, %v10956_v55  ;;  %v10934_v21 = vsub.s32 %v10204_v18, %v10933_v47 }
 0x4be   :  { %v11643_v45 = vsel %vm11427_vm1, %v20772_v52, 0.0  ;;  %v9454_v28 = vadd.f32 %v20492_v13, %v21394_v41  ;;  %v20826_v23 = vmul.u32.u64.low 3817748708, %v10207_v63  ;;  %v20827_v31 = vmul.u32.u64.high 3817748708, %v10207_v63, %v20826_v23 }
 0x4bf   :  { %v11714_v46 = vadd.f32 %v11713_v39, %v11643_v45  ;;  %v11793_v59 = vmul.f32 %v11643_v45, %v20772_v52  ;;  %v11358_v7 = vsel %vm20819_vm4, %v11286_v8, %v10956_v55  ;;  %vm11068_vm10 = vcmp.ne.s32.totalorder %v10934_v21, 0 }
 0x4c0   :  { %vm11140_vm6 = vcmp.lt.s32.totalorder %v10934_v21, 0  ;;  %v11284_v22 = vadd.s32 18, %v10934_v21  ;;  %v11645_v18 = vsel %vm20809_vm11, %v20746_v1, 0.0  ;;  %v10987_v13 = vshrl.u32 %v20815_v34, 4 }
 0x4c1   :  { %v11864_v0 = vadd.f32 %v11863_v58, %v11793_v59  ;;  %vm11212_vm3 = vmand %vm11140_vm6, %vm11068_vm10  ;;  %v20835_v10 = vadd.f32 %v13115_v2, %v9454_v28  ;;  %vm11430_vm2 = vcmp.lt.s32.totalorder %v11358_v7, 16  ;;  %v10210_v53 = vadd.s32 568, %v19077_v30 }
 0x4c2   :  { %v11356_v52 = vsel %vm11212_vm3, %v11284_v22, %v10934_v21  ;;  %v20838_v26 = vadd.f32 %v9766_v54, %v9446_v57  ;;  %v10988_v50 = vmul.u32 18, %v10987_v13  ;;  %v9764_v24 = vadd.f32 %v9763_v51, %v20739_v29 }
 0x4c3   :  { %vm11428_vm8 = vcmp.lt.s32.totalorder %v11356_v52, 16  ;;  %v10965_v17 = vshrl.u32 %v20827_v31, 4  ;;  %v12947_v37 = vpack.c.bf16 %v20835_v10, %v20807_v43  ;;  %v11646_v27 = vsel %vm11430_vm2, %v20750_v62, 0.0 }
 0x4c4   :  { %v11644_v5 = vsel %vm11428_vm8, %v20769_v56, 0.0  ;;  %v20845_v12 = vmul.u32.u64.low 3817748708, %v10210_v53  ;;  %v20846_v14 = vmul.u32.u64.high 3817748708, %v10210_v53, %v20845_v12  ;;  %v12942_v29 = vpack.c.bf16 %v20838_v26, %v9764_v24 }
 0x4c5   :  { %v11715_v35 = vadd.f32 %v11714_v46, %v11644_v5  ;;  %v11794_v9 = vmul.f32 %v11644_v5, %v20769_v56  ;;  %v10966_v38 = vmul.u32 18, %v10965_v17  ;;  %12983 = vst [vmem:[%s20880_s2 + $0x118] sm:$0xff] %v12947_v37   ;;  %v10208_v32 = vadd.s32 552, %v19077_v30 }
 0x4c6   :  { %v11795_v3 = vmul.f32 %v11645_v18, %v20746_v1  ;;  %v11796_v16 = vmul.f32 %v11646_v27, %v20750_v62  ;;  %v10989_v42 = vsub.s32 %v20804_v20, %v10988_v50  ;;  %v10998_v56 = vshrl.u32 %v20846_v14, 4  ;;  %12982 = vst [vmem:[%s20880_s2 + $0x110] sm:$0xff] %v12942_v29  }
 0x4c7   :  { %v11716_v49 = vadd.f32 %v11715_v35, %v11645_v18  ;;  %v11865_v6 = vadd.f32 %v11864_v0, %v11794_v9  ;;  %v10967_v57 = vsub.s32 %v10207_v63, %v10966_v38 }
 0x4c8   :  { %v20862_v4 = vmul.u32.u64.low 3817748708, %v10208_v32  ;;  %v20863_v25 = vmul.u32.u64.high 3817748708, %v10208_v32, %v20862_v4  ;;  %v10999_v62 = vmul.u32 18, %v10998_v56  ;;  %vm11073_vm11 = vcmp.ne.s32.totalorder %v10989_v42, 0 }
 0x4c9   :  { %v11866_v51 = vadd.f32 %v11865_v6, %v11795_v3  ;;  %v11717_v19 = vadd.f32 %v11716_v49, %v11646_v27  ;;  %vm11071_vm5 = vcmp.ne.s32.totalorder %v10967_v57, 0  ;;  %vm11143_vm14 = vcmp.lt.s32.totalorder %v10967_v57, 0 }
 0x4ca   :  { %v11287_v30 = vadd.s32 18, %v10967_v57  ;;  %vm11215_vm0 = vmand %vm11143_vm14, %vm11071_vm5  ;;  %vm11145_vm7 = vcmp.lt.s32.totalorder %v10989_v42, 0  ;;  %v11000_v40 = vsub.s32 %v10210_v53, %v10999_v62  ;;  %v10976_v61 = vshrl.u32 %v20863_v25, 4 }
 0x4cb   :  { %v11867_v1 = vadd.f32 %v11866_v51, %v11796_v16  ;;  %v11289_v44 = vadd.s32 18, %v10989_v42  ;;  %vm11217_vm15 = vmand %vm11145_vm7, %vm11073_vm11 }
 0x4cc   :  { %v11359_v20 = vsel %vm11215_vm0, %v11287_v30, %v10967_v57  ;;  %vm11074_vm1 = vcmp.ne.s32.totalorder %v11000_v40, 0  ;;  %vm11146_vm13 = vcmp.lt.s32.totalorder %v11000_v40, 0  ;;  %v11290_v39 = vadd.s32 18, %v11000_v40 }
 0x4cd   :  { %vm11431_vm12 = vcmp.lt.s32.totalorder %v11359_v20, 16  ;;  %v10977_v55 = vmul.u32 18, %v10976_v61  ;;  %vm11218_vm9 = vmand %vm11146_vm13, %vm11074_vm1  ;;  %v11361_v2 = vsel %vm11217_vm15, %v11289_v44, %v10989_v42 }
 0x4ce   :  { %v11647_v15 = vsel %vm11431_vm12, %v9764_v24, 0.0  ;;  %v11362_v36 = vsel %vm11218_vm9, %v11290_v39, %v11000_v40  ;;  %vm11433_vm6 = vcmp.lt.s32.totalorder %v11361_v2, 16 }
 0x4cf   :  { %v11718_v33 = vadd.f32 %v11717_v19, %v11647_v15  ;;  %v11797_v11 = vmul.f32 %v11647_v15, %v9764_v24  ;;  %v10978_v60 = vsub.s32 %v10208_v32, %v10977_v55  ;;  %vm11434_vm2 = vcmp.lt.s32.totalorder %v11362_v36, 16 }
 0x4d0   :  { %v11649_v58 = vsel %vm11433_vm6, %v20807_v43, 0.0  ;;  %v11650_v21 = vsel %vm11434_vm2, %v20835_v10, 0.0 }
 0x4d1   :  { %v11868_v47 = vadd.f32 %v11867_v1, %v11797_v11  ;;  %vm11072_vm4 = vcmp.ne.s32.totalorder %v10978_v60, 0  ;;  %vm11144_vm10 = vcmp.lt.s32.totalorder %v10978_v60, 0  ;;  %v11288_v34 = vadd.s32 18, %v10978_v60 }
 0x4d2   :  { %vm11216_vm3 = vmand %vm11144_vm10, %vm11072_vm4  ;;  %v11799_v41 = vmul.f32 %v11649_v58, %v20807_v43  ;;  %v11800_v59 = vmul.f32 %v11650_v21, %v20835_v10 }
 0x4d3   :  { %v11360_v63 = vsel %vm11216_vm3, %v11288_v34, %v10978_v60 }
 0x4d4   :  { %vm11432_vm8 = vcmp.lt.s32.totalorder %v11360_v63, 16 }
 0x4d5   :  { %v11648_v45 = vsel %vm11432_vm8, %v20838_v26, 0.0 }
 0x4d6   :  { %v11719_v48 = vadd.f32 %v11718_v33, %v11648_v45  ;;  %v11798_v8 = vmul.f32 %v11648_v45, %v20838_v26 }
 0x4d8   :  { %v11720_v28 = vadd.f32 %v11719_v48, %v11649_v58  ;;  %v11869_v46 = vadd.f32 %v11868_v47, %v11798_v8 }
 0x4da   :  { %v11721_v23 = vadd.f32 %v11720_v28, %v11650_v21  ;;  %v11870_v31 = vadd.f32 %v11869_v46, %v11799_v41 }
 0x4dc   :  { %v11722_v54 = vrot.slane %v11721_v23, 4  ;;  %v11871_v7 = vadd.f32 %v11870_v31, %v11800_v59 }
 0x4de   :  { %v11723_v22 = vadd.f32 %v11722_v54, %v11721_v23  ;;  %v11872_v18 = vrot.slane %v11871_v7, 4 }
 0x4e0   :  { %v11724_v0 = vrot.slane %v11723_v22, 2  ;;  %v11873_v13 = vadd.f32 %v11872_v18, %v11871_v7 }
 0x4e2   :  { %v11725_v52 = vadd.f32 %v11724_v0, %v11723_v22  ;;  %v11874_v53 = vrot.slane %v11873_v13, 2 }
 0x4e4   :  { %v11726_v50 = vrot.slane %v11725_v52, 1  ;;  %v11875_v26 = vadd.f32 %v11874_v53, %v11873_v13 }
 0x4e6   :  { %v11727_v24 = vadd.f32 %v11726_v50, %v11725_v52  ;;  %v11876_v17 = vrot.slane %v11875_v26, 1 }
 0x4e8   :  { %11728 = vst [vmem:[%s20881_s3] sm:$0x1] %v11727_v24  ;;  %v11877_v43 = vadd.f32 %v11876_v17, %v11875_v26 }
 0x4ea   :  { %11878 = vst [vmem:[%s20881_s3 + $0x1] sm:$0x1] %v11877_v43 }

</bundles_post_ra>
